<compile_context>
chip_gen: v6e
topology: v6e:2x2x1
jax: 0.10.0
libtpu: 0.0.40
codegen_flags: <defaults>
</compile_context>

<pallas_src>
import functools

import jax
import jax.numpy as jnp
from jax import lax
from jax.experimental import pallas as pl
from jax.experimental.pallas import tpu as pltpu


def _dmcnn_kernel(x_ref, pos_ref, len_ref, w_ref, b_ref, o_ref, *,
                  L, H_pad, n_ws, tap_offsets):
    """One batch-block: tap-accumulated conv + dynamic max pooling.

    x_ref   : (B_blk*L, D)           flattened (example-major) rows, compute dtype
    pos_ref : (B_blk, 1)  int32      trigger position per example
    len_ref : (B_blk, 1)  int32      valid length per example
    w_ref   : (n_taps, D, n_ws*H_pad) packed weights (zero cols for unused taps)
    b_ref   : (1, n_ws*H_pad) f32    packed bias
    o_ref   : (B_blk, 2*n_ws*H_pad)  [left_ws0 | right_ws0 | left_ws1 | ...]
    """
    x = x_ref[...]                                   # (M, D)
    M, _ = x.shape
    b_blk = M // L
    N_pad = n_ws * H_pad
    cdt = w_ref.dtype

    # Upcast once for the sublane rolls (f32 rolls are always supported);
    # masked taps are cast back to the compute dtype for the MXU feed.
    xf = x.astype(jnp.float32)

    # Within-example row index of every flattened row (rows are example-major).
    l_idx = lax.broadcasted_iota(jnp.int32, (M, 1), 0) % L

    # Conv via per-tap accumulated matmuls (no lane-unaligned im2col concat).
    # Rows whose tap source falls outside [0, L) (sequence edge / example
    # boundary in the flattened layout) are zeroed == zero "same" padding.
    acc = jnp.zeros((M, N_pad), jnp.float32)
    for k, d in enumerate(tap_offsets):
        shifted = xf if d == 0 else pltpu.roll(xf, shift=(-d) % M, axis=0)
        src = l_idx + d
        tap_ok = (src >= 0) & (src < L)
        xt = jnp.where(tap_ok, shifted, 0.0).astype(cdt)
        acc = acc + jnp.dot(xt, w_ref[k], preferred_element_type=jnp.float32)

    conv = acc.reshape(b_blk, L, N_pad)

    # Dynamic multi-pooling masks at (b_blk, L, 1) granularity (no per-row
    # replicated pos/len inputs).
    pos = pos_ref[...].reshape(b_blk, 1, 1)
    seq_len = len_ref[...].reshape(b_blk, 1, 1)
    li = lax.broadcasted_iota(jnp.int32, (b_blk, L, 1), 1)
    valid = li < seq_len
    left_m = valid & (li <= pos)
    right_m = valid & (li > pos)

    neg = jnp.float32(-1e30)
    bias = b_ref[...]                                # (1, N_pad) f32
    # Bias added after the max (a per-channel constant commutes with max over
    # rows).  Empty segments: -1e30 + b == -1e30 exactly in f32.
    left = jnp.max(jnp.where(left_m, conv, neg), axis=1) + bias    # (b_blk, N_pad)
    right = jnp.max(jnp.where(right_m, conv, neg), axis=1) + bias  # (b_blk, N_pad)

    if n_ws == 1:
        o_ref[...] = jnp.concatenate([left, right], axis=-1)
    else:
        chunks = []
        for i in range(n_ws):           # lane-aligned (H_pad-wide) slices
            chunks.append(left[:, i * H_pad:(i + 1) * H_pad])
            chunks.append(right[:, i * H_pad:(i + 1) * H_pad])
        o_ref[...] = jnp.concatenate(chunks, axis=-1)


def dmcnn_feature_extractor(x, position, lengths, weights, biases, window_sizes,
                            hidden_size, *, batch_block=64,
                            compute_dtype=jnp.bfloat16):
    """x: [B, L, D] f32; position/lengths: [B] int32.

    weights[i]: (ws_i, D, H) tap-major (PyTorch Conv1d weight (H, D, ws)
    transposed to (ws, D, H)); biases[i]: (1, H).
    Returns [B, 2*H*len(window_sizes)] f32, ordered [left|right] per ws.
    """
    B, L, D = x.shape
    H = hidden_size
    n_ws = len(window_sizes)
    H_pad = ((H + 127) // 128) * 128
    N_pad = n_ws * H_pad

    # Batch-block sizing: large enough that M = bb*L fills the MXU and
    # amortizes per-step pipeline overhead, but keep >= 2 grid blocks when B
    # allows so both v7x TensorCores get work.
    bb = max(8, int(batch_block))
    while bb > 16 and pl.cdiv(B, bb) < 2:
        bb //= 2
    bb = max(8, (bb // 8) * 8)

    B_pad = pl.cdiv(B, bb) * bb
    if B_pad != B:
        x = jnp.pad(x, ((0, B_pad - B), (0, 0), (0, 0)))
        position = jnp.pad(position, (0, B_pad - B))
        lengths = jnp.pad(lengths, (0, B_pad - B))

    x_flat = x.reshape(B_pad * L, D).astype(compute_dtype)
    pos_col = position.astype(jnp.int32).reshape(B_pad, 1)
    len_col = lengths.astype(jnp.int32).reshape(B_pad, 1)

    # Pack all window sizes into a single (n_taps, D, n_ws*H_pad) weight slab
    # (zero columns for taps a smaller window does not use) and one bias row.
    d_min = -max((ws - 1) // 2 for ws in window_sizes)
    d_max = max(ws // 2 for ws in window_sizes)
    tap_offsets = tuple(range(d_min, d_max + 1))
    n_taps = len(tap_offsets)

    w_pack = jnp.zeros((n_taps, D, N_pad), jnp.float32)
    b_pack = jnp.zeros((1, N_pad), jnp.float32)
    for i, (ws, W, bvec) in enumerate(zip(window_sizes, weights, biases)):
        pad_l = (ws - 1) // 2
        for k in range(ws):
            t = (k - pad_l) - d_min
            w_pack = w_pack.at[t, :, i * H_pad:i * H_pad + H].set(W[k])
        b_pack = b_pack.at[0, i * H_pad:i * H_pad + H].set(bvec.reshape(H))
    w_pack = w_pack.astype(compute_dtype)

    m_blk = bb * L
    grid = (B_pad // bb,)

    kernel = functools.partial(_dmcnn_kernel, L=L, H_pad=H_pad, n_ws=n_ws,
                               tap_offsets=tap_offsets)

    out_pad = pl.pallas_call(
        kernel,
        out_shape=jax.ShapeDtypeStruct((B_pad, 2 * N_pad), jnp.float32),
        grid=grid,
        in_specs=[
            pl.BlockSpec((m_blk, D), lambda i: (i, 0)),
            pl.BlockSpec((bb, 1), lambda i: (i, 0)),
            pl.BlockSpec((bb, 1), lambda i: (i, 0)),
            pl.BlockSpec((n_taps, D, N_pad), lambda i: (0, 0, 0)),
            pl.BlockSpec((1, N_pad), lambda i: (0, 0)),
        ],
        out_specs=pl.BlockSpec((bb, 2 * N_pad), lambda i: (i, 0)),
        compiler_params=pltpu.CompilerParams(
            dimension_semantics=("parallel",)),
    )(x_flat, pos_col, len_col, w_pack, b_pack)

    if B_pad == B and H_pad == H:
        return out_pad                       # layout already matches the module

    # Drop the H / batch padding; keep [left|right] per window-size ordering.
    pieces = []
    for i in range(n_ws):
        base = i * 2 * H_pad
        pieces.append(out_pad[:B, base:base + H])
        pieces.append(out_pad[:B, base + H_pad:base + H_pad + H])
    return jnp.concatenate(pieces, axis=-1)


def dmcnn_reference(x, position, lengths, weights, biases, window_sizes, H):
    """Pure-JAX reference for correctness checking (f32)."""
    B, L, D = x.shape
    outs = []
    for ws, W, bvec in zip(window_sizes, weights, biases):
        pad_l = (ws - 1) // 2
        pad_r = (ws - 1) - pad_l
        x_pad = jnp.pad(x, ((0, 0), (pad_l, pad_r), (0, 0)))
        conv = jnp.zeros((B, L, H), jnp.float32)
        for k in range(ws):
            conv = conv + jnp.einsum("bld,dh->blh", x_pad[:, k:k + L, :], W[k])
        conv = conv + bvec[0]
        idx = jnp.arange(L)[None, :, None]
        valid = idx < lengths[:, None, None]
        left = jnp.where(valid & (idx <= position[:, None, None]), conv, -1e30)
        right = jnp.where(valid & (idx > position[:, None, None]), conv, -1e30)
        outs.append(jnp.concatenate([left.max(1), right.max(1)], axis=-1))
    return jnp.concatenate(outs, axis=-1)


if __name__ == "__main__":
    # Small shapes consistent with the module's forward; B large enough to
    # exercise the multi-block (batch-parallel) grid.
    B, L, D, H = 256, 8, 32, 64
    window_sizes = [3]  # cnn_size default

    key = jax.random.PRNGKey(0)
    kx, kl, kp, kw, kb = jax.random.split(key, 5)

    x = jax.random.normal(kx, (B, L, D), dtype=jnp.float32)
    lengths = jax.random.randint(kl, (B,), 2, L + 1).astype(jnp.int32)
    position = jax.random.randint(kp, (B,), 0, lengths).astype(jnp.int32)

    # PyTorch Conv1d weight is (H, D, ws); store tap-major as (ws, D, H).
    weights, biases = [], []
    kws = jax.random.split(kw, len(window_sizes))
    kbs = jax.random.split(kb, len(window_sizes))
    for i, ws in enumerate(window_sizes):
        w_torch = 0.1 * jax.random.normal(kws[i], (H, D, ws), dtype=jnp.float32)
        weights.append(jnp.transpose(w_torch, (2, 1, 0)))  # (ws, D, H)
        biases.append(0.1 * jax.random.normal(kbs[i], (1, H), dtype=jnp.float32))

    ref = dmcnn_reference(x, position, lengths, weights, biases, window_sizes, H)

    # 1) f32 path — tight correctness check.
    out_f32 = dmcnn_feature_extractor(x, position, lengths, weights, biases,
                                      window_sizes, H, batch_block=64,
                                      compute_dtype=jnp.float32)
    out_f32 = jax.block_until_ready(out_f32)
    assert out_f32.shape == (B, 2 * H * len(window_sizes)), out_f32.shape
    err_f32 = float(jnp.max(jnp.abs(out_f32 - ref)))
    assert jnp.allclose(out_f32, ref, atol=1e-4, rtol=1e-4), err_f32

    # 2) bf16 MXU-feed path (default) — loosened tolerance for bf16 rounding.
    out_bf16 = dmcnn_feature_extractor(x, position, lengths, weights, biases,
                                       window_sizes, H, batch_block=64,
                                       compute_dtype=jnp.bfloat16)
    out_bf16 = jax.block_until_ready(out_bf16)
    assert out_bf16.shape == (B, 2 * H * len(window_sizes)), out_bf16.shape
    err_bf16 = float(jnp.max(jnp.abs(out_bf16 - ref)))
    assert err_bf16 < 8e-2, err_bf16

    print("KERNEL_OK")
</pallas_src>

<mosaic_0001>
module attributes {stable_mosaic.version = 11 : i64} {
  func.func @_dmcnn_kernel(%arg0: i32, %arg1: memref<512x32xf32, #tpu.memory_space<vmem>>, %arg2: memref<64x1xi32, #tpu.memory_space<vmem>>, %arg3: memref<64x1xi32, #tpu.memory_space<vmem>>, %arg4: memref<3x32x128xf32, #tpu.memory_space<vmem>>, %arg5: memref<1x128xf32, #tpu.memory_space<vmem>>, %arg6: memref<64x256xf32, #tpu.memory_space<vmem>>) attributes {dimension_semantics = [#tpu.dimension_semantics<parallel>], iteration_bounds = array<i64: 4>, scalar_prefetch = 0 : i64, scratch_operands = 0 : i64, tpu.core_type = #tpu.core_type<tc>, window_params = [{transform_indices = @transform_0, window_bounds = array<i64: 512, 32>}, {transform_indices = @transform_1, window_bounds = array<i64: 64, 1>}, {transform_indices = @transform_2, window_bounds = array<i64: 64, 1>}, {pipeline_mode = #tpu.pipeline_mode<synchronous>, transform_indices = @transform_3, window_bounds = array<i64: 3, 32, 128>}, {pipeline_mode = #tpu.pipeline_mode<synchronous>, transform_indices = @transform_4, window_bounds = array<i64: 1, 128>}, {transform_indices = @transform_5, window_bounds = array<i64: 64, 256>}]} {
    %c0 = arith.constant 0 : index
    %c0_0 = arith.constant 0 : index
    %0 = vector.load %arg1[%c0, %c0_0] : memref<512x32xf32, #tpu.memory_space<vmem>>, vector<512x32xf32>
    %1 = tpu.iota {dimensions = array<i32: 0>} : vector<512x1xi32>
    %c8_i32 = arith.constant 8 : i32
    %c0_i32 = arith.constant 0 : i32
    %2 = arith.cmpi eq, %c8_i32, %c0_i32 : i32
    %c1_i32 = arith.constant 1 : i32
    %3 = arith.select %2, %c1_i32, %c8_i32 : i32
    %4 = vector.broadcast %3 : i32 to vector<512x1xi32>
    %5 = arith.remsi %1, %4 : vector<512x1xi32>
    %c0_i32_1 = arith.constant 0 : i32
    %6 = vector.broadcast %c0_i32_1 : i32 to vector<512x1xi32>
    %7 = arith.cmpi ne, %5, %6 : vector<512x1xi32>
    %c0_i32_2 = arith.constant 0 : i32
    %8 = vector.broadcast %c0_i32_2 : i32 to vector<512x1xi32>
    %9 = arith.cmpi slt, %5, %8 : vector<512x1xi32>
    %c0_i32_3 = arith.constant 0 : i32
    %10 = arith.cmpi slt, %3, %c0_i32_3 : i32
    %11 = vector.broadcast %10 : i1 to vector<512x1xi1>
    %12 = vector.broadcast %11 : vector<512x1xi1> to vector<512x1xi1>
    %13 = arith.xori %9, %12 : vector<512x1xi1>
    %14 = arith.andi %13, %7 : vector<512x1xi1>
    %15 = vector.broadcast %3 : i32 to vector<512x1xi32>
    %16 = arith.addi %5, %15 : vector<512x1xi32>
    %17 = arith.select %14, %16, %5 : vector<512x1xi1>, vector<512x1xi32>
    %cst = arith.constant 0.000000e+00 : f32
    %18 = vector.broadcast %cst : f32 to vector<512x128xf32>
    %c1_i32_4 = arith.constant 1 : i32
    %19 = tpu.dynamic_rotate %0 by %c1_i32_4 dim 0 : vector<512x32xf32>, i32 -> vector<512x32xf32>
    %c-1_i32 = arith.constant -1 : i32
    %20 = vector.broadcast %c-1_i32 : i32 to vector<512x1xi32>
    %21 = arith.addi %17, %20 : vector<512x1xi32>
    %c0_i32_5 = arith.constant 0 : i32
    %22 = vector.broadcast %c0_i32_5 : i32 to vector<512x1xi32>
    %23 = arith.cmpi sge, %21, %22 : vector<512x1xi32>
    %c8_i32_6 = arith.constant 8 : i32
    %24 = vector.broadcast %c8_i32_6 : i32 to vector<512x1xi32>
    %25 = arith.cmpi slt, %21, %24 : vector<512x1xi32>
    %26 = arith.andi %23, %25 : vector<512x1xi1>
    %cst_7 = arith.constant 0.000000e+00 : f32
    %27 = vector.shape_cast %26 : vector<512x1xi1> to vector<512x1xi1>
    %28 = vector.broadcast %27 : vector<512x1xi1> to vector<512x32xi1>
    %29 = vector.broadcast %cst_7 : f32 to vector<512x32xf32>
    %30 = arith.select %28, %19, %29 : vector<512x32xi1>, vector<512x32xf32>
    %c0_8 = arith.constant 0 : index
    %c0_9 = arith.constant 0 : index
    %c0_10 = arith.constant 0 : index
    %31 = vector.load %arg4[%c0_8, %c0_9, %c0_10] : memref<3x32x128xf32, #tpu.memory_space<vmem>>, vector<1x32x128xf32>
    %32 = vector.shape_cast %31 : vector<1x32x128xf32> to vector<32x128xf32>
    %cst_11 = arith.constant dense<0.000000e+00> : vector<512x128xf32>
    %33 = tpu.matmul %30, %32, %cst_11 {dimension_numbers = #tpu.dot_dimension_numbers<[1], [0], [0], [1], [0, 0, 1, 1], [], []>} : vector<512x32xf32>, vector<32x128xf32>, vector<512x128xf32> -> vector<512x128xf32>
    %34 = arith.addf %18, %33 : vector<512x128xf32>
    %c0_i32_12 = arith.constant 0 : i32
    %35 = vector.broadcast %c0_i32_12 : i32 to vector<512x1xi32>
    %36 = arith.addi %17, %35 : vector<512x1xi32>
    %c0_i32_13 = arith.constant 0 : i32
    %37 = vector.broadcast %c0_i32_13 : i32 to vector<512x1xi32>
    %38 = arith.cmpi sge, %36, %37 : vector<512x1xi32>
    %c8_i32_14 = arith.constant 8 : i32
    %39 = vector.broadcast %c8_i32_14 : i32 to vector<512x1xi32>
    %40 = arith.cmpi slt, %36, %39 : vector<512x1xi32>
    %41 = arith.andi %38, %40 : vector<512x1xi1>
    %cst_15 = arith.constant 0.000000e+00 : f32
    %42 = vector.shape_cast %41 : vector<512x1xi1> to vector<512x1xi1>
    %43 = vector.broadcast %42 : vector<512x1xi1> to vector<512x32xi1>
    %44 = vector.broadcast %cst_15 : f32 to vector<512x32xf32>
    %45 = arith.select %43, %0, %44 : vector<512x32xi1>, vector<512x32xf32>
    %c1 = arith.constant 1 : index
    %c0_16 = arith.constant 0 : index
    %c0_17 = arith.constant 0 : index
    %46 = vector.load %arg4[%c1, %c0_16, %c0_17] : memref<3x32x128xf32, #tpu.memory_space<vmem>>, vector<1x32x128xf32>
    %47 = vector.shape_cast %46 : vector<1x32x128xf32> to vector<32x128xf32>
    %cst_18 = arith.constant dense<0.000000e+00> : vector<512x128xf32>
    %48 = tpu.matmul %45, %47, %cst_18 {dimension_numbers = #tpu.dot_dimension_numbers<[1], [0], [0], [1], [0, 0, 1, 1], [], []>} : vector<512x32xf32>, vector<32x128xf32>, vector<512x128xf32> -> vector<512x128xf32>
    %49 = arith.addf %34, %48 : vector<512x128xf32>
    %c511_i32 = arith.constant 511 : i32
    %50 = tpu.dynamic_rotate %0 by %c511_i32 dim 0 : vector<512x32xf32>, i32 -> vector<512x32xf32>
    %c1_i32_19 = arith.constant 1 : i32
    %51 = vector.broadcast %c1_i32_19 : i32 to vector<512x1xi32>
    %52 = arith.addi %17, %51 : vector<512x1xi32>
    %c0_i32_20 = arith.constant 0 : i32
    %53 = vector.broadcast %c0_i32_20 : i32 to vector<512x1xi32>
    %54 = arith.cmpi sge, %52, %53 : vector<512x1xi32>
    %c8_i32_21 = arith.constant 8 : i32
    %55 = vector.broadcast %c8_i32_21 : i32 to vector<512x1xi32>
    %56 = arith.cmpi slt, %52, %55 : vector<512x1xi32>
    %57 = arith.andi %54, %56 : vector<512x1xi1>
    %cst_22 = arith.constant 0.000000e+00 : f32
    %58 = vector.shape_cast %57 : vector<512x1xi1> to vector<512x1xi1>
    %59 = vector.broadcast %58 : vector<512x1xi1> to vector<512x32xi1>
    %60 = vector.broadcast %cst_22 : f32 to vector<512x32xf32>
    %61 = arith.select %59, %50, %60 : vector<512x32xi1>, vector<512x32xf32>
    %c2 = arith.constant 2 : index
    %c0_23 = arith.constant 0 : index
    %c0_24 = arith.constant 0 : index
    %62 = vector.load %arg4[%c2, %c0_23, %c0_24] : memref<3x32x128xf32, #tpu.memory_space<vmem>>, vector<1x32x128xf32>
    %63 = vector.shape_cast %62 : vector<1x32x128xf32> to vector<32x128xf32>
    %cst_25 = arith.constant dense<0.000000e+00> : vector<512x128xf32>
    %64 = tpu.matmul %61, %63, %cst_25 {dimension_numbers = #tpu.dot_dimension_numbers<[1], [0], [0], [1], [0, 0, 1, 1], [], []>} : vector<512x32xf32>, vector<32x128xf32>, vector<512x128xf32> -> vector<512x128xf32>
    %65 = arith.addf %49, %64 : vector<512x128xf32>
    %66 = vector.shape_cast %65 : vector<512x128xf32> to vector<64x8x128xf32>
    %c0_26 = arith.constant 0 : index
    %c0_27 = arith.constant 0 : index
    %67 = vector.load %arg2[%c0_26, %c0_27] : memref<64x1xi32, #tpu.memory_space<vmem>>, vector<64x1xi32>
    %68 = vector.shape_cast %67 : vector<64x1xi32> to vector<64x1x1xi32>
    %c0_28 = arith.constant 0 : index
    %c0_29 = arith.constant 0 : index
    %69 = vector.load %arg3[%c0_28, %c0_29] : memref<64x1xi32, #tpu.memory_space<vmem>>, vector<64x1xi32>
    %70 = vector.shape_cast %69 : vector<64x1xi32> to vector<64x1x1xi32>
    %71 = tpu.iota {dimensions = array<i32: 1>} : vector<64x8x1xi32>
    %72 = vector.broadcast %70 : vector<64x1x1xi32> to vector<64x8x1xi32>
    %73 = arith.cmpi slt, %71, %72 : vector<64x8x1xi32>
    %74 = vector.broadcast %68 : vector<64x1x1xi32> to vector<64x8x1xi32>
    %75 = arith.cmpi sle, %71, %74 : vector<64x8x1xi32>
    %76 = arith.andi %73, %75 : vector<64x8x1xi1>
    %77 = vector.broadcast %68 : vector<64x1x1xi32> to vector<64x8x1xi32>
    %78 = arith.cmpi sgt, %71, %77 : vector<64x8x1xi32>
    %79 = arith.andi %73, %78 : vector<64x8x1xi1>
    %c0_30 = arith.constant 0 : index
    %c0_31 = arith.constant 0 : index
    %80 = vector.load %arg5[%c0_30, %c0_31] : memref<1x128xf32, #tpu.memory_space<vmem>>, vector<1x128xf32>
    %cst_32 = arith.constant -1.000000e+30 : f32
    %81 = vector.shape_cast %76 : vector<64x8x1xi1> to vector<64x8x1xi1>
    %82 = vector.broadcast %81 : vector<64x8x1xi1> to vector<64x8x128xi1>
    %83 = vector.broadcast %cst_32 : f32 to vector<64x8x128xf32>
    %84 = arith.select %82, %66, %83 : vector<64x8x128xi1>, vector<64x8x128xf32>
    %cst_33 = arith.constant dense<0xFF800000> : vector<64x128xf32>
    %85 = vector.multi_reduction <maximumf>, %84, %cst_33 [1] : vector<64x8x128xf32> to vector<64x128xf32>
    %86 = vector.broadcast %80 : vector<1x128xf32> to vector<64x128xf32>
    %87 = arith.addf %85, %86 : vector<64x128xf32>
    %cst_34 = arith.constant -1.000000e+30 : f32
    %88 = vector.shape_cast %79 : vector<64x8x1xi1> to vector<64x8x1xi1>
    %89 = vector.broadcast %88 : vector<64x8x1xi1> to vector<64x8x128xi1>
    %90 = vector.broadcast %cst_34 : f32 to vector<64x8x128xf32>
    %91 = arith.select %89, %66, %90 : vector<64x8x128xi1>, vector<64x8x128xf32>
    %cst_35 = arith.constant dense<0xFF800000> : vector<64x128xf32>
    %92 = vector.multi_reduction <maximumf>, %91, %cst_35 [1] : vector<64x8x128xf32> to vector<64x128xf32>
    %93 = vector.broadcast %80 : vector<1x128xf32> to vector<64x128xf32>
    %94 = arith.addf %92, %93 : vector<64x128xf32>
    %95 = tpu.concatenate %87, %94 in 1 : vector<64x128xf32>, vector<64x128xf32> -> vector<64x256xf32>
    %c0_36 = arith.constant 0 : index
    %c0_37 = arith.constant 0 : index
    %96 = vector.load %arg6[%c0_36, %c0_37] : memref<64x256xf32, #tpu.memory_space<vmem>>, vector<64x256xf32>
    tpu.vector_store %arg6[%c0_36, %c0_37], %95 {strides = array<i32>} : memref<64x256xf32, #tpu.memory_space<vmem>>, vector<64x256xf32>,
    return
  }
  func.func @transform_0(%arg0: i32) -> (i32, i32) {
    %c0_i32 = arith.constant 0 : i32
    %c0_i32_0 = arith.constant 0 : i32
    return %arg0, %c0_i32 : i32, i32
  }
  func.func @transform_1(%arg0: i32) -> (i32, i32) {
    %c0_i32 = arith.constant 0 : i32
    %c0_i32_0 = arith.constant 0 : i32
    return %arg0, %c0_i32 : i32, i32
  }
  func.func @transform_2(%arg0: i32) -> (i32, i32) {
    %c0_i32 = arith.constant 0 : i32
    %c0_i32_0 = arith.constant 0 : i32
    return %arg0, %c0_i32 : i32, i32
  }
  func.func @transform_3(%arg0: i32) -> (i32, i32, i32) {
    %c0_i32 = arith.constant 0 : i32
    %c0_i32_0 = arith.constant 0 : i32
    %c0_i32_1 = arith.constant 0 : i32
    %c0_i32_2 = arith.constant 0 : i32
    return %c0_i32, %c0_i32_0, %c0_i32_1 : i32, i32, i32
  }
  func.func @transform_4(%arg0: i32) -> (i32, i32) {
    %c0_i32 = arith.constant 0 : i32
    %c0_i32_0 = arith.constant 0 : i32
    %c0_i32_1 = arith.constant 0 : i32
    return %c0_i32, %c0_i32_0 : i32, i32
  }
  func.func @transform_5(%arg0: i32) -> (i32, i32) {
    %c0_i32 = arith.constant 0 : i32
    %c0_i32_0 = arith.constant 0 : i32
    return %arg0, %c0_i32 : i32, i32
  }
}

</mosaic_0001>

<bundles_post_ra>
// kernel: tpu_custom_call.1
= control target key start
LH: loop header
LB: loop body
LE: loop exit
PB: predicated region body
PF: predicated region fallthrough
CT: control target
= control target key end

     0   :  { %10 = vsyncpa [#allocation3], 0  ;;  %s13655_s0 = inlined_call_operand.vmem [shape: f32[2048,32], index: 0, kind: input, shape index: {}]   ;;  %s13656_s1 = inlined_call_operand.vmem [shape: s32[256,1], index: 1, kind: input, shape index: {}]   ;;  %s13657_s2 = inlined_call_operand.vmem [shape: s32[256,1], index: 2, kind: input, shape index: {}]   ;;  %s13658_s3 = inlined_call_operand.vmem [shape: f32[3,32,128], index: 3, kind: input, shape index: {}]   ;;  %s13659_s4 = inlined_call_operand.vmem [shape: f32[1,128], index: 4, kind: input, shape index: {}]   ;;  %s13660_s5 = inlined_call_operand.hbm [shape: f32[256,256], index: 5, kind: output, shape index: {}]  }
   0x1   :  { %12 = vsyncpa [#allocation3 + $0x1], 0  ;;  %s9230_s18 = smov 0   ;;  %s9232_s19 = smov 0  }
   0x2   :  { %s9234_s20 = smov 0   ;;  %s9236_s21 = smov 0  }
   0x3 LB: > { %s9251_s22 = sadd.s32 4294967295, %s9193_s21   ;;  %s8310_s23 = sadd.s32 4294967294, %s9193_s21   ;;  %s9193_s21 = sphi %s9236_s21, %s15042_s21   ;;  %s9189_s20 = sphi %s9234_s20, %s15041_s20   ;;  %s9185_s19 = sphi %s9232_s19, %s15040_s19   ;;  %s9181_s18 = sphi %s9230_s18, %s15039_s18  }
   0x4   : > { %s9255_s24 = sadd.s32 1, %s9193_s21   ;;  %s145_s25 = sadd.s32 1, %s9189_s20 }
   0x5   : > { %s142_s26 = ssub.s32 %s9193_s21, %s9255_s24  ;;  %p155_p0 = scmp.ne.s32.totalorder %s9189_s20, %s9185_s19 }
   0x6   : > { %p143_p1 = scmp.eq.s32.totalorder %s142_s26, 0  ;;  %p156_p2 = scmp.eq.s32.totalorder %s9251_s22, 3 }
   0x7   : > { %p161_p3 = scmp.ne.s32.totalorder %s9185_s19, %s9181_s18  ;;  %p162_p4 = scmp.eq.s32.totalorder %s8310_s23, 3 }
   0x8   : > { %s9266_s27 = scalar_select %p143_p1, %s9189_s20, %s145_s25  }
   0x9   : > { %p9268_p5 = por %p156_p2, %p155_p0  ;;  %p9272_p6 = por %p162_p4, %p161_p3 }
   0xa   : > { %p8313_p7 = scmp.ge.s32.totalorder %s9193_s21, 1  ;;  %p213_p8 = scmp.lt.s32.totalorder %s9193_s21, 5 }
   0xc   : > { %p214_p9 = pnand %p8313_p7, %p213_p8 }
   0xe   : > { %217 = sbr.rel (%p214_p9) target bundleno = 883 (0x373), region = 40 }
  0x13   : > { %v8324_v0 = vld [vmem:[%s13658_s3 + $0x38] sm:$0xff]  ;;  %v8323_v1 = vld [vmem:[%s13658_s3 + $0x30] sm:$0xff]  ;;  %s8315_s9 = sshll.u32 %s9251_s22, 6  ;;  %v334_v2 = vlaneseq  ;;  %s8317_s10 = sshll.u32 %s9251_s22, 3  ;;  %v8322_v3 = vld [vmem:[%s13658_s3 + $0x28] sm:$0xff]  ;;  %vm13739_vm0 = vcmask 261120  }
  0x14   : > { %9046 = vmatprep.subr.mxu1 %v8324_v0  ;;  %8734 = vmatprep.subr.mxu0 %v8324_v0  ;;  %p252_p10 = scmp.lt.s32.totalorder %s8315_s9, 255  ;;  %p258_p11 = scmp.lt.s32.totalorder %s8317_s10, 31  ;;  %v9195_v4 = vmov 1966171168   ;;  %v8321_v6 = vld [vmem:[%s13658_s3 + $0x20] sm:$0xff]  ;;  %v1747_v9 = vld [vmem:[%s13658_s3 + $0x18] sm:$0xff] }
  0x15   : > { %9050 = vmatpush3.msra.mxu1 %v8324_v0  ;;  %8735 = vmatpush3.msra.mxu0 %v8324_v0  ;;  %v4525_v5 = vunpack.c.l.s4 %v9195_v4  ;;  %v9292_v7 = vshrl.u32 %v334_v2, 7  ;;  %v8456_v15 = vld [vmem:[%s13658_s3 + $0x58] sm:$0xff]  ;;  %v13661_v33 = vmov 0   ;;  %v1746_v36 = vld [vmem:[%s13658_s3 + $0x10] sm:$0xff]  ;;  %v1745_v60 = vld [vmem:[%s13658_s3 + $0x8] sm:$0xff]  ;;  %v13922_v63 = vmov 0 }
  0x16   : > { %9047 = vmatprep.subr.mxu1 %v8323_v1  ;;  %8736 = vmatprep.subr.mxu0 %v8323_v1  ;;  %s15044_s9 = smov (!%p252_p10, %s8315_s9), 255  ;;  %s15046_s10 = smov (!%p258_p11, %s8317_s10), 31  ;;  %v8455_v37 = vld [vmem:[%s13658_s3 + $0x50] sm:$0xff]  ;;  %v8454_v61 = vld [vmem:[%s13658_s3 + $0x48] sm:$0xff]  ;;  %v13937_v52 = vmov 0 }
  0x17   : > { %9051 = vmatpush3.msra.mxu1 %v8323_v1  ;;  %8737 = vmatpush3.msra.mxu0 %v8323_v1  ;;  %s8316_s15 = sshll.u32 %s15044_s9, 3  ;;  %v4526_v8 = vunpack.c.0.s8 %v4525_v5  ;;  %s8318_s30 = sshll.u32 %s15046_s10, 3  ;;  %v403_v17 = vand.u32 7, %v9292_v7  ;;  %v9344_v19 = vadd.s32 8, %v9292_v7  ;;  %v9358_v23 = vadd.s32 16, %v9292_v7 }
  0x18   : > { %9048 = vmatprep.subr.mxu1 %v8322_v3  ;;  %8738 = vmatprep.subr.mxu0 %v8322_v3  ;;  %s9297_s23 = scalar_lea.vmem %s13655_s0, %s8316_s15  ;;  %s9319_s8 = scalar_lea.vmem %s13656_s1, %s8318_s30  ;;  %v9361_v24 = vadd.s32 24, %v9292_v7  ;;  %v9376_v28 = vsub.s32 0, %v9292_v7  ;;  %v9410_v40 = vadd.s32 32, %v9292_v7  ;;  %v9424_v45 = vadd.s32 40, %v9292_v7 }
  0x19   : > { %9052 = vmatpush3.msra.mxu1 %v8322_v3  ;;  %8739 = vmatpush3.msra.mxu0 %v8322_v3  ;;  %v9303_v10 = vld [vmem:[%s9297_s23 + $0x100] sm:$0xff]  ;;  %v9309_v12 = vld [vmem:[%s9297_s23 + $0x108] sm:$0xff]  ;;  %s9324_s11 = scalar_lea.vmem %s13657_s2, %s8318_s30  ;;  %v9327_v14 = vsub.s32 %v4526_v8, %v9292_v7  ;;  %v9335_v16 = vld [vmem:[%s9297_s23 + $0x110] sm:$0xff]  ;;  %v9390_v32 = vadd.s32 4294967295, %v403_v17  ;;  %v9407_v39 = vadd.s32 1, %v403_v17  ;;  %s8529_s6 = sshll.u32 %s9251_s22, 11 }
  0x1a   : > { %9049 = vmatprep.subr.mxu1 %v8321_v6  ;;  %8740 = vmatprep.subr.mxu0 %v8321_v6  ;;  %v9306_v11 = vld [vmem:[%s9297_s23] sm:$0xff]  ;;  %v9314_v13 = vld [vmem:[%s9297_s23 + $0x8] sm:$0xff]  ;;  %v9341_v18 = vld [vmem:[%s9297_s23 + $0x10] sm:$0xff]  ;;  %s13606_s22 = scalar_lea.hbm %s13660_s5, %s8529_s6 }
  0x1b   : > { %13915 = vst [vmem:[#allocation5_spill] sm:$0xff] %v9306_v11  ;;  %9053 = vmatpush3.msra.mxu1 %v8321_v6  ;;  %8790 = vmatprep.mubr.msk.f32.mxu1 %vm13739_vm0, %v9303_v10  ;;  %v9349_v20 = vld [vmem:[%s9297_s23 + $0x118] sm:$0xff]  ;;  %v9352_v21 = vld [vmem:[%s9319_s8] sm:$0xff]  ;;  %v9388_v31 = vld [vmem:[%s9319_s8 + $0x8] sm:$0xff] }
  0x1c   : > { %8741 = vmatpush3.msra.mxu0 %v8321_v6  ;;  %8742 = vmatprep.mubr.msk.f32.mxu0 %vm13739_vm0, %v9306_v11  ;;  %13916 = vst [vmem:[#allocation6_spill] sm:$0xff] %v9349_v20  ;;  %v9355_v22 = vld [vmem:[%s9324_s11] sm:$0xff]  ;;  %v9366_v25 = vld [vmem:[%s9297_s23 + $0x18] sm:$0xff]  ;;  %v9373_v27 = vrot.slane %v9352_v21, %v9327_v14  ;;  %v9398_v35 = vld [vmem:[%s9324_s11 + $0x8] sm:$0xff]  ;;  %v4579_v51 = vrot.slane %v9388_v31, %v9327_v14 }
  0x1d   : > { %8791 = vmatmul.mubr.msk.f32.vlgmr.msra.gmra.mxu1 %vm13739_vm0, %v9309_v12  ;;  %8838 = vmatprep.subr.mxu1 %v1747_v9  ;;  %v9369_v26 = vld [vmem:[%s9297_s23 + $0x120] sm:$0xff]  ;;  %v9382_v29 = vrot.slane %v9355_v22, %v9327_v14  ;;  %v9419_v42 = vld [vmem:[%s9297_s23 + $0x128] sm:$0xff]  ;;  %v9437_v50 = vld [vmem:[%s9297_s23 + $0x130] sm:$0xff]  ;;  %v4979_v55 = vrot.slane %v9398_v35, %v9327_v14 }
  0x1e   : > { %8743 = vmatmul.mubr.msk.f32.vlgmr.msra.gmra.mxu0 %vm13739_vm0, %v9314_v13  ;;  %8839 = vmatpush3.msra.mxu1 %v1747_v9  ;;  %13917 = vst [vmem:[#allocation7_spill] sm:$0xff] %v9369_v26  ;;  %v9385_v30 = vld [vmem:[%s9297_s23 + $0x20] sm:$0xff]  ;;  %v4546_v34 = vrot.slane %v9373_v27, %v9327_v14  ;;  %13918 = vst [vmem:[#allocation8_spill] sm:$0xff] %v9419_v42  ;;  %v9434_v48 = vld [vmem:[%s9297_s23 + $0x28] sm:$0xff]  ;;  %v9457_v59 = vrot.slane %v4579_v51, %v9327_v14 }
  0x1f   : > { %8942 = vmatprep.subr.mxu0 %v8456_v15  ;;  %8793 = vmatprep.mubr.msk.f32.mxu1 %vm13739_vm0, %v9335_v16  ;;  %v4946_v41 = vrot.slane %v9382_v29, %v9327_v14  ;;  %13920 = vst [vmem:[#allocation10_spill] sm:$0xff] %v9437_v50  ;;  %v9446_v56 = vld [vmem:[%s9297_s23 + $0x30] sm:$0xff]  ;;  %v9479_v1 = vrot.slane %v4979_v55, %v9327_v14  ;;  %v9482_v2 = vld [vmem:[%s9297_s23 + $0x138] sm:$0xff]  ;;  %v9503_v8 = vld [vmem:[%s9297_s23 + $0x140] sm:$0xff] }
  0x20   : > { %8943 = vmatpush3.msra.mxu0 %v8456_v15  ;;  %8745 = vmatprep.mubr.msk.f32.mxu0 %vm13739_vm0, %v9341_v18  ;;  %v9428_v47 = vrot.slane %v4546_v34, %v9376_v28  ;;  %v4568_v49 = vcombine.high %v4546_v34, %v4546_v34  ;;  %13926 = vst [vmem:[#allocation14_spill] sm:$0xff] %v9482_v2  ;;  %v9500_v6 = vld [vmem:[%s9297_s23 + $0x38] sm:$0xff]  ;;  %13928 = vst [vmem:[#allocation16_spill] sm:$0xff] %v9503_v8  ;;  %v9511_v34 = vld [vmem:[%s9297_s23 + $0x40] sm:$0xff] }
  0x21   : > { %8794 = vmatmul.mubr.msk.f32.gmra.mxu1 %vm13739_vm0, %v9349_v20  ;;  %9097 = vset.pattern.permute.xlu0 %v13661_v33  ;;  %v5318_v53 = vrot.slane %v4946_v41, %v9376_v28  ;;  %v4968_v54 = vcombine.high %v4946_v41, %v4946_v41  ;;  %v9495_v5 = vrot.slane %v9457_v59, %v9376_v28  ;;  %v9558_v3 = vld [vmem:[%s9297_s23 + $0x150] sm:$0xff]  ;;  %v9623_v38 = vld [vmem:[%s9297_s23 + $0x60] sm:$0xff] }
  0x22   : > { %8746 = vmatmul.mubr.msk.f32.gmra.mxu0 %vm13739_vm0, %v9366_v25  ;;  %8796 = vmatprep.mubr.msk.f32.mxu1 %vm13739_vm0, %v9369_v26  ;;  %13919 = vst [vmem:[#allocation9_spill] sm:$0xff] %v9428_v47  ;;  %vm5891_vm1 = vcmp.le.s32.totalorder %v9292_v7, %v9428_v47  ;;  %v9454_v58 = vrot.slane %v4568_v49, %v9376_v28  ;;  %13933 = vst [vmem:[#allocation19_spill] sm:$0xff] %v9558_v3  ;;  %v9569_v46 = vld [vmem:[%s9297_s23 + $0x50] sm:$0xff] }
  0x23   : > { %8748 = vmatprep.mubr.msk.f32.mxu0 %vm13739_vm0, %v9385_v30  ;;  %9098 = vset.pattern.permute.xlu1 %v13661_v33  ;;  %vm9467_vm2 = vcmp.lt.s32.totalorder %v9292_v7, %v5318_v53  ;;  %v9474_v0 = vrot.slane %v4968_v54, %v9376_v28  ;;  %13927 = vst [vmem:[#allocation15_spill] sm:$0xff] %v9495_v5  ;;  %v10047_v26 = vld [vmem:[%s9297_s23 + $0xf0] sm:$0xff] }
  0x24   : > { %8840 = vmatprep.subr.mxu1 %v1746_v36  ;;  %8944 = vmatprep.subr.mxu0 %v8455_v37  ;;  %13921 = vst [vmem:[#allocation11_spill] sm:$0xff] %v9454_v58  ;;  %v13923_v63 = vsel %vm9467_vm2, 4294967295, %v13922_v63  ;;  %vm5955_vm3 = vmand %vm9467_vm2, %vm5891_vm1  ;;  %vm5893_vm4 = vcmp.le.s32.totalorder %v9292_v7, %v9454_v58  ;;  %v5350_v15 = vrot.slane %v9479_v1, %v9376_v28 }
  0x25   : > { %8797 = vmatmul.mubr.msk.f32.gmra.mxu1 %vm13739_vm0, %v9419_v42  ;;  %8945 = vmatpush3.msra.mxu0 %v8455_v37  ;;  %13924 = vst [vmem:[#allocation12_spill] sm:$0xff] %v13923_v63  ;;  %13925 = vst [vmem:[#allocation13_spill] sm:$0xff] %v9474_v0  ;;  %v6148_v9 = vsel %vm5955_vm3, 1, %v13661_v33  ;;  %vm13729_vm5 = vcmp.lt.s32.totalorder %v9292_v7, %v9474_v0  ;;  %v4587_v17 = vcombine.high %v4579_v51, %v4579_v51  ;;  %v13929_v51 = vmov 0 }
  0x26   : > { %8749 = vmatmul.mubr.msk.f32.gmra.mxu0 %vm13739_vm0, %v9434_v48  ;;  %8799 = vmatprep.mubr.msk.f32.mxu1 %vm13739_vm0, %v9437_v50  ;;  %vm5957_vm6 = vmand %vm13729_vm5, %vm5893_vm4  ;;  %vm5899_vm7 = vcmp.le.s32.totalorder %v9292_v7, %v9495_v5  ;;  %vm9527_vm8 = vcmp.lt.s32.totalorder %v9292_v7, %v5350_v15  ;;  %v4538_v54 = vcombine.high %v9373_v27, %v9373_v27  ;;  %v9555_v27 = vld [vmem:[%s9297_s23 + $0x48] sm:$0xff]  ;;  %v13942_v37 = vmov 0  ;;  %v9690_v5 = vld [vmem:[%s9297_s23 + $0x70] sm:$0xff] }
  0x27   : > { %8751 = vmatprep.mubr.msk.f32.mxu0 %vm13739_vm0, %v9446_v56  ;;  %8841 = vmatpush3.msra.mxu1 %v1746_v36  ;;  %v4987_v36 = vcombine.high %v4979_v55, %v4979_v55  ;;  %v6150_v49 = vsel %vm5957_vm6, 1, %v13661_v33  ;;  %v13930_v51 = vsel %vm9527_vm8, 4294967295, %v13929_v51  ;;  %v9534_v53 = vrot.slane %v4587_v17, %v9327_v14  ;;  %v9541_v55 = vld [vmem:[%s9297_s23 + $0x148] sm:$0xff]  ;;  %vm5963_vm9 = vmand %vm9527_vm8, %vm5899_vm7 }
  0x28   : > { %8842 = vmatprep.subr.mxu1 %v1745_v60  ;;  %8946 = vmatprep.subr.mxu0 %v8454_v61  ;;  %13931 = vst [vmem:[#allocation17_spill] sm:$0xff] %v13930_v51  ;;  %13932 = vst [vmem:[#allocation18_spill] sm:$0xff] %v9541_v55  ;;  %v4938_v4 = vcombine.high %v9382_v29, %v9382_v29  ;;  %v1744_v29 = vld [vmem:[%s13658_s3] sm:$0xff]  ;;  %v4617_v0 = vcombine.high %v9457_v59, %v9457_v59  ;;  %v13958_v42 = vmov 0 }
  0x29   : > { %6213 = vperm.xlu0 %9097, %v6148_v9   ;;  %8800 = vmatmul.mubr.msk.f32.gmra.mxu1 %vm13739_vm0, %v9482_v2  ;;  %v9548_v17 = vrot.slane %v4987_v36, %v9327_v14  ;;  %v4523_v9 = vcombine.high %v9352_v21, %v9352_v21  ;;  %v9565_v15 = vrot.slane %v9534_v53, %v9376_v28 }
  0x2a   : > { %8752 = vmatmul.mubr.msk.f32.gmra.mxu0 %vm13739_vm0, %v9500_v6  ;;  %8802 = vmatprep.mubr.msk.f32.mxu1 %vm13739_vm0, %v9503_v8  ;;  %v4560_v36 = vrot.slane %v4538_v54, %v9327_v14  ;;  %v4923_v21 = vcombine.high %v9355_v22, %v9355_v22  ;;  %v4960_v54 = vrot.slane %v4938_v4, %v9327_v14 }
  0x2b   : > { %6219 = vperm.xlu1 %9098, %v6150_v49   ;;  %8754 = vmatprep.mubr.msk.f32.mxu0 %vm13739_vm0, %v9511_v34  ;;  %v6156_v49 = vsel %vm5963_vm9, 1, %v13661_v33  ;;  %13934 = vst [vmem:[#allocation20_spill] sm:$0xff] %v9565_v15  ;;  %v5354_v44 = vrot.slane %v9548_v17, %v9376_v28  ;;  %vm5900_vm10 = vcmp.le.s32.totalorder %v9292_v7, %v9565_v15  ;;  %v9682_v15 = vld [vmem:[%s9297_s23 + $0x170] sm:$0xff] }
  0x2c   : > { %8843 = vmatpush3.msra.mxu1 %v1745_v60  ;;  %8947 = vmatpush3.msra.mxu0 %v8454_v61  ;;  %v8453_v60 = vld [vmem:[%s13658_s3 + $0x40] sm:$0xff]  ;;  %v9589_v22 = vrot.slane %v4560_v36, %v9376_v28  ;;  %v4570_v4 = vcombine.high %v4560_v36, %v4560_v36  ;;  %v5322_v61 = vrot.slane %v4960_v54, %v9376_v28  ;;  %v9608_v36 = vld [vmem:[%s9297_s23 + $0x58] sm:$0xff] }
  0x2d   : > { %6237 = vperm.xlu0 %9097, %v6156_v49   ;;  %8803 = vmatmul.mubr.msk.f32.gmra.mxu1 %vm13739_vm0, %v9541_v55  ;;  %v9596_v49 = vld [vmem:[%s9297_s23 + $0x158] sm:$0xff]  ;;  %vm9600_vm11 = vcmp.lt.s32.totalorder %v9292_v7, %v5354_v44  ;;  %v4970_v62 = vcombine.high %v4960_v54, %v4960_v54  ;;  %v4537_v43 = vrot.slane %v4523_v9, %v9327_v14  ;;  %v9620_v54 = vld [vmem:[%s9297_s23 + $0x160] sm:$0xff]  ;;  %v13949_v9 = vmov 0  }
  0x2e   : > { %13935 = vst [vmem:[#allocation21_spill] sm:$0xff] %v9589_v22  ;;  %8755 = vmatmul.mubr.msk.f32.gmra.mxu0 %vm13739_vm0, %v9555_v27  ;;  %8805 = vmatprep.mubr.msk.f32.mxu1 %vm13739_vm0, %v9558_v3  ;;  %13936 = vst [vmem:[#allocation22_spill] sm:$0xff] %v9596_v49  ;;  %v13938_v52 = vsel %vm9600_vm11, 4294967295, %v13937_v52  ;;  %vm5892_vm13 = vcmp.le.s32.totalorder %v9292_v7, %v9589_v22  ;;  %v9616_v44 = vrot.slane %v4570_v4, %v9376_v28  ;;  %v13968_v55 = vmov 0 }
  0x2f   : > { %13939 = vst [vmem:[#allocation23_spill] sm:$0xff] %v13938_v52  ;;  %8757 = vmatprep.mubr.msk.f32.mxu0 %vm13739_vm0, %v9569_v46  ;;  %8844 = vmatprep.subr.mxu1 %v1744_v29  ;;  %vm5964_vm12 = vmand %vm9600_vm11, %vm5900_vm10  ;;  %vm9627_vm14 = vcmp.lt.s32.totalorder %v9292_v7, %v5322_v61  ;;  %v9632_v57 = vrot.slane %v4970_v62, %v9376_v28 }
  0x30   : > { %13940 = vst [vmem:[#allocation24_spill] sm:$0xff] %v9616_v44  ;;  %13941 = vst [vmem:[#allocation25_spill] sm:$0xff] %v9620_v54  ;;  %8845 = vmatpush3.msra.mxu1 %v1744_v29  ;;  %8948 = vmatprep.subr.mxu0 %v8453_v60  ;;  %v6157_v41 = vsel %vm5964_vm12, 1, %v13661_v33  ;;  %v13943_v37 = vsel %vm9627_vm14, 4294967295, %v13942_v37  ;;  %v4937_v4 = vrot.slane %v4923_v21, %v9327_v14  ;;  %v9652_v21 = vld [vmem:[%s9297_s23 + $0x168] sm:$0xff] }
  0x31   : > { %13944 = vst [vmem:[#allocation26_spill] sm:$0xff] %v13943_v37  ;;  %13945 = vst [vmem:[#allocation27_spill] sm:$0xff] %v9632_v57  ;;  %8806 = vmatmul.mubr.msk.f32.gmra.mxu1 %vm13739_vm0, %v9596_v49  ;;  %8949 = vmatpush3.msra.mxu0 %v8453_v60  ;;  %vm5894_vm1 = vcmp.le.s32.totalorder %v9292_v7, %v9616_v44  ;;  %v9647_v62 = vrot.slane %v4537_v43, %v9327_v14  ;;  %v9666_v29 = vld [vmem:[%s9297_s23 + $0x68] sm:$0xff]  ;;  %v9802_v37 = vld [vmem:[%s9297_s23 + $0x90] sm:$0xff] }
  0x32   : > { %6240 = vperm.xlu1 %9098, %v6157_v41   ;;  %vm5956_vm15 = vmand %vm9627_vm14, %vm5892_vm13  ;;  %8758 = vmatmul.mubr.msk.f32.gmra.mxu0 %vm13739_vm0, %v9608_v36  ;;  %13946 = vst [vmem:[#allocation28_spill] sm:$0xff] %v9652_v21  ;;  %vm13728_vm3 = vcmp.lt.s32.totalorder %v9292_v7, %v9632_v57  ;;  %v9659_v61 = vrot.slane %v4937_v4, %v9327_v14  ;;  %v9719_v57 = vld [vmem:[%s9297_s23 + $0x78] sm:$0xff]  ;;  %v9915_v49 = vld [vmem:[%s9297_s23 + $0xc0] sm:$0xff] }
  0x33   : > { %v6149_v60 = vsel %vm5956_vm15, 1, %v13661_v33  ;;  %8808 = vmatprep.mubr.msk.f32.mxu1 %vm13739_vm0, %v9620_v54  ;;  %8760 = vmatprep.mubr.msk.f32.mxu0 %vm13739_vm0, %v9623_v38  ;;  %vm5958_vm4 = vmand %vm13728_vm3, %vm5894_vm1  ;;  %v9679_v52 = vrot.slane %v9647_v62, %v9376_v28  ;;  %13948 = vst [vmem:[#allocation30_spill] sm:$0xff] %v9682_v15  ;;  %v4939_v33 = vcombine.high %v4937_v4, %v4937_v4  ;;  %v13951_v4 = vmov 0 }
  0x34   : > { %6216 = vperm.xlu0 %9097, %v6149_v60   ;;  %v6151_v51 = vsel %vm5958_vm4, 1, %v13949_v9  ;;  %v5334_v41 = vrot.slane %v9659_v61, %v9376_v28  ;;  %v4539_v60 = vcombine.high %v4537_v43, %v4537_v43  ;;  %v9701_v43 = vld [vmem:[%s9297_s23 + $0x178] sm:$0xff]  ;;  %v5017_v59 = vcombine.high %v9479_v1, %v9479_v1  ;;  %v9732_v1 = vld [vmem:[%s9297_s23 + $0x180] sm:$0xff] }
  0x35   : > { %13947 = vst [vmem:[#allocation29_spill] sm:$0xff] %v9679_v52  ;;  %8809 = vmatmul.mubr.msk.f32.gmra.mxu1 %vm13739_vm0, %v9652_v21  ;;  %vm5895_vm6 = vcmp.le.s32.totalorder %v9292_v7, %v9679_v52  ;;  %13950 = vst [vmem:[#allocation31_spill] sm:$0xff] %v9701_v43  ;;  %v5019_v22 = vcombine.high %v9548_v17, %v9548_v17  ;;  %v4572_v50 = vcombine.high %v9388_v31, %v9388_v31  ;;  %v13974_v54 = vmov 0 }
  0x36   : > { %6222 = vperm.xlu1 %9098, %v6151_v51   ;;  %8761 = vmatmul.mubr.msk.f32.gmra.mxu0 %vm13739_vm0, %v9666_v29  ;;  %vm9704_vm7 = vcmp.lt.s32.totalorder %v9292_v7, %v5334_v41  ;;  %v9709_v44 = vrot.slane %v4539_v60, %v9327_v14  ;;  %v9712_v51 = vrot.slane %v4939_v33, %v9327_v14 }
  0x37   : > { %v13952_v4 = vsel %vm9704_vm7, 4294967295, %v13951_v4  ;;  %8811 = vmatprep.mubr.msk.f32.mxu1 %vm13739_vm0, %v9682_v15  ;;  %vm5959_vm9 = vmand %vm9704_vm7, %vm5895_vm6  ;;  %v9727_v33 = vrot.slane %v4617_v0, %v9376_v28  ;;  %8763 = vmatprep.mubr.msk.f32.mxu0 %vm13739_vm0, %v9690_v5  ;;  %v9742_v52 = vrot.slane %v5017_v59, %v9376_v28  ;;  %v9747_v0 = vld [vmem:[%s9297_s23 + $0x80] sm:$0xff]  ;;  %v9757_v59 = vld [vmem:[%s9297_s23 + $0x188] sm:$0xff] }
  0x38   : > { %13953 = vst [vmem:[#allocation32_spill] sm:$0xff] %v13952_v4  ;;  %v6152_v60 = vsel %vm5959_vm9, 1, %v13949_v9  ;;  %v5338_v41 = vrot.slane %v9712_v51, %v9376_v28  ;;  %v9739_v58 = vrot.slane %v9709_v44, %v9376_v28  ;;  %13957 = vst [vmem:[#allocation36_spill] sm:$0xff] %v9757_v59  ;;  %v9773_v4 = vld [vmem:[%s9297_s23 + $0x88] sm:$0xff] }
  0x39   : > { %13954 = vst [vmem:[#allocation33_spill] sm:$0xff] %v9727_v33  ;;  %13956 = vst [vmem:[#allocation35_spill] sm:$0xff] %v9742_v52  ;;  %8812 = vmatmul.mubr.msk.f32.gmra.mxu1 %vm13739_vm0, %v9701_v43  ;;  %6225 = vperm.xlu0 %9097, %v6152_v60   ;;  %vm5901_vm10 = vcmp.le.s32.totalorder %v9292_v7, %v9727_v33  ;;  %vm13701_vm15 = vcmp.lt.s32.totalorder %v9292_v7, %v9742_v52 }
  0x3a   : > { %13955 = vst [vmem:[#allocation34_spill] sm:$0xff] %v9739_v58  ;;  %8764 = vmatmul.mubr.msk.f32.gmra.mxu0 %vm13739_vm0, %v9719_v57  ;;  %vm9760_vm12 = vcmp.lt.s32.totalorder %v9292_v7, %v5338_v41  ;;  %vm5896_vm13 = vcmp.le.s32.totalorder %v9292_v7, %v9739_v58  ;;  %v4619_v60 = vcombine.high %v9534_v53, %v9534_v53  ;;  %v320_v53 = vld [vmem:[%s9297_s23 + $0x190] sm:$0xff]  ;;  %vm5965_vm4 = vmand %vm13701_vm15, %vm5901_vm10 }
  0x3b   : > { %v13959_v42 = vsel %vm9760_vm12, 4294967295, %v13958_v42  ;;  %8814 = vmatprep.mubr.msk.f32.mxu1 %vm13739_vm0, %v9732_v1  ;;  %vm5960_vm1 = vmand %vm9760_vm12, %vm5896_vm13  ;;  %v4569_v58 = vcombine.high %v9647_v62, %v9647_v62  ;;  %8766 = vmatprep.mubr.msk.f32.mxu0 %vm13739_vm0, %v9747_v0  ;;  %v4969_v62 = vcombine.high %v9659_v61, %v9659_v61  ;;  %v6158_v33 = vsel %vm5965_vm4, 1, %v13949_v9  ;;  %v321_v61 = vld [vmem:[%s9297_s23 + $0x198] sm:$0xff] }
  0x3c   : > { %13960 = vst [vmem:[#allocation37_spill] sm:$0xff] %v13959_v42  ;;  %v6153_v41 = vsel %vm5960_vm1, 1, %v13949_v9  ;;  %v9795_v17 = vrot.slane %v4619_v60, %v9376_v28  ;;  %v9807_v52 = vrot.slane %v5019_v22, %v9376_v28  ;;  %v322_v22 = vld [vmem:[%s9297_s23 + $0x1a0] sm:$0xff]  ;;  %v4971_v42 = vcombine.high %v9712_v51, %v9712_v51  ;;  %v323_v51 = vld [vmem:[%s9297_s23 + $0x1a8] sm:$0xff] }
  0x3d   : > { %8815 = vmatmul.mubr.msk.f32.gmra.mxu1 %vm13739_vm0, %v9757_v59  ;;  %6228 = vperm.xlu1 %9098, %v6153_v41   ;;  %v9810_v60 = vrot.slane %v4569_v58, %v9376_v28  ;;  %v9820_v41 = vrot.slane %v4969_v62, %v9376_v28  ;;  %v9824_v58 = vld [vmem:[%s9297_s23 + $0x98] sm:$0xff]  ;;  %v4571_v62 = vcombine.high %v9709_v44, %v9709_v44 }
  0x3e   : > { %13961 = vst [vmem:[#allocation38_spill] sm:$0xff] %v9795_v17  ;;  %13962 = vst [vmem:[#allocation39_spill] sm:$0xff] %v9807_v52  ;;  %8767 = vmatmul.mubr.msk.f32.gmra.mxu0 %vm13739_vm0, %v9773_v4  ;;  %6243 = vperm.xlu0 %9097, %v6158_v33   ;;  %vm5902_vm6 = vcmp.le.s32.totalorder %v9292_v7, %v9795_v17  ;;  %vm13699_vm9 = vcmp.lt.s32.totalorder %v9292_v7, %v9807_v52  ;;  %v9836_v33 = vld [vmem:[%s9297_s23 + $0xa0] sm:$0xff]  ;;  %v324_v52 = vld [vmem:[%s9297_s23 + $0x1b0] sm:$0xff] }
  0x3f   : > { %13963 = vst [vmem:[#allocation40_spill] sm:$0xff] %v9810_v60  ;;  %13964 = vst [vmem:[#allocation41_spill] sm:$0xff] %v9820_v41  ;;  %8817 = vmatprep.mubr.msk.f32.mxu1 %vm13739_vm0, %v320_v53  ;;  %vm5897_vm10 = vcmp.le.s32.totalorder %v9292_v7, %v9810_v60  ;;  %8769 = vmatprep.mubr.msk.f32.mxu0 %vm13739_vm0, %v9802_v37  ;;  %vm13727_vm1 = vcmp.lt.s32.totalorder %v9292_v7, %v9820_v41  ;;  %v326_v41 = vld [vmem:[%s9297_s23 + $0x1c0] sm:$0xff] }
  0x40   : > { %vm5966_vm13 = vmand %vm13699_vm9, %vm5902_vm6  ;;  %v4972_v44 = vcombine.high %v9398_v35, %v9398_v35  ;;  %v9865_v63 = vrot.slane %v4971_v42, %v9376_v28  ;;  %v9868_v31 = vrot.slane %v4571_v62, %v9376_v28  ;;  %v9873_v35 = vld [vmem:[%s9297_s23 + $0xa8] sm:$0xff]  ;;  %v325_v62 = vld [vmem:[%s9297_s23 + $0x1b8] sm:$0xff] }
  0x41   : > { %8818 = vmatmul.mubr.msk.f32.gmra.mxu1 %vm13739_vm0, %v321_v61  ;;  %v6159_v53 = vsel %vm5966_vm13, 1, %v13949_v9  ;;  %vm5961_vm4 = vmand %vm13727_vm1, %vm5897_vm10  ;;  %v9881_v61 = vld [vmem:[%s9297_s23 + $0xb0] sm:$0xff] }
  0x42   : > { %8770 = vmatmul.mubr.msk.f32.gmra.mxu0 %vm13739_vm0, %v9824_v58  ;;  %8820 = vmatprep.mubr.msk.f32.mxu1 %vm13739_vm0, %v322_v22  ;;  %v6154_v2 = vsel %vm5961_vm4, 1, %v13949_v9  ;;  %13965 = vst [vmem:[#allocation42_spill] sm:$0xff] %v9865_v63  ;;  %13966 = vst [vmem:[#allocation43_spill] sm:$0xff] %v9868_v31  ;;  %v4986_v42 = vrot.slane %v4972_v44, %v9327_v14  ;;  %vm13707_vm6 = vcmp.lt.s32.totalorder %v9292_v7, %v9865_v63  ;;  %v9906_v63 = vld [vmem:[%s9297_s23 + $0xb8] sm:$0xff] }
  0x43   : > { %6246 = vperm.xlu1 %9098, %v6159_v53   ;;  %8772 = vmatprep.mubr.msk.f32.mxu0 %vm13739_vm0, %v9836_v33  ;;  %v4586_v53 = vrot.slane %v4572_v50, %v9327_v14  ;;  %vm5898_vm10 = vcmp.le.s32.totalorder %v9292_v7, %v9868_v31 }
  0x44   : > { %6231 = vperm.xlu0 %9097, %v6154_v2   ;;  %vm5962_vm13 = vmand %vm13707_vm6, %vm5898_vm10  ;;  %v5002_v44 = vrot.slane %v4986_v42, %v9327_v14  ;;  %v4988_v22 = vcombine.high %v4986_v42, %v4986_v42  ;;  %v9952_v42 = vld [vmem:[%s9297_s23 + $0xc8] sm:$0xff] }
  0x45   : > { %8821 = vmatmul.mubr.msk.f32.gmra.mxu1 %vm13739_vm0, %v323_v51  ;;  %v4602_v50 = vrot.slane %v4586_v53, %v9327_v14  ;;  %v4588_v17 = vcombine.high %v4586_v53, %v4586_v53  ;;  %v6155_v2 = vsel %vm5962_vm13, 1, %v13949_v9 }
  0x46   : > { %8773 = vmatmul.mubr.msk.f32.gmra.mxu0 %vm13739_vm0, %v9873_v35  ;;  %8823 = vmatprep.mubr.msk.f32.mxu1 %vm13739_vm0, %v324_v52  ;;  %v5366_v53 = vrot.slane %v5002_v44, %v9376_v28  ;;  %v5016_v3 = vrot.slane %v4988_v22, %v9327_v14  ;;  %v9935_v22 = vld [vmem:[%s9319_s8 + $0x10] sm:$0xff] }
  0x47   : > { %8775 = vmatprep.mubr.msk.f32.mxu0 %vm13739_vm0, %v9881_v61  ;;  %6234 = vperm.xlu1 %9098, %v6155_v2   ;;  %v9910_v31 = vrot.slane %v4602_v50, %v9376_v28  ;;  %v4616_v52 = vrot.slane %v4588_v17, %v9327_v14  ;;  %v4618_v51 = vcombine.high %v4602_v50, %v4602_v50 }
  0x48   : > { %v5018_v2 = vcombine.high %v5002_v44, %v5002_v44  ;;  %vm9922_vm4 = vcmp.lt.s32.totalorder %v9292_v7, %v5366_v53  ;;  %v5370_v60 = vrot.slane %v5016_v3, %v9376_v28 }
  0x49   : > { %13967 = vst [vmem:[#allocation44_spill] sm:$0xff] %v9910_v31  ;;  %8824 = vmatmul.mubr.msk.f32.gmra.mxu1 %vm13739_vm0, %v325_v62  ;;  %v13969_v55 = vsel %vm9922_vm4, 4294967295, %v13968_v55  ;;  %vm5903_vm10 = vcmp.le.s32.totalorder %v9292_v7, %v9910_v31  ;;  %v9929_v17 = vrot.slane %v4616_v52, %v9376_v28  ;;  %v9932_v50 = vrot.slane %v4618_v51, %v9376_v28  ;;  %v327_v62 = vld [vmem:[%s9297_s23 + $0x1c8] sm:$0xff]  ;;  %v328_v31 = vld [vmem:[%s9297_s23 + $0x1d0] sm:$0xff] }
  0x4a   : > { %13970 = vst [vmem:[#allocation45_spill] sm:$0xff] %v13969_v55  ;;  %8776 = vmatmul.mubr.msk.f32.gmra.mxu0 %vm13739_vm0, %v9906_v63  ;;  %vm5967_vm13 = vmand %vm9922_vm4, %vm5903_vm10  ;;  %v9946_v51 = vrot.slane %v5018_v2, %v9376_v28  ;;  %8826 = vmatprep.mubr.msk.f32.mxu1 %vm13739_vm0, %v326_v41  ;;  %v9962_v2 = vld [vmem:[%s9324_s11 + $0x10] sm:$0xff]  ;;  %vm9969_vm15 = vcmp.lt.s32.totalorder %v9292_v7, %v5370_v60  ;;  %v331_v55 = vld [vmem:[%s9297_s23 + $0x1e8] sm:$0xff] }
  0x4b   : > { %13971 = vst [vmem:[#allocation46_spill] sm:$0xff] %v9929_v17  ;;  %13972 = vst [vmem:[#allocation47_spill] sm:$0xff] %v9932_v50  ;;  %8778 = vmatprep.mubr.msk.f32.mxu0 %vm13739_vm0, %v9915_v49  ;;  %v6160_v53 = vsel %vm5967_vm13, 1, %v13949_v9  ;;  %vm5904_vm10 = vcmp.le.s32.totalorder %v9292_v7, %v9929_v17  ;;  %vm5905_vm9 = vcmp.le.s32.totalorder %v9292_v7, %v9932_v50  ;;  %v9965_v41 = vld [vmem:[%s9297_s23 + $0xd0] sm:$0xff]  ;;  %v13975_v54 = vsel %vm9969_vm15, 4294967295, %v13974_v54 }
  0x4c   : > { %13973 = vst [vmem:[#allocation48_spill] sm:$0xff] %v9946_v51  ;;  %6249 = vperm.xlu0 %9097, %v6160_v53   ;;  %13976 = vst [vmem:[#allocation49_spill] sm:$0xff] %v13975_v54  ;;  %vm13717_vm13 = vcmp.lt.s32.totalorder %v9292_v7, %v9946_v51  ;;  %v4620_v44 = vcombine.high %v4616_v52, %v4616_v52  ;;  %v5020_v53 = vcombine.high %v5016_v3, %v5016_v3  ;;  %v329_v52 = vld [vmem:[%s9297_s23 + $0x1d8] sm:$0xff]  ;;  %v10012_v54 = vld [vmem:[%s9297_s23 + $0xe0] sm:$0xff] }
  0x4d   : > { %8827 = vmatmul.mubr.msk.f32.gmra.mxu1 %vm13739_vm0, %v327_v62  ;;  %vm5968_vm6 = vmand %vm9969_vm15, %vm5904_vm10  ;;  %v4628_v60 = vrot.slane %v9935_v22, %v9327_v14  ;;  %v5028_v8 = vrot.slane %v9962_v2, %v9327_v14  ;;  %v330_v62 = vld [vmem:[%s9297_s23 + $0x1e0] sm:$0xff] }
  0x4e   : > { %8779 = vmatmul.mubr.msk.f32.gmra.mxu0 %vm13739_vm0, %v9952_v42  ;;  %8829 = vmatprep.mubr.msk.f32.mxu1 %vm13739_vm0, %v328_v31  ;;  %v6161_v17 = vsel %vm5968_vm6, 1, %v13949_v9  ;;  %vm5969_vm10 = vmand %vm13717_vm13, %vm5905_vm9  ;;  %v9995_v3 = vrot.slane %v4620_v44, %v9376_v28  ;;  %v10002_v31 = vld [vmem:[%s9297_s23 + $0xd8] sm:$0xff]  ;;  %v10008_v51 = vrot.slane %v5020_v53, %v9376_v28 }
  0x4f   : > { %8781 = vmatprep.mubr.msk.f32.mxu0 %vm13739_vm0, %v9965_v41  ;;  %6252 = vperm.xlu1 %9098, %v6161_v17   ;;  %v6162_v50 = vsel %vm5969_vm10, 1, %v13949_v9  ;;  %v4644_v44 = vrot.slane %v4628_v60, %v9327_v14  ;;  %v5044_v17 = vrot.slane %v5028_v8, %v9327_v14  ;;  %v4636_v47 = vcombine.high %v4628_v60, %v4628_v60 }
  0x50   : > { %13977 = vst [vmem:[#allocation50_spill] sm:$0xff] %v9995_v3  ;;  %13978 = vst [vmem:[#allocation51_spill] sm:$0xff] %v10008_v51  ;;  %6255 = vperm.xlu0 %9097, %v6162_v50   ;;  %vm5906_vm9 = vcmp.le.s32.totalorder %v9292_v7, %v9995_v3  ;;  %vm13726_vm6 = vcmp.lt.s32.totalorder %v9292_v7, %v10008_v51  ;;  %v5036_v53 = vcombine.high %v5028_v8, %v5028_v8  ;;  %v10039_v3 = vld [vmem:[%s9297_s23 + $0xe8] sm:$0xff]  ;;  %v332_v51 = vld [vmem:[%s9297_s23 + $0x1f0] sm:$0xff]  ;;  %v13980_v8 = vmov 0 }
  0x51   : > { %8830 = vmatmul.mubr.msk.f32.gmra.mxu1 %vm13739_vm0, %v329_v52  ;;  %v10025_v21 = vrot.slane %v4644_v44, %v9376_v28  ;;  %vm5970_vm10 = vmand %vm13726_vm6, %vm5906_vm9  ;;  %v5382_v52 = vrot.slane %v5044_v17, %v9376_v28  ;;  %v4666_v50 = vcombine.high %v4644_v44, %v4644_v44  ;;  %v4658_v60 = vrot.slane %v4636_v47, %v9327_v14 }
  0x52   : > { %8782 = vmatmul.mubr.msk.f32.gmra.mxu0 %vm13739_vm0, %v10002_v31  ;;  %8832 = vmatprep.mubr.msk.f32.mxu1 %vm13739_vm0, %v330_v62  ;;  %v6163_v62 = vsel %vm5970_vm10, 1, %v13949_v9  ;;  %v5058_v15 = vrot.slane %v5036_v53, %v9327_v14  ;;  %v5066_v43 = vcombine.high %v5044_v17, %v5044_v17 }
  0x53   : > { %13979 = vst [vmem:[#allocation52_spill] sm:$0xff] %v10025_v21  ;;  %8784 = vmatprep.mubr.msk.f32.mxu0 %vm13739_vm0, %v10012_v54  ;;  %vm5907_vm13 = vcmp.le.s32.totalorder %v9292_v7, %v10025_v21  ;;  %6258 = vperm.xlu1 %9098, %v6163_v62   ;;  %vm10050_vm9 = vcmp.lt.s32.totalorder %v9292_v7, %v5382_v52 }
  0x54   : > { %v13981_v8 = vsel %vm10050_vm9, 4294967295, %v13980_v8  ;;  %vm5971_vm10 = vmand %vm10050_vm9, %vm5907_vm13  ;;  %v10062_v52 = vrot.slane %v4666_v50, %v9376_v28  ;;  %v5386_v17 = vrot.slane %v5058_v15, %v9376_v28  ;;  %v10070_v53 = vrot.slane %v4658_v60, %v9376_v28  ;;  %v10079_v50 = vld [vmem:[%s9297_s23 + $0x1f8] sm:$0xff] }
  0x55   : > { %13982 = vst [vmem:[#allocation53_spill] sm:$0xff] %v13981_v8  ;;  %8833 = vmatmul.mubr.msk.f32.gmra.mxu1 %vm13739_vm0, %v331_v55  ;;  %v6164_v47 = vsel %vm5971_vm10, 1, %v13949_v9  ;;  %v10073_v62 = vrot.slane %v5066_v43, %v9376_v28  ;;  %13986 = vst [vmem:[#allocation57_spill] sm:$0xff] %v10079_v50  ;;  %v10082_v55 = vld [vmem:[%s9297_s23 + $0xf8] sm:$0xff]  ;;  %v13987_v43 = vmov 0 }
  0x56   : > { %13983 = vst [vmem:[#allocation54_spill] sm:$0xff] %v10062_v52  ;;  %8785 = vmatmul.mubr.msk.f32.gmra.mxu0 %vm13739_vm0, %v10039_v3  ;;  %13984 = vst [vmem:[#allocation55_spill] sm:$0xff] %v10070_v53  ;;  %8835 = vmatprep.mubr.msk.f32.mxu1 %vm13739_vm0, %v332_v51  ;;  %vm5909_vm13 = vcmp.le.s32.totalorder %v9292_v7, %v10062_v52  ;;  %vm10090_vm10 = vcmp.lt.s32.totalorder %v9292_v7, %v5386_v17 }
  0x57   : > { %13985 = vst [vmem:[#allocation56_spill] sm:$0xff] %v10073_v62  ;;  %8787 = vmatprep.mubr.msk.f32.mxu0 %vm13739_vm0, %v10047_v26  ;;  %6261 = vperm.xlu0 %9097, %v6164_v47   ;;  %v13988_v43 = vsel %vm10090_vm10, 4294967295, %v13987_v43  ;;  %vm5908_vm6 = vcmp.le.s32.totalorder %v9292_v7, %v10070_v53  ;;  %vm13738_vm1 = vcmp.lt.s32.totalorder %v9292_v7, %v10073_v62 }
  0x58   : > { %13989 = vst [vmem:[#allocation58_spill] sm:$0xff] %v13988_v43  ;;  %v4668_v51 = vcombine.high %v4658_v60, %v4658_v60  ;;  %vm5972_vm3 = vmand %vm10090_vm10, %vm5908_vm6  ;;  %v5068_v47 = vcombine.high %v5058_v15, %v5058_v15  ;;  %v4621_v17 = vcombine.high %v9935_v22, %v9935_v22  ;;  %v5021_v15 = vcombine.high %v9962_v2, %v9962_v2 }
  0x59   : > { %8836 = vmatmul.mubr.msk.f32.gmra.mxu1 %vm13739_vm0, %v10079_v50  ;;  %v6165_v60 = vsel %vm5972_vm3, 1, %v13949_v9  ;;  %vm5973_vm5 = vmand %vm13738_vm1, %vm5909_vm13  ;;  %vm1360_vm10 = vcmp.ge.s32.totalorder %v9390_v32, 0  ;;  %v14018_v32 = vrot.slane %v9306_v11, 7 }
  0x5a   : > { %8788 = vmatmul.mubr.msk.f32.gmra.mxu0 %vm13739_vm0, %v10082_v55  ;;  %v10114_v21 = vrot.slane %v4668_v51, %v9376_v28  ;;  %6264 = vperm.xlu1 %9098, %v6165_v60   ;;  %v6166_v44 = vsel %vm5973_vm5, 1, %v13949_v9  ;;  %v10121_v52 = vrot.slane %v5068_v47, %v9376_v28  ;;  %v4635_v20 = vrot.slane %v4621_v17, %v9327_v14 }
  0x5b   : > { %6267 = vperm.xlu0 %9097, %v6166_v44   ;;  %v5035_v2 = vrot.slane %v5021_v15, %v9327_v14 }
  0x5c   : > { %13990 = vst [vmem:[#allocation59_spill] sm:$0xff] %v10114_v21  ;;  %13991 = vst [vmem:[#allocation60_spill] sm:$0xff] %v10121_v52  ;;  %vm5910_vm3 = vcmp.le.s32.totalorder %v9292_v7, %v10114_v21  ;;  %vm13736_vm5 = vcmp.lt.s32.totalorder %v9292_v7, %v10121_v52  ;;  %v4651_v47 = vrot.slane %v4635_v20, %v9327_v14 }
  0x5d   : > { %vm5974_vm6 = vmand %vm13736_vm5, %vm5910_vm3  ;;  %v5051_v44 = vrot.slane %v5035_v2, %v9327_v14  ;;  %v4637_v62 = vcombine.high %v4635_v20, %v4635_v20  ;;  %v5037_v22 = vcombine.high %v5035_v2, %v5035_v2  ;;  %v10177_v20 = vld [vmem:[%s9324_s11 + $0x18] sm:$0xff] }
  0x5e   : > { %v6167_v51 = vsel %vm5974_vm6, 1, %v13949_v9  ;;  %v10142_v60 = vrot.slane %v4651_v47, %v9376_v28  ;;  %v4667_v43 = vcombine.high %v4651_v47, %v4651_v47 }
  0x5f   : > { %6270 = vperm.xlu1 %9098, %v6167_v51   ;;  %v5398_v21 = vrot.slane %v5051_v44, %v9376_v28  ;;  %v4665_v17 = vrot.slane %v4637_v62, %v9327_v14  ;;  %v5065_v52 = vrot.slane %v5037_v22, %v9327_v14  ;;  %v5067_v53 = vcombine.high %v5051_v44, %v5051_v44 }
  0x60   : > { %13992 = vst [vmem:[#allocation61_spill] sm:$0xff] %v10142_v60  ;;  %vm5911_vm13 = vcmp.le.s32.totalorder %v9292_v7, %v10142_v60  ;;  %v10152_v15 = vrot.slane %v4667_v43, %v9376_v28  ;;  %v13994_v51 = vmov 0  ;;  %v5077_v43 = vrot.slane %v10177_v20, %v9327_v14 }
  0x61   : > { %vm10155_vm3 = vcmp.lt.s32.totalorder %v9292_v7, %v5398_v21  ;;  %v5402_v62 = vrot.slane %v5065_v52, %v9376_v28  ;;  %v10161_v22 = vrot.slane %v4665_v17, %v9376_v28  ;;  %v10164_v47 = vrot.slane %v5067_v53, %v9376_v28  ;;  %v10174_v21 = vld [vmem:[%s9319_s8 + $0x18] sm:$0xff] }
  0x62   : > { %13993 = vst [vmem:[#allocation62_spill] sm:$0xff] %v10152_v15  ;;  %v13995_v51 = vsel %vm10155_vm3, 4294967295, %v13994_v51  ;;  %vm5975_vm6 = vmand %vm10155_vm3, %vm5911_vm13  ;;  %v13999_v53 = vmov 0  ;;  %v4669_v44 = vcombine.high %v4665_v17, %v4665_v17 }
  0x63   : > { %13996 = vst [vmem:[#allocation63_spill] sm:$0xff] %v13995_v51  ;;  %13997 = vst [vmem:[#allocation64_spill] sm:$0xff] %v10161_v22  ;;  %v6168_v60 = vsel %vm5975_vm6, 1, %v13949_v9  ;;  %vm10181_vm1 = vcmp.lt.s32.totalorder %v9292_v7, %v5402_v62  ;;  %vm5912_vm0 = vcmp.le.s32.totalorder %v9292_v7, %v10161_v22  ;;  %vm13747_vm13 = vcmp.lt.s32.totalorder %v9292_v7, %v10164_v47 }
  0x64   : > { %13998 = vst [vmem:[#allocation65_spill] sm:$0xff] %v10164_v47  ;;  %v14000_v53 = vsel %vm10181_vm1, 4294967295, %v13999_v53  ;;  %6273 = vperm.xlu0 %9097, %v6168_v60   ;;  %vm5976_vm5 = vmand %vm10181_vm1, %vm5912_vm0  ;;  %v5069_v51 = vcombine.high %v5065_v52, %v5065_v52  ;;  %vm14002_vm6 = vcmp.le.s32.totalorder %v9292_v7, %v10152_v15  ;;  %v4677_v60 = vrot.slane %v10174_v21, %v9327_v14 }
  0x65   : > { %14001 = vst [vmem:[#allocation66_spill] sm:$0xff] %v14000_v53  ;;  %v6169_v8 = vsel %vm5976_vm5, 1, %v13949_v9  ;;  %vm5977_vm3 = vmand %vm13747_vm13, %vm14002_vm6  ;;  %v10212_v2 = vrot.slane %v4669_v44, %v9376_v28  ;;  %v5093_v22 = vrot.slane %v5077_v43, %v9327_v14 }
  0x66   : > { %6276 = vperm.xlu1 %9098, %v6169_v8   ;;  %v6170_v17 = vsel %vm5977_vm3, 1, %v13949_v9  ;;  %v10209_v62 = vrot.slane %v5069_v51, %v9376_v28  ;;  %v4693_v53 = vrot.slane %v4677_v60, %v9327_v14  ;;  %v4685_v52 = vcombine.high %v4677_v60, %v4677_v60 }
  0x67   : > { %14004 = vst [vmem:[#allocation68_spill] sm:$0xff] %v10212_v2  ;;  %vm5914_vm3 = vcmp.le.s32.totalorder %v9292_v7, %v10212_v2  ;;  %v5414_v51 = vrot.slane %v5093_v22, %v9376_v28  ;;  %v5085_v2 = vcombine.high %v5077_v43, %v5077_v43  ;;  %v5115_v43 = vcombine.high %v5093_v22, %v5093_v22 }
  0x68   : > { %14003 = vst [vmem:[#allocation67_spill] sm:$0xff] %v10209_v62  ;;  %6279 = vperm.xlu0 %9097, %v6170_v17   ;;  %vm13750_vm5 = vcmp.lt.s32.totalorder %v9292_v7, %v10209_v62  ;;  %v10229_v44 = vrot.slane %v4693_v53, %v9376_v28  ;;  %v14006_v62 = vmov 0  ;;  %v4707_v60 = vrot.slane %v4685_v52, %v9327_v14 }
  0x69   : > { %vm5978_vm6 = vmand %vm13750_vm5, %vm5914_vm3  ;;  %vm10237_vm3 = vcmp.lt.s32.totalorder %v9292_v7, %v5414_v51  ;;  %v4715_v17 = vcombine.high %v4693_v53, %v4693_v53  ;;  %v5107_v15 = vrot.slane %v5085_v2, %v9327_v14  ;;  %v13757_v53 = vrot.slane %v10079_v50, 7 }
  0x6a   : > { %14005 = vst [vmem:[#allocation69_spill] sm:$0xff] %v10229_v44  ;;  %v6171_v8 = vsel %vm5978_vm6, 1, %v13949_v9  ;;  %v14007_v62 = vsel %vm10237_vm3, 4294967295, %v14006_v62  ;;  %vm5915_vm5 = vcmp.le.s32.totalorder %v9292_v7, %v10229_v44  ;;  %v10251_v59 = vrot.slane %v4707_v60, %v9376_v28 }
  0x6b   : > { %6282 = vperm.xlu1 %9098, %v6171_v8   ;;  %vm5979_vm6 = vmand %vm10237_vm3, %vm5915_vm5  ;;  %v10254_v44 = vrot.slane %v4715_v17, %v9376_v28  ;;  %v5418_v52 = vrot.slane %v5107_v15, %v9376_v28  ;;  %v10259_v47 = vrot.slane %v5115_v43, %v9376_v28  ;;  %v4717_v8 = vcombine.high %v4707_v60, %v4707_v60 }
  0x6c   : > { %v6172_v51 = vsel %vm5979_vm6, 1, %v13949_v9  ;;  %vm5916_vm5 = vcmp.le.s32.totalorder %v9292_v7, %v10251_v59  ;;  %v5117_v43 = vcombine.high %v5107_v15, %v5107_v15  ;;  %v14013_v22 = vrot.slane %v9306_v11, 7 }
  0x6d   : > { %14008 = vst [vmem:[#allocation70_spill] sm:$0xff] %v10254_v44  ;;  %6285 = vperm.xlu0 %9097, %v6172_v51   ;;  %14009 = vst [vmem:[#allocation71_spill] sm:$0xff] %v10259_v47  ;;  %vm5917_vm6 = vcmp.le.s32.totalorder %v9292_v7, %v10254_v44  ;;  %vm10269_vm13 = vcmp.lt.s32.totalorder %v9292_v7, %v5418_v52  ;;  %v14010_v51 = vmov 0  ;;  %vm13762_vm0 = vcmp.lt.s32.totalorder %v9292_v7, %v10259_v47 }
  0x6e   : > { %v14011_v51 = vsel %vm10269_vm13, 4294967295, %v14010_v51  ;;  %vm14014_vm3 = vcmp.lt.s32.totalorder %v9292_v7, 1  ;;  %vm5980_vm1 = vmand %vm10269_vm13, %vm5916_vm5  ;;  %v10284_v60 = vrot.slane %v4717_v8, %v9376_v28  ;;  %v4670_v52 = vcombine.high %v10174_v21, %v10174_v21 }
  0x6f   : > { %14012 = vst [vmem:[#allocation72_spill] sm:$0xff] %v14011_v51  ;;  %v1295_v2 = vsel %vm14014_vm3, %v13757_v53, %v14013_v22  ;;  %v5070_v15 = vcombine.high %v10177_v20, %v10177_v20  ;;  %v6173_v17 = vsel %vm5980_vm1, 1, %v13949_v9  ;;  %vm5981_vm3 = vmand %vm13762_vm0, %vm5917_vm6  ;;  %v10296_v22 = vrot.slane %v5117_v43, %v9376_v28 }
  0x70   : > { %14015 = vst [vmem:[#allocation73_spill] sm:$0xff] %v10284_v60  ;;  %v1680_v53 = vsel %vm1360_vm10, %v1295_v2, 0.0  ;;  %v14017_v8 = vrot.slane %v9314_v13, 7  ;;  %vm14019_vm5 = vcmp.lt.s32.totalorder %v9292_v7, 1  ;;  %6288 = vperm.xlu1 %9098, %v6173_v17   ;;  %v6174_v20 = vsel %vm5981_vm3, 1, %v13949_v9 }
  0x71   : > { %14016 = vst [vmem:[#allocation74_spill] sm:$0xff] %v10296_v22  ;;  %vm5918_vm1 = vcmp.le.s32.totalorder %v9292_v7, %v10284_v60  ;;  %vm14020_vm13 = vcmask 261120   ;;  %v4684_v50 = vrot.slane %v4670_v52, %v9327_v14  ;;  %v5084_v43 = vrot.slane %v5070_v15, %v9327_v14  ;;  %6291 = vperm.xlu0 %9097, %v6174_v20  }
  0x72   : > { %v1294_v21 = vsel %vm14019_vm5, %v14018_v32, %v14017_v8  ;;  %8846 = vmatprep.mubr.msk.f32.mxu1 %vm14020_vm13, %v1680_v53  ;;  %vm13767_vm10 = vcmp.lt.s32.totalorder %v9292_v7, %v10296_v22  ;;  %v14021_v2 = vand.u32 7, %v9344_v19  ;;  %v14022_v17 = vrot.slane %v9314_v13, 1 }
  0x73   : > { %v14023_v8 = vrot.slane %v9306_v11, 1  ;;  %vm14024_vm6 = vcmp.lt.s32.totalorder %v9292_v7, 7  ;;  %vm3549_vm13 = vcmp.lt.s32.totalorder %v9407_v39, 8  ;;  %vm5982_vm3 = vmand %vm13767_vm10, %vm5918_vm1  ;;  %v4700_v53 = vrot.slane %v4684_v50, %v9327_v14 }
  0x74   : > { %v1297_v47 = vadd.s32 4294967295, %v14021_v2  ;;  %v5100_v52 = vrot.slane %v5084_v43, %v9327_v14  ;;  %v14025_v20 = vrot.slane %v9341_v18, 1  ;;  %v14026_v2 = vmov %v14022_v17  ;;  %vm14027_vm5 = vmmov %vm14024_vm6 }
  0x75   : > { %v3419_v32 = vsel %vm14024_vm6, %v14023_v8, %v14022_v17  ;;  %v6175_v17 = vsel %vm5982_vm3, 1, %v13949_v9  ;;  %vm14028_vm0 = vcmask 261120   ;;  %v14029_v39 = vand.u32 7, %v9344_v19 }
  0x76   : > { %v3805_v15 = vsel %vm3549_vm13, %v3419_v32, 0.0  ;;  %v3418_v11 = vsel %vm14027_vm5, %v14026_v2, %v14025_v20  ;;  %vm1361_vm6 = vcmp.ge.s32.totalorder %v1297_v47, 0  ;;  %v4686_v22 = vcombine.high %v4684_v50, %v4684_v50  ;;  %6294 = vperm.xlu1 %9098, %v6175_v17   ;;  %vm14030_vm1 = vmmov %vm14028_vm0 }
  0x77   : > { %8950 = vmatprep.mubr.msk.f32.mxu0 %vm14028_vm0, %v3805_v15  ;;  %v3422_v8 = vadd.s32 1, %v14029_v39  ;;  %v5430_v60 = vrot.slane %v5100_v52, %v9376_v28  ;;  %v10338_v32 = vrot.slane %v4700_v53, %v9376_v28  ;;  %v1681_v44 = vsel %vm1361_vm6, %v1294_v21, 0.0 }
  0x78   : > { %v5086_v51 = vcombine.high %v5084_v43, %v5084_v43  ;;  %8847 = vmatmul.mubr.msk.f32.vlgmr.msra.gmra.mxu1 %vm14030_vm1, %v1681_v44  ;;  %v4714_v20 = vrot.slane %v4686_v22, %v9327_v14  ;;  %v14031_v47 = vrot.slane %v9341_v18, 7  ;;  %v14032_v15 = vrot.slane %v9314_v13, 7 }
  0x79   : > { %vm3550_vm13 = vcmp.lt.s32.totalorder %v3422_v8, 8  ;;  %vm14033_vm0 = vcmp.lt.s32.totalorder %v9292_v7, 1  ;;  %v14034_v50 = vand.u32 7, %v9358_v23  ;;  %vm10351_vm3 = vcmp.lt.s32.totalorder %v9292_v7, %v5430_v60 }
  0x7a   : > { %v1293_v19 = vsel %vm14033_vm0, %v14032_v15, %v14031_v47  ;;  %v14035_v17 = vmov 0  ;;  %vm5919_vm5 = vcmp.le.s32.totalorder %v9292_v7, %v10338_v32  ;;  %v3806_v44 = vsel %vm3550_vm13, %v3418_v11, 0.0 }
  0x7b   : > { %v1298_v2 = vadd.s32 4294967295, %v14034_v50  ;;  %v14036_v17 = vsel %vm10351_vm3, 4294967295, %v14035_v17  ;;  %v5114_v22 = vrot.slane %v5086_v51, %v9327_v14  ;;  %vm5983_vm6 = vmand %vm10351_vm3, %vm5919_vm5  ;;  %8951 = vmatmul.mubr.msk.f32.vlgmr.msra.gmra.mxu0 %vm14030_vm1, %v3806_v44  ;;  %v10362_v13 = vrot.slane %v4714_v20, %v9376_v28 }
  0x7c   : > { %v4716_v21 = vcombine.high %v4700_v53, %v4700_v53  ;;  %v5116_v60 = vcombine.high %v5100_v52, %v5100_v52  ;;  %v6176_v43 = vsel %vm5983_vm6, 1, %v13949_v9  ;;  %v14037_v11 = vrot.slane %v9366_v25, 7 }
  0x7d   : > { %vm1362_vm0 = vcmp.ge.s32.totalorder %v1298_v2, 0  ;;  %v5434_v39 = vrot.slane %v5114_v22, %v9376_v28  ;;  %v14038_v51 = vmov %v14031_v47  ;;  %vm14039_vm13 = vcmp.lt.s32.totalorder %v9292_v7, 1  ;;  %6297 = vperm.xlu0 %9097, %v6176_v43  }
  0x7e   : > { %v1682_v8 = vsel %vm1362_vm0, %v1293_v19, 0.0  ;;  %v1292_v47 = vsel %vm14039_vm13, %v14038_v51, %v14037_v11  ;;  %vm5920_vm5 = vcmp.le.s32.totalorder %v9292_v7, %v10362_v13  ;;  %v10376_v53 = vrot.slane %v5116_v60, %v9376_v28 }
  0x7f   : > { %8849 = vmatprep.mubr.msk.f32.mxu1 %vm14030_vm1, %v1682_v8  ;;  %v10379_v52 = vrot.slane %v4716_v21, %v9376_v28  ;;  %v14042_v15 = vand.u32 7, %v9361_v24  ;;  %vm10384_vm6 = vcmp.lt.s32.totalorder %v9292_v7, %v5434_v39  ;;  %v14043_v50 = vmov 0 }
  0x80   : > { %14040 = vst [vmem:[#allocation75_spill] sm:$0xff] %v10376_v53  ;;  %v14044_v50 = vsel %vm10384_vm6, 4294967295, %v14043_v50  ;;  %v14045_v2 = vrot.slane %v9366_v25, 1  ;;  %v14046_v44 = vrot.slane %v9341_v18, 1  ;;  %vm14047_vm0 = vcmp.lt.s32.totalorder %v9292_v7, 7  ;;  %vm5984_vm1 = vmand %vm10384_vm6, %vm5920_vm5 }
  0x81   : > { %14041 = vst [vmem:[#allocation76_spill] sm:$0xff] %v10379_v52  ;;  %v1299_v19 = vadd.s32 4294967295, %v14042_v15  ;;  %v14048_v21 = vand.u32 7, %v9358_v23  ;;  %v14049_v8 = vrot.slane %v9385_v30, 1  ;;  %vm14051_vm13 = vmmov %vm14047_vm0  ;;  %vm13775_vm10 = vcmp.lt.s32.totalorder %v9292_v7, %v10376_v53 }
  0x82   : > { %v3417_v60 = vsel %vm14047_vm0, %v14046_v44, %v14045_v2  ;;  %v14050_v11 = vmov %v14045_v2  ;;  %vm5921_vm3 = vcmp.le.s32.totalorder %v9292_v7, %v10379_v52  ;;  %v14052_v18 = vmov %v14042_v15  ;;  %v10415_v44 = vld [vmem:[%s9319_s8 + $0x20] sm:$0xff] }
  0x83   : > { %v3423_v43 = vadd.s32 1, %v14048_v21  ;;  %v3416_v39 = vsel %vm14051_vm13, %v14050_v11, %v14049_v8  ;;  %vm1363_vm0 = vcmp.ge.s32.totalorder %v1299_v19, 0  ;;  %v3424_v23 = vadd.s32 1, %v14052_v18  ;;  %vm5985_vm9 = vmand %vm13775_vm10, %vm5921_vm3  ;;  %v10418_v21 = vld [vmem:[%s9324_s11 + $0x20] sm:$0xff] }
  0x84   : > { %v6177_v51 = vsel %vm5984_vm1, 1, %v13949_v9  ;;  %v1683_v15 = vsel %vm1363_vm0, %v1292_v47, 0.0  ;;  %v4718_v2 = vcombine.high %v4714_v20, %v4714_v20  ;;  %v6178_v8 = vsel %vm5985_vm9, 1, %v13949_v9 }
  0x85   : > { %vm3551_vm13 = vcmp.lt.s32.totalorder %v3423_v43, 8  ;;  %6300 = vperm.xlu1 %9098, %v6177_v51   ;;  %vm14053_vm5 = vcmask 261120   ;;  %vm3552_vm6 = vcmp.lt.s32.totalorder %v3424_v23, 8  ;;  %v5118_v19 = vcombine.high %v5114_v22, %v5114_v22  ;;  %6303 = vperm.xlu0 %9097, %v6178_v8  }
  0x86   : > { %8850 = vmatmul.mubr.msk.f32.gmra.mxu1 %vm14053_vm5, %v1683_v15  ;;  %v3807_v24 = vsel %vm3551_vm13, %v3417_v60, 0.0  ;;  %vm14054_vm1 = vmmov %vm14053_vm5  ;;  %v3808_v11 = vsel %vm3552_vm6, %v3416_v39, 0.0  ;;  %v10424_v47 = vrot.slane %v4718_v2, %v9376_v28  ;;  %v431_v20 = vand.u32 7, %v9410_v40 }
  0x87   : > { %8953 = vmatprep.mubr.msk.f32.mxu0 %vm14054_vm1, %v3807_v24  ;;  %v14056_v43 = vrot.slane %v9385_v30, 7  ;;  %v14057_v18 = vrot.slane %v9366_v25, 7  ;;  %vm14058_vm9 = vcmp.lt.s32.totalorder %v9292_v7, 1  ;;  %vm14059_vm3 = vmmov %vm14054_vm1  ;;  %v10435_v22 = vrot.slane %v5118_v19, %v9376_v28 }
  0x88   : > { %14055 = vst [vmem:[#allocation77_spill] sm:$0xff] %v10424_v47  ;;  %8954 = vmatmul.mubr.msk.f32.gmra.mxu0 %vm14059_vm3, %v3808_v11  ;;  %v4726_v60 = vrot.slane %v10415_v44, %v9327_v14  ;;  %v5126_v39 = vrot.slane %v10418_v21, %v9327_v14  ;;  %v438_v40 = vand.u32 7, %v9424_v45  ;;  %vm5922_vm6 = vcmp.le.s32.totalorder %v9292_v7, %v10424_v47  ;;  %vm14062_vm0 = vmmov %vm14058_vm9 }
  0x89   : > { %v1291_v51 = vsel %vm14058_vm9, %v14057_v18, %v14056_v43  ;;  %v1300_v25 = vadd.s32 4294967295, %v431_v20  ;;  %v14060_v23 = vrot.slane %v9434_v48, 7  ;;  %v14061_v15 = vmov %v14056_v43 }
  0x8a   : > { %v14063_v8 = vrot.slane %v9434_v48, 1  ;;  %v14064_v24 = vrot.slane %v9385_v30, 1  ;;  %vm14065_vm13 = vcmp.lt.s32.totalorder %v9292_v7, 7  ;;  %vm13774_vm5 = vcmp.lt.s32.totalorder %v9292_v7, %v10435_v22 }
  0x8b   : > { %v1290_v2 = vsel %vm14062_vm0, %v14061_v15, %v14060_v23  ;;  %v4742_v45 = vrot.slane %v4726_v60, %v9327_v14  ;;  %v5142_v11 = vrot.slane %v5126_v39, %v9327_v14  ;;  %v1301_v43 = vadd.s32 4294967295, %v438_v40  ;;  %vm5986_vm1 = vmand %vm13774_vm5, %vm5922_vm6 }
  0x8c   : > { %v3415_v19 = vsel %vm14065_vm13, %v14064_v24, %v14063_v8  ;;  %vm1364_vm9 = vcmp.ge.s32.totalorder %v1300_v25, 0  ;;  %v3425_v18 = vadd.s32 1, %v431_v20  ;;  %v14066_v23 = vrot.slane %v9446_v56, 1  ;;  %vm14068_vm3 = vmmov %vm14065_vm13 }
  0x8d   : > { %v14067_v30 = vmov %v14063_v8  ;;  %v3426_v8 = vadd.s32 1, %v438_v40  ;;  %v6179_v24 = vsel %vm5986_vm1, 1, %v13949_v9  ;;  %v1684_v53 = vsel %vm1364_vm9, %v1291_v51, 0.0 }
  0x8e   : > { %v3414_v15 = vsel %vm14068_vm3, %v14067_v30, %v14066_v23  ;;  %v5446_v47 = vrot.slane %v5142_v11, %v9376_v28  ;;  %v10472_v52 = vrot.slane %v4742_v45, %v9376_v28  ;;  %6306 = vperm.xlu1 %9098, %v6179_v24   ;;  %vm14069_vm6 = vcmask 261120  }
  0x8f   : > { %8852 = vmatprep.mubr.msk.f32.mxu1 %vm14069_vm6, %v1684_v53  ;;  %vm1365_vm0 = vcmp.ge.s32.totalorder %v1301_v43, 0  ;;  %vm3553_vm13 = vcmp.lt.s32.totalorder %v3425_v18, 8  ;;  %vm3554_vm5 = vcmp.lt.s32.totalorder %v3426_v8, 8  ;;  %v4734_v20 = vcombine.high %v4726_v60, %v4726_v60  ;;  %vm14072_vm3 = vmmov %vm14069_vm6 }
  0x90   : > { %vm10476_vm10 = vcmp.lt.s32.totalorder %v9292_v7, %v5446_v47  ;;  %v14070_v25 = vmov 0  ;;  %vm5923_vm1 = vcmp.le.s32.totalorder %v9292_v7, %v10472_v52  ;;  %v1685_v51 = vsel %vm1365_vm0, %v1290_v2, 0.0  ;;  %vm14073_vm6 = vmmov %vm14072_vm3 }
  0x91   : > { %v14071_v25 = vsel %vm10476_vm10, 4294967295, %v14070_v25  ;;  %v3809_v40 = vsel %vm3553_vm13, %v3415_v19, 0.0  ;;  %vm5987_vm9 = vmand %vm10476_vm10, %vm5923_vm1  ;;  %8853 = vmatmul.mubr.msk.f32.gmra.mxu1 %vm14072_vm3, %v1685_v51  ;;  %v3810_v53 = vsel %vm3554_vm5, %v3414_v15, 0.0  ;;  %v4756_v60 = vrot.slane %v4734_v20, %v9327_v14 }
  0x92   : > { %8956 = vmatprep.mubr.msk.f32.mxu0 %vm14073_vm6, %v3809_v40  ;;  %v5134_v43 = vcombine.high %v5126_v39, %v5126_v39  ;;  %v341_v47 = vadd.s32 48, %v9292_v7  ;;  %v6180_v18 = vsel %vm5987_vm9, 1, %v13949_v9  ;;  %vm14074_vm15 = vmmov %vm14072_vm3  ;;  %v14075_v2 = vrot.slane %v9446_v56, 7 }
  0x93   : > { %8957 = vmatmul.mubr.msk.f32.gmra.mxu0 %vm14074_vm15, %v3810_v53  ;;  %v14076_v19 = vrot.slane %v9434_v48, 7  ;;  %vm14077_vm0 = vcmp.lt.s32.totalorder %v9292_v7, 1  ;;  %v4764_v30 = vcombine.high %v4742_v45, %v4742_v45  ;;  %v5164_v8 = vcombine.high %v5142_v11, %v5142_v11  ;;  %6309 = vperm.xlu0 %9097, %v6180_v18  }
  0x94   : > { %v5156_v15 = vrot.slane %v5134_v43, %v9327_v14  ;;  %v10498_v39 = vrot.slane %v4756_v60, %v9376_v28  ;;  %v445_v24 = vand.u32 7, %v341_v47  ;;  %v342_v20 = vadd.s32 56, %v9292_v7  ;;  %vm14081_vm15 = vmmov %vm14077_vm0 }
  0x95   : > { %v1289_v23 = vsel %vm14077_vm0, %v14076_v19, %v14075_v2  ;;  %v10502_v51 = vrot.slane %v5164_v8, %v9376_v28  ;;  %v10505_v40 = vrot.slane %v4764_v30, %v9376_v28  ;;  %v14079_v48 = vrot.slane %v9500_v6, 7 }
  0x96   : > { %v14080_v45 = vmov %v14075_v2  ;;  %v14082_v53 = vrot.slane %v9500_v6, 1  ;;  %v14083_v43 = vrot.slane %v9446_v56, 1  ;;  %vm14084_vm5 = vcmp.lt.s32.totalorder %v9292_v7, 7 }
  0x97   : > { %14078 = vst [vmem:[#allocation78_spill] sm:$0xff] %v10502_v51  ;;  %v1288_v11 = vsel %vm14081_vm15, %v14080_v45, %v14079_v48  ;;  %v5450_v18 = vrot.slane %v5156_v15, %v9376_v28  ;;  %vm5924_vm13 = vcmp.le.s32.totalorder %v9292_v7, %v10498_v39  ;;  %v1302_v2 = vadd.s32 4294967295, %v445_v24  ;;  %vm14087_vm3 = vmmov %vm14084_vm5 }
  0x98   : > { %v3413_v47 = vsel %vm14084_vm5, %v14083_v43, %v14082_v53  ;;  %v452_v19 = vand.u32 7, %v342_v20  ;;  %vm13784_vm1 = vcmp.lt.s32.totalorder %v9292_v7, %v10502_v51  ;;  %vm5925_vm9 = vcmp.le.s32.totalorder %v9292_v7, %v10505_v40 }
  0x99   : > { %v3427_v30 = vadd.s32 1, %v445_v24  ;;  %v14085_v8 = vrot.slane %v9511_v34, 1  ;;  %v14086_v56 = vmov %v14082_v53  ;;  %vm10533_vm6 = vcmp.lt.s32.totalorder %v9292_v7, %v5450_v18  ;;  %vm5989_vm15 = vmand %vm13784_vm1, %vm5925_vm9 }
  0x9a   : > { %vm1366_vm0 = vcmp.ge.s32.totalorder %v1302_v2, 0  ;;  %v1303_v20 = vadd.s32 4294967295, %v452_v19  ;;  %v3428_v53 = vadd.s32 1, %v452_v19  ;;  %vm5988_vm5 = vmand %vm10533_vm6, %vm5924_vm13  ;;  %v6182_v43 = vsel %vm5989_vm15, 1, %v13949_v9 }
  0x9b   : > { %v3412_v48 = vsel %vm14087_vm3, %v14086_v56, %v14085_v8  ;;  %v1686_v24 = vsel %vm1366_vm0, %v1289_v23, 0.0  ;;  %vm3555_vm10 = vcmp.lt.s32.totalorder %v3427_v30, 8  ;;  %v4766_v8 = vcombine.high %v4756_v60, %v4756_v60  ;;  %6315 = vperm.xlu0 %9097, %v6182_v43  }
  0x9c   : > { %v6181_v18 = vsel %vm5988_vm5, 1, %v13949_v9  ;;  %vm14090_vm3 = vcmask 261120   ;;  %vm1367_vm4 = vcmp.ge.s32.totalorder %v1303_v20, 0  ;;  %v3811_v2 = vsel %vm3555_vm10, %v3413_v47, 0.0 }
  0x9d   : > { %8855 = vmatprep.mubr.msk.f32.mxu1 %vm14090_vm3, %v1686_v24  ;;  %vm3556_vm11 = vcmp.lt.s32.totalorder %v3428_v53, 8  ;;  %6312 = vperm.xlu1 %9098, %v6181_v18   ;;  %v1687_v56 = vsel %vm1367_vm4, %v1288_v11, 0.0  ;;  %vm14091_vm9 = vmmov %vm14090_vm3  ;;  %v5166_v51 = vcombine.high %v5156_v15, %v5156_v15  ;;  %v10547_v23 = vrot.slane %v4766_v8, %v9376_v28 }
  0x9e   : > { %8959 = vmatprep.mubr.msk.f32.mxu0 %vm14091_vm9, %v3811_v2  ;;  %v3812_v19 = vsel %vm3556_vm11, %v3412_v48, 0.0  ;;  %vm14093_vm13 = vmmov %vm14090_vm3  ;;  %v343_v60 = vadd.s32 64, %v9292_v7  ;;  %v14095_v30 = vrot.slane %v9511_v34, 7  ;;  %v14096_v47 = vrot.slane %v9500_v6, 7 }
  0x9f   : > { %14092 = vst [vmem:[#allocation79_spill] sm:$0xff] %v10547_v23  ;;  %8856 = vmatmul.mubr.msk.f32.gmra.mxu1 %vm14093_vm13, %v1687_v56  ;;  %vm14094_vm0 = vmmov %vm14090_vm3  ;;  %vm14097_vm10 = vcmp.lt.s32.totalorder %v9292_v7, 1  ;;  %v4719_v48 = vcombine.high %v10415_v44, %v10415_v44  ;;  %v5119_v15 = vcombine.high %v10418_v21, %v10418_v21  ;;  %v10563_v20 = vrot.slane %v5166_v51, %v9376_v28 }
  0xa0   : > { %8960 = vmatmul.mubr.msk.f32.gmra.mxu0 %vm14094_vm0, %v3812_v19  ;;  %v1287_v11 = vsel %vm14097_vm10, %v14096_v47, %v14095_v30  ;;  %vm5926_vm11 = vcmp.le.s32.totalorder %v9292_v7, %v10547_v23  ;;  %v344_v53 = vadd.s32 72, %v9292_v7  ;;  %v14099_v24 = vrot.slane %v9555_v27, 7  ;;  %vm14101_vm4 = vmmov %vm14097_vm10 }
  0xa1   : > { %14098 = vst [vmem:[#allocation80_spill] sm:$0xff] %v10563_v20  ;;  %v14100_v6 = vmov %v14095_v30  ;;  %v459_v8 = vand.u32 7, %v343_v60  ;;  %v4733_v44 = vrot.slane %v4719_v48, %v9327_v14  ;;  %v5133_v21 = vrot.slane %v5119_v15, %v9327_v14 }
  0xa2   : > { %v1286_v43 = vsel %vm14101_vm4, %v14100_v6, %v14099_v24  ;;  %v14102_v51 = vrot.slane %v9555_v27, 1  ;;  %v14103_v18 = vrot.slane %v9511_v34, 1  ;;  %vm14104_vm15 = vcmp.lt.s32.totalorder %v9292_v7, 7 }
  0xa3   : > { %vm13783_vm5 = vcmp.lt.s32.totalorder %v9292_v7, %v10563_v20  ;;  %v466_v56 = vand.u32 7, %v344_v53  ;;  %v14105_v19 = vrot.slane %v9569_v46, 1  ;;  %vm14107_vm3 = vmmov %vm14104_vm15  ;;  %v345_v47 = vadd.s32 80, %v9292_v7 }
  0xa4   : > { %v3411_v2 = vsel %vm14104_vm15, %v14103_v18, %v14102_v51  ;;  %v14106_v30 = vmov %v14102_v51  ;;  %vm5990_vm9 = vmand %vm13783_vm5, %vm5926_vm11  ;;  %v1304_v34 = vadd.s32 4294967295, %v459_v8  ;;  %v4749_v48 = vrot.slane %v4733_v44, %v9327_v14 }
  0xa5   : > { %v3410_v60 = vsel %vm14107_vm3, %v14106_v30, %v14105_v19  ;;  %v5149_v15 = vrot.slane %v5133_v21, %v9327_v14  ;;  %v3429_v24 = vadd.s32 1, %v459_v8  ;;  %v6183_v53 = vsel %vm5990_vm9, 1, %v13949_v9 }
  0xa6   : > { %v1305_v6 = vadd.s32 4294967295, %v466_v56  ;;  %v3430_v51 = vadd.s32 1, %v466_v56  ;;  %v4735_v18 = vcombine.high %v4733_v44, %v4733_v44  ;;  %6318 = vperm.xlu1 %9098, %v6183_v53   ;;  %vm1368_vm13 = vcmp.ge.s32.totalorder %v1304_v34, 0 }
  0xa7   : > { %v5462_v19 = vrot.slane %v5149_v15, %v9376_v28  ;;  %v10599_v30 = vrot.slane %v4749_v48, %v9376_v28  ;;  %vm3557_vm0 = vcmp.lt.s32.totalorder %v3429_v24, 8  ;;  %v1688_v20 = vsel %vm1368_vm13, %v1287_v11, 0.0 }
  0xa8   : > { %vm1369_vm10 = vcmp.ge.s32.totalorder %v1305_v6, 0  ;;  %v3813_v23 = vsel %vm3557_vm0, %v3411_v2, 0.0  ;;  %vm3558_vm11 = vcmp.lt.s32.totalorder %v3430_v51, 8  ;;  %vm14108_vm4 = vcmask 261120  }
  0xa9   : > { %8858 = vmatprep.mubr.msk.f32.mxu1 %vm14108_vm4, %v1688_v20  ;;  %vm10603_vm15 = vcmp.lt.s32.totalorder %v9292_v7, %v5462_v19  ;;  %v14109_v8 = vmov 0  ;;  %vm5927_vm3 = vcmp.le.s32.totalorder %v9292_v7, %v10599_v30  ;;  %v1689_v44 = vsel %vm1369_vm10, %v1286_v43, 0.0  ;;  %vm14112_vm9 = vmmov %vm14108_vm4 }
  0xaa   : > { %v14110_v8 = vsel %vm10603_vm15, 4294967295, %v14109_v8  ;;  %8962 = vmatprep.mubr.msk.f32.mxu0 %vm14112_vm9, %v3813_v23  ;;  %v3814_v56 = vsel %vm3558_vm11, %v3410_v60, 0.0  ;;  %vm5991_vm13 = vmand %vm10603_vm15, %vm5927_vm3  ;;  %v4763_v11 = vrot.slane %v4735_v18, %v9327_v14  ;;  %v5135_v20 = vcombine.high %v5133_v21, %v5133_v21 }
  0xab   : > { %14111 = vst [vmem:[#allocation81_spill] sm:$0xff] %v14110_v8  ;;  %vm14113_vm5 = vmmov %vm14108_vm4  ;;  %v473_v2 = vand.u32 7, %v345_v47  ;;  %v14115_v34 = vrot.slane %v9569_v46, 7  ;;  %v14116_v24 = vrot.slane %v9555_v27, 7  ;;  %vm14117_vm10 = vcmp.lt.s32.totalorder %v9292_v7, 1 }
  0xac   : > { %8859 = vmatmul.mubr.msk.f32.gmra.mxu1 %vm14113_vm5, %v1689_v44  ;;  %vm14114_vm0 = vmmov %vm14108_vm4  ;;  %v6184_v23 = vsel %vm5991_vm13, 1, %v13949_v9  ;;  %v4765_v60 = vcombine.high %v4749_v48, %v4749_v48  ;;  %v5165_v53 = vcombine.high %v5149_v15, %v5149_v15  ;;  %v346_v6 = vadd.s32 88, %v9292_v7 }
  0xad   : > { %8963 = vmatmul.mubr.msk.f32.gmra.mxu0 %vm14114_vm0, %v3814_v56  ;;  %v1285_v43 = vsel %vm14117_vm10, %v14116_v24, %v14115_v34  ;;  %6321 = vperm.xlu0 %9097, %v6184_v23   ;;  %v5163_v51 = vrot.slane %v5135_v20, %v9327_v14  ;;  %v10625_v18 = vrot.slane %v4763_v11, %v9376_v28  ;;  %v1306_v21 = vadd.s32 4294967295, %v473_v2  ;;  %vm14121_vm5 = vmmov %vm14117_vm10 }
  0xae   : > { %v14119_v47 = vrot.slane %v9608_v36, 7  ;;  %v14120_v27 = vmov %v14115_v34  ;;  %v10634_v44 = vrot.slane %v5165_v53, %v9376_v28  ;;  %v10637_v48 = vrot.slane %v4765_v60, %v9376_v28 }
  0xaf   : > { %14118 = vst [vmem:[#allocation82_spill] sm:$0xff] %v10625_v18  ;;  %v480_v15 = vand.u32 7, %v346_v6  ;;  %v14124_v56 = vrot.slane %v9608_v36, 1  ;;  %v14125_v20 = vrot.slane %v9569_v46, 1  ;;  %vm14126_vm11 = vcmp.lt.s32.totalorder %v9292_v7, 7 }
  0xb0   : > { %v1284_v19 = vsel %vm14121_vm5, %v14120_v27, %v14119_v47  ;;  %14122 = vst [vmem:[#allocation83_spill] sm:$0xff] %v10634_v44  ;;  %14123 = vst [vmem:[#allocation84_spill] sm:$0xff] %v10637_v48  ;;  %v5466_v24 = vrot.slane %v5163_v51, %v9376_v28  ;;  %vm5928_vm4 = vcmp.le.s32.totalorder %v9292_v7, %v10625_v18  ;;  %vm1370_vm3 = vcmp.ge.s32.totalorder %v1306_v21, 0 }
  0xb1   : > { %v3409_v34 = vsel %vm14126_vm11, %v14125_v20, %v14124_v56  ;;  %v3431_v23 = vadd.s32 1, %v473_v2  ;;  %v1690_v53 = vsel %vm1370_vm3, %v1285_v43, 0.0  ;;  %vm13794_vm9 = vcmp.lt.s32.totalorder %v9292_v7, %v10634_v44  ;;  %v10671_v20 = vld [vmem:[%s9319_s8 + $0x28] sm:$0xff] }
  0xb2   : > { %vm5929_vm13 = vcmp.le.s32.totalorder %v9292_v7, %v10637_v48  ;;  %v1307_v46 = vadd.s32 4294967295, %v480_v15  ;;  %vm10653_vm0 = vcmp.lt.s32.totalorder %v9292_v7, %v5466_v24  ;;  %v14127_v60 = vmov 0  ;;  %v10674_v24 = vld [vmem:[%s9324_s11 + $0x28] sm:$0xff] }
  0xb3   : > { %v14128_v60 = vsel %vm10653_vm0, 4294967295, %v14127_v60  ;;  %vm14130_vm10 = vcmask 261120   ;;  %vm5993_vm5 = vmand %vm13794_vm9, %vm5929_vm13  ;;  %vm3559_vm11 = vcmp.lt.s32.totalorder %v3431_v23, 8  ;;  %v14131_v2 = vrot.slane %v9623_v38, 1 }
  0xb4   : > { %14129 = vst [vmem:[#allocation85_spill] sm:$0xff] %v14128_v60  ;;  %8861 = vmatprep.mubr.msk.f32.mxu1 %vm14130_vm10, %v1690_v53  ;;  %v14132_v43 = vmov %v14124_v56  ;;  %vm14133_vm3 = vcmp.lt.s32.totalorder %v9292_v7, 7  ;;  %v3432_v21 = vadd.s32 1, %v480_v15  ;;  %vm5992_vm1 = vmand %vm10653_vm0, %vm5928_vm4  ;;  %v6186_v47 = vsel %vm5993_vm5, 1, %v13949_v9 }
  0xb5   : > { %v3408_v6 = vsel %vm14133_vm3, %v14132_v43, %v14131_v2  ;;  %vm1371_vm15 = vcmp.ge.s32.totalorder %v1307_v46, 0  ;;  %v3815_v27 = vsel %vm3559_vm11, %v3409_v34, 0.0  ;;  %v4767_v56 = vcombine.high %v4763_v11, %v4763_v11  ;;  %6327 = vperm.xlu0 %9097, %v6186_v47   ;;  %vm14134_vm13 = vmmov %vm14130_vm10 }
  0xb6   : > { %v6185_v23 = vsel %vm5992_vm1, 1, %v13949_v9  ;;  %v1691_v53 = vsel %vm1371_vm15, %v1284_v19, 0.0  ;;  %8965 = vmatprep.mubr.msk.f32.mxu0 %vm14134_vm13, %v3815_v27  ;;  %vm3560_vm10 = vcmp.lt.s32.totalorder %v3432_v21, 8  ;;  %v5167_v15 = vcombine.high %v5163_v51, %v5163_v51  ;;  %vm14135_vm3 = vmmov %vm14134_vm13 }
  0xb7   : > { %6324 = vperm.xlu1 %9098, %v6185_v23   ;;  %8862 = vmatmul.mubr.msk.f32.gmra.mxu1 %vm14135_vm3, %v1691_v53  ;;  %v3816_v2 = vsel %vm3560_vm10, %v3408_v6, 0.0  ;;  %v10680_v46 = vrot.slane %v4767_v56, %v9376_v28  ;;  %v347_v11 = vadd.s32 96, %v9292_v7  ;;  %v14137_v34 = vrot.slane %v9623_v38, 7  ;;  %vm14140_vm15 = vmmov %vm14135_vm3 }
  0xb8   : > { %v14138_v43 = vrot.slane %v9608_v36, 7  ;;  %vm14139_vm1 = vcmp.lt.s32.totalorder %v9292_v7, 1  ;;  %8966 = vmatmul.mubr.msk.f32.gmra.mxu0 %vm14140_vm15, %v3816_v2  ;;  %v10691_v51 = vrot.slane %v5167_v15, %v9376_v28  ;;  %v4775_v6 = vrot.slane %v10671_v20, %v9327_v14 }
  0xb9   : > { %14136 = vst [vmem:[#allocation86_spill] sm:$0xff] %v10680_v46  ;;  %v5175_v21 = vrot.slane %v10674_v24, %v9327_v14  ;;  %v348_v47 = vadd.s32 104, %v9292_v7  ;;  %vm5930_vm4 = vcmp.le.s32.totalorder %v9292_v7, %v10680_v46  ;;  %v487_v36 = vand.u32 7, %v347_v11  ;;  %vm14144_vm5 = vmmov %vm14139_vm1 }
  0xba   : > { %v1283_v19 = vsel %vm14139_vm1, %v14138_v43, %v14137_v34  ;;  %14141 = vst [vmem:[#allocation87_spill] sm:$0xff] %v10691_v51  ;;  %v14142_v27 = vrot.slane %v9666_v29, 7  ;;  %v14143_v56 = vmov %v14137_v34  ;;  %v14145_v53 = vrot.slane %v9666_v29, 1 }
  0xbb   : > { %v14146_v15 = vrot.slane %v9623_v38, 1  ;;  %vm14147_vm11 = vcmp.lt.s32.totalorder %v9292_v7, 7  ;;  %vm13793_vm13 = vcmp.lt.s32.totalorder %v9292_v7, %v10691_v51  ;;  %v4791_v34 = vrot.slane %v4775_v6, %v9327_v14 }
  0xbc   : > { %v1282_v23 = vsel %vm14144_vm5, %v14143_v56, %v14142_v27  ;;  %v5191_v11 = vrot.slane %v5175_v21, %v9327_v14  ;;  %v494_v43 = vand.u32 7, %v348_v47  ;;  %vm5994_vm10 = vmand %vm13793_vm13, %vm5930_vm4  ;;  %v1308_v27 = vadd.s32 4294967295, %v487_v36 }
  0xbd   : > { %v3407_v2 = vsel %vm14147_vm11, %v14146_v15, %v14145_v53  ;;  %v3433_v56 = vadd.s32 1, %v487_v36  ;;  %v14148_v44 = vrot.slane %v9690_v5, 1  ;;  %v14149_v38 = vmov %v14145_v53  ;;  %vm14150_vm3 = vmmov %vm14147_vm11 }
  0xbe   : > { %v4783_v15 = vcombine.high %v4775_v6, %v4775_v6  ;;  %v6187_v60 = vsel %vm5994_vm10, 1, %v13949_v9  ;;  %v5478_v46 = vrot.slane %v5191_v11, %v9376_v28  ;;  %v10728_v47 = vrot.slane %v4791_v34, %v9376_v28 }
  0xbf   : > { %v3406_v53 = vsel %vm14150_vm3, %v14149_v38, %v14148_v44  ;;  %v1309_v8 = vadd.s32 4294967295, %v494_v43  ;;  %6330 = vperm.xlu1 %9098, %v6187_v60   ;;  %vm1372_vm1 = vcmp.ge.s32.totalorder %v1308_v27, 0  ;;  %vm3561_vm15 = vcmp.lt.s32.totalorder %v3433_v56, 8 }
  0xc0   : > { %v3434_v36 = vadd.s32 1, %v494_v43  ;;  %v4805_v51 = vrot.slane %v4783_v15, %v9327_v14  ;;  %v1692_v48 = vsel %vm1372_vm1, %v1283_v19, 0.0  ;;  %vm10732_vm4 = vcmp.lt.s32.totalorder %v9292_v7, %v5478_v46 }
  0xc1   : > { %v14151_v18 = vmov 0  ;;  %vm5931_vm5 = vcmp.le.s32.totalorder %v9292_v7, %v10728_v47  ;;  %vm1373_vm11 = vcmp.ge.s32.totalorder %v1309_v8, 0  ;;  %vm14153_vm10 = vcmask 261120  }
  0xc2   : > { %v14152_v18 = vsel %vm10732_vm4, 4294967295, %v14151_v18  ;;  %8864 = vmatprep.mubr.msk.f32.mxu1 %vm14153_vm10, %v1692_v48  ;;  %vm5995_vm3 = vmand %vm10732_vm4, %vm5931_vm5  ;;  %v1693_v44 = vsel %vm1373_vm11, %v1282_v23, 0.0  ;;  %v3817_v60 = vsel %vm3561_vm15, %v3407_v2, 0.0  ;;  %vm3562_vm13 = vcmp.lt.s32.totalorder %v3434_v36, 8 }
  0xc3   : > { %v5183_v6 = vcombine.high %v5175_v21, %v5175_v21  ;;  %v6188_v19 = vsel %vm5995_vm3, 1, %v13949_v9  ;;  %vm14154_vm1 = vmmov %vm14153_vm10  ;;  %v3818_v46 = vsel %vm3562_vm13, %v3406_v53, 0.0  ;;  %v10745_v43 = vrot.slane %v4805_v51, %v9376_v28 }
  0xc4   : > { %8865 = vmatmul.mubr.msk.f32.gmra.mxu1 %vm14154_vm1, %v1693_v44  ;;  %vm14155_vm9 = vmmov %vm14154_vm1  ;;  %v349_v8 = vadd.s32 112, %v9292_v7  ;;  %6333 = vperm.xlu0 %9097, %v6188_v19   ;;  %v14157_v23 = vrot.slane %v9690_v5, 7  ;;  %v14158_v21 = vrot.slane %v9666_v29, 7  ;;  %vm14159_vm15 = vcmp.lt.s32.totalorder %v9292_v7, 1 }
  0xc5   : > { %8968 = vmatprep.mubr.msk.f32.mxu0 %vm14155_vm9, %v3817_v60  ;;  %vm14156_vm10 = vmmov %vm14154_vm1  ;;  %v5205_v48 = vrot.slane %v5183_v6, %v9327_v14  ;;  %v4813_v27 = vcombine.high %v4791_v34, %v4791_v34  ;;  %v350_v56 = vadd.s32 120, %v9292_v7  ;;  %vm5932_vm9 = vcmp.le.s32.totalorder %v9292_v7, %v10745_v43 }
  0xc6   : > { %8969 = vmatmul.mubr.msk.f32.gmra.mxu0 %vm14156_vm10, %v3818_v46  ;;  %v1281_v2 = vsel %vm14159_vm15, %v14158_v21, %v14157_v23  ;;  %v501_v38 = vand.u32 7, %v349_v8  ;;  %v5213_v53 = vcombine.high %v5191_v11, %v5191_v11  ;;  %v14160_v15 = vrot.slane %v9719_v57, 7  ;;  %vm14162_vm13 = vmmov %vm14159_vm15 }
  0xc7   : > { %v14161_v36 = vmov %v14157_v23  ;;  %v5482_v29 = vrot.slane %v5205_v48, %v9376_v28  ;;  %v10767_v60 = vrot.slane %v4813_v27, %v9376_v28  ;;  %v508_v34 = vand.u32 7, %v350_v56 }
  0xc8   : > { %v1280_v44 = vsel %vm14162_vm13, %v14161_v36, %v14160_v15  ;;  %v14163_v6 = vrot.slane %v9719_v57, 1  ;;  %v14164_v19 = vrot.slane %v9690_v5, 1  ;;  %vm14165_vm5 = vcmp.lt.s32.totalorder %v9292_v7, 7 }
  0xc9   : > { %v1310_v46 = vadd.s32 4294967295, %v501_v38  ;;  %v10776_v8 = vrot.slane %v5213_v53, %v9376_v28  ;;  %v3435_v23 = vadd.s32 1, %v501_v38  ;;  %v14167_v21 = vrot.slane %v9747_v0, 1  ;;  %vm14169_vm11 = vmmov %vm14165_vm5 }
  0xca   : > { %v3405_v11 = vsel %vm14165_vm5, %v14164_v19, %v14163_v6  ;;  %v14168_v15 = vmov %v14163_v6  ;;  %vm10785_vm3 = vcmp.lt.s32.totalorder %v9292_v7, %v5482_v29  ;;  %v14170_v56 = vmov 0 }
  0xcb   : > { %14166 = vst [vmem:[#allocation88_spill] sm:$0xff] %v10776_v8  ;;  %v3404_v27 = vsel %vm14169_vm11, %v14168_v15, %v14167_v21  ;;  %v14171_v56 = vsel %vm10785_vm3, 4294967295, %v14170_v56  ;;  %vm5933_vm1 = vcmp.le.s32.totalorder %v9292_v7, %v10767_v60  ;;  %v1311_v5 = vadd.s32 4294967295, %v508_v34  ;;  %vm5996_vm10 = vmand %vm10785_vm3, %vm5932_vm9 }
  0xcc   : > { %v3436_v36 = vadd.s32 1, %v508_v34  ;;  %vm1374_vm15 = vcmp.ge.s32.totalorder %v1310_v46, 0  ;;  %vm13801_vm13 = vcmp.lt.s32.totalorder %v9292_v7, %v10776_v8  ;;  %vm3563_vm5 = vcmp.lt.s32.totalorder %v3435_v23, 8 }
  0xcd   : > { %v4815_v38 = vcombine.high %v4805_v51, %v4805_v51  ;;  %v6189_v53 = vsel %vm5996_vm10, 1, %v13949_v9  ;;  %v1694_v29 = vsel %vm1374_vm15, %v1281_v2, 0.0  ;;  %vm5997_vm11 = vmand %vm13801_vm13, %vm5933_vm1  ;;  %vm1375_vm4 = vcmp.ge.s32.totalorder %v1311_v5, 0 }
  0xce   : > { %v3819_v34 = vsel %vm3563_vm5, %v3405_v11, 0.0  ;;  %6336 = vperm.xlu1 %9098, %v6189_v53   ;;  %vm14172_vm0 = vcmask 261120   ;;  %v6190_v6 = vsel %vm5997_vm11, 1, %v13949_v9  ;;  %v1695_v19 = vsel %vm1375_vm4, %v1280_v44, 0.0 }
  0xcf   : > { %8867 = vmatprep.mubr.msk.f32.mxu1 %vm14172_vm0, %v1694_v29  ;;  %vm3564_vm9 = vcmp.lt.s32.totalorder %v3436_v36, 8  ;;  %v5215_v46 = vcombine.high %v5205_v48, %v5205_v48  ;;  %6339 = vperm.xlu0 %9097, %v6190_v6   ;;  %vm14173_vm3 = vmmov %vm14172_vm0  ;;  %v10806_v2 = vrot.slane %v4815_v38, %v9376_v28  ;;  %v351_v23 = vadd.s32 128, %v9292_v7 }
  0xd0   : > { %8868 = vmatmul.mubr.msk.f32.gmra.mxu1 %vm14173_vm3, %v1695_v19  ;;  %v3820_v51 = vsel %vm3564_vm9, %v3404_v27, 0.0  ;;  %v14174_v21 = vrot.slane %v9747_v0, 7  ;;  %v14175_v11 = vrot.slane %v9719_v57, 7  ;;  %vm14176_vm0 = vcmp.lt.s32.totalorder %v9292_v7, 1  ;;  %vm14177_vm1 = vmmov %vm14173_vm3 }
  0xd1   : > { %8971 = vmatprep.mubr.msk.f32.mxu0 %vm14177_vm1, %v3819_v34  ;;  %v10817_v48 = vrot.slane %v5215_v46, %v9376_v28  ;;  %v4768_v44 = vcombine.high %v10671_v20, %v10671_v20  ;;  %v5168_v27 = vcombine.high %v10674_v24, %v10674_v24  ;;  %v352_v5 = vadd.s32 136, %v9292_v7  ;;  %vm14179_vm4 = vmmov %vm14177_vm1 }
  0xd2   : > { %v1279_v15 = vsel %vm14176_vm0, %v14175_v11, %v14174_v21  ;;  %8972 = vmatmul.mubr.msk.f32.gmra.mxu0 %vm14179_vm4, %v3820_v51  ;;  %vm5934_vm3 = vcmp.le.s32.totalorder %v9292_v7, %v10806_v2  ;;  %v515_v57 = vand.u32 7, %v351_v23  ;;  %v14180_v36 = vrot.slane %v9773_v4, 7  ;;  %vm14182_vm10 = vmmov %vm14176_vm0 }
  0xd3   : > { %14178 = vst [vmem:[#allocation89_spill] sm:$0xff] %v10817_v48  ;;  %v14181_v38 = vmov %v14174_v21  ;;  %v14183_v20 = vrot.slane %v9773_v4, 1  ;;  %v14184_v29 = vrot.slane %v9747_v0, 1  ;;  %vm14185_vm15 = vcmp.lt.s32.totalorder %v9292_v7, 7 }
  0xd4   : > { %v1278_v53 = vsel %vm14182_vm10, %v14181_v38, %v14180_v36  ;;  %vm13800_vm5 = vcmp.lt.s32.totalorder %v9292_v7, %v10817_v48  ;;  %v4782_v34 = vrot.slane %v4768_v44, %v9327_v14  ;;  %v5182_v6 = vrot.slane %v5168_v27, %v9327_v14  ;;  %vm14188_vm9 = vmmov %vm14185_vm15 }
  0xd5   : > { %v3403_v24 = vsel %vm14185_vm15, %v14184_v29, %v14183_v20  ;;  %v522_v19 = vand.u32 7, %v352_v5  ;;  %vm5998_vm11 = vmand %vm13800_vm5, %vm5934_vm3  ;;  %v1312_v46 = vadd.s32 4294967295, %v515_v57  ;;  %v3437_v51 = vadd.s32 1, %v515_v57 }
  0xd6   : > { %v14186_v23 = vrot.slane %v9802_v37, 1  ;;  %v14187_v0 = vmov %v14183_v20  ;;  %v353_v11 = vadd.s32 144, %v9292_v7  ;;  %v6191_v44 = vsel %vm5998_vm11, 1, %v13949_v9 }
  0xd7   : > { %v4798_v27 = vrot.slane %v4782_v34, %v9327_v14  ;;  %v5198_v5 = vrot.slane %v5182_v6, %v9327_v14  ;;  %v1313_v36 = vadd.s32 4294967295, %v522_v19  ;;  %6342 = vperm.xlu1 %9098, %v6191_v44   ;;  %vm1376_vm0 = vcmp.ge.s32.totalorder %v1312_v46, 0 }
  0xd8   : > { %v3402_v21 = vsel %vm14188_vm9, %v14187_v0, %v14186_v23  ;;  %vm3565_vm1 = vcmp.lt.s32.totalorder %v3437_v51, 8  ;;  %v3438_v57 = vadd.s32 1, %v522_v19  ;;  %v4784_v38 = vcombine.high %v4782_v34, %v4782_v34 }
  0xd9   : > { %v1696_v20 = vsel %vm1376_vm0, %v1279_v15, 0.0  ;;  %v5494_v29 = vrot.slane %v5198_v5, %v9376_v28  ;;  %v10858_v48 = vrot.slane %v4798_v27, %v9376_v28  ;;  %vm1377_vm4 = vcmp.ge.s32.totalorder %v1313_v36, 0 }
  0xda   : > { %vm14190_vm3 = vcmask 261120   ;;  %v1697_v23 = vsel %vm1377_vm4, %v1278_v53, 0.0  ;;  %v3821_v0 = vsel %vm3565_vm1, %v3403_v24, 0.0  ;;  %vm3566_vm10 = vcmp.lt.s32.totalorder %v3438_v57, 8 }
  0xdb   : > { %14189 = vst [vmem:[#allocation90_spill] sm:$0xff] %v10858_v48  ;;  %8870 = vmatprep.mubr.msk.f32.mxu1 %vm14190_vm3, %v1696_v20  ;;  %v4812_v8 = vrot.slane %v4784_v38, %v9327_v14  ;;  %vm10863_vm15 = vcmp.lt.s32.totalorder %v9292_v7, %v5494_v29  ;;  %v14191_v46 = vmov 0  ;;  %vm5935_vm11 = vcmp.le.s32.totalorder %v9292_v7, %v10858_v48  ;;  %vm14194_vm9 = vmmov %vm14190_vm3 }
  0xdc   : > { %v14192_v46 = vsel %vm10863_vm15, 4294967295, %v14191_v46  ;;  %8871 = vmatmul.mubr.msk.f32.gmra.mxu1 %vm14194_vm9, %v1697_v23  ;;  %vm14195_vm0 = vmmov %vm14190_vm3  ;;  %v3822_v15 = vsel %vm3566_vm10, %v3402_v21, 0.0  ;;  %v5184_v34 = vcombine.high %v5182_v6, %v5182_v6  ;;  %v529_v24 = vand.u32 7, %v353_v11 }
  0xdd   : > { %14193 = vst [vmem:[#allocation91_spill] sm:$0xff] %v14192_v46  ;;  %8974 = vmatprep.mubr.msk.f32.mxu0 %vm14195_vm0, %v3821_v0  ;;  %vm5999_vm1 = vmand %vm10863_vm15, %vm5935_vm11  ;;  %v10875_v53 = vrot.slane %v4812_v8, %v9376_v28  ;;  %v14198_v19 = vrot.slane %v9802_v37, 7  ;;  %v14199_v51 = vrot.slane %v9773_v4, 7  ;;  %vm14200_vm3 = vcmp.lt.s32.totalorder %v9292_v7, 1 }
  0xde   : > { %vm14196_vm4 = vmmov %vm14195_vm0  ;;  %v4814_v36 = vcombine.high %v4798_v27, %v4798_v27  ;;  %v6192_v21 = vsel %vm5999_vm1, 1, %v13949_v9  ;;  %v5212_v6 = vrot.slane %v5184_v34, %v9327_v14  ;;  %v5214_v57 = vcombine.high %v5198_v5, %v5198_v5 }
  0xdf   : > { %8975 = vmatmul.mubr.msk.f32.gmra.mxu0 %vm14196_vm4, %v3822_v15  ;;  %14197 = vst [vmem:[#allocation92_spill] sm:$0xff] %v10875_v53  ;;  %v1277_v44 = vsel %vm14200_vm3, %v14199_v51, %v14198_v19  ;;  %v354_v38 = vadd.s32 152, %v9292_v7  ;;  %6345 = vperm.xlu0 %9097, %v6192_v21   ;;  %vm5936_vm10 = vcmp.le.s32.totalorder %v9292_v7, %v10875_v53  ;;  %v1314_v11 = vadd.s32 4294967295, %v529_v24  ;;  %vm14204_vm11 = vmmov %vm14200_vm3 }
  0xe0   : > { %v10889_v20 = vrot.slane %v4814_v36, %v9376_v28  ;;  %v14202_v4 = vrot.slane %v9824_v58, 7  ;;  %v14203_v29 = vmov %v14198_v19  ;;  %v5498_v23 = vrot.slane %v5212_v6, %v9376_v28 }
  0xe1   : > { %v10899_v5 = vrot.slane %v5214_v57, %v9376_v28  ;;  %v536_v0 = vand.u32 7, %v354_v38  ;;  %v14206_v15 = vrot.slane %v9824_v58, 1  ;;  %v14207_v34 = vrot.slane %v9802_v37, 1 }
  0xe2   : > { %14201 = vst [vmem:[#allocation93_spill] sm:$0xff] %v10889_v20  ;;  %v1276_v27 = vsel %vm14204_vm11, %v14203_v29, %v14202_v4  ;;  %vm14208_vm9 = vcmp.lt.s32.totalorder %v9292_v7, 7  ;;  %vm1378_vm0 = vcmp.ge.s32.totalorder %v1314_v11, 0  ;;  %vm5937_vm1 = vcmp.le.s32.totalorder %v9292_v7, %v10889_v20 }
  0xe3   : > { %14205 = vst [vmem:[#allocation94_spill] sm:$0xff] %v10899_v5  ;;  %v3401_v19 = vsel %vm14208_vm9, %v14207_v34, %v14206_v15  ;;  %v3439_v51 = vadd.s32 1, %v529_v24  ;;  %v14209_v36 = vrot.slane %v9836_v33, 1  ;;  %v14210_v21 = vmov %v14206_v15  ;;  %vm14211_vm4 = vmmov %vm14208_vm9  ;;  %v10934_v34 = vld [vmem:[%s9319_s8 + $0x30] sm:$0xff] }
  0xe4   : > { %vm10916_vm3 = vcmp.lt.s32.totalorder %v9292_v7, %v5498_v23  ;;  %v14212_v38 = vmov 0  ;;  %v1698_v37 = vsel %vm1378_vm0, %v1277_v44, 0.0  ;;  %vm13811_vm11 = vcmp.lt.s32.totalorder %v9292_v7, %v10899_v5 }
  0xe5   : > { %v3400_v57 = vsel %vm14211_vm4, %v14210_v21, %v14209_v36  ;;  %v14213_v38 = vsel %vm10916_vm3, 4294967295, %v14212_v38  ;;  %v1315_v11 = vadd.s32 4294967295, %v536_v0  ;;  %vm6000_vm9 = vmand %vm10916_vm3, %vm5936_vm10  ;;  %vm14215_vm5 = vcmask 261120   ;;  %v10937_v36 = vld [vmem:[%s9324_s11 + $0x30] sm:$0xff] }
  0xe6   : > { %14214 = vst [vmem:[#allocation95_spill] sm:$0xff] %v14213_v38  ;;  %8873 = vmatprep.mubr.msk.f32.mxu1 %vm14215_vm5, %v1698_v37  ;;  %vm3567_vm4 = vcmp.lt.s32.totalorder %v3439_v51, 8  ;;  %v3440_v24 = vadd.s32 1, %v536_v0  ;;  %v4816_v4 = vcombine.high %v4812_v8, %v4812_v8  ;;  %v5216_v29 = vcombine.high %v5212_v6, %v5212_v6  ;;  %vm6001_vm0 = vmand %vm13811_vm11, %vm5937_vm1 }
  0xe7   : > { %v6193_v23 = vsel %vm6000_vm9, 1, %v13949_v9  ;;  %vm1379_vm13 = vcmp.ge.s32.totalorder %v1315_v11, 0  ;;  %v3823_v44 = vsel %vm3567_vm4, %v3401_v19, 0.0  ;;  %v355_v15 = vadd.s32 160, %v9292_v7  ;;  %vm14217_vm1 = vmmov %vm14215_vm5 }
  0xe8   : > { %6348 = vperm.xlu1 %9098, %v6193_v23   ;;  %v6194_v51 = vsel %vm6001_vm0, 1, %v13949_v9  ;;  %v1699_v0 = vsel %vm1379_vm13, %v1276_v27, 0.0  ;;  %8977 = vmatprep.mubr.msk.f32.mxu0 %vm14215_vm5, %v3823_v44  ;;  %vm3568_vm10 = vcmp.lt.s32.totalorder %v3440_v24, 8  ;;  %v10942_v8 = vrot.slane %v5216_v29, %v9376_v28  ;;  %vm14222_vm9 = vmmov %vm14217_vm1 }
  0xe9   : > { %6351 = vperm.xlu0 %9097, %v6194_v51   ;;  %8874 = vmatmul.mubr.msk.f32.gmra.mxu1 %vm14217_vm1, %v1699_v0  ;;  %v3824_v6 = vsel %vm3568_vm10, %v3400_v57, 0.0  ;;  %v10946_v19 = vrot.slane %v4816_v4, %v9376_v28  ;;  %v543_v21 = vand.u32 7, %v355_v15  ;;  %v14219_v37 = vrot.slane %v9836_v33, 7 }
  0xea   : > { %14216 = vst [vmem:[#allocation96_spill] sm:$0xff] %v10942_v8  ;;  %v14220_v11 = vrot.slane %v9824_v58, 7  ;;  %vm14221_vm13 = vcmp.lt.s32.totalorder %v9292_v7, 1  ;;  %8978 = vmatmul.mubr.msk.f32.gmra.mxu0 %vm14222_vm9, %v3824_v6  ;;  %vm13810_vm4 = vcmp.lt.s32.totalorder %v9292_v7, %v10942_v8  ;;  %v4824_v24 = vrot.slane %v10934_v34, %v9327_v14 }
  0xeb   : > { %14218 = vst [vmem:[#allocation97_spill] sm:$0xff] %v10946_v19  ;;  %v5224_v57 = vrot.slane %v10937_v36, %v9327_v14  ;;  %v356_v4 = vadd.s32 168, %v9292_v7  ;;  %vm5938_vm0 = vcmp.le.s32.totalorder %v9292_v7, %v10946_v19  ;;  %v1316_v58 = vadd.s32 4294967295, %v543_v21  ;;  %vm14225_vm5 = vmmov %vm14221_vm13 }
  0xec   : > { %v1275_v27 = vsel %vm14221_vm13, %v14220_v11, %v14219_v37  ;;  %v14223_v29 = vrot.slane %v9873_v35, 7  ;;  %v14224_v23 = vmov %v14219_v37  ;;  %v14226_v15 = vrot.slane %v9873_v35, 1  ;;  %vm6002_vm1 = vmand %vm13810_vm4, %vm5938_vm0 }
  0xed   : > { %v14227_v51 = vrot.slane %v9836_v33, 1  ;;  %vm14228_vm10 = vcmp.lt.s32.totalorder %v9292_v7, 7  ;;  %v4840_v6 = vrot.slane %v4824_v24, %v9327_v14  ;;  %v5240_v37 = vrot.slane %v5224_v57, %v9327_v14 }
  0xee   : > { %v1274_v44 = vsel %vm14225_vm5, %v14224_v23, %v14223_v29  ;;  %v550_v11 = vand.u32 7, %v356_v4  ;;  %v3441_v5 = vadd.s32 1, %v543_v21  ;;  %v6195_v38 = vsel %vm6002_vm1, 1, %v13949_v9  ;;  %vm14231_vm9 = vmmov %vm14228_vm10 }
  0xef   : > { %v3399_v0 = vsel %vm14228_vm10, %v14227_v51, %v14226_v15  ;;  %vm1380_vm13 = vcmp.ge.s32.totalorder %v1316_v58, 0  ;;  %v14229_v29 = vrot.slane %v9881_v61, 1  ;;  %v14230_v33 = vmov %v14226_v15  ;;  %6354 = vperm.xlu1 %9098, %v6195_v38  }
  0xf0   : > { %v4832_v15 = vcombine.high %v4824_v24, %v4824_v24  ;;  %v1700_v51 = vsel %vm1380_vm13, %v1275_v27, 0.0  ;;  %v5510_v8 = vrot.slane %v5240_v37, %v9376_v28  ;;  %v10990_v46 = vrot.slane %v4840_v6, %v9376_v28 }
  0xf1   : > { %v3398_v23 = vsel %vm14231_vm9, %v14230_v33, %v14229_v29  ;;  %v1317_v4 = vadd.s32 4294967295, %v550_v11  ;;  %vm14232_vm0 = vcmask 261120   ;;  %vm3569_vm5 = vcmp.lt.s32.totalorder %v3441_v5, 8 }
  0xf2   : > { %8876 = vmatprep.mubr.msk.f32.mxu1 %vm14232_vm0, %v1700_v51  ;;  %v3442_v21 = vadd.s32 1, %v550_v11  ;;  %v4854_v58 = vrot.slane %v4832_v15, %v9327_v14  ;;  %v5232_v19 = vcombine.high %v5224_v57, %v5224_v57  ;;  %vm10995_vm10 = vcmp.lt.s32.totalorder %v9292_v7, %v5510_v8  ;;  %vm14236_vm11 = vmmov %vm14232_vm0  ;;  %v11022_v15 = vpop.permute.xlu0 %6213 }
  0xf3   : > { %v14233_v20 = vmov 0  ;;  %vm5939_vm1 = vcmp.le.s32.totalorder %v9292_v7, %v10990_v46  ;;  %vm1381_vm13 = vcmp.ge.s32.totalorder %v1317_v4, 0  ;;  %v3825_v38 = vsel %vm3569_vm5, %v3399_v0, 0.0 }
  0xf4   : > { %v14234_v20 = vsel %vm10995_vm10, 4294967295, %v14233_v20  ;;  %vm6003_vm9 = vmand %vm10995_vm10, %vm5939_vm1  ;;  %v1701_v27 = vsel %vm1381_vm13, %v1274_v44, 0.0  ;;  %8980 = vmatprep.mubr.msk.f32.mxu0 %vm14232_vm0, %v3825_v38  ;;  %vm3570_vm4 = vcmp.lt.s32.totalorder %v3442_v21, 8  ;;  %v5254_v5 = vrot.slane %v5232_v19, %v9327_v14 }
  0xf5   : > { %14235 = vst [vmem:[#allocation98_spill] sm:$0xff] %v14234_v20  ;;  %v11006_v24 = vrot.slane %v4854_v58, %v9376_v28  ;;  %v6196_v8 = vsel %vm6003_vm9, 1, %v13949_v9  ;;  %8877 = vmatmul.mubr.msk.f32.gmra.mxu1 %vm14236_vm11, %v1701_v27  ;;  %v3826_v57 = vsel %vm3570_vm4, %v3398_v23, 0.0  ;;  %v357_v11 = vadd.s32 176, %v9292_v7  ;;  %vm14240_vm1 = vmmov %vm14232_vm0 }
  0xf6   : > { %v14237_v0 = vrot.slane %v9881_v61, 7  ;;  %v14238_v29 = vrot.slane %v9873_v35, 7  ;;  %vm14239_vm5 = vcmp.lt.s32.totalorder %v9292_v7, 1  ;;  %6357 = vperm.xlu0 %9097, %v6196_v8   ;;  %8981 = vmatmul.mubr.msk.f32.gmra.mxu0 %vm14240_vm1, %v3826_v57  ;;  %v5514_v19 = vrot.slane %v5254_v5, %v9376_v28 }
  0xf7   : > { %vm5940_vm13 = vcmp.le.s32.totalorder %v9292_v7, %v11006_v24  ;;  %v4862_v33 = vcombine.high %v4840_v6, %v4840_v6  ;;  %v358_v23 = vadd.s32 184, %v9292_v7  ;;  %v557_v51 = vand.u32 7, %v357_v11  ;;  %vm14243_vm11 = vmmov %vm14239_vm5 }
  0xf8   : > { %v1273_v44 = vsel %vm14239_vm5, %v14238_v29, %v14237_v0  ;;  %v5262_v4 = vcombine.high %v5240_v37, %v5240_v37  ;;  %v14241_v35 = vrot.slane %v9906_v63, 7  ;;  %v14242_v21 = vmov %v14237_v0 }
  0xf9   : > { %v14244_v27 = vrot.slane %v9906_v63, 1  ;;  %v14245_v8 = vrot.slane %v9881_v61, 1  ;;  %vm14246_vm4 = vcmp.lt.s32.totalorder %v9292_v7, 7  ;;  %vm11037_vm9 = vcmp.lt.s32.totalorder %v9292_v7, %v5514_v19 }
  0xfa   : > { %v1272_v38 = vsel %vm14243_vm11, %v14242_v21, %v14241_v35  ;;  %v11042_v37 = vrot.slane %v4862_v33, %v9376_v28  ;;  %v564_v11 = vand.u32 7, %v358_v23  ;;  %v14249_v0 = vrot.slane %v9915_v49, 1  ;;  %vm14251_vm0 = vmmov %vm14246_vm4 }
  0xfb   : > { %v3397_v6 = vsel %vm14246_vm4, %v14245_v8, %v14244_v27  ;;  %v14250_v29 = vmov %v14244_v27  ;;  %vm6004_vm5 = vmand %vm11037_vm9, %vm5940_vm13  ;;  %v1318_v61 = vadd.s32 4294967295, %v557_v51  ;;  %v11053_v19 = vrot.slane %v5262_v4, %v9376_v28  ;;  %v11065_v4 = vpop.permute.xlu0 %6237 }
  0xfc   : > { %v3396_v35 = vsel %vm14251_vm0, %v14250_v29, %v14249_v0  ;;  %v3443_v21 = vadd.s32 1, %v557_v51  ;;  %v4864_v27 = vcombine.high %v4854_v58, %v4854_v58  ;;  %v6197_v33 = vsel %vm6004_vm5, 1, %v13949_v9  ;;  %v11063_v51 = vpop.permute.xlu1 %6219  ;;  %14253 = vst [vmem:[#allocation100_spill] sm:$0xff] %v11065_v4 }
  0xfd   : > { %14252 = vst [vmem:[#allocation99_spill] sm:$0xff] %v11053_v19  ;;  %vm5941_vm1 = vcmp.le.s32.totalorder %v9292_v7, %v11042_v37  ;;  %v1319_v23 = vadd.s32 4294967295, %v564_v11  ;;  %v3444_v8 = vadd.s32 1, %v564_v11  ;;  %6360 = vperm.xlu1 %9098, %v6197_v33   ;;  %vm1382_vm11 = vcmp.ge.s32.totalorder %v1318_v61, 0 }
  0xfe   : > { %vm13825_vm4 = vcmp.lt.s32.totalorder %v9292_v7, %v11053_v19  ;;  %vm3571_vm0 = vcmp.lt.s32.totalorder %v3443_v21, 8  ;;  %v5264_v0 = vcombine.high %v5254_v5, %v5254_v5  ;;  %v1702_v29 = vsel %vm1382_vm11, %v1273_v44, 0.0 }
  0xff   : > { %vm6005_vm13 = vmand %vm13825_vm4, %vm5941_vm1  ;;  %vm1383_vm3 = vcmp.ge.s32.totalorder %v1319_v23, 0  ;;  %v3827_v58 = vsel %vm3571_vm0, %v3397_v6, 0.0  ;;  %vm3572_vm5 = vcmp.lt.s32.totalorder %v3444_v8, 8  ;;  %vm14254_vm15 = vcmask 261120  }
 0x100   : > { %8879 = vmatprep.mubr.msk.f32.mxu1 %vm14254_vm15, %v1702_v29  ;;  %v6198_v11 = vsel %vm6005_vm13, 1, %v13949_v9  ;;  %v1703_v61 = vsel %vm1383_vm3, %v1272_v38, 0.0  ;;  %vm14255_vm10 = vmmov %vm14254_vm15  ;;  %v3828_v5 = vsel %vm3572_vm5, %v3396_v35, 0.0  ;;  %v11071_v44 = vrot.slane %v5264_v0, %v9376_v28  ;;  %v11120_v4 = vpop.permute.xlu1 %6240 }
 0x101   : > { %8983 = vmatprep.mubr.msk.f32.mxu0 %vm14255_vm10, %v3827_v58  ;;  %6363 = vperm.xlu0 %9097, %v6198_v11   ;;  %vm14257_vm1 = vmmov %vm14255_vm10  ;;  %v11075_v6 = vrot.slane %v4864_v27, %v9376_v28  ;;  %v359_v21 = vadd.s32 192, %v9292_v7  ;;  %v14258_v33 = vrot.slane %v9915_v49, 7  ;;  %v14259_v23 = vrot.slane %v9906_v63, 7  ;;  %14271 = vst [vmem:[#allocation102_spill] sm:$0xff] %v11120_v4 }
 0x102   : > { %14256 = vst [vmem:[#allocation101_spill] sm:$0xff] %v11071_v44  ;;  %8880 = vmatmul.mubr.msk.f32.gmra.mxu1 %vm14257_vm1, %v1703_v61  ;;  %vm14260_vm15 = vcmp.lt.s32.totalorder %v9292_v7, 1  ;;  %v4817_v35 = vcombine.high %v10934_v34, %v10934_v34  ;;  %vm14261_vm3 = vmmov %vm14257_vm1  ;;  %vm13823_vm10 = vcmp.lt.s32.totalorder %v9292_v7, %v11071_v44  ;;  %v5217_v27 = vcombine.high %v10937_v36, %v10937_v36  ;;  %v11122_v44 = vpop.permute.xlu0 %6216 }
 0x103   : > { %v1271_v38 = vsel %vm14260_vm15, %v14259_v23, %v14258_v33  ;;  %8984 = vmatmul.mubr.msk.f32.gmra.mxu0 %vm14261_vm3, %v3828_v5  ;;  %v360_v8 = vadd.s32 200, %v9292_v7  ;;  %v14262_v0 = vrot.slane %v9952_v42, 7  ;;  %v14263_v63 = vmov %v14258_v33  ;;  %vm14264_vm11 = vmmov %vm14260_vm15 }
 0x104   : > { %vm5942_vm0 = vcmp.le.s32.totalorder %v9292_v7, %v11075_v6  ;;  %v571_v34 = vand.u32 7, %v359_v21  ;;  %v4831_v58 = vrot.slane %v4817_v35, %v9327_v14  ;;  %v14265_v11 = vrot.slane %v9952_v42, 1 }
 0x105   : > { %v1270_v29 = vsel %vm14264_vm11, %v14263_v63, %v14262_v0  ;;  %v14266_v61 = vrot.slane %v9915_v49, 1  ;;  %vm14267_vm13 = vcmp.lt.s32.totalorder %v9292_v7, 7  ;;  %vm6006_vm5 = vmand %vm13823_vm10, %vm5942_vm0  ;;  %v5231_v5 = vrot.slane %v5217_v27, %v9327_v14 }
 0x106   : > { %v578_v33 = vand.u32 7, %v360_v8  ;;  %v14268_v23 = vrot.slane %v9965_v41, 1  ;;  %v14269_v21 = vmov %v14265_v11  ;;  %vm14270_vm1 = vmmov %vm14267_vm13  ;;  %v361_v0 = vadd.s32 208, %v9292_v7 }
 0x107   : > { %v3395_v36 = vsel %vm14267_vm13, %v14266_v61, %v14265_v11  ;;  %v6199_v49 = vsel %vm6006_vm5, 1, %v13949_v9  ;;  %v1320_v63 = vadd.s32 4294967295, %v571_v34  ;;  %v4847_v11 = vrot.slane %v4831_v58, %v9327_v14 }
 0x108   : > { %v3394_v35 = vsel %vm14270_vm1, %v14269_v21, %v14268_v23  ;;  %v3445_v61 = vadd.s32 1, %v571_v34  ;;  %6366 = vperm.xlu1 %9098, %v6199_v49   ;;  %v5247_v27 = vrot.slane %v5231_v5, %v9327_v14  ;;  %v1321_v8 = vadd.s32 4294967295, %v578_v33 }
 0x109   : > { %v3446_v20 = vadd.s32 1, %v578_v33  ;;  %v4833_v53 = vcombine.high %v4831_v58, %v4831_v58  ;;  %vm1384_vm15 = vcmp.ge.s32.totalorder %v1320_v63, 0  ;;  %v11126_v23 = vrot.slane %v4847_v11, %v9376_v28  ;;  %v11153_v63 = vpop.permute.xlu1 %6222 }
 0x10a   : > { %vm3573_vm3 = vcmp.lt.s32.totalorder %v3445_v61, 8  ;;  %v5233_v21 = vcombine.high %v5231_v5, %v5231_v5  ;;  %v1704_v48 = vsel %vm1384_vm15, %v1271_v38, 0.0  ;;  %v5526_v19 = vrot.slane %v5247_v27, %v9376_v28 }
 0x10b   : > { %14272 = vst [vmem:[#allocation103_spill] sm:$0xff] %v11126_v23  ;;  %vm1385_vm11 = vcmp.ge.s32.totalorder %v1321_v8, 0  ;;  %v3829_v34 = vsel %vm3573_vm3, %v3395_v36, 0.0  ;;  %vm14273_vm0 = vcmask 261120   ;;  %vm5943_vm13 = vcmp.le.s32.totalorder %v9292_v7, %v11126_v23 }
 0x10c   : > { %8882 = vmatprep.mubr.msk.f32.mxu1 %vm14273_vm0, %v1704_v48  ;;  %v1705_v49 = vsel %vm1385_vm11, %v1270_v29, 0.0  ;;  %vm14274_vm5 = vmmov %vm14273_vm0  ;;  %vm3574_vm1 = vcmp.lt.s32.totalorder %v3446_v20, 8  ;;  %v4861_v58 = vrot.slane %v4833_v53, %v9327_v14  ;;  %vm11135_vm10 = vcmp.lt.s32.totalorder %v9292_v7, %v5526_v19 }
 0x10d   : > { %8986 = vmatprep.mubr.msk.f32.mxu0 %vm14274_vm5, %v3829_v34  ;;  %v14275_v33 = vmov 0  ;;  %vm14278_vm15 = vmmov %vm14273_vm0  ;;  %v3830_v38 = vsel %vm3574_vm1, %v3394_v35, 0.0  ;;  %v5261_v36 = vrot.slane %v5233_v21, %v9327_v14  ;;  %v585_v48 = vand.u32 7, %v361_v0  ;;  %v11155_v0 = vpop.permute.xlu0 %6225 }
 0x10e   : > { %v14276_v33 = vsel %vm11135_vm10, 4294967295, %v14275_v33  ;;  %8883 = vmatmul.mubr.msk.f32.gmra.mxu1 %vm14278_vm15, %v1705_v49  ;;  %vm6007_vm3 = vmand %vm11135_vm10, %vm5943_vm13  ;;  %v11145_v20 = vrot.slane %v4861_v58, %v9376_v28  ;;  %v14281_v53 = vrot.slane %v9965_v41, 7  ;;  %v14282_v19 = vrot.slane %v9952_v42, 7  ;;  %14284 = vst [vmem:[#allocation106_spill] sm:$0xff] %v11155_v0 }
 0x10f   : > { %14277 = vst [vmem:[#allocation104_spill] sm:$0xff] %v14276_v33  ;;  %vm14279_vm11 = vmmov %vm14273_vm0  ;;  %vm14283_vm0 = vcmp.lt.s32.totalorder %v9292_v7, 1  ;;  %v4863_v5 = vcombine.high %v4847_v11, %v4847_v11  ;;  %v5263_v35 = vcombine.high %v5247_v27, %v5247_v27  ;;  %v6200_v61 = vsel %vm6007_vm3, 1, %v13949_v9 }
 0x110   : > { %8987 = vmatmul.mubr.msk.f32.gmra.mxu0 %vm14279_vm11, %v3830_v38  ;;  %14280 = vst [vmem:[#allocation105_spill] sm:$0xff] %v11145_v20  ;;  %v1269_v29 = vsel %vm14283_vm0, %v14282_v19, %v14281_v53  ;;  %v5530_v8 = vrot.slane %v5261_v36, %v9376_v28  ;;  %v1322_v21 = vadd.s32 4294967295, %v585_v48  ;;  %v362_v34 = vadd.s32 216, %v9292_v7  ;;  %6369 = vperm.xlu0 %9097, %v6200_v61   ;;  %vm14289_vm5 = vmmov %vm14283_vm0 }
 0x111   : > { %vm5944_vm13 = vcmp.le.s32.totalorder %v9292_v7, %v11145_v20  ;;  %v11163_v42 = vrot.slane %v5263_v35, %v9376_v28  ;;  %v11166_v11 = vrot.slane %v4863_v5, %v9376_v28  ;;  %v14287_v27 = vrot.slane %v10002_v31, 7  ;;  %v11211_v0 = vpop.permute.xlu0 %6243 }
 0x112   : > { %v14288_v49 = vmov %v14281_v53  ;;  %vm11175_vm1 = vcmp.lt.s32.totalorder %v9292_v7, %v5530_v8  ;;  %v14290_v53 = vmov 0  ;;  %vm1386_vm15 = vcmp.ge.s32.totalorder %v1322_v21, 0  ;;  %14301 = vst [vmem:[#allocation111_spill] sm:$0xff] %v11211_v0 }
 0x113   : > { %14285 = vst [vmem:[#allocation107_spill] sm:$0xff] %v11163_v42  ;;  %14286 = vst [vmem:[#allocation108_spill] sm:$0xff] %v11166_v11  ;;  %v1268_v38 = vsel %vm14289_vm5, %v14288_v49, %v14287_v27  ;;  %v14291_v53 = vsel %vm11175_vm1, 4294967295, %v14290_v53  ;;  %v592_v19 = vand.u32 7, %v362_v34  ;;  %v14293_v35 = vrot.slane %v10002_v31, 1 }
 0x114   : > { %14292 = vst [vmem:[#allocation109_spill] sm:$0xff] %v14291_v53  ;;  %v14294_v61 = vrot.slane %v9965_v41, 1  ;;  %vm14295_vm3 = vcmp.lt.s32.totalorder %v9292_v7, 7  ;;  %vm6008_vm11 = vmand %vm11175_vm1, %vm5944_vm13  ;;  %v1706_v4 = vsel %vm1386_vm15, %v1269_v29, 0.0  ;;  %vm13840_vm0 = vcmp.lt.s32.totalorder %v9292_v7, %v11163_v42  ;;  %v11207_v53 = vld [vmem:[%s9324_s11 + $0x38] sm:$0xff]  ;;  %v11209_v42 = vpop.permute.xlu1 %6228  ;;  %s248_s11 = sand.u32 1, %s9185_s19  }
 0x115   : > { %vm5945_vm5 = vcmp.le.s32.totalorder %v9292_v7, %v11166_v11  ;;  %v3447_v8 = vadd.s32 1, %v585_v48  ;;  %v6201_v21 = vsel %vm6008_vm11, 1, %v13949_v9  ;;  %vm14296_vm4 = vcmask 261120   ;;  %14300 = vst [vmem:[#allocation110_spill] sm:$0xff] %v11209_v42  ;;  %v11264_v20 = vpop.permute.xlu0 %6231  ;;  %s8314_s13 = sshll.u32 %s248_s11, 7  ;;  %s13615_s12 = scalar_lea.sflag [#allocation3], %s248_s11 }
 0x116   : > { %v3393_v5 = vsel %vm14295_vm3, %v14294_v61, %v14293_v35  ;;  %8885 = vmatprep.mubr.msk.f32.mxu1 %vm14296_vm4, %v1706_v4  ;;  %vm6009_vm3 = vmand %vm13840_vm0, %vm5945_vm5  ;;  %v1323_v41 = vadd.s32 4294967295, %v592_v19  ;;  %v14297_v34 = vrot.slane %v10012_v54, 1  ;;  %v14298_v29 = vmov %v14293_v35  ;;  %6372 = vperm.xlu1 %9098, %v6201_v21   ;;  %v11204_v4 = vld [vmem:[%s9319_s8 + $0x38] sm:$0xff]  ;;  %14320 = vst [vmem:[#allocation115_spill] sm:$0xff] %v11264_v20  ;;  %s12982_s14 = scalar_lea.vmem [#allocation2], %s8314_s13  ;;  %s9197_s8 = smov [#allocation2]  }
 0x117   : > { %vm14299_vm13 = vcmp.lt.s32.totalorder %v9292_v7, 7  ;;  %v3448_v49 = vadd.s32 1, %v592_v19  ;;  %v6202_v48 = vsel %vm6009_vm3, 1, %v13949_v9  ;;  %vm3575_vm15 = vcmp.lt.s32.totalorder %v3447_v8, 8  ;;  %s8224_s7 = sshll.u32 %s12982_s14, 4  ;;  %s9137_s13 = sshll.u32 %s9197_s8, 4  ;;  %s13608_s7 = int_to_ptr.vmem [resolvable:$true] %s8224_s7  ;;  %s9138_s13 = int_to_ptr.vmem [resolvable:$false] %s9137_s13 }
 0x118   : > { %v3392_v27 = vsel %vm14299_vm13, %v14298_v29, %v14297_v34  ;;  %v4865_v35 = vcombine.high %v4861_v58, %v4861_v58  ;;  %v5265_v61 = vcombine.high %v5261_v36, %v5261_v36  ;;  %6375 = vperm.xlu0 %9097, %v6202_v48   ;;  %vm1387_vm4 = vcmp.ge.s32.totalorder %v1323_v41, 0  ;;  %v11262_v11 = vpop.permute.xlu1 %6246  ;;  %s9139_s15 = scalar_lea.vmem %s9138_s13, 4096  ;;  %p9140_p1 = scmp.lt.s32.totalorder %s13608_s7, %s9138_s13 }
 0x119   : > { %v3831_v33 = vsel %vm3575_vm15, %v3393_v5, 0.0  ;;  %vm3576_vm11 = vcmp.lt.s32.totalorder %v3448_v49, 8  ;;  %v363_v19 = vadd.s32 224, %v9292_v7  ;;  %v1707_v21 = vsel %vm1387_vm4, %v1268_v38, 0.0  ;;  %14319 = vst [vmem:[#allocation114_spill] sm:$0xff] %v11262_v11 }
 0x11a   : > { %vm14302_vm5 = vcmask 261120   ;;  %v3832_v8 = vsel %vm3576_vm11, %v3392_v27, 0.0  ;;  %v11216_v58 = vrot.slane %v5265_v61, %v9376_v28  ;;  %v11219_v36 = vrot.slane %v4865_v35, %v9376_v28 }
 0x11b   : > { %8989 = vmatprep.mubr.msk.f32.mxu0 %vm14302_vm5, %v3831_v33  ;;  %vm14305_vm3 = vmmov %vm14302_vm5  ;;  %v599_v34 = vand.u32 7, %v363_v19  ;;  %v14307_v5 = vrot.slane %v10012_v54, 7  ;;  %v14308_v41 = vrot.slane %v10002_v31, 7  ;;  %vm14309_vm15 = vcmp.lt.s32.totalorder %v9292_v7, 1 }
 0x11c   : > { %14303 = vst [vmem:[#allocation112_spill] sm:$0xff] %v11216_v58  ;;  %14304 = vst [vmem:[#allocation113_spill] sm:$0xff] %v11219_v36  ;;  %8886 = vmatmul.mubr.msk.f32.gmra.mxu1 %vm14305_vm3, %v1707_v21  ;;  %v4873_v33 = vrot.slane %v11204_v4, %v9327_v14  ;;  %v5273_v29 = vrot.slane %v11207_v53, %v9327_v14  ;;  %vm13839_vm4 = vcmp.lt.s32.totalorder %v9292_v7, %v11216_v58  ;;  %vm14349_vm10 = vcmask 261120  }
 0x11d   : > { %vm14306_vm13 = vmmov %vm14305_vm3  ;;  %v1267_v38 = vsel %vm14309_vm15, %v14308_v41, %v14307_v5  ;;  %vm5946_vm11 = vcmp.le.s32.totalorder %v9292_v7, %v11219_v36  ;;  %v364_v27 = vadd.s32 232, %v9292_v7  ;;  %v14310_v49 = vrot.slane %v10039_v3, 7 }
 0x11e   : > { %8990 = vmatmul.mubr.msk.f32.gmra.mxu0 %vm14306_vm13, %v3832_v8  ;;  %v14311_v31 = vmov %v14307_v5  ;;  %vm14312_vm5 = vmmov %vm14309_vm15  ;;  %v1324_v35 = vadd.s32 4294967295, %v599_v34  ;;  %v4889_v61 = vrot.slane %v4873_v33, %v9327_v14  ;;  %v5289_v19 = vrot.slane %v5273_v29, %v9327_v14 }
 0x11f   : > { %v1266_v48 = vsel %vm14312_vm5, %v14311_v31, %v14310_v49  ;;  %vm6010_vm3 = vmand %vm13839_vm4, %vm5946_vm11  ;;  %v14313_v21 = vrot.slane %v10039_v3, 1  ;;  %v14314_v8 = vrot.slane %v10012_v54, 1  ;;  %vm14315_vm13 = vcmp.lt.s32.totalorder %v9292_v7, 7 }
 0x120   : > { %v6203_v41 = vsel %vm6010_vm3, 1, %v13949_v9  ;;  %v606_v0 = vand.u32 7, %v364_v27  ;;  %v3449_v49 = vadd.s32 1, %v599_v34  ;;  %v14316_v31 = vrot.slane %v10047_v26, 1  ;;  %vm14318_vm15 = vmmov %vm14315_vm13 }
 0x121   : > { %v3391_v5 = vsel %vm14315_vm13, %v14314_v8, %v14313_v21  ;;  %v14317_v58 = vmov %v14313_v21  ;;  %6378 = vperm.xlu1 %9098, %v6203_v41   ;;  %vm1388_vm11 = vcmp.ge.s32.totalorder %v1324_v35, 0  ;;  %v5542_v54 = vrot.slane %v5289_v19, %v9376_v28 }
 0x122   : > { %v3390_v36 = vsel %vm14318_vm15, %v14317_v58, %v14316_v31  ;;  %v11268_v21 = vrot.slane %v4889_v61, %v9376_v28  ;;  %v4881_v27 = vcombine.high %v4873_v33, %v4873_v33  ;;  %v1708_v34 = vsel %vm1388_vm11, %v1267_v38, 0.0  ;;  %v11279_v31 = vpop.f32.mrf.mxu1 }
 0x123   : > { %v1325_v8 = vadd.s32 4294967295, %v606_v0  ;;  %vm3577_vm5 = vcmp.lt.s32.totalorder %v3449_v49, 8  ;;  %v3450_v42 = vadd.s32 1, %v606_v0  ;;  %vm14321_vm3 = vcmask 261120   ;;  %14325 = vst [vmem:[#allocation117_spill] sm:$0xff] %v11279_v31  ;;  %v11297_v31 = vpop.permute.xlu1 %6234 }
 0x124   : > { %8888 = vmatprep.mubr.msk.f32.mxu1 %vm14321_vm3, %v1708_v34  ;;  %vm11272_vm13 = vcmp.lt.s32.totalorder %v9292_v7, %v5542_v54  ;;  %v14322_v58 = vmov 0  ;;  %vm5947_vm15 = vcmp.le.s32.totalorder %v9292_v7, %v11268_v21  ;;  %v3833_v35 = vsel %vm3577_vm5, %v3391_v5, 0.0  ;;  %vm14326_vm0 = vmmov %vm14321_vm3  ;;  %14331 = vst [vmem:[#allocation118_spill] sm:$0xff] %v11297_v31  ;;  %v11332_v31 = vpop.f32.mrf.mxu0 }
 0x125   : > { %v14323_v58 = vsel %vm11272_vm13, 4294967295, %v14322_v58  ;;  %v4903_v41 = vrot.slane %v4881_v27, %v9327_v14  ;;  %vm6011_vm11 = vmand %vm11272_vm13, %vm5947_vm15  ;;  %vm1389_vm4 = vcmp.ge.s32.totalorder %v1325_v8, 0  ;;  %8992 = vmatprep.mubr.msk.f32.mxu0 %vm14326_vm0, %v3833_v35  ;;  %vm3578_vm3 = vcmp.lt.s32.totalorder %v3450_v42, 8  ;;  %14345 = vst [vmem:[#allocation122_spill] sm:$0xff] %v11332_v31  ;;  %v14498_v31 = vld [vmem:[#allocation41_spill] sm:$0xff] }
 0x126   : > { %14324 = vst [vmem:[#allocation116_spill] sm:$0xff] %v14323_v58  ;;  %v5281_v0 = vcombine.high %v5273_v29, %v5273_v29  ;;  %v365_v38 = vadd.s32 240, %v9292_v7  ;;  %v6204_v33 = vsel %vm6011_vm11, 1, %v13949_v9  ;;  %v1709_v49 = vsel %vm1389_vm4, %v1266_v48, 0.0  ;;  %vm14327_vm5 = vmmov %vm14326_vm0 }
 0x127   : > { %v3834_v54 = vsel %vm3578_vm3, %v3390_v36, 0.0  ;;  %v11287_v5 = vrot.slane %v4903_v41, %v9376_v28  ;;  %6381 = vperm.xlu0 %9097, %v6204_v33   ;;  %8889 = vmatmul.mubr.msk.f32.gmra.mxu1 %vm14327_vm5, %v1709_v49  ;;  %v14328_v8 = vrot.slane %v10047_v26, 7  ;;  %v14329_v42 = vrot.slane %v10039_v3, 7  ;;  %v11299_v36 = vpop.permute.xlu0 %6249  ;;  %vm14333_vm4 = vmmov %vm14327_vm5 }
 0x128   : > { %v5303_v27 = vrot.slane %v5281_v0, %v9327_v14  ;;  %v613_v34 = vand.u32 7, %v365_v38  ;;  %vm14330_vm0 = vcmp.lt.s32.totalorder %v9292_v7, 1  ;;  %v4911_v35 = vcombine.high %v4889_v61, %v4889_v61  ;;  %14332 = vst [vmem:[#allocation119_spill] sm:$0xff] %v11299_v36  ;;  %8993 = vmatmul.mubr.msk.f32.gmra.mxu0 %vm14333_vm4, %v3834_v54  ;;  %v11311_v61 = vpop.f32.mrf.mxu1 }
 0x129   : > { %v1265_v29 = vsel %vm14330_vm0, %v14329_v42, %v14328_v8  ;;  %vm5948_vm15 = vcmp.le.s32.totalorder %v9292_v7, %v11287_v5  ;;  %v5311_v48 = vcombine.high %v5289_v19, %v5289_v19  ;;  %v366_v0 = vadd.s32 248, %v9292_v7  ;;  %vm14336_vm11 = vmmov %vm14330_vm0  ;;  %14337 = vst [vmem:[#allocation120_spill] sm:$0xff] %v11311_v61 }
 0x12a   : > { %v14334_v38 = vrot.slane %v10082_v55, 7  ;;  %v14335_v3 = vmov %v14328_v8  ;;  %v5546_v49 = vrot.slane %v5303_v27, %v9376_v28  ;;  %v1326_v8 = vadd.s32 4294967295, %v613_v34 }
 0x12b   : > { %v11315_v54 = vrot.slane %v4911_v35, %v9376_v28  ;;  %v14338_v42 = vrot.slane %v10082_v55, 1  ;;  %v14339_v19 = vrot.slane %v10047_v26, 1  ;;  %vm14340_vm3 = vcmp.lt.s32.totalorder %v9292_v7, 7 }
 0x12c   : > { %v1264_v33 = vsel %vm14336_vm11, %v14335_v3, %v14334_v38  ;;  %v11324_v11 = vrot.slane %v5311_v48, %v9376_v28  ;;  %v620_v20 = vand.u32 7, %v366_v0  ;;  %v3451_v38 = vadd.s32 1, %v613_v34  ;;  %vm14344_vm5 = vmmov %vm14340_vm3 }
 0x12d   : > { %v3389_v36 = vsel %vm14340_vm3, %v14339_v19, %v14338_v42  ;;  %v14342_v3 = vrot.slane %v9303_v10, 1  ;;  %v14343_v61 = vmov %v14338_v42  ;;  %vm11335_vm0 = vcmp.lt.s32.totalorder %v9292_v7, %v5546_v49  ;;  %v11355_v19 = vpop.permute.xlu1 %6252 }
 0x12e   : > { %14341 = vst [vmem:[#allocation121_spill] sm:$0xff] %v11324_v11  ;;  %vm1390_vm4 = vcmp.ge.s32.totalorder %v1326_v8, 0  ;;  %vm5949_vm11 = vcmp.le.s32.totalorder %v9292_v7, %v11315_v54  ;;  %v4913_v48 = vcombine.high %v4903_v41, %v4903_v41  ;;  %vm6012_vm3 = vmand %vm11335_vm0, %vm5948_vm15  ;;  %v1327_v0 = vadd.s32 4294967295, %v620_v20 }
 0x12f   : > { %v3388_v35 = vsel %vm14344_vm5, %v14343_v61, %v14342_v3  ;;  %v1710_v34 = vsel %vm1390_vm4, %v1265_v29, 0.0  ;;  %vm13860_vm5 = vcmp.lt.s32.totalorder %v9292_v7, %v11324_v11  ;;  %vm3579_vm1 = vcmp.lt.s32.totalorder %v3451_v38, 8  ;;  %v11348_v61 = vpop.f32.mrf.mxu1  ;;  %14350 = vst [vmem:[#allocation124_spill] sm:$0xff] %v11355_v19  ;;  %v11357_v29 = vpop.permute.xlu0 %6255  ;;  %vm14352_vm4 = vmmov %vm14349_vm10  ;;  %v14531_v11 = vld [vmem:[#allocation15_spill] sm:$0xff] }
 0x130   : > { %14348 = vst [vmem:[#allocation123_spill] sm:$0xff] %v11348_v61  ;;  %v6205_v49 = vsel %vm6012_vm3, 1, %v13949_v9  ;;  %8891 = vmatprep.mubr.msk.f32.mxu1 %vm14349_vm10, %v1710_v34  ;;  %vm6013_vm13 = vmand %vm13860_vm5, %vm5949_vm11  ;;  %v3835_v41 = vsel %vm3579_vm1, %v3389_v36, 0.0  ;;  %v3452_v8 = vadd.s32 1, %v620_v20  ;;  %v5313_v42 = vcombine.high %v5303_v27, %v5303_v27  ;;  %v11365_v61 = vpop.f32.mrf.mxu0 }
 0x131   : > { %14351 = vst [vmem:[#allocation125_spill] sm:$0xff] %v11357_v29  ;;  %6384 = vperm.xlu1 %9098, %v6205_v49   ;;  %v6206_v38 = vsel %vm6013_vm13, 1, %v13949_v9  ;;  %vm1391_vm15 = vcmp.ge.s32.totalorder %v1327_v0, 0  ;;  %8995 = vmatprep.mubr.msk.f32.mxu0 %vm14352_vm4, %v3835_v41  ;;  %v11362_v3 = vrot.slane %v4913_v48, %v9376_v28  ;;  %v367_v34 = vadd.s32 256, %v9292_v7  ;;  %14353 = vst [vmem:[#allocation126_spill] sm:$0xff] %v11365_v61  ;;  %v11415_v58 = vpop.permute.xlu1 %6258 }
 0x132   : > { %6387 = vperm.xlu0 %9097, %v6206_v38   ;;  %v1711_v20 = vsel %vm1391_vm15, %v1264_v33, 0.0  ;;  %vm3580_vm10 = vcmp.lt.s32.totalorder %v3452_v8, 8  ;;  %v11368_v27 = vrot.slane %v5313_v42, %v9376_v28  ;;  %v14355_v36 = vrot.slane %v9303_v10, 7  ;;  %vm14358_vm13 = vmmov %vm14352_vm4  ;;  %v11381_v8 = vpop.f32.mrf.mxu1  ;;  %14371 = vst [vmem:[#allocation130_spill] sm:$0xff] %v11415_v58 }
 0x133   : > { %v14356_v49 = vrot.slane %v10082_v55, 7  ;;  %vm14357_vm1 = vcmp.lt.s32.totalorder %v9292_v7, 1  ;;  %8892 = vmatmul.mubr.msk.f32.gmra.mxu1 %vm14358_vm13, %v1711_v20  ;;  %v3836_v48 = vsel %vm3580_vm10, %v3388_v35, 0.0  ;;  %vm5950_vm11 = vcmp.le.s32.totalorder %v9292_v7, %v11362_v3  ;;  %14359 = vst [vmem:[#allocation128_spill] sm:$0xff] %v11381_v8  ;;  %vm14360_vm3 = vmmov %vm14352_vm4  ;;  %v11405_v8 = vpop.f32.mrf.mxu0 }
 0x134   : > { %14354 = vst [vmem:[#allocation127_spill] sm:$0xff] %v11368_v27  ;;  %v627_v41 = vand.u32 7, %v367_v34  ;;  %v4866_v33 = vcombine.high %v11204_v4, %v11204_v4  ;;  %8996 = vmatmul.mubr.msk.f32.gmra.mxu0 %vm14360_vm3, %v3836_v48  ;;  %vm13857_vm15 = vcmp.lt.s32.totalorder %v9292_v7, %v11368_v27  ;;  %v5266_v55 = vcombine.high %v11207_v53, %v11207_v53  ;;  %vm14363_vm4 = vmmov %vm14357_vm1 }
 0x135   : > { %v1263_v0 = vsel %vm14357_vm1, %v14356_v49, %v14355_v36  ;;  %v368_v42 = vadd.s32 264, %v9292_v7  ;;  %v14361_v35 = vrot.slane %v9309_v12, 7  ;;  %v14362_v38 = vmov %v14355_v36  ;;  %vm6014_vm10 = vmand %vm13857_vm15, %vm5950_vm11  ;;  %14367 = vst [vmem:[#allocation129_spill] sm:$0xff] %v11405_v8 }
 0x136   : > { %v1328_v4 = vadd.s32 4294967295, %v627_v41  ;;  %v4880_v20 = vrot.slane %v4866_v33, %v9327_v14  ;;  %v14364_v36 = vrot.slane %v9309_v12, 1  ;;  %v14365_v53 = vrot.slane %v9303_v10, 1  ;;  %v11417_v10 = vpop.permute.xlu0 %6261 }
 0x137   : > { %v1262_v34 = vsel %vm14363_vm4, %v14362_v38, %v14361_v35  ;;  %vm14366_vm1 = vcmp.lt.s32.totalorder %v9292_v7, 7  ;;  %v3453_v48 = vadd.s32 1, %v627_v41  ;;  %v6207_v29 = vsel %vm6014_vm10, 1, %v13949_v9  ;;  %14372 = vst [vmem:[#allocation131_spill] sm:$0xff] %v11417_v10 }
 0x138   : > { %v3387_v49 = vsel %vm14366_vm1, %v14365_v53, %v14364_v36  ;;  %v5280_v35 = vrot.slane %v5266_v55, %v9327_v14  ;;  %v634_v38 = vand.u32 7, %v368_v42  ;;  %v14368_v19 = vrot.slane %v9335_v16, 1  ;;  %vm14370_vm13 = vmmov %vm14366_vm1  ;;  %6390 = vperm.xlu1 %9098, %v6207_v29   ;;  %v11420_v55 = vpop.f32.mrf.mxu1 }
 0x139   : > { %v14369_v27 = vmov %v14364_v36  ;;  %vm1392_vm11 = vcmp.ge.s32.totalorder %v1328_v4, 0  ;;  %v4896_v41 = vrot.slane %v4880_v20, %v9327_v14  ;;  %vm3581_vm3 = vcmp.lt.s32.totalorder %v3453_v48, 8  ;;  %14373 = vst [vmem:[#allocation132_spill] sm:$0xff] %v11420_v55  ;;  %v11434_v48 = vld [vmem:[%s9297_s23 + $0x188] sm:$0xff] }
 0x13a   : > { %v3386_v33 = vsel %vm14370_vm13, %v14369_v27, %v14368_v19  ;;  %v4882_v36 = vcombine.high %v4880_v20, %v4880_v20  ;;  %v1712_v42 = vsel %vm1392_vm11, %v1263_v0, 0.0  ;;  %v5296_v53 = vrot.slane %v5280_v35, %v9327_v14  ;;  %v11431_v20 = vpop.f32.mrf.mxu0 }
 0x13b   : > { %v1329_v8 = vadd.s32 4294967295, %v634_v38  ;;  %v3837_v61 = vsel %vm3581_vm3, %v3387_v49, 0.0  ;;  %vm14374_vm4 = vcmask 261120   ;;  %v11425_v19 = vrot.slane %v4896_v41, %v9376_v28  ;;  %14377 = vst [vmem:[#allocation134_spill] sm:$0xff] %v11431_v20 }
 0x13c   : > { %8894 = vmatprep.mubr.msk.f32.mxu1 %vm14374_vm4, %v1712_v42  ;;  %vm14376_vm10 = vmmov %vm14374_vm4  ;;  %v3454_v29 = vadd.s32 1, %v634_v38  ;;  %v11429_v27 = vrot.slane %v4882_v36, %v9327_v14  ;;  %v5282_v4 = vcombine.high %v5280_v35, %v5280_v35  ;;  %v5558_v49 = vrot.slane %v5296_v53, %v9376_v28  ;;  %v11444_v35 = vpop.f32.mrf.mxu1 }
 0x13d   : > { %14375 = vst [vmem:[#allocation133_spill] sm:$0xff] %v11425_v19  ;;  %8998 = vmatprep.mubr.msk.f32.mxu0 %vm14376_vm10, %v3837_v61  ;;  %vm1393_vm1 = vcmp.ge.s32.totalorder %v1329_v8, 0  ;;  %v369_v42 = vadd.s32 272, %v9292_v7  ;;  %vm5951_vm13 = vcmp.le.s32.totalorder %v9292_v7, %v11425_v19  ;;  %14378 = vst [vmem:[#allocation135_spill] sm:$0xff] %v11444_v35  ;;  %v14379_v36 = vmov 0  ;;  %v11471_v35 = vpop.f32.mrf.mxu0 }
 0x13e   : > { %v1713_v61 = vsel %vm1393_vm1, %v1262_v34, 0.0  ;;  %vm3582_vm11 = vcmp.lt.s32.totalorder %v3454_v29, 8  ;;  %v11442_v38 = vrot.slane %v5282_v4, %v9327_v14  ;;  %vm11447_vm3 = vcmp.lt.s32.totalorder %v9292_v7, %v5558_v49  ;;  %v11456_v34 = vpop.permute.xlu1 %6264  ;;  %v11458_v29 = vpop.permute.xlu0 %6267  ;;  %vm14385_vm1 = vmmov %vm14374_vm4  ;;  %14389 = vst [vmem:[#allocation140_spill] sm:$0xff] %v11471_v35 }
 0x13f   : > { %v14380_v36 = vsel %vm11447_vm3, 4294967295, %v14379_v36  ;;  %8895 = vmatmul.mubr.msk.f32.gmra.mxu1 %vm14374_vm4, %v1713_v61  ;;  %v3838_v8 = vsel %vm3582_vm11, %v3386_v33, 0.0  ;;  %v11454_v0 = vrot.slane %v11429_v27, %v9376_v28  ;;  %v641_v55 = vand.u32 7, %v369_v42  ;;  %14383 = vst [vmem:[#allocation138_spill] sm:$0xff] %v11456_v34  ;;  %14384 = vst [vmem:[#allocation139_spill] sm:$0xff] %v11458_v29 }
 0x140   : > { %14381 = vst [vmem:[#allocation136_spill] sm:$0xff] %v14380_v36  ;;  %vm6015_vm10 = vmand %vm11447_vm3, %vm5951_vm13  ;;  %8999 = vmatmul.mubr.msk.f32.gmra.mxu0 %vm14385_vm1, %v3838_v8  ;;  %v5562_v14 = vrot.slane %v11442_v38, %v9376_v28  ;;  %v14386_v4 = vrot.slane %v9335_v16, 7  ;;  %v14387_v33 = vrot.slane %v9309_v12, 7  ;;  %vm14388_vm11 = vcmp.lt.s32.totalorder %v9292_v7, 1 }
 0x141   : > { %14382 = vst [vmem:[#allocation137_spill] sm:$0xff] %v11454_v0  ;;  %v4912_v42 = vcombine.high %v4896_v41, %v4896_v41  ;;  %v5312_v61 = vcombine.high %v5296_v53, %v5296_v53  ;;  %v6208_v29 = vsel %vm6015_vm10, 1, %v13949_v9  ;;  %vm5952_vm13 = vcmp.le.s32.totalorder %v9292_v7, %v11454_v0  ;;  %vm14398_vm10 = vmmov %vm14388_vm11 }
 0x142   : > { %v1261_v49 = vsel %vm14388_vm11, %v14387_v33, %v14386_v4  ;;  %v1330_v8 = vadd.s32 4294967295, %v641_v55  ;;  %v370_v10 = vadd.s32 280, %v9292_v7  ;;  %6393 = vperm.xlu0 %9097, %v6208_v29   ;;  %vm11478_vm4 = vcmp.lt.s32.totalorder %v9292_v7, %v5562_v14  ;;  %v14395_v4 = vld [vmem:[#allocation6_spill] sm:$0xff]  ;;  %v11494_v29 = vpop.f32.mrf.mxu1 }
 0x143   : > { %v14390_v12 = vmov 0  ;;  %v11483_v41 = vrot.slane %v5312_v61, %v9376_v28  ;;  %v11486_v53 = vrot.slane %v4912_v42, %v9376_v28  ;;  %v14396_v33 = vrot.slane %v14395_v4, 7  ;;  %14399 = vst [vmem:[#allocation6_spill] sm:$0xff] %v11494_v29  ;;  %vm6016_vm1 = vmand %vm11478_vm4, %vm5952_vm13  ;;  %v11527_v29 = vpop.permute.xlu0 %6273 }
 0x144   : > { %v14391_v12 = vsel %vm11478_vm4, 4294967295, %v14390_v12  ;;  %v14397_v34 = vrot.slane %v9335_v16, 7  ;;  %vm1394_vm11 = vcmp.ge.s32.totalorder %v1330_v8, 0  ;;  %v648_v14 = vand.u32 7, %v370_v10  ;;  %v11512_v10 = vld [vmem:[%s9297_s23 + $0x190] sm:$0xff]  ;;  %14410 = vst [vmem:[#allocation145_spill] sm:$0xff] %v11527_v29 }
 0x145   : > { %14392 = vst [vmem:[#allocation141_spill] sm:$0xff] %v14391_v12  ;;  %14393 = vst [vmem:[#allocation142_spill] sm:$0xff] %v11483_v41  ;;  %v14400_v61 = vrot.slane %v14395_v4, 1  ;;  %v14401_v36 = vrot.slane %v9335_v16, 1  ;;  %vm14402_vm15 = vcmp.lt.s32.totalorder %v9292_v7, 7  ;;  %v3455_v35 = vadd.s32 1, %v641_v55 }
 0x146   : > { %14394 = vst [vmem:[#allocation143_spill] sm:$0xff] %v11486_v53  ;;  %v1260_v58 = vsel %vm14398_vm10, %v14397_v34, %v14396_v33  ;;  %v6209_v20 = vsel %vm6016_vm1, 1, %v13949_v9  ;;  %v1714_v0 = vsel %vm1394_vm11, %v1261_v49, 0.0  ;;  %vm13863_vm10 = vcmp.lt.s32.totalorder %v9292_v7, %v11483_v41  ;;  %v11509_v34 = vpop.f32.mrf.mxu0  ;;  %v14405_v55 = vld [vmem:[#allocation7_spill] sm:$0xff]  ;;  %v14849_v57 = vld [vmem:[#allocation133_spill] sm:$0xff] }
 0x147   : > { %v3385_v42 = vsel %vm14402_vm15, %v14401_v36, %v14400_v61  ;;  %vm5953_vm5 = vcmp.le.s32.totalorder %v9292_v7, %v11486_v53  ;;  %14403 = vst [vmem:[#allocation144_spill] sm:$0xff] %v11509_v34  ;;  %6396 = vperm.xlu1 %9098, %v6209_v20   ;;  %vm14404_vm13 = vcmask 261120   ;;  %v1331_v16 = vadd.s32 4294967295, %v648_v14  ;;  %v11532_v34 = vpop.f32.mrf.mxu1  ;;  %v14464_v53 = vld [vmem:[#allocation24_spill] sm:$0xff] }
 0x148   : > { %8897 = vmatprep.mubr.msk.f32.mxu1 %vm14404_vm13, %v1714_v0  ;;  %vm6017_vm15 = vmand %vm13863_vm10, %vm5953_vm5  ;;  %vm3583_vm1 = vcmp.lt.s32.totalorder %v3455_v35, 8  ;;  %v14406_v36 = vrot.slane %v14405_v55, 1  ;;  %v14407_v49 = vmov %v14400_v61  ;;  %vm14408_vm11 = vcmp.lt.s32.totalorder %v9292_v7, 7  ;;  %v11525_v61 = vpop.permute.xlu1 %6270  ;;  %14411 = vst [vmem:[#allocation146_spill] sm:$0xff] %v11532_v34 }
 0x149   : > { %14409 = vst [vmem:[#allocation7_spill] sm:$0xff] %v11525_v61  ;;  %v6210_v20 = vsel %vm6017_vm15, 1, %v13949_v9  ;;  %v3839_v0 = vsel %vm3583_vm1, %v3385_v42, 0.0  ;;  %v3456_v8 = vadd.s32 1, %v648_v14  ;;  %v4914_v41 = vcombine.high %v11429_v27, %v11429_v27  ;;  %v11581_v61 = vpop.permute.xlu0 %6279 }
 0x14a   : > { %v3384_v33 = vsel %vm14408_vm11, %v14407_v49, %v14406_v36  ;;  %6399 = vperm.xlu0 %9097, %v6210_v20   ;;  %vm1395_vm5 = vcmp.ge.s32.totalorder %v1331_v16, 0  ;;  %9001 = vmatprep.mubr.msk.f32.mxu0 %vm14404_vm13, %v3839_v0  ;;  %v5314_v36 = vcombine.high %v11442_v38, %v11442_v38  ;;  %v371_v49 = vadd.s32 288, %v9292_v7  ;;  %v11548_v16 = vpop.f32.mrf.mxu0  ;;  %vm14417_vm11 = vmmov %vm14404_vm13 }
 0x14b   : > { %v1715_v29 = vsel %vm1395_vm5, %v1260_v58, 0.0  ;;  %vm3584_vm15 = vcmp.lt.s32.totalorder %v3456_v8, 8  ;;  %v11540_v14 = vrot.slane %v4914_v41, %v9376_v28  ;;  %v14413_v27 = vrot.slane %v14405_v55, 7  ;;  %14416 = vst [vmem:[#allocation148_spill] sm:$0xff] %v11548_v16  ;;  %v14419_v8 = vld [vmem:[#allocation9_spill] sm:$0xff]  ;;  %vm14420_vm13 = vmmov %vm14417_vm11 }
 0x14c   : > { %v14414_v42 = vrot.slane %v14395_v4, 7  ;;  %vm14415_vm1 = vcmp.lt.s32.totalorder %v9292_v7, 1  ;;  %8898 = vmatmul.mubr.msk.f32.gmra.mxu1 %vm14417_vm11, %v1715_v29  ;;  %v3840_v0 = vsel %vm3584_vm15, %v3384_v33, 0.0  ;;  %v11552_v38 = vrot.slane %v5314_v36, %v9376_v28  ;;  %v14422_v29 = vld [vmem:[#allocation8_spill] sm:$0xff]  ;;  %v11579_v34 = vpop.permute.xlu1 %6276 }
 0x14d   : > { %14412 = vst [vmem:[#allocation147_spill] sm:$0xff] %v11540_v14  ;;  %v655_v58 = vand.u32 7, %v371_v49  ;;  %vm6019_vm5 = vcmp.gt.s32.totalorder %v9292_v7, %v14419_v8  ;;  %9002 = vmatmul.mubr.msk.f32.gmra.mxu0 %vm14420_vm13, %v3840_v0  ;;  %vm5954_vm10 = vcmp.le.s32.totalorder %v9292_v7, %v11540_v14  ;;  %v372_v4 = vadd.s32 296, %v9292_v7  ;;  %v11574_v0 = vpop.f32.mrf.mxu1  ;;  %14430 = vst [vmem:[#allocation12_spill] sm:$0xff] %v11579_v34  ;;  %v14436_v34 = vld [vmem:[#allocation21_spill] sm:$0xff] }
 0x14e   : > { %v1259_v20 = vsel %vm14415_vm1, %v14414_v42, %v14413_v27  ;;  %14418 = vst [vmem:[#allocation149_spill] sm:$0xff] %v11552_v38  ;;  %vm6083_vm1 = vmand %vm9467_vm2, %vm6019_vm5  ;;  %v14423_v33 = vrot.slane %v14422_v29, 7  ;;  %v14424_v28 = vmov %v14413_v27  ;;  %vm14425_vm15 = vcmp.lt.s32.totalorder %v9292_v7, 1 }
 0x14f   : > { %v14426_v49 = vrot.slane %v14422_v29, 1  ;;  %v14427_v27 = vrot.slane %v14405_v55, 1  ;;  %vm14428_vm11 = vcmp.lt.s32.totalorder %v9292_v7, 7  ;;  %14429 = vst [vmem:[#allocation9_spill] sm:$0xff] %v11574_v0  ;;  %vm13871_vm2 = vcmp.lt.s32.totalorder %v9292_v7, %v11552_v38  ;;  %14431 = vst [vmem:[#allocation8_spill] sm:$0xff] %v11581_v61  ;;  %v11598_v61 = vpop.f32.mrf.mxu0 }
 0x150   : > { %v1258_v36 = vsel %vm14425_vm15, %v14424_v28, %v14423_v33  ;;  %v1332_v8 = vadd.s32 4294967295, %v655_v58  ;;  %v6986_v41 = vsel %vm6083_vm1, 1, %v13949_v9  ;;  %v3457_v35 = vadd.s32 1, %v655_v58  ;;  %v11584_v33 = vld [vmem:[%s9297_s23 + $0x198] sm:$0xff]  ;;  %vm6018_vm5 = vmand %vm13871_vm2, %vm5954_vm10 }
 0x151   : > { %v3383_v42 = vsel %vm14428_vm11, %v14427_v27, %v14426_v49  ;;  %7051 = vperm.xlu0 %9097, %v6986_v41   ;;  %v662_v28 = vand.u32 7, %v372_v4  ;;  %v14432_v49 = vld [vmem:[#allocation10_spill] sm:$0xff]  ;;  %v14434_v0 = vrot.slane %v14422_v29, 1  ;;  %vm14435_vm13 = vmmov %vm14428_vm11  ;;  %vm6020_vm1 = vcmp.gt.s32.totalorder %v9292_v7, %v14436_v34  ;;  %v11628_v55 = vpop.f32.mrf.mxu0 }
 0x152   : > { %v14433_v27 = vrot.slane %v14432_v49, 1  ;;  %14437 = vst [vmem:[#allocation10_spill] sm:$0xff] %v11598_v61  ;;  %v6211_v14 = vsel %vm6018_vm5, 1, %v13949_v9  ;;  %vm1396_vm15 = vcmp.ge.s32.totalorder %v1332_v8, 0  ;;  %vm3585_vm10 = vcmp.lt.s32.totalorder %v3457_v35, 8  ;;  %vm6084_vm11 = vmand %vm9627_vm14, %vm6020_vm1 }
 0x153   : > { %6402 = vperm.xlu1 %9098, %v6211_v14   ;;  %v1716_v4 = vsel %vm1396_vm15, %v1259_v20, 0.0  ;;  %v1333_v38 = vadd.s32 4294967295, %v662_v28  ;;  %v3841_v16 = vsel %vm3585_vm10, %v3383_v42, 0.0  ;;  %v3458_v12 = vadd.s32 1, %v662_v28  ;;  %v14445_v20 = vld [vmem:[#allocation11_spill] sm:$0xff]  ;;  %v14446_v42 = vld [vmem:[#allocation13_spill] sm:$0xff] }
 0x154   : > { %v3382_v58 = vsel %vm14435_vm13, %v14434_v0, %v14433_v27  ;;  %v11604_v0 = vpop.f32.mrf.mxu1  ;;  %vm14440_vm13 = vcmask 261120   ;;  %v6987_v34 = vsel %vm6084_vm11, 1, %v13949_v9  ;;  %v373_v8 = vadd.s32 304, %v9292_v7  ;;  %v14448_v28 = vld [vmem:[#allocation14_spill] sm:$0xff]  ;;  %14452 = vst [vmem:[#allocation26_spill] sm:$0xff] %v11628_v55 }
 0x155   : > { %14439 = vst [vmem:[#allocation21_spill] sm:$0xff] %v11604_v0  ;;  %8900 = vmatprep.mubr.msk.f32.mxu1 %vm14440_vm13, %v1716_v4  ;;  %vm14441_vm2 = vmmov %vm14440_vm13  ;;  %v14442_v35 = vrot.slane %v14432_v49, 7  ;;  %v14443_v27 = vrot.slane %v14422_v29, 7  ;;  %vm14444_vm14 = vcmp.lt.s32.totalorder %v9292_v7, 1  ;;  %vm6021_vm5 = vcmp.gt.s32.totalorder %v9292_v7, %v14445_v20  ;;  %v11636_v0 = vld [vmem:[%s9297_s23 + $0x1a0] sm:$0xff] }
 0x156   : > { %9004 = vmatprep.mubr.msk.f32.mxu0 %vm14441_vm2, %v3841_v16  ;;  %vm1397_vm1 = vcmp.ge.s32.totalorder %v1333_v38, 0  ;;  %vm3586_vm15 = vcmp.lt.s32.totalorder %v3458_v12, 8  ;;  %vm14447_vm2 = vcmp.lt.s32.totalorder %v9292_v7, %v14446_v42  ;;  %v374_v16 = vadd.s32 312, %v9292_v7  ;;  %vm14451_vm11 = vmmov %vm14444_vm14  ;;  %v11631_v38 = vpop.permute.xlu1 %6282  ;;  %v11633_v42 = vpop.permute.xlu0 %6285 }
 0x157   : > { %v1257_v14 = vsel %vm14444_vm14, %v14443_v27, %v14442_v35  ;;  %vm6085_vm10 = vmand %vm14447_vm2, %vm6021_vm5  ;;  %v14449_v41 = vrot.slane %v14448_v28, 7  ;;  %v14450_v4 = vmov %v14442_v35  ;;  %v1717_v35 = vsel %vm1397_vm1, %v1258_v36, 0.0  ;;  %14453 = vst [vmem:[#allocation11_spill] sm:$0xff] %v11631_v38  ;;  %v11653_v61 = vpop.f32.mrf.mxu1  ;;  %7054 = vperm.xlu1 %9098, %v6987_v34  }
 0x158   : > { %v3842_v27 = vsel %vm3586_vm15, %v3382_v58, 0.0  ;;  %v669_v20 = vand.u32 7, %v373_v8  ;;  %v6988_v12 = vsel %vm6085_vm10, 1, %v13949_v9  ;;  %14454 = vst [vmem:[#allocation13_spill] sm:$0xff] %v11633_v42  ;;  %8901 = vmatmul.mubr.msk.f32.gmra.mxu1 %vm14440_vm13, %v1717_v35  ;;  %vm14455_vm14 = vmmov %vm14440_vm13  ;;  %v14457_v36 = vrot.slane %v14432_v49, 1  ;;  %v14459_v8 = vld [vmem:[#allocation16_spill] sm:$0xff] }
 0x159   : > { %v1256_v29 = vsel %vm14451_vm11, %v14450_v4, %v14449_v41  ;;  %9005 = vmatmul.mubr.msk.f32.gmra.mxu0 %vm14455_vm14, %v3842_v27  ;;  %v676_v41 = vand.u32 7, %v374_v16  ;;  %v14456_v4 = vrot.slane %v14448_v28, 1  ;;  %vm14458_vm5 = vcmp.lt.s32.totalorder %v9292_v7, 7  ;;  %14463 = vst [vmem:[#allocation14_spill] sm:$0xff] %v11653_v61  ;;  %7057 = vperm.xlu0 %9097, %v6988_v12   ;;  %v11668_v12 = vpop.f32.mrf.mxu0 }
 0x15a   : > { %v14460_v38 = vrot.slane %v14459_v8, 1  ;;  %vm14462_vm1 = vmmov %vm14458_vm5  ;;  %v1334_v16 = vadd.s32 4294967295, %v669_v20  ;;  %v3459_v27 = vadd.s32 1, %v669_v20  ;;  %vm6022_vm15 = vcmp.gt.s32.totalorder %v9292_v7, %v14464_v53  ;;  %14469 = vst [vmem:[#allocation16_spill] sm:$0xff] %v11668_v12  ;;  %v14470_v20 = vld [vmem:[#allocation29_spill] sm:$0xff]  ;;  %v11680_v61 = vpop.permute.xlu1 %6288 }
 0x15b   : > { %v3381_v58 = vsel %vm14458_vm5, %v14457_v36, %v14456_v4  ;;  %v14461_v42 = vmov %v14456_v4  ;;  %v1335_v49 = vadd.s32 4294967295, %v676_v41  ;;  %v3460_v4 = vadd.s32 1, %v676_v41  ;;  %v14465_v36 = vld [vmem:[#allocation27_spill] sm:$0xff]  ;;  %v11703_v35 = vpop.f32.mrf.mxu0 }
 0x15c   : > { %v3380_v55 = vsel %vm14462_vm1, %v14461_v42, %v14460_v38  ;;  %vm14466_vm2 = vcmp.lt.s32.totalorder %v9292_v7, %v14465_v36  ;;  %v375_v19 = vadd.s32 320, %v9292_v7  ;;  %v14467_v38 = vrot.slane %v14459_v8, 7  ;;  %14475 = vst [vmem:[#allocation27_spill] sm:$0xff] %v11680_v61  ;;  %14486 = vst [vmem:[#allocation32_spill] sm:$0xff] %v11703_v35 }
 0x15d   : > { %vm6086_vm10 = vmand %vm14466_vm2, %vm6022_vm15  ;;  %v14468_v42 = vrot.slane %v14448_v28, 7  ;;  %vm1398_vm13 = vcmp.ge.s32.totalorder %v1334_v16, 0  ;;  %vm3587_vm14 = vcmp.lt.s32.totalorder %v3459_v27, 8  ;;  %vm6023_vm5 = vcmp.gt.s32.totalorder %v9292_v7, %v14470_v20  ;;  %v11675_v28 = vpop.f32.mrf.mxu1 }
 0x15e   : > { %v6989_v53 = vsel %vm6086_vm10, 1, %v13949_v9  ;;  %v1718_v41 = vsel %vm1398_vm13, %v1257_v14, 0.0  ;;  %vm1399_vm1 = vcmp.ge.s32.totalorder %v1335_v49, 0  ;;  %v3843_v36 = vsel %vm3587_vm14, %v3381_v58, 0.0  ;;  %vm6087_vm2 = vmand %vm9704_vm7, %vm6023_vm5  ;;  %14472 = vst [vmem:[#allocation24_spill] sm:$0xff] %v11675_v28  ;;  %v11682_v14 = vpop.permute.xlu0 %6291  ;;  %v11685_v58 = vld [vmem:[%s9297_s23 + $0x1a8] sm:$0xff] }
 0x15f   : > { %v1255_v34 = vsel %vm14451_vm11, %v14468_v42, %v14467_v38  ;;  %vm3588_vm15 = vcmp.lt.s32.totalorder %v3460_v4, 8  ;;  %vm14473_vm11 = vcmask 261120   ;;  %v1719_v38 = vsel %vm1399_vm1, %v1256_v29, 0.0  ;;  %14476 = vst [vmem:[#allocation29_spill] sm:$0xff] %v11682_v14  ;;  %v14479_v49 = vld [vmem:[#allocation18_spill] sm:$0xff]  ;;  %7060 = vperm.xlu1 %9098, %v6989_v53   ;;  %v14487_v28 = vld [vmem:[#allocation19_spill] sm:$0xff]  ;;  %v11723_v35 = vpop.f32.mrf.mxu1 }
 0x160   : > { %8903 = vmatprep.mubr.msk.f32.mxu1 %vm14473_vm11, %v1718_v41  ;;  %vm14474_vm4 = vmmov %vm14473_vm11  ;;  %v3844_v16 = vsel %vm3588_vm15, %v3380_v55, 0.0  ;;  %v683_v27 = vand.u32 7, %v375_v19  ;;  %v6990_v42 = vsel %vm6087_vm2, 1, %v13949_v9  ;;  %v376_v29 = vadd.s32 328, %v9292_v7  ;;  %14496 = vst [vmem:[#allocation18_spill] sm:$0xff] %v11723_v35  ;;  %v11748_v35 = vld [vmem:[%s9297_s23 + $0x1b0] sm:$0xff] }
 0x161   : > { %9007 = vmatprep.mubr.msk.f32.mxu0 %vm14474_vm4, %v3843_v36  ;;  %vm14477_vm7 = vmmov %vm14474_vm4  ;;  %v14480_v4 = vrot.slane %v14479_v49, 7  ;;  %v14481_v19 = vrot.slane %v14459_v8, 7  ;;  %v14483_v20 = vrot.slane %v14479_v49, 1  ;;  %v14484_v41 = vrot.slane %v14459_v8, 1  ;;  %7063 = vperm.xlu0 %9097, %v6990_v42  }
 0x162   : > { %8904 = vmatmul.mubr.msk.f32.gmra.mxu1 %vm14477_vm7, %v1719_v38  ;;  %vm14478_vm10 = vmmov %vm14474_vm4  ;;  %vm14482_vm4 = vcmp.lt.s32.totalorder %v9292_v7, 1  ;;  %vm14485_vm13 = vcmp.lt.s32.totalorder %v9292_v7, 7  ;;  %v1336_v38 = vadd.s32 4294967295, %v683_v27  ;;  %v14488_v14 = vrot.slane %v14487_v28, 1 }
 0x163   : > { %9008 = vmatmul.mubr.msk.f32.gmra.mxu0 %vm14478_vm10, %v3844_v16  ;;  %v1254_v55 = vsel %vm14482_vm4, %v14481_v19, %v14480_v4  ;;  %v3379_v36 = vsel %vm14485_vm13, %v14484_v41, %v14483_v20  ;;  %v3461_v16 = vadd.s32 1, %v683_v27  ;;  %v14489_v61 = vmov %v14483_v20  ;;  %vm14490_vm14 = vmmov %vm14485_vm13  ;;  %v14491_v19 = vld [vmem:[#allocation34_spill] sm:$0xff] }
 0x164   : > { %v3378_v4 = vsel %vm14490_vm14, %v14489_v61, %v14488_v14  ;;  %vm6024_vm5 = vcmp.gt.s32.totalorder %v9292_v7, %v14491_v19  ;;  %v690_v12 = vand.u32 7, %v376_v29  ;;  %v377_v53 = vadd.s32 336, %v9292_v7  ;;  %vm14495_vm15 = vmmov %vm14482_vm4  ;;  %v14497_v14 = vld [vmem:[#allocation40_spill] sm:$0xff] }
 0x165   : > { %vm6088_vm1 = vmand %vm9760_vm12, %vm6024_vm5  ;;  %v14493_v27 = vrot.slane %v14487_v28, 7  ;;  %v14494_v42 = vrot.slane %v14479_v49, 7  ;;  %vm1400_vm2 = vcmp.ge.s32.totalorder %v1336_v38, 0  ;;  %vm3589_vm11 = vcmp.lt.s32.totalorder %v3461_v16, 8  ;;  %v11731_v49 = vpop.f32.mrf.mxu0 }
 0x166   : > { %v6991_v61 = vsel %vm6088_vm1, 1, %v13949_v9  ;;  %vm6025_vm7 = vcmp.gt.s32.totalorder %v9292_v7, %v14497_v14  ;;  %v1720_v29 = vsel %vm1400_vm2, %v1255_v34, 0.0  ;;  %v1337_v19 = vadd.s32 4294967295, %v690_v12  ;;  %14500 = vst [vmem:[#allocation19_spill] sm:$0xff] %v11731_v49  ;;  %vm14506_vm14 = vmmov %vm14495_vm15  ;;  %v11745_v14 = vpop.permute.xlu0 %6297 }
 0x167   : > { %v1253_v41 = vsel %vm14495_vm15, %v14494_v42, %v14493_v27  ;;  %v3845_v20 = vsel %vm3589_vm11, %v3379_v36, 0.0  ;;  %v3462_v8 = vadd.s32 1, %v690_v12  ;;  %vm14499_vm12 = vcmp.lt.s32.totalorder %v9292_v7, %v14498_v31  ;;  %v14503_v42 = vld [vmem:[#allocation22_spill] sm:$0xff]  ;;  %v11743_v31 = vpop.permute.xlu1 %6294  ;;  %14508 = vst [vmem:[#allocation37_spill] sm:$0xff] %v11745_v14  ;;  %7066 = vperm.xlu1 %9098, %v6991_v61   ;;  %v14515_v61 = vld [vmem:[#allocation25_spill] sm:$0xff] }
 0x168   : > { %vm6089_vm10 = vmand %vm14499_vm12, %vm6025_vm7  ;;  %vm14501_vm4 = vcmask 261120   ;;  %v697_v38 = vand.u32 7, %v377_v53  ;;  %v378_v27 = vadd.s32 344, %v9292_v7  ;;  %v14504_v34 = vrot.slane %v14503_v42, 7  ;;  %14507 = vst [vmem:[#allocation34_spill] sm:$0xff] %v11743_v31 }
 0x169   : > { %8906 = vmatprep.mubr.msk.f32.mxu1 %vm14501_vm4, %v1720_v29  ;;  %vm14502_vm13 = vmmov %vm14501_vm4  ;;  %v6992_v16 = vsel %vm6089_vm10, 1, %v13949_v9  ;;  %v14505_v36 = vrot.slane %v14487_v28, 7  ;;  %vm1401_vm5 = vcmp.ge.s32.totalorder %v1337_v19, 0  ;;  %vm3590_vm1 = vcmp.lt.s32.totalorder %v3462_v8, 8 }
 0x16a   : > { %9010 = vmatprep.mubr.msk.f32.mxu0 %vm14502_vm13, %v3845_v20  ;;  %7069 = vperm.xlu0 %9097, %v6992_v16   ;;  %v14509_v53 = vrot.slane %v14503_v42, 1  ;;  %v14510_v20 = vrot.slane %v14487_v28, 1  ;;  %vm14511_vm15 = vcmp.lt.s32.totalorder %v9292_v7, 7  ;;  %v3846_v31 = vsel %vm3590_vm1, %v3378_v4, 0.0  ;;  %vm14513_vm2 = vmmov %vm14501_vm4 }
 0x16b   : > { %v1252_v12 = vsel %vm14506_vm14, %v14505_v36, %v14504_v34  ;;  %v11757_v34 = vpop.f32.mrf.mxu1  ;;  %v1721_v36 = vsel %vm1401_vm5, %v1254_v55, 0.0  ;;  %v1338_v14 = vadd.s32 4294967295, %v697_v38  ;;  %v704_v23 = vand.u32 7, %v378_v27  ;;  %vm14514_vm11 = vmmov %vm14513_vm2  ;;  %v11770_v55 = vpop.f32.mrf.mxu0 }
 0x16c   : > { %v3377_v49 = vsel %vm14511_vm15, %v14510_v20, %v14509_v53  ;;  %14512 = vst [vmem:[#allocation40_spill] sm:$0xff] %v11757_v34  ;;  %8907 = vmatmul.mubr.msk.f32.gmra.mxu1 %vm14513_vm2, %v1721_v36  ;;  %9011 = vmatmul.mubr.msk.f32.gmra.mxu0 %vm14514_vm11, %v3846_v31  ;;  %v3463_v8 = vadd.s32 1, %v697_v38  ;;  %v14516_v19 = vrot.slane %v14515_v61, 1  ;;  %v14517_v28 = vmov %v14509_v53  ;;  %vm14518_vm7 = vmmov %vm14511_vm15  ;;  %v14519_v53 = vld [vmem:[#allocation43_spill] sm:$0xff]  ;;  %v14521_v20 = vld [vmem:[#allocation42_spill] sm:$0xff] }
 0x16d   : > { %vm6026_vm12 = vcmp.gt.s32.totalorder %v9292_v7, %v14519_v53  ;;  %14520 = vst [vmem:[#allocation41_spill] sm:$0xff] %v11770_v55  ;;  %vm1402_vm10 = vcmp.ge.s32.totalorder %v1338_v14, 0  ;;  %v1339_v4 = vadd.s32 4294967295, %v704_v23  ;;  %v3464_v27 = vadd.s32 1, %v704_v23  ;;  %v11783_v14 = vpop.f32.mrf.mxu1  ;;  %vm14527_vm1 = vmmov %vm14513_vm2  ;;  %v14543_v34 = vld [vmem:[#allocation30_spill] sm:$0xff] }
 0x16e   : > { %v3376_v16 = vsel %vm14518_vm7, %v14517_v28, %v14516_v19  ;;  %vm14522_vm4 = vcmp.lt.s32.totalorder %v9292_v7, %v14521_v20  ;;  %v379_v38 = vadd.s32 352, %v9292_v7  ;;  %v1722_v31 = vsel %vm1402_vm10, %v1253_v41, 0.0  ;;  %14526 = vst [vmem:[#allocation22_spill] sm:$0xff] %v11783_v14  ;;  %v11786_v41 = vpop.permute.xlu1 %6300  ;;  %vm14530_vm11 = vmmov %vm14527_vm1 }
 0x16f   : > { %vm6090_vm13 = vmand %vm14522_vm4, %vm6026_vm12  ;;  %vm3591_vm14 = vcmp.lt.s32.totalorder %v3463_v8, 8  ;;  %v14523_v19 = vrot.slane %v14515_v61, 7  ;;  %v14524_v28 = vrot.slane %v14503_v42, 7  ;;  %vm14525_vm5 = vcmp.lt.s32.totalorder %v9292_v7, 1  ;;  %8909 = vmatprep.mubr.msk.f32.mxu1 %vm14527_vm1, %v1722_v31  ;;  %14528 = vst [vmem:[#allocation25_spill] sm:$0xff] %v11786_v41  ;;  %v11788_v8 = vpop.permute.xlu0 %6303  ;;  %v11794_v31 = vpop.f32.mrf.mxu0 }
 0x170   : > { %v6993_v36 = vsel %vm6090_vm13, 1, %v13949_v9  ;;  %vm1403_vm15 = vcmp.ge.s32.totalorder %v1339_v4, 0  ;;  %v3847_v23 = vsel %vm3591_vm14, %v3377_v49, 0.0  ;;  %vm3592_vm2 = vcmp.lt.s32.totalorder %v3464_v27, 8  ;;  %14529 = vst [vmem:[#allocation43_spill] sm:$0xff] %v11788_v8  ;;  %14532 = vst [vmem:[#allocation42_spill] sm:$0xff] %v11794_v31 }
 0x171   : > { %v1251_v53 = vsel %vm14525_vm5, %v14524_v28, %v14523_v19  ;;  %7072 = vperm.xlu1 %9098, %v6993_v36   ;;  %v711_v20 = vand.u32 7, %v379_v38  ;;  %v1723_v29 = vsel %vm1403_vm15, %v1252_v12, 0.0  ;;  %9013 = vmatprep.mubr.msk.f32.mxu0 %vm14530_vm11, %v3847_v23  ;;  %v3848_v42 = vsel %vm3592_vm2, %v3376_v16, 0.0  ;;  %vm14533_vm12 = vmmov %vm14527_vm1  ;;  %v14536_v27 = vld [vmem:[#allocation28_spill] sm:$0xff]  ;;  %v14549_v31 = vld [vmem:[#allocation23_spill] sm:$0xff]  ;;  %v11830_v55 = vpop.f32.mrf.mxu0 }
 0x172   : > { %vm6027_vm7 = vcmp.gt.s32.totalorder %v9292_v7, %v14531_v11  ;;  %v380_v19 = vadd.s32 360, %v9292_v7  ;;  %8910 = vmatmul.mubr.msk.f32.gmra.mxu1 %vm14533_vm12, %v1723_v29  ;;  %vm14534_vm10 = vmmov %vm14527_vm1  ;;  %v14537_v12 = vrot.slane %v14536_v27, 7  ;;  %v14538_v38 = vrot.slane %v14515_v61, 7  ;;  %v11813_v23 = vld [vmem:[%s9297_s23 + $0x1b8] sm:$0xff] }
 0x173   : > { %9014 = vmatmul.mubr.msk.f32.gmra.mxu0 %vm14534_vm10, %v3848_v42  ;;  %v1340_v49 = vadd.s32 4294967295, %v711_v20  ;;  %vm6091_vm4 = vmand %vm9527_vm8, %vm6027_vm7  ;;  %v14540_v11 = vrot.slane %v14536_v27, 1  ;;  %v14541_v36 = vrot.slane %v14515_v61, 1  ;;  %vm14542_vm14 = vcmp.lt.s32.totalorder %v9292_v7, 7 }
 0x174   : > { %vm14539_vm13 = vmmov %vm14525_vm5  ;;  %v3465_v28 = vadd.s32 1, %v711_v20  ;;  %v6994_v4 = vsel %vm6091_vm4, 1, %v13949_v9  ;;  %v718_v14 = vand.u32 7, %v380_v19  ;;  %v14544_v8 = vrot.slane %v14543_v34, 1  ;;  %v14548_v20 = vld [vmem:[#allocation20_spill] sm:$0xff] }
 0x175   : > { %v1250_v16 = vsel %vm14539_vm13, %v14538_v38, %v14537_v12  ;;  %v3375_v29 = vsel %vm14542_vm14, %v14541_v36, %v14540_v11  ;;  %v14545_v41 = vmov %v14540_v11  ;;  %vm14546_vm8 = vmmov %vm14542_vm14  ;;  %v11823_v38 = vpop.f32.mrf.mxu1  ;;  %vm1404_vm5 = vcmp.ge.s32.totalorder %v1340_v49, 0  ;;  %7075 = vperm.xlu0 %9097, %v6994_v4   ;;  %v14559_v4 = vld [vmem:[#allocation35_spill] sm:$0xff] }
 0x176   : > { %v3374_v12 = vsel %vm14546_vm8, %v14545_v41, %v14544_v8  ;;  %14547 = vst [vmem:[#allocation15_spill] sm:$0xff] %v11823_v38  ;;  %vm3593_vm1 = vcmp.lt.s32.totalorder %v3465_v28, 8  ;;  %vm6028_vm15 = vcmp.gt.s32.totalorder %v9292_v7, %v14548_v20  ;;  %v1724_v11 = vsel %vm1404_vm5, %v1251_v53, 0.0  ;;  %vm14551_vm7 = vmmov %vm14534_vm10  ;;  %v11846_v28 = vpop.permute.xlu0 %6309  ;;  %v14561_v20 = vld [vmem:[#allocation31_spill] sm:$0xff] }
 0x177   : > { %v1341_v36 = vadd.s32 4294967295, %v718_v14  ;;  %v3849_v19 = vsel %vm3593_vm1, %v3375_v29, 0.0  ;;  %v3466_v42 = vadd.s32 1, %v718_v14  ;;  %vm14550_vm2 = vnez %v14549_v31  ;;  %8912 = vmatprep.mubr.msk.f32.mxu1 %vm14551_vm7, %v1724_v11  ;;  %vm14552_vm12 = vmmov %vm14551_vm7  ;;  %v14556_v31 = vld [vmem:[#allocation33_spill] sm:$0xff]  ;;  %v11844_v29 = vpop.permute.xlu1 %6306  ;;  %14558 = vst [vmem:[#allocation28_spill] sm:$0xff] %v11846_v28 }
 0x178   : > { %vm6092_vm11 = vmand %vm14550_vm2, %vm6028_vm15  ;;  %9016 = vmatprep.mubr.msk.f32.mxu0 %vm14552_vm12, %v3849_v19  ;;  %v381_v8 = vadd.s32 368, %v9292_v7  ;;  %v14553_v49 = vrot.slane %v14543_v34, 7  ;;  %v14554_v53 = vrot.slane %v14536_v27, 7  ;;  %vm6029_vm4 = vcmp.gt.s32.totalorder %v9292_v7, %v14556_v31  ;;  %14557 = vst [vmem:[#allocation17_spill] sm:$0xff] %v11844_v29 }
 0x179   : > { %v6995_v41 = vsel %vm6092_vm11, 1, %v13949_v9  ;;  %vm14555_vm10 = vmmov %vm14539_vm13  ;;  %vm1405_vm13 = vcmp.ge.s32.totalorder %v1341_v36, 0  ;;  %vm3594_vm14 = vcmp.lt.s32.totalorder %v3466_v42, 8  ;;  %vm14560_vm8 = vcmp.lt.s32.totalorder %v9292_v7, %v14559_v4  ;;  %v11879_v4 = vpop.f32.mrf.mxu0 }
 0x17a   : > { %v1249_v14 = vsel %vm14555_vm10, %v14554_v53, %v14553_v49  ;;  %7078 = vperm.xlu1 %9098, %v6995_v41   ;;  %vm6093_vm5 = vmand %vm14560_vm8, %vm6029_vm4  ;;  %v382_v27 = vadd.s32 376, %v9292_v7  ;;  %v14562_v11 = vrot.slane %v14561_v20, 7  ;;  %v14563_v19 = vmov %v14553_v49  ;;  %v11858_v53 = vpop.f32.mrf.mxu1  ;;  %v11862_v41 = vld [vmem:[%s9297_s23 + $0x1c0] sm:$0xff]  ;;  %14574 = vst [vmem:[#allocation20_spill] sm:$0xff] %v11879_v4 }
 0x17b   : > { %vm14564_vm1 = vmmov %vm14555_vm10  ;;  %14565 = vst [vmem:[#allocation30_spill] sm:$0xff] %v11858_v53  ;;  %v1725_v31 = vsel %vm1405_vm13, %v1250_v16, 0.0  ;;  %v3850_v61 = vsel %vm3594_vm14, %v3374_v12, 0.0  ;;  %v725_v36 = vand.u32 7, %v381_v8  ;;  %v6996_v42 = vsel %vm6093_vm5, 1, %v13949_v9  ;;  %v14575_v53 = vld [vmem:[#allocation38_spill] sm:$0xff] }
 0x17c   : > { %v1248_v49 = vsel %vm14564_vm1, %v14563_v19, %v14562_v11  ;;  %vm14566_vm15 = vmmov %vm14551_vm7  ;;  %v732_v38 = vand.u32 7, %v382_v27  ;;  %v14568_v28 = vrot.slane %v14561_v20, 1  ;;  %v14569_v11 = vrot.slane %v14543_v34, 1  ;;  %7081 = vperm.xlu0 %9097, %v6996_v42   ;;  %v11894_v42 = vpop.f32.mrf.mxu1 }
 0x17d   : > { %8913 = vmatmul.mubr.msk.f32.gmra.mxu1 %vm14566_vm15, %v1725_v31  ;;  %vm14567_vm2 = vmmov %vm14551_vm7  ;;  %vm14570_vm11 = vcmp.lt.s32.totalorder %v9292_v7, 7  ;;  %v14571_v12 = vrot.slane %v9732_v1, 1  ;;  %v3467_v27 = vadd.s32 1, %v725_v36  ;;  %vm6030_vm12 = vcmp.gt.s32.totalorder %v9292_v7, %v14575_v53  ;;  %14581 = vst [vmem:[#allocation23_spill] sm:$0xff] %v11894_v42 }
 0x17e   : > { %9017 = vmatmul.mubr.msk.f32.gmra.mxu0 %vm14567_vm2, %v3850_v61  ;;  %v3373_v16 = vsel %vm14570_vm11, %v14569_v11, %v14568_v28  ;;  %v14572_v8 = vmov %v14568_v28  ;;  %vm14573_vm7 = vmmov %vm14570_vm11  ;;  %v1342_v61 = vadd.s32 4294967295, %v725_v36  ;;  %v1343_v34 = vadd.s32 4294967295, %v732_v38  ;;  %v14576_v28 = vld [vmem:[#allocation39_spill] sm:$0xff]  ;;  %v11899_v36 = vpop.permute.xlu1 %6312 }
 0x17f   : > { %v3372_v19 = vsel %vm14573_vm7, %v14572_v8, %v14571_v12  ;;  %v3468_v29 = vadd.s32 1, %v732_v38  ;;  %vm14577_vm10 = vcmp.lt.s32.totalorder %v9292_v7, %v14576_v28  ;;  %v383_v11 = vadd.s32 384, %v9292_v7  ;;  %vm14580_vm13 = vmmov %vm14564_vm1  ;;  %v14582_v38 = vld [vmem:[#allocation44_spill] sm:$0xff]  ;;  %14583 = vst [vmem:[#allocation33_spill] sm:$0xff] %v11899_v36  ;;  %v11901_v28 = vpop.permute.xlu0 %6315 }
 0x180   : > { %vm6094_vm4 = vmand %vm14577_vm10, %vm6030_vm12  ;;  %v14578_v12 = vrot.slane %v9732_v1, 7  ;;  %v14579_v8 = vrot.slane %v14561_v20, 7  ;;  %vm1406_vm14 = vcmp.ge.s32.totalorder %v1342_v61, 0  ;;  %vm3595_vm8 = vcmp.lt.s32.totalorder %v3467_v27, 8  ;;  %14584 = vst [vmem:[#allocation35_spill] sm:$0xff] %v11901_v28  ;;  %v11905_v61 = vpop.f32.mrf.mxu0  ;;  %v11911_v28 = vld [vmem:[%s9297_s23 + $0x1c8] sm:$0xff] }
 0x181   : > { %v6997_v53 = vsel %vm6094_vm4, 1, %v13949_v9  ;;  %vm6031_vm5 = vcmp.gt.s32.totalorder %v9292_v7, %v14582_v38  ;;  %v1726_v4 = vsel %vm1406_vm14, %v1249_v14, 0.0  ;;  %vm1407_vm1 = vcmp.ge.s32.totalorder %v1343_v34, 0  ;;  %14587 = vst [vmem:[#allocation31_spill] sm:$0xff] %v11905_v61  ;;  %v14603_v61 = vld [vmem:[#allocation49_spill] sm:$0xff] }
 0x182   : > { %v1247_v31 = vsel %vm14580_vm13, %v14579_v8, %v14578_v12  ;;  %v3851_v20 = vsel %vm3595_vm8, %v3373_v16, 0.0  ;;  %vm3596_vm15 = vcmp.lt.s32.totalorder %v3468_v29, 8  ;;  %7084 = vperm.xlu1 %9098, %v6997_v53   ;;  %v14585_v12 = vld [vmem:[#allocation45_spill] sm:$0xff]  ;;  %vm14588_vm7 = vcmask 261120   ;;  %v14592_v16 = vld [vmem:[#allocation36_spill] sm:$0xff] }
 0x183   : > { %vm14586_vm2 = vnez %v14585_v12  ;;  %8915 = vmatprep.mubr.msk.f32.mxu1 %vm14588_vm7, %v1726_v4  ;;  %v1727_v27 = vsel %vm1407_vm1, %v1248_v49, 0.0  ;;  %vm14589_vm12 = vmmov %vm14588_vm7  ;;  %v3852_v8 = vsel %vm3596_vm15, %v3372_v19, 0.0  ;;  %v739_v38 = vand.u32 7, %v383_v11 }
 0x184   : > { %vm6095_vm11 = vmand %vm14586_vm2, %vm6031_vm5  ;;  %9019 = vmatprep.mubr.msk.f32.mxu0 %vm14589_vm12, %v3851_v20  ;;  %v384_v29 = vadd.s32 392, %v9292_v7  ;;  %v14593_v34 = vrot.slane %v14592_v16, 7  ;;  %v14594_v49 = vrot.slane %v9732_v1, 7  ;;  %v14595_v19 = vrot.slane %v11434_v48, 1  ;;  %v11929_v20 = vpop.f32.mrf.mxu1 }
 0x185   : > { %v6998_v42 = vsel %vm6095_vm11, 1, %v13949_v9  ;;  %vm14590_vm10 = vmmov %vm14588_vm7  ;;  %v14596_v11 = vrot.slane %v9732_v1, 1  ;;  %vm14597_vm14 = vcmp.lt.s32.totalorder %v9292_v7, 7  ;;  %14598 = vst [vmem:[#allocation38_spill] sm:$0xff] %v11929_v20  ;;  %v1344_v12 = vadd.s32 4294967295, %v739_v38 }
 0x186   : > { %8916 = vmatmul.mubr.msk.f32.gmra.mxu1 %vm14590_vm10, %v1727_v27  ;;  %vm14591_vm4 = vmmov %vm14588_vm7  ;;  %v1246_v4 = vsel %vm14580_vm13, %v14594_v49, %v14593_v34  ;;  %7087 = vperm.xlu0 %9097, %v6998_v42   ;;  %v3469_v27 = vadd.s32 1, %v739_v38  ;;  %v14600_v14 = vmov %v14595_v19  ;;  %v14602_v34 = vld [vmem:[#allocation46_spill] sm:$0xff]  ;;  %v746_v49 = vand.u32 7, %v384_v29  ;;  %v11956_v29 = vpop.permute.xlu0 %6321 }
 0x187   : > { %9020 = vmatmul.mubr.msk.f32.gmra.mxu0 %vm14591_vm4, %v3852_v8  ;;  %v3371_v53 = vsel %vm14597_vm14, %v14596_v11, %v14595_v19  ;;  %v14599_v8 = vrot.slane %v11512_v10, 1  ;;  %vm14601_vm8 = vmmov %vm14597_vm14  ;;  %vm6032_vm5 = vcmp.gt.s32.totalorder %v9292_v7, %v14602_v34  ;;  %vm14604_vm1 = vnez %v14603_v61  ;;  %v11949_v11 = vpop.f32.mrf.mxu0  ;;  %v11954_v61 = vpop.permute.xlu1 %6318  ;;  %14611 = vst [vmem:[#allocation45_spill] sm:$0xff] %v11956_v29 }
 0x188   : > { %vm6096_vm15 = vmand %vm14604_vm1, %vm6032_vm5  ;;  %v385_v19 = vadd.s32 400, %v9292_v7  ;;  %v14605_v42 = vrot.slane %v11512_v10, 7  ;;  %v14606_v38 = vrot.slane %v14592_v16, 7  ;;  %14608 = vst [vmem:[#allocation39_spill] sm:$0xff] %v11949_v11  ;;  %vm1408_vm11 = vcmp.ge.s32.totalorder %v1344_v12, 0  ;;  %v11961_v12 = vpop.f32.mrf.mxu1 }
 0x189   : > { %v3370_v36 = vsel %vm14601_vm8, %v14600_v14, %v14599_v8  ;;  %vm14607_vm2 = vmmov %vm14580_vm13  ;;  %vm3597_vm7 = vcmp.lt.s32.totalorder %v3469_v27, 8  ;;  %v6999_v14 = vsel %vm6096_vm15, 1, %v13949_v9  ;;  %v14609_v8 = vld [vmem:[#allocation47_spill] sm:$0xff]  ;;  %14610 = vst [vmem:[#allocation44_spill] sm:$0xff] %v11954_v61  ;;  %v1728_v34 = vsel %vm1408_vm11, %v1247_v31, 0.0 }
 0x18a   : > { %v1245_v48 = vsel %vm14607_vm2, %v14606_v38, %v14605_v42  ;;  %vm6033_vm12 = vcmp.gt.s32.totalorder %v9292_v7, %v14609_v8  ;;  %v1345_v1 = vadd.s32 4294967295, %v746_v49  ;;  %v3853_v16 = vsel %vm3597_vm7, %v3371_v53, 0.0  ;;  %7090 = vperm.xlu1 %9098, %v6999_v14   ;;  %v14612_v42 = vld [vmem:[#allocation48_spill] sm:$0xff]  ;;  %14614 = vst [vmem:[#allocation36_spill] sm:$0xff] %v11961_v12  ;;  %vm14619_vm8 = vmmov %vm14607_vm2  ;;  %v11974_v14 = vld [vmem:[%s9297_s23 + $0x1d0] sm:$0xff]  ;;  %v11983_v12 = vpop.f32.mrf.mxu0 }
 0x18b   : > { %v3470_v20 = vadd.s32 1, %v746_v49  ;;  %vm14613_vm10 = vcmp.lt.s32.totalorder %v9292_v7, %v14612_v42  ;;  %vm14615_vm13 = vcmask 261120   ;;  %v753_v27 = vand.u32 7, %v385_v19 }
 0x18c   : > { %vm6097_vm4 = vmand %vm14613_vm10, %vm6033_vm12  ;;  %8918 = vmatprep.mubr.msk.f32.mxu1 %vm14615_vm13, %v1728_v34  ;;  %v386_v8 = vadd.s32 408, %v9292_v7  ;;  %v14617_v31 = vrot.slane %v11584_v33, 7  ;;  %v14618_v53 = vrot.slane %v11512_v10, 7  ;;  %vm1409_vm5 = vcmp.ge.s32.totalorder %v1345_v1, 0 }
 0x18d   : > { %vm14616_vm14 = vmmov %vm14615_vm13  ;;  %v7000_v38 = vsel %vm6097_vm4, 1, %v13949_v9  ;;  %vm3598_vm1 = vcmp.lt.s32.totalorder %v3470_v20, 8  ;;  %v14620_v19 = vrot.slane %v11584_v33, 1  ;;  %v14621_v34 = vrot.slane %v11512_v10, 1 }
 0x18e   : > { %9022 = vmatprep.mubr.msk.f32.mxu0 %vm14616_vm14, %v3853_v16  ;;  %v1244_v49 = vsel %vm14619_vm8, %v14618_v53, %v14617_v31  ;;  %7093 = vperm.xlu0 %9097, %v7000_v38   ;;  %vm14622_vm15 = vcmp.lt.s32.totalorder %v9292_v7, 7  ;;  %v1729_v29 = vsel %vm1409_vm5, %v1246_v4, 0.0  ;;  %v3854_v61 = vsel %vm3598_vm1, %v3370_v36, 0.0  ;;  %vm14623_vm2 = vmmov %vm14615_vm13  ;;  %v11996_v36 = vpop.f32.mrf.mxu1 }
 0x18f   : > { %v3369_v16 = vsel %vm14622_vm15, %v14621_v34, %v14620_v19  ;;  %v1346_v11 = vadd.s32 4294967295, %v753_v27  ;;  %v760_v31 = vand.u32 7, %v386_v8  ;;  %8919 = vmatmul.mubr.msk.f32.gmra.mxu1 %vm14623_vm2, %v1729_v29  ;;  %vm14624_vm11 = vmmov %vm14623_vm2  ;;  %v3471_v20 = vadd.s32 1, %v753_v27  ;;  %14629 = vst [vmem:[#allocation46_spill] sm:$0xff] %v11996_v36  ;;  %v14630_v29 = vld [vmem:[#allocation51_spill] sm:$0xff]  ;;  %v12002_v27 = vpop.permute.xlu1 %6324  ;;  %v12004_v34 = vpop.permute.xlu0 %6327  ;;  %v14638_v36 = vld [vmem:[#allocation52_spill] sm:$0xff] }
 0x190   : > { %9023 = vmatmul.mubr.msk.f32.gmra.mxu0 %vm14624_vm11, %v3854_v61  ;;  %v14625_v1 = vrot.slane %v11636_v0, 1  ;;  %v14626_v10 = vmov %v14620_v19  ;;  %vm14627_vm7 = vmmov %vm14622_vm15  ;;  %v14628_v19 = vld [vmem:[#allocation50_spill] sm:$0xff]  ;;  %vm14631_vm4 = vcmp.lt.s32.totalorder %v9292_v7, %v14630_v29  ;;  %v387_v61 = vadd.s32 416, %v9292_v7  ;;  %14632 = vst [vmem:[#allocation49_spill] sm:$0xff] %v12002_v27 }
 0x191   : > { %vm6034_vm12 = vcmp.gt.s32.totalorder %v9292_v7, %v14628_v19  ;;  %vm1410_vm10 = vcmp.ge.s32.totalorder %v1346_v11, 0  ;;  %v1347_v4 = vadd.s32 4294967295, %v760_v31  ;;  %v3472_v8 = vadd.s32 1, %v760_v31  ;;  %14633 = vst [vmem:[#allocation47_spill] sm:$0xff] %v12004_v34  ;;  %v12013_v19 = vpop.f32.mrf.mxu0  ;;  %vm14637_vm5 = vmmov %vm14623_vm2 }
 0x192   : > { %v3368_v38 = vsel %vm14627_vm7, %v14626_v10, %v14625_v1  ;;  %vm6098_vm13 = vmand %vm14631_vm4, %vm6034_vm12  ;;  %v1730_v42 = vsel %vm1410_vm10, %v1245_v48, 0.0  ;;  %vm3599_vm14 = vcmp.lt.s32.totalorder %v3471_v20, 8  ;;  %v14634_v10 = vrot.slane %v11636_v0, 7  ;;  %14636 = vst [vmem:[#allocation48_spill] sm:$0xff] %v12013_v19  ;;  %v14656_v19 = vld [vmem:[#allocation58_spill] sm:$0xff] }
 0x193   : > { %v7001_v1 = vsel %vm6098_vm13, 1, %v13949_v9  ;;  %v14635_v11 = vrot.slane %v11584_v33, 7  ;;  %8921 = vmatprep.mubr.msk.f32.mxu1 %vm14637_vm5, %v1730_v42  ;;  %vm1411_vm1 = vcmp.ge.s32.totalorder %v1347_v4, 0  ;;  %v3855_v29 = vsel %vm3599_vm14, %v3369_v16, 0.0  ;;  %vm14640_vm7 = vmmov %vm14623_vm2  ;;  %v14642_v16 = vld [vmem:[#allocation53_spill] sm:$0xff] }
 0x194   : > { %vm3600_vm15 = vcmp.lt.s32.totalorder %v3472_v8, 8  ;;  %7096 = vperm.xlu1 %9098, %v7001_v1   ;;  %v767_v48 = vand.u32 7, %v387_v61  ;;  %v1731_v20 = vsel %vm1411_vm1, %v1244_v49, 0.0  ;;  %9025 = vmatprep.mubr.msk.f32.mxu0 %vm14623_vm2, %v3855_v29  ;;  %vm6035_vm11 = vcmp.gt.s32.totalorder %v9292_v7, %v14638_v36  ;;  %vm14641_vm12 = vmmov %vm14623_vm2 }
 0x195   : > { %v1243_v31 = vsel %vm14619_vm8, %v14635_v11, %v14634_v10  ;;  %v3856_v53 = vsel %vm3600_vm15, %v3368_v38, 0.0  ;;  %v388_v33 = vadd.s32 424, %v9292_v7  ;;  %v12020_v10 = vpop.f32.mrf.mxu1  ;;  %8922 = vmatmul.mubr.msk.f32.gmra.mxu1 %vm14640_vm7, %v1731_v20  ;;  %vm14643_vm10 = vnez %v14642_v16  ;;  %vm14646_vm13 = vmmov %vm14619_vm8 }
 0x196   : > { %14639 = vst [vmem:[#allocation50_spill] sm:$0xff] %v12020_v10  ;;  %9026 = vmatmul.mubr.msk.f32.gmra.mxu0 %vm14641_vm12, %v3856_v53  ;;  %v1348_v42 = vadd.s32 4294967295, %v767_v48  ;;  %vm6099_vm4 = vmand %vm14643_vm10, %vm6035_vm11  ;;  %v14644_v49 = vrot.slane %v11685_v58, 7  ;;  %v14645_v4 = vrot.slane %v11636_v0, 7  ;;  %v14647_v36 = vrot.slane %v11685_v58, 1  ;;  %v12039_v53 = vld [vmem:[%s9297_s23 + $0x1d8] sm:$0xff] }
 0x197   : > { %v14648_v8 = vrot.slane %v11636_v0, 1  ;;  %vm14649_vm14 = vcmp.lt.s32.totalorder %v9292_v7, 7  ;;  %v3473_v1 = vadd.s32 1, %v767_v48  ;;  %v7002_v29 = vsel %vm6099_vm4, 1, %v13949_v9  ;;  %v14653_v48 = vld [vmem:[#allocation55_spill] sm:$0xff]  ;;  %vm14659_vm12 = vmmov %vm14640_vm7 }
 0x198   : > { %v1242_v38 = vsel %vm14646_vm13, %v14645_v4, %v14644_v49  ;;  %v774_v20 = vand.u32 7, %v388_v33  ;;  %v14650_v16 = vrot.slane %v11748_v35, 1  ;;  %v14651_v10 = vmov %v14647_v36  ;;  %vm14652_vm8 = vmmov %vm14649_vm14  ;;  %v12049_v4 = vpop.f32.mrf.mxu0  ;;  %7099 = vperm.xlu0 %9097, %v7002_v29   ;;  %v12056_v33 = vpop.permute.xlu0 %6333 }
 0x199   : > { %v3367_v61 = vsel %vm14649_vm14, %v14648_v8, %v14647_v36  ;;  %vm1412_vm5 = vcmp.ge.s32.totalorder %v1348_v42, 0  ;;  %vm3601_vm1 = vcmp.lt.s32.totalorder %v3473_v1, 8  ;;  %vm6036_vm15 = vcmp.gt.s32.totalorder %v9292_v7, %v14653_v48  ;;  %v12054_v36 = vpop.permute.xlu1 %6330  ;;  %14655 = vst [vmem:[#allocation52_spill] sm:$0xff] %v12056_v33  ;;  %vm14662_vm10 = vmmov %vm14646_vm13 }
 0x19a   : > { %v3366_v49 = vsel %vm14652_vm8, %v14651_v10, %v14650_v16  ;;  %14654 = vst [vmem:[#allocation51_spill] sm:$0xff] %v12054_v36  ;;  %v1732_v8 = vsel %vm1412_vm5, %v1243_v31, 0.0  ;;  %v1349_v11 = vadd.s32 4294967295, %v774_v20  ;;  %v3857_v34 = vsel %vm3601_vm1, %v3367_v61, 0.0  ;;  %v12060_v10 = vpop.f32.mrf.mxu1  ;;  %vm14668_vm1 = vmmov %vm14662_vm10  ;;  %v14681_v36 = vld [vmem:[#allocation60_spill] sm:$0xff] }
 0x19b   : > { %v3474_v27 = vadd.s32 1, %v774_v20  ;;  %vm14657_vm2 = vnez %v14656_v19  ;;  %14658 = vst [vmem:[#allocation53_spill] sm:$0xff] %v12060_v10  ;;  %8924 = vmatprep.mubr.msk.f32.mxu1 %vm14640_vm7, %v1732_v8  ;;  %9028 = vmatprep.mubr.msk.f32.mxu0 %vm14659_vm12, %v3857_v34  ;;  %v389_v1 = vadd.s32 432, %v9292_v7  ;;  %v14660_v29 = vrot.slane %v11748_v35, 7  ;;  %v14663_v19 = vld [vmem:[#allocation54_spill] sm:$0xff]  ;;  %v14664_v34 = vld [vmem:[#allocation56_spill] sm:$0xff]  ;;  %v12084_v8 = vpop.f32.mrf.mxu0 }
 0x19c   : > { %vm6100_vm11 = vmand %vm14657_vm2, %vm6036_vm15  ;;  %v14661_v31 = vrot.slane %v11685_v58, 7  ;;  %vm6037_vm4 = vcmp.gt.s32.totalorder %v9292_v7, %v14663_v19  ;;  %vm1413_vm13 = vcmp.ge.s32.totalorder %v1349_v11, 0  ;;  %vm14665_vm8 = vcmp.lt.s32.totalorder %v9292_v7, %v14664_v34  ;;  %v12105_v19 = vpop.f32.mrf.mxu1  ;;  %v14678_v10 = vld [vmem:[#allocation59_spill] sm:$0xff] }
 0x19d   : > { %v7003_v42 = vsel %vm6100_vm11, 1, %v13949_v9  ;;  %vm3602_vm14 = vcmp.lt.s32.totalorder %v3474_v27, 8  ;;  %vm6101_vm5 = vmand %vm14665_vm8, %vm6037_vm4  ;;  %v390_v20 = vadd.s32 440, %v9292_v7  ;;  %v14666_v16 = vrot.slane %v11813_v23, 7  ;;  %14677 = vst [vmem:[#allocation55_spill] sm:$0xff] %v12105_v19 }
 0x19e   : > { %v1241_v61 = vsel %vm14662_vm10, %v14661_v31, %v14660_v29  ;;  %7102 = vperm.xlu1 %9098, %v7003_v42   ;;  %v14667_v48 = vmov %v14660_v29  ;;  %v1733_v29 = vsel %vm1413_vm13, %v1242_v38, 0.0  ;;  %v3858_v31 = vsel %vm3602_vm14, %v3366_v49, 0.0  ;;  %v12088_v42 = vld [vmem:[%s9297_s23 + $0x1e0] sm:$0xff]  ;;  %vm14669_vm15 = vmmov %vm14640_vm7 }
 0x19f   : > { %v1240_v58 = vsel %vm14668_vm1, %v14667_v48, %v14666_v16  ;;  %v781_v11 = vand.u32 7, %v389_v1  ;;  %v7004_v27 = vsel %vm6101_vm5, 1, %v13949_v9  ;;  %8925 = vmatmul.mubr.msk.f32.gmra.mxu1 %vm14669_vm15, %v1733_v29  ;;  %vm14670_vm2 = vmmov %vm14640_vm7  ;;  %v788_v34 = vand.u32 7, %v390_v20  ;;  %v14687_v29 = vld [vmem:[#allocation61_spill] sm:$0xff] }
 0x1a0   : > { %9029 = vmatmul.mubr.msk.f32.gmra.mxu0 %vm14670_vm2, %v3858_v31  ;;  %v14671_v0 = vrot.slane %v11813_v23, 1  ;;  %v14672_v16 = vrot.slane %v11748_v35, 1  ;;  %vm14673_vm11 = vcmp.lt.s32.totalorder %v9292_v7, 7  ;;  %v14674_v49 = vrot.slane %v11862_v41, 1  ;;  %7105 = vperm.xlu0 %9097, %v7004_v27   ;;  %v12110_v35 = vpop.permute.xlu1 %6336  ;;  %vm14685_vm13 = vmmov %vm14668_vm1 }
 0x1a1   : > { %vm14676_vm7 = vmmov %vm14673_vm11  ;;  %v1350_v31 = vadd.s32 4294967295, %v781_v11  ;;  %v3475_v20 = vadd.s32 1, %v781_v11  ;;  %vm6038_vm12 = vcmp.gt.s32.totalorder %v9292_v7, %v14678_v10  ;;  %14679 = vst [vmem:[#allocation58_spill] sm:$0xff] %v12110_v35  ;;  %v3476_v33 = vadd.s32 1, %v788_v34  ;;  %v12124_v10 = vpop.f32.mrf.mxu0 }
 0x1a2   : > { %v3365_v38 = vsel %vm14673_vm11, %v14672_v16, %v14671_v0  ;;  %v14675_v1 = vmov %v14671_v0  ;;  %v12112_v0 = vpop.permute.xlu0 %6339  ;;  %v1351_v16 = vadd.s32 4294967295, %v788_v34  ;;  %vm14682_vm10 = vcmp.lt.s32.totalorder %v9292_v7, %v14681_v36  ;;  %14686 = vst [vmem:[#allocation56_spill] sm:$0xff] %v12124_v10 }
 0x1a3   : > { %v3364_v48 = vsel %vm14676_vm7, %v14675_v1, %v14674_v49  ;;  %14680 = vst [vmem:[#allocation54_spill] sm:$0xff] %v12112_v0  ;;  %vm6102_vm4 = vmand %vm14682_vm10, %vm6038_vm12  ;;  %v391_v49 = vadd.s32 448, %v9292_v7  ;;  %v14683_v1 = vrot.slane %v11862_v41, 7  ;;  %v14684_v27 = vrot.slane %v11813_v23, 7  ;;  %v14688_v0 = vld [vmem:[#allocation63_spill] sm:$0xff]  ;;  %v12131_v23 = vpop.f32.mrf.mxu1 }
 0x1a4   : > { %vm1414_vm14 = vcmp.ge.s32.totalorder %v1350_v31, 0  ;;  %vm3603_vm8 = vcmp.lt.s32.totalorder %v3475_v20, 8  ;;  %v7005_v34 = vsel %vm6102_vm4, 1, %v13949_v9  ;;  %vm6039_vm5 = vcmp.gt.s32.totalorder %v9292_v7, %v14687_v29  ;;  %14690 = vst [vmem:[#allocation59_spill] sm:$0xff] %v12131_v23  ;;  %v12137_v29 = vld [vmem:[%s9297_s23 + $0x1e8] sm:$0xff] }
 0x1a5   : > { %v1239_v11 = vsel %vm14685_vm13, %v14684_v27, %v14683_v1  ;;  %v1734_v36 = vsel %vm1414_vm14, %v1241_v61, 0.0  ;;  %vm1415_vm1 = vcmp.ge.s32.totalorder %v1351_v16, 0  ;;  %v3859_v19 = vsel %vm3603_vm8, %v3365_v38, 0.0  ;;  %7108 = vperm.xlu1 %9098, %v7005_v34   ;;  %v14707_v23 = vld [vmem:[#allocation66_spill] sm:$0xff] }
 0x1a6   : > { %vm3604_vm15 = vcmp.lt.s32.totalorder %v3476_v33, 8  ;;  %vm14689_vm2 = vnez %v14688_v0  ;;  %vm14691_vm7 = vcmask 261120   ;;  %v1735_v31 = vsel %vm1415_vm1, %v1240_v58, 0.0 }
 0x1a7   : > { %vm6103_vm11 = vmand %vm14689_vm2, %vm6039_vm5  ;;  %8927 = vmatprep.mubr.msk.f32.mxu1 %vm14691_vm7, %v1734_v36  ;;  %v3860_v20 = vsel %vm3604_vm15, %v3364_v48, 0.0  ;;  %v795_v1 = vand.u32 7, %v391_v49  ;;  %v392_v33 = vadd.s32 456, %v9292_v7  ;;  %v14695_v38 = vrot.slane %v11911_v28, 7  ;;  %v12155_v49 = vpop.f32.mrf.mxu0 }
 0x1a8   : > { %vm14692_vm12 = vmmov %vm14691_vm7  ;;  %v7006_v27 = vsel %vm6103_vm11, 1, %v13949_v9  ;;  %v14696_v58 = vrot.slane %v11862_v41, 7  ;;  %v14697_v48 = vrot.slane %v11911_v28, 1  ;;  %v14698_v0 = vrot.slane %v11862_v41, 1  ;;  %14700 = vst [vmem:[#allocation60_spill] sm:$0xff] %v12155_v49  ;;  %v12167_v41 = vpop.permute.xlu0 %6345 }
 0x1a9   : > { %9031 = vmatprep.mubr.msk.f32.mxu0 %vm14692_vm12, %v3859_v19  ;;  %vm14693_vm10 = vmmov %vm14691_vm7  ;;  %vm14699_vm14 = vcmp.lt.s32.totalorder %v9292_v7, 7  ;;  %v1352_v34 = vadd.s32 4294967295, %v795_v1  ;;  %7111 = vperm.xlu0 %9097, %v7006_v27   ;;  %v3477_v36 = vadd.s32 1, %v795_v1  ;;  %14706 = vst [vmem:[#allocation63_spill] sm:$0xff] %v12167_v41  ;;  %vm14708_vm1 = vnez %v14707_v23 }
 0x1aa   : > { %8928 = vmatmul.mubr.msk.f32.gmra.mxu1 %vm14693_vm10, %v1735_v31  ;;  %vm14694_vm4 = vmmov %vm14691_vm7  ;;  %v1238_v19 = vsel %vm14685_vm13, %v14696_v58, %v14695_v38  ;;  %v3363_v16 = vsel %vm14699_vm14, %v14698_v0, %v14697_v48  ;;  %v14701_v31 = vrot.slane %v11974_v14, 1  ;;  %v14704_v38 = vld [vmem:[#allocation64_spill] sm:$0xff]  ;;  %v12165_v58 = vpop.permute.xlu1 %6342  ;;  %v802_v0 = vand.u32 7, %v392_v33  ;;  %v14713_v33 = vld [vmem:[#allocation62_spill] sm:$0xff] }
 0x1ab   : > { %9032 = vmatmul.mubr.msk.f32.gmra.mxu0 %vm14694_vm4, %v3860_v20  ;;  %v14702_v20 = vmov %v14697_v48  ;;  %vm14703_vm8 = vmmov %vm14699_vm14  ;;  %vm6040_vm5 = vcmp.gt.s32.totalorder %v9292_v7, %v14704_v38  ;;  %14705 = vst [vmem:[#allocation61_spill] sm:$0xff] %v12165_v58  ;;  %v393_v1 = vadd.s32 464, %v9292_v7  ;;  %v14709_v27 = vrot.slane %v11974_v14, 7 }
 0x1ac   : > { %v3362_v61 = vsel %vm14703_vm8, %v14702_v20, %v14701_v31  ;;  %vm6104_vm15 = vmand %vm14708_vm1, %vm6040_vm5  ;;  %v14710_v35 = vrot.slane %v11911_v28, 7  ;;  %v12179_v20 = vpop.f32.mrf.mxu1  ;;  %vm1416_vm11 = vcmp.ge.s32.totalorder %v1352_v34, 0  ;;  %vm3605_vm7 = vcmp.lt.s32.totalorder %v3477_v36, 8  ;;  %v14714_v28 = vld [vmem:[#allocation65_spill] sm:$0xff]  ;;  %v12213_v10 = vpop.permute.xlu0 %6351 }
 0x1ad   : > { %vm14711_vm2 = vmmov %vm14685_vm13  ;;  %14712 = vst [vmem:[#allocation64_spill] sm:$0xff] %v12179_v20  ;;  %v7007_v38 = vsel %vm6104_vm15, 1, %v13949_v9  ;;  %vm6041_vm12 = vcmp.gt.s32.totalorder %v9292_v7, %v14713_v33  ;;  %v1736_v23 = vsel %vm1416_vm11, %v1239_v11, 0.0  ;;  %v1353_v48 = vadd.s32 4294967295, %v802_v0 }
 0x1ae   : > { %v1237_v31 = vsel %vm14711_vm2, %v14710_v35, %v14709_v27  ;;  %v3861_v41 = vsel %vm3605_vm7, %v3363_v16, 0.0  ;;  %v3478_v58 = vadd.s32 1, %v802_v0  ;;  %7114 = vperm.xlu1 %9098, %v7007_v38   ;;  %vm14715_vm10 = vcmp.lt.s32.totalorder %v9292_v7, %v14714_v28  ;;  %v12187_v35 = vpop.f32.mrf.mxu0  ;;  %vm14721_vm8 = vmmov %vm14711_vm2  ;;  %v12200_v38 = vld [vmem:[%s9297_s23 + $0x1f0] sm:$0xff]  ;;  %v12209_v28 = vpop.f32.mrf.mxu1 }
 0x1af   : > { %vm6105_vm4 = vmand %vm14715_vm10, %vm6041_vm12  ;;  %14716 = vst [vmem:[#allocation66_spill] sm:$0xff] %v12187_v35  ;;  %vm14717_vm13 = vcmask 261120   ;;  %v809_v34 = vand.u32 7, %v393_v1  ;;  %v394_v27 = vadd.s32 472, %v9292_v7  ;;  %v14719_v11 = vrot.slane %v12039_v53, 7 }
 0x1b0   : > { %8930 = vmatprep.mubr.msk.f32.mxu1 %vm14717_vm13, %v1736_v23  ;;  %vm14718_vm14 = vmmov %vm14717_vm13  ;;  %v7008_v36 = vsel %vm6105_vm4, 1, %v13949_v9  ;;  %v14720_v16 = vrot.slane %v11974_v14, 7  ;;  %vm1417_vm5 = vcmp.ge.s32.totalorder %v1353_v48, 0  ;;  %vm3606_vm1 = vcmp.lt.s32.totalorder %v3478_v58, 8  ;;  %14725 = vst [vmem:[#allocation62_spill] sm:$0xff] %v12209_v28  ;;  %v14738_v58 = vld [vmem:[#allocation69_spill] sm:$0xff] }
 0x1b1   : > { %9034 = vmatprep.mubr.msk.f32.mxu0 %vm14718_vm14, %v3861_v41  ;;  %7117 = vperm.xlu0 %9097, %v7008_v36   ;;  %v14722_v41 = vrot.slane %v12039_v53, 1  ;;  %v14723_v1 = vrot.slane %v11974_v14, 1  ;;  %vm14724_vm15 = vcmp.lt.s32.totalorder %v9292_v7, 7  ;;  %v1737_v20 = vsel %vm1417_vm5, %v1238_v19, 0.0  ;;  %vm14726_vm2 = vmmov %vm14717_vm13  ;;  %v14731_v19 = vld [vmem:[#allocation68_spill] sm:$0xff] }
 0x1b2   : > { %v1236_v0 = vsel %vm14721_vm8, %v14720_v16, %v14719_v11  ;;  %v3862_v35 = vsel %vm3606_vm1, %v3362_v61, 0.0  ;;  %v1354_v49 = vadd.s32 4294967295, %v809_v34  ;;  %v816_v11 = vand.u32 7, %v394_v27  ;;  %v12211_v16 = vpop.permute.xlu1 %6348  ;;  %8931 = vmatmul.mubr.msk.f32.gmra.mxu1 %vm14726_vm2, %v1737_v20  ;;  %vm14727_vm11 = vmmov %vm14726_vm2  ;;  %v12226_v27 = vpop.f32.mrf.mxu0  ;;  %v14732_v20 = vld [vmem:[#allocation67_spill] sm:$0xff]  ;;  %v14753_v28 = vld [vmem:[#allocation72_spill] sm:$0xff] }
 0x1b3   : > { %v3361_v23 = vsel %vm14724_vm15, %v14723_v1, %v14722_v41  ;;  %9035 = vmatmul.mubr.msk.f32.gmra.mxu0 %vm14727_vm11, %v3862_v35  ;;  %v3479_v14 = vadd.s32 1, %v809_v34  ;;  %v14728_v48 = vrot.slane %v12088_v42, 1  ;;  %v14729_v36 = vmov %v14722_v41  ;;  %vm14730_vm7 = vmmov %vm14724_vm15 }
 0x1b4   : > { %vm6042_vm12 = vcmp.gt.s32.totalorder %v9292_v7, %v14731_v19  ;;  %vm1418_vm10 = vcmp.ge.s32.totalorder %v1354_v49, 0  ;;  %v1355_v41 = vadd.s32 4294967295, %v816_v11  ;;  %v3480_v1 = vadd.s32 1, %v816_v11  ;;  %v12239_v49 = vpop.f32.mrf.mxu1  ;;  %vm14737_vm5 = vmmov %vm14726_vm2 }
 0x1b5   : > { %v3360_v61 = vsel %vm14730_vm7, %v14729_v36, %v14728_v48  ;;  %vm14733_vm4 = vcmp.lt.s32.totalorder %v9292_v7, %v14732_v20  ;;  %v395_v35 = vadd.s32 480, %v9292_v7  ;;  %v1738_v34 = vsel %vm1418_vm10, %v1237_v31, 0.0  ;;  %14736 = vst [vmem:[#allocation65_spill] sm:$0xff] %v12239_v49  ;;  %vm14739_vm7 = vmmov %vm14726_vm2 }
 0x1b6   : > { %vm6106_vm13 = vmand %vm14733_vm4, %vm6042_vm12  ;;  %vm3607_vm14 = vcmp.lt.s32.totalorder %v3479_v14, 8  ;;  %v14734_v48 = vrot.slane %v12088_v42, 7  ;;  %v14735_v36 = vrot.slane %v12039_v53, 7  ;;  %8933 = vmatprep.mubr.msk.f32.mxu1 %vm14737_vm5, %v1738_v34  ;;  %vm1419_vm1 = vcmp.ge.s32.totalorder %v1355_v41, 0  ;;  %v12264_v34 = vpop.permute.xlu1 %6354 }
 0x1b7   : > { %v7009_v33 = vsel %vm6106_vm13, 1, %v13949_v9  ;;  %v3863_v11 = vsel %vm3607_vm14, %v3361_v23, 0.0  ;;  %vm3608_vm15 = vcmp.lt.s32.totalorder %v3480_v1, 8  ;;  %v823_v20 = vand.u32 7, %v395_v35  ;;  %vm14740_vm12 = vmmov %vm14726_vm2 }
 0x1b8   : > { %v1235_v19 = vsel %vm14721_vm8, %v14735_v36, %v14734_v48  ;;  %7120 = vperm.xlu1 %9098, %v7009_v33   ;;  %v1739_v31 = vsel %vm1419_vm1, %v1236_v0, 0.0  ;;  %9037 = vmatprep.mubr.msk.f32.mxu0 %vm14726_vm2, %v3863_v11  ;;  %v3864_v14 = vsel %vm3608_vm15, %v3360_v61, 0.0  ;;  %vm6043_vm11 = vcmp.gt.s32.totalorder %v9292_v7, %v14738_v58  ;;  %v12246_v48 = vpop.f32.mrf.mxu0  ;;  %vm14744_vm13 = vmmov %vm14721_vm8  ;;  %v12266_v36 = vpop.permute.xlu0 %6357 }
 0x1b9   : > { %v396_v53 = vadd.s32 488, %v9292_v7  ;;  %8934 = vmatmul.mubr.msk.f32.gmra.mxu1 %vm14739_vm7, %v1739_v31  ;;  %9038 = vmatmul.mubr.msk.f32.gmra.mxu0 %vm14740_vm12, %v3864_v14  ;;  %v1356_v23 = vadd.s32 4294967295, %v823_v20  ;;  %vm14741_vm10 = vnez %v14007_v62  ;;  %v14742_v0 = vrot.slane %v12137_v29, 7  ;;  %14748 = vst [vmem:[#allocation68_spill] sm:$0xff] %v12266_v36  ;;  %vm14755_vm12 = vmmov %vm14739_vm7 }
 0x1ba   : > { %vm6107_vm4 = vmand %vm14741_vm10, %vm6043_vm11  ;;  %v14743_v33 = vrot.slane %v12088_v42, 7  ;;  %v14745_v61 = vrot.slane %v12137_v29, 1  ;;  %v14746_v41 = vrot.slane %v12088_v42, 1  ;;  %vm14747_vm14 = vcmp.lt.s32.totalorder %v9292_v7, 7  ;;  %v9129_v42 = vld [vmem:[%s9297_s23 + $0x1f8] sm:$0xff]  ;;  %v12282_v36 = vpop.f32.mrf.mxu0  ;;  %s9133_s23 = scalar_lea.vmem %s13608_s7, 2048 }
 0x1bb   : > { %v3481_v35 = vadd.s32 1, %v823_v20  ;;  %v7010_v62 = vsel %vm6107_vm4, 1, %v13949_v9  ;;  %v830_v11 = vand.u32 7, %v396_v53  ;;  %v14749_v31 = vrot.slane %v12200_v38, 1  ;;  %vm14751_vm8 = vmmov %vm14747_vm14  ;;  %p9134_p12 = scmp.ne.s32.totalorder %s13608_s7, %s9133_s23  ;;  %p9141_p2 = scmp.lt.s32.totalorder %s9139_s15, %s9133_s23 }
 0x1bc   : > { %v1234_v58 = vsel %vm14744_vm13, %v14743_v33, %v14742_v0  ;;  %v3359_v1 = vsel %vm14747_vm14, %v14746_v41, %v14745_v61  ;;  %v14750_v14 = vmov %v14745_v61  ;;  %v12275_v33 = vpop.f32.mrf.mxu1  ;;  %v3355_v49 = vrot.slane %v9129_v42, 1  ;;  %7123 = vperm.xlu0 %9097, %v7010_v62   ;;  %vm14758_vm10 = vmmov %vm14744_vm13 }
 0x1bd   : > { %v3358_v0 = vsel %vm14751_vm8, %v14750_v14, %v14749_v31  ;;  %14752 = vst [vmem:[#allocation67_spill] sm:$0xff] %v12275_v33  ;;  %vm1420_vm5 = vcmp.ge.s32.totalorder %v1356_v23, 0  ;;  %vm3609_vm1 = vcmp.lt.s32.totalorder %v3481_v35, 8  ;;  %vm6044_vm15 = vcmp.gt.s32.totalorder %v9292_v7, %v10251_v59  ;;  %p9135_p13 = pnand %p9134_p12, %p9268_p5  ;;  %p9142_p3 = por %p9141_p2, %p9140_p1 }
 0x1be   : > { %v1740_v20 = vsel %vm1420_vm5, %v1235_v19, 0.0  ;;  %v1357_v61 = vadd.s32 4294967295, %v830_v11  ;;  %v3865_v53 = vsel %vm3609_vm1, %v3359_v1, 0.0  ;;  %v3482_v41 = vadd.s32 1, %v830_v11  ;;  %v14759_v1 = vld [vmem:[#allocation70_spill] sm:$0xff]  ;;  %v12300_v31 = vpop.f32.mrf.mxu1  ;;  %vm14764_vm1 = vmmov %vm14739_vm7 }
 0x1bf   : > { %vm14754_vm2 = vnez %v14753_v28  ;;  %8936 = vmatprep.mubr.msk.f32.mxu1 %vm14739_vm7, %v1740_v20  ;;  %9040 = vmatprep.mubr.msk.f32.mxu0 %vm14755_vm12, %v3865_v53  ;;  %v397_v35 = vadd.s32 496, %v9292_v7  ;;  %v14756_v62 = vrot.slane %v12200_v38, 7  ;;  %v14757_v59 = vrot.slane %v12137_v29, 7  ;;  %v14760_v28 = vld [vmem:[#allocation71_spill] sm:$0xff]  ;;  %14762 = vst [vmem:[#allocation69_spill] sm:$0xff] %v12300_v31  ;;  %v12303_v53 = vpop.permute.xlu1 %6360  ;;  %v14772_v31 = vld [vmem:[#allocation73_spill] sm:$0xff]  ;;  %p9136_p0 = pneg %p9135_p13 }
 0x1c0   : > { %vm6108_vm11 = vmand %vm14754_vm2, %vm6044_vm15  ;;  %vm6045_vm4 = vcmp.gt.s32.totalorder %v9292_v7, %v14759_v1  ;;  %vm1421_vm13 = vcmp.ge.s32.totalorder %v1357_v61, 0  ;;  %vm3610_vm14 = vcmp.lt.s32.totalorder %v3482_v41, 8  ;;  %vm14761_vm8 = vcmp.lt.s32.totalorder %v9292_v7, %v14760_v28 }
 0x1c1   : > { %v7011_v23 = vsel %vm6108_vm11, 1, %v13949_v9  ;;  %v1233_v19 = vsel %vm14758_vm10, %v14757_v59, %v14756_v62  ;;  %vm6109_vm5 = vmand %vm14761_vm8, %vm6045_vm4  ;;  %v398_v11 = vadd.s32 504, %v9292_v7  ;;  %v1741_v14 = vsel %vm1421_vm13, %v1234_v58, 0.0  ;;  %v12305_v62 = vpop.permute.xlu0 %6363  ;;  %v12313_v59 = vpop.f32.mrf.mxu0  ;;  %p9143_p4 = pnand %p9142_p3, %p9136_p0 }
 0x1c2   : > { %7126 = vperm.xlu1 %9098, %v7011_v23   ;;  %v3866_v42 = vsel %vm3610_vm14, %v3358_v0, 0.0  ;;  %v837_v29 = vand.u32 7, %v397_v35  ;;  %v7012_v20 = vsel %vm6109_vm5, 1, %v13949_v9  ;;  %14763 = vst [vmem:[#allocation72_spill] sm:$0xff] %v12305_v62  ;;  %8937 = vmatmul.mubr.msk.f32.gmra.mxu1 %vm14764_vm1, %v1741_v14  ;;  %vm14765_vm15 = vmmov %vm14764_vm1  ;;  %v14766_v41 = vrot.slane %v12200_v38, 1  ;;  %v14768_v0 = vld [vmem:[#allocation57_spill] sm:$0xff] }
 0x1c3   : > { %9041 = vmatmul.mubr.msk.f32.gmra.mxu0 %vm14765_vm15, %v3866_v42  ;;  %v844_v61 = vand.u32 7, %v398_v11  ;;  %vm14767_vm2 = vcmp.lt.s32.totalorder %v9292_v7, 7  ;;  %7129 = vperm.xlu0 %9097, %v7012_v20   ;;  %v14769_v35 = vrot.slane %v14768_v0, 7  ;;  %v14770_v1 = vrot.slane %v12200_v38, 7  ;;  %vm14771_vm11 = vmmov %vm14758_vm10  ;;  %v14773_v42 = vld [vmem:[#allocation5_spill] sm:$0xff]  ;;  %v14776_v20 = vld [vmem:[#allocation74_spill] sm:$0xff]  ;;  %v12332_v38 = vpop.f32.mrf.mxu1 }
 0x1c4   : > { %v3357_v23 = vsel %vm14767_vm2, %v14766_v41, %v3355_v49  ;;  %v1358_v58 = vadd.s32 4294967295, %v837_v29  ;;  %v3483_v14 = vadd.s32 1, %v837_v29  ;;  %vm6046_vm7 = vcmp.gt.s32.totalorder %v9292_v7, %v14772_v31  ;;  %vm14775_vm12 = vmmov %vm14767_vm2  ;;  %14778 = vst [vmem:[#allocation70_spill] sm:$0xff] %v12332_v38  ;;  %v14789_v0 = vld [vmem:[#allocation75_spill] sm:$0xff]  ;;  %v14875_v38 = vld [vmem:[#allocation108_spill] sm:$0xff] }
 0x1c5   : > { %v1232_v28 = vsel %vm14771_vm11, %v14770_v1, %v14769_v35  ;;  %v1359_v11 = vadd.s32 4294967295, %v844_v61  ;;  %v14774_v33 = vrot.slane %v14773_v42, 1  ;;  %v3484_v62 = vadd.s32 1, %v844_v61  ;;  %v14797_v42 = vld [vmem:[#allocation82_spill] sm:$0xff] }
 0x1c6   : > { %vm14777_vm10 = vcmp.lt.s32.totalorder %v9292_v7, %v14776_v20  ;;  %vm6047_vm13 = vcmp.gt.s32.totalorder %v9292_v7, %v10338_v32  ;;  %vm1422_vm14 = vcmp.ge.s32.totalorder %v1358_v58, 0  ;;  %vm3611_vm8 = vcmp.lt.s32.totalorder %v3483_v14, 8  ;;  %v12341_v32 = vpop.f32.mrf.mxu0  ;;  %v12357_v58 = vpop.f32.mrf.mxu1  ;;  %v14800_v20 = vld [vmem:[#allocation84_spill] sm:$0xff] }
 0x1c7   : > { %v3420_v41 = vsel %vm14775_vm12, %v3355_v49, %v14774_v33  ;;  %vm6110_vm4 = vmand %vm14777_vm10, %vm6046_vm7  ;;  %vm14779_vm5 = vnez %v14036_v17  ;;  %vm6048_vm15 = vcmp.gt.s32.totalorder %v9292_v7, %v10362_v13  ;;  %v1742_v49 = vsel %vm1422_vm14, %v1233_v19, 0.0  ;;  %v12347_v19 = vpop.permute.xlu1 %6366  ;;  %14788 = vst [vmem:[#allocation57_spill] sm:$0xff] %v12357_v58 }
 0x1c8   : > { %v7013_v31 = vsel %vm6110_vm4, 1, %v13949_v9  ;;  %vm6111_vm1 = vmand %vm14779_vm5, %vm6047_vm13  ;;  %vm1423_vm2 = vcmp.ge.s32.totalorder %v1359_v11, 0  ;;  %v3867_v33 = vsel %vm3611_vm8, %v3357_v23, 0.0  ;;  %vm3612_vm11 = vcmp.lt.s32.totalorder %v3484_v62, 8  ;;  %v12349_v23 = vpop.permute.xlu0 %6369  ;;  %v14787_v62 = vld [vmem:[#allocation77_spill] sm:$0xff]  ;;  %v12370_v1 = vpop.f32.mrf.mxu0  ;;  %v14795_v11 = vld [vmem:[#allocation78_spill] sm:$0xff] }
 0x1c9   : > { %7132 = vperm.xlu1 %9098, %v7013_v31   ;;  %vm14780_vm7 = vnez %v14044_v50  ;;  %vm14781_vm10 = vcmask 261120   ;;  %v1743_v29 = vsel %vm1423_vm2, %v1232_v28, 0.0  ;;  %v3868_v17 = vsel %vm3612_vm11, %v3420_v41, 0.0  ;;  %14783 = vst [vmem:[#allocation71_spill] sm:$0xff] %v12349_v23  ;;  %v14786_v50 = vld [vmem:[#allocation76_spill] sm:$0xff] }
 0x1ca   : > { %vm6112_vm12 = vmand %vm14780_vm7, %vm6048_vm15  ;;  %8939 = vmatprep.mubr.msk.f32.mxu1 %vm14781_vm10, %v1742_v49  ;;  %v7014_v61 = vsel %vm6111_vm1, 1, %v13949_v9  ;;  %vm6049_vm8 = vcmp.gt.s32.totalorder %v9292_v7, %v14786_v50  ;;  %vm6050_vm5 = vcmp.gt.s32.totalorder %v9292_v7, %v14787_v62  ;;  %vm14790_vm1 = vcmp.lt.s32.totalorder %v9292_v7, %v14789_v0  ;;  %v12390_v45 = vpop.f32.mrf.mxu0  ;;  %v14798_v41 = vld [vmem:[#allocation80_spill] sm:$0xff]  ;;  %v14810_v62 = vld [vmem:[#allocation83_spill] sm:$0xff] }
 0x1cb   : > { %vm14782_vm4 = vmmov %vm14781_vm10  ;;  %v7015_v13 = vsel %vm6112_vm12, 1, %v13949_v9  ;;  %7135 = vperm.xlu0 %9097, %v7014_v61   ;;  %vm6051_vm2 = vcmp.gt.s32.totalorder %v9292_v7, %v10472_v52  ;;  %vm6052_vm11 = vcmp.gt.s32.totalorder %v9292_v7, %v10498_v39  ;;  %vm14791_vm7 = vcmp.lt.s32.totalorder %v9292_v7, %v10435_v22  ;;  %v12379_v52 = vpop.f32.mrf.mxu1  ;;  %v14793_v39 = vld [vmem:[#allocation79_spill] sm:$0xff]  ;;  %v12383_v22 = vpop.permute.xlu1 %6372  ;;  %v14841_v0 = vld [vmem:[#allocation121_spill] sm:$0xff] }
 0x1cc   : > { %9043 = vmatprep.mubr.msk.f32.mxu0 %vm14782_vm4, %v3867_v33  ;;  %vm14784_vm13 = vmmov %vm14782_vm4  ;;  %vm14792_vm10 = vnez %v14071_v25  ;;  %v12385_v14 = vpop.permute.xlu0 %6375  ;;  %v14805_v33 = vld [vmem:[#allocation86_spill] sm:$0xff]  ;;  %v14936_v23 = vld [vmem:[#allocation148_spill] sm:$0xff] }
 0x1cd   : > { %8940 = vmatmul.mubr.msk.f32.gmra.mxu1 %vm14784_vm13, %v1743_v29  ;;  %vm14785_vm14 = vmmov %vm14782_vm4  ;;  %7138 = vperm.xlu1 %9098, %v7015_v13   ;;  %14794 = vst [vmem:[#allocation73_spill] sm:$0xff] %v12385_v14  ;;  %v2973_v31 = vpop.f32.mrf.mxu1  ;;  %v8952_v13 = vpop.f32.mrf.mxu0 }
 0x1ce   : > { %9044 = vmatmul.mubr.msk.f32.gmra.mxu0 %vm14785_vm14, %v3868_v17  ;;  %vm6113_vm15 = vmand %vm14790_vm1, %vm6049_vm8  ;;  %vm6053_vm14 = vcmp.gt.s32.totalorder %v9292_v7, %v10505_v40  ;;  %vm6054_vm8 = vcmp.gt.s32.totalorder %v9292_v7, %v14793_v39  ;;  %v14806_v17 = vld [vmem:[#allocation85_spill] sm:$0xff]  ;;  %v14816_v39 = vld [vmem:[#allocation87_spill] sm:$0xff] }
 0x1cf   : > { %v7016_v35 = vsel %vm6113_vm15, 1, %v13949_v9  ;;  %vm6114_vm12 = vmand %vm14791_vm7, %vm6050_vm5  ;;  %vm6055_vm5 = vcmp.gt.s32.totalorder %v9292_v7, %v10599_v30  ;;  %vm6056_vm15 = vcmp.gt.s32.totalorder %v9292_v7, %v14797_v42  ;;  %vm6057_vm7 = vcmp.gt.s32.totalorder %v9292_v7, %v14800_v20  ;;  %v14801_v30 = vld [vmem:[#allocation81_spill] sm:$0xff] }
 0x1d0   : > { %v7017_v28 = vsel %vm6114_vm12, 1, %v13949_v9  ;;  %vm6115_vm4 = vmand %vm14792_vm10, %vm6051_vm2  ;;  %7141 = vperm.xlu0 %9097, %v7016_v35   ;;  %vm14799_vm2 = vcmp.lt.s32.totalorder %v9292_v7, %v14798_v41  ;;  %vm14802_vm12 = vnez %v14801_v30  ;;  %v12430_v35 = vpop.permute.xlu1 %6378  ;;  %v14830_v30 = vld [vmem:[#allocation88_spill] sm:$0xff] }
 0x1d1   : > { %vm6116_vm13 = vmand %vm10533_vm6, %vm6052_vm11  ;;  %7144 = vperm.xlu1 %9098, %v7017_v28   ;;  %v7018_v25 = vsel %vm6115_vm4, 1, %v13949_v9  ;;  %vm14796_vm6 = vcmp.lt.s32.totalorder %v9292_v7, %v14795_v11  ;;  %vm6058_vm4 = vcmp.gt.s32.totalorder %v9292_v7, %v14805_v33  ;;  %14814 = vst [vmem:[#allocation5_spill] sm:$0xff] %v12430_v35  ;;  %v12432_v28 = vpop.permute.xlu0 %6381 }
 0x1d2   : > { %v7019_v40 = vsel %vm6116_vm13, 1, %v13949_v9  ;;  %vm6117_vm1 = vmand %vm14796_vm6, %vm6053_vm14  ;;  %vm14807_vm13 = vnez %v14806_v17  ;;  %14815 = vst [vmem:[#allocation74_spill] sm:$0xff] %v12432_v28  ;;  %v14836_v17 = vld [vmem:[#allocation99_spill] sm:$0xff] }
 0x1d3   : > { %vm6118_vm11 = vmand %vm14799_vm2, %vm6054_vm8  ;;  %v7020_v29 = vsel %vm6117_vm1, 1, %v13949_v9  ;;  %vm6059_vm8 = vcmp.gt.s32.totalorder %v9292_v7, %v10728_v47  ;;  %vm6060_vm1 = vcmp.gt.s32.totalorder %v9292_v7, %v10745_v43  ;;  %v14845_v47 = vld [vmem:[#allocation103_spill] sm:$0xff]  ;;  %v14846_v43 = vld [vmem:[#allocation122_spill] sm:$0xff] }
 0x1d4   : > { %7147 = vperm.xlu0 %9097, %v7018_v25   ;;  %vm12405_vm10 = vmand %vm14802_vm12, %vm6055_vm5  ;;  %v7021_v50 = vsel %vm6118_vm11, 1, %v13949_v9  ;;  %vm14811_vm5 = vcmp.lt.s32.totalorder %v9292_v7, %v14810_v62  ;;  %vm6068_vm11 = vcmp.gt.s32.totalorder %v9292_v7, %v11006_v24  ;;  %v8851_v25 = vpop.f32.mrf.mxu1  ;;  %v12512_v33 = vpop.permute.xlu1 %6384  ;;  %v14847_v24 = vld [vmem:[#allocation126_spill] sm:$0xff] }
 0x1d5   : > { %7150 = vperm.xlu1 %9098, %v7019_v40   ;;  %vm12414_vm14 = vmand %vm14807_vm13, %vm6056_vm15  ;;  %vm14817_vm15 = vcmp.lt.s32.totalorder %v9292_v7, %v14816_v39  ;;  %vm6076_vm13 = vcmp.gt.s32.totalorder %v9292_v7, %v11287_v5  ;;  %v7022_v40 = vsel %vm12405_vm10, 1, %v13949_v9  ;;  %14834 = vst [vmem:[#allocation76_spill] sm:$0xff] %v12512_v33  ;;  %v14863_v39 = vld [vmem:[#allocation101_spill] sm:$0xff] }
 0x1d6   : > { %vm12424_vm6 = vmand %vm14811_vm5, %vm6057_vm7  ;;  %vm14820_vm7 = vnez %v14152_v18  ;;  %v4132_v18 = vpop.f32.mrf.mxu0  ;;  %v7023_v5 = vsel %vm12414_vm14, 1, %v13949_v9  ;;  %v2983_v41 = vpop.f32.mrf.mxu1 }
 0x1d7   : > { %vm12437_vm2 = vmand %vm14817_vm15, %vm6058_vm4  ;;  %vm14823_vm4 = vnez %v14171_v56  ;;  %vm6404_vm15 = vcmp.eq.s32.totalorder %v11022_v15, 1  ;;  %v7024_v11 = vsel %vm12424_vm6, 1, %v13949_v9  ;;  %v14848_v56 = vld [vmem:[#allocation110_spill] sm:$0xff] }
 0x1d8   : > { %7153 = vperm.xlu0 %9097, %v7020_v29   ;;  %vm12445_vm12 = vmand %vm14820_vm7, %vm6059_vm8  ;;  %vm6061_vm8 = vcmp.gt.s32.totalorder %v9292_v7, %v10767_v60  ;;  %vm6405_vm7 = vcmp.eq.s32.totalorder %v11122_v44, 1  ;;  %v7025_v42 = vsel %vm12437_vm2, 1, %v13949_v9  ;;  %vm6067_vm2 = vcmp.gt.s32.totalorder %v9292_v7, %v10990_v46  ;;  %v12514_v29 = vpop.permute.xlu0 %6387  ;;  %v8955_v62 = vpop.f32.mrf.mxu0  ;;  %v14876_v44 = vld [vmem:[#allocation143_spill] sm:$0xff]  ;;  %v14893_v46 = vld [vmem:[#allocation106_spill] sm:$0xff] }
 0x1d9   : > { %7156 = vperm.xlu1 %9098, %v7021_v50   ;;  %vm12456_vm5 = vmand %vm14823_vm4, %vm6060_vm1  ;;  %vm6069_vm1 = vcmp.gt.s32.totalorder %v9292_v7, %v11042_v37  ;;  %v7026_v20 = vsel %vm12445_vm12, 1, %v13949_v9  ;;  %vm6070_vm12 = vcmp.gt.s32.totalorder %v9292_v7, %v11075_v6  ;;  %14835 = vst [vmem:[#allocation77_spill] sm:$0xff] %v12514_v29  ;;  %v14840_v50 = vld [vmem:[#allocation90_spill] sm:$0xff]  ;;  %vm6071_vm4 = vcmp.gt.s32.totalorder %v9292_v7, %v14845_v47  ;;  %v8854_v58 = vpop.f32.mrf.mxu1 }
 0x1da   : > { %vm12469_vm10 = vmand %vm11037_vm9, %vm6068_vm11  ;;  %vm6077_vm9 = vcmp.gt.s32.totalorder %v9292_v7, %v11315_v54  ;;  %vm6062_vm11 = vcmp.gt.s32.totalorder %v9292_v7, %v10806_v2  ;;  %v7027_v26 = vsel %vm12456_vm5, 1, %v13949_v9  ;;  %vm14837_vm5 = vcmp.lt.s32.totalorder %v9292_v7, %v14836_v17  ;;  %v14851_v17 = vld [vmem:[#allocation129_spill] sm:$0xff]  ;;  %v14857_v2 = vld [vmem:[#allocation98_spill] sm:$0xff] }
 0x1db   : > { %vm12484_vm14 = vmand %vm11335_vm0, %vm6076_vm13  ;;  %vm14831_vm0 = vcmp.lt.s32.totalorder %v9292_v7, %v14830_v30  ;;  %v12520_v60 = vsel %vm12469_vm10, 1, %v13949_v9  ;;  %vm6078_vm13 = vcmp.gt.s32.totalorder %v9292_v7, %v11362_v3  ;;  %vm6063_vm10 = vcmp.gt.s32.totalorder %v9292_v7, %v14840_v50  ;;  %v14850_v30 = vld [vmem:[#allocation92_spill] sm:$0xff]  ;;  %v14910_v50 = vld [vmem:[#allocation141_spill] sm:$0xff] }
 0x1dc   : > { %7159 = vperm.xlu0 %9097, %v7022_v40   ;;  %vm12504_vm6 = vmand %vm14831_vm0, %vm6061_vm8  ;;  %vm6075_vm0 = vcmp.gt.s32.totalorder %v9292_v7, %v11268_v21  ;;  %v12541_v37 = vsel %vm12484_vm14, 1, %v13949_v9  ;;  %v2979_v40 = vadd.f32 %v12379_v52, %v14846_v43  ;;  %v14856_v43 = vld [vmem:[#allocation105_spill] sm:$0xff]  ;;  %v14877_v21 = vld [vmem:[#allocation127_spill] sm:$0xff] }
 0x1dd   : > { %7162 = vperm.xlu1 %9098, %v7023_v5   ;;  %vm12528_vm8 = vmand %vm14837_vm5, %vm6069_vm1  ;;  %vm14842_vm1 = vcmp.lt.s32.totalorder %v9292_v7, %v14841_v0  ;;  %v2974_v5 = vadd.f32 %v2973_v31, %v14847_v24  ;;  %v12562_v54 = vsel %vm12504_vm6, 1, %v13949_v9  ;;  %v2989_v0 = vadd.f32 %v8851_v25, %v14851_v17  ;;  %v14852_v31 = vld [vmem:[#allocation89_spill] sm:$0xff]  ;;  %v14887_v24 = vld [vmem:[#allocation104_spill] sm:$0xff] }
 0x1de   : > { %vm12549_vm5 = vmand %vm14842_vm1, %vm6077_vm9  ;;  %vm6079_vm9 = vcmp.gt.s32.totalorder %v9292_v7, %v14849_v57  ;;  %v12572_v52 = vsel %vm12528_vm8, 1, %v13949_v9  ;;  %vm14853_vm6 = vcmp.lt.s32.totalorder %v9292_v7, %v14852_v31  ;;  %v12586_v25 = vadd.f32 %v8952_v13, %v2979_v40  ;;  %v14861_v17 = vld [vmem:[#allocation137_spill] sm:$0xff]  ;;  %v4142_v40 = vpop.f32.mrf.mxu0  ;;  %v12621_v31 = vpop.permute.xlu0 %6393 }
 0x1df   : > { %vm12580_vm14 = vmand %vm14853_vm6, %vm6062_vm11  ;;  %v12593_v61 = vsel %vm12549_vm5, 1, %v13949_v9  ;;  %vm14858_vm11 = vnez %v14857_v2  ;;  %vm6080_vm6 = vcmp.gt.s32.totalorder %v9292_v7, %v14861_v17  ;;  %v12606_v13 = vadd.f32 %v8955_v62, %v2989_v0  ;;  %14868 = vst [vmem:[#allocation79_spill] sm:$0xff] %v12621_v31  ;;  %v14869_v2 = vld [vmem:[#allocation93_spill] sm:$0xff]  ;;  %v14870_v62 = vld [vmem:[#allocation140_spill] sm:$0xff] }
 0x1e0   : > { %7165 = vperm.xlu0 %9097, %v7024_v11   ;;  %v12588_v11 = vadd.f32 %v4132_v18, %v2974_v5  ;;  %vm12600_vm8 = vmand %vm14858_vm11, %vm6067_vm2  ;;  %v14862_v18 = vld [vmem:[#allocation134_spill] sm:$0xff]  ;;  %vm14864_vm5 = vcmp.lt.s32.totalorder %v9292_v7, %v14863_v39  ;;  %v12619_v5 = vpop.permute.xlu1 %6390  ;;  %vm6065_vm2 = vcmp.gt.s32.totalorder %v9292_v7, %v14869_v2  ;;  %v2999_v0 = vadd.f32 %v8854_v58, %v14870_v62  ;;  %v14919_v2 = vld [vmem:[#allocation107_spill] sm:$0xff] }
 0x1e1   : > { %7168 = vperm.xlu1 %9098, %v7025_v42   ;;  %v2984_v42 = vadd.f32 %v2983_v41, %v14862_v18  ;;  %vm12615_vm1 = vmand %vm14864_vm5, %vm6070_vm12  ;;  %14867 = vst [vmem:[#allocation75_spill] sm:$0xff] %v12619_v5  ;;  %v6469_v41 = vsel %vm6405_vm7, %v12586_v25, -1e+30  ;;  %v14871_v18 = vld [vmem:[#allocation116_spill] sm:$0xff]  ;;  %vm6073_vm5 = vcmp.gt.s32.totalorder %v9292_v7, %v14875_v38  ;;  %v12648_v58 = vsel %vm12580_vm14, 1, %v13949_v9  ;;  %v14915_v17 = vld [vmem:[#allocation94_spill] sm:$0xff] }
 0x1e2   : > { %v6468_v6 = vsel %vm6404_vm15, %v12588_v11, -1e+30  ;;  %vm14872_vm12 = vnez %v14871_v18  ;;  %v6538_v31 = vrot.slane %v6469_v41, 4  ;;  %vm14878_vm15 = vcmp.lt.s32.totalorder %v9292_v7, %v14877_v21  ;;  %v14881_v18 = vld [vmem:[#allocation97_spill] sm:$0xff]  ;;  %v14883_v21 = vld [vmem:[#allocation91_spill] sm:$0xff] }
 0x1e3   : > { %vm12637_vm11 = vmand %vm14872_vm12, %vm6075_vm0  ;;  %v6532_v15 = vrot.slane %v6468_v6, 4  ;;  %vm6066_vm12 = vcmp.gt.s32.totalorder %v9292_v7, %v14881_v18  ;;  %vm14882_vm7 = vcmp.eq.s32.totalorder %v11153_v63, 1  ;;  %v12665_v49 = vadd.f32 %v4142_v40, %v2984_v42  ;;  %v8958_v42 = vpop.f32.mrf.mxu0  ;;  %v14891_v40 = vld [vmem:[#allocation113_spill] sm:$0xff] }
 0x1e4   : > { %7171 = vperm.xlu0 %9097, %v7026_v20   ;;  %vm12656_vm0 = vmand %vm14878_vm15, %vm6078_vm13  ;;  %v6471_v20 = vsel %vm14882_vm7, %v12606_v13, -1e+30  ;;  %v12670_v3 = vsel %vm12600_vm8, 1, %v13949_v9  ;;  %vm14884_vm13 = vnez %v14883_v21  ;;  %v6539_v5 = vmax.f32 %v6469_v41, %v6538_v31 }
 0x1e5   : > { %7174 = vperm.xlu1 %9098, %v7027_v26   ;;  %vm12677_vm14 = vmand %vm14884_vm13, %vm6063_vm10  ;;  %v6533_v63 = vmax.f32 %v6468_v6, %v6532_v15  ;;  %v6550_v28 = vrot.slane %v6471_v20, 4  ;;  %v12684_v26 = vsel %vm12615_vm1, 1, %v13949_v9  ;;  %vm14888_vm8 = vnez %v14887_v24  ;;  %v2993_v24 = vpop.f32.mrf.mxu1  ;;  %v14899_v6 = vld [vmem:[#allocation95_spill] sm:$0xff] }
 0x1e6   : > { %vm12691_vm7 = vmand %vm14888_vm8, %vm6071_vm4  ;;  %vm6074_vm10 = vcmp.gt.s32.totalorder %v9292_v7, %v14891_v40  ;;  %vm14892_vm15 = vcmp.eq.s32.totalorder %v11063_v51, 1  ;;  %v12700_v41 = vadd.f32 %v8958_v42, %v2999_v0  ;;  %vm6408_vm1 = vcmp.eq.s32.totalorder %v14893_v46, 1  ;;  %v12717_v51 = vpop.permute.xlu0 %6399 }
 0x1e7   : > { %v6470_v31 = vsel %vm14892_vm15, %v12665_v49, -1e+30  ;;  %v12706_v47 = vsel %vm12637_vm11, 1, %v13949_v9  ;;  %vm12713_vm4 = vmand %vm11447_vm3, %vm6079_vm9  ;;  %14897 = vst [vmem:[#allocation78_spill] sm:$0xff] %v12717_v51  ;;  %v6540_v0 = vrot.slane %v6539_v5, 2  ;;  %v6534_v21 = vrot.slane %v6533_v63, 2 }
 0x1e8   : > { %v6551_v42 = vmax.f32 %v6471_v20, %v6550_v28  ;;  %7198 = vperm.xlu0 %9097, %v12520_v60   ;;  %v12723_v39 = vsel %vm12656_vm0, 1, %v13949_v9  ;;  %v12728_v57 = vsel %vm12677_vm14, 1, %v13949_v9  ;;  %vm14898_vm3 = vcmp.gt.s32.totalorder %v9292_v7, %v14850_v30  ;;  %v12739_v60 = vpop.permute.xlu1 %6396  ;;  %v14906_v30 = vld [vmem:[#allocation109_spill] sm:$0xff] }
 0x1e9   : > { %vm14900_vm9 = vnez %v14899_v6  ;;  %14903 = vst [vmem:[#allocation82_spill] sm:$0xff] %v12739_v60  ;;  %v6544_v20 = vrot.slane %v6470_v31, 4  ;;  %vm14904_vm0 = vcmp.eq.s32.totalorder %v14848_v56, 1  ;;  %7222 = vperm.xlu1 %9098, %v12541_v37   ;;  %v12748_v29 = vsel %vm12691_vm7, 1, %v13949_v9 }
 0x1ea   : > { %vm12735_vm11 = vmand %vm14900_vm9, %vm14898_vm3  ;;  %v6473_v62 = vsel %vm14904_vm0, %v12700_v41, -1e+30  ;;  %vm14905_vm13 = vcmp.gt.s32.totalorder %v9292_v7, %v14856_v43  ;;  %vm14907_vm14 = vnez %v14906_v30  ;;  %v6541_v51 = vmax.f32 %v6539_v5, %v6540_v0  ;;  %v14914_v5 = vld [vmem:[#allocation144_spill] sm:$0xff] }
 0x1eb   : > { %vm12755_vm8 = vmand %vm14907_vm14, %vm14905_vm13  ;;  %v6535_v60 = vmax.f32 %v6533_v63, %v6534_v21  ;;  %vm7883_vm15 = vcmask 1041409   ;;  %v6552_v56 = vrot.slane %v6551_v42, 2  ;;  %v12762_v37 = vsel %vm12713_vm4, 1, %v13949_v9 }
 0x1ec   : > { %vm14911_vm7 = vnez %v14910_v50  ;;  %v6545_v30 = vmax.f32 %v6470_v31, %v6544_v20  ;;  %v6562_v33 = vrot.slane %v6473_v62, 4  ;;  %v2994_v63 = vadd.f32 %v2993_v24, %v14914_v5  ;;  %v4152_v50 = vpop.f32.mrf.mxu0  ;;  %7177 = vperm.xlu0 %9097, %v12562_v54   ;;  %v7052_v54 = vpop.permute.xlu0 %7051 }
 0x1ed   : > { %vm12769_vm3 = vmand %vm14911_vm7, %vm6080_vm6  ;;  %v12777_v0 = vsel %vm12735_vm11, 1, %v13949_v9  ;;  %vm14916_vm4 = vcmp.lt.s32.totalorder %v9292_v7, %v14915_v17  ;;  %v6542_v21 = vrot.slane %v6541_v51, 1  ;;  %v6536_v31 = vrot.slane %v6535_v60, 1  ;;  %7201 = vperm.xlu1 %9098, %v12572_v52   ;;  %v14924_v17 = vld [vmem:[#allocation142_spill] sm:$0xff]  ;;  %v12833_v43 = vpop.permute.xlu1 %6402 }
 0x1ee   : > { %vm12785_vm9 = vmand %vm14916_vm4, %vm6065_vm2  ;;  %v6553_v20 = vmax.f32 %v6551_v42, %v6552_v56  ;;  %v12793_v24 = vsel %vm12755_vm8, 1, %v13949_v9  ;;  %vm14920_vm6 = vcmp.lt.s32.totalorder %v9292_v7, %v14919_v2  ;;  %v12808_v42 = vld [vmem:[%s13659_s4] ss:$0 sm:$0xff]  ;;  %v6546_v56 = vrot.slane %v6545_v30, 2  ;;  %14928 = vst [vmem:[#allocation80_spill] sm:$0xff] %v12833_v43 }
 0x1ef   : > { %vm12801_vm2 = vmand %vm14920_vm6, %vm6073_vm5  ;;  %v6563_v6 = vmax.f32 %v6473_v62, %v6562_v33  ;;  %v12810_v5 = vadd.f32 %v4152_v50, %v2994_v63  ;;  %v12816_v38 = vsel %vm12769_vm3, 1, %v13949_v9  ;;  %vm14923_vm5 = vcmp.gt.s32.totalorder %v9292_v7, %v14876_v44  ;;  %v14929_v44 = vld [vmem:[#allocation96_spill] sm:$0xff] }
 0x1f0   : > { %vm14925_vm11 = vcmp.lt.s32.totalorder %v9292_v7, %v14924_v17  ;;  %v6543_v33 = vmax.f32 %v6541_v51, %v6542_v21  ;;  %vm7242_vm13 = vcmp.eq.s32.totalorder %v7052_v54, 1  ;;  %v6537_v62 = vmax.f32 %v6535_v60, %v6536_v31  ;;  %v14933_v54 = vld [vmem:[#allocation112_spill] sm:$0xff]  ;;  %7225 = vperm.xlu0 %9097, %v12593_v61   ;;  %v8857_v17 = vpop.f32.mrf.mxu1  ;;  %v7058_v2 = vpop.permute.xlu0 %7057 }
 0x1f1   : > { %vm12824_vm0 = vmand %vm14925_vm11, %vm14923_vm5  ;;  %vm7886_vm14 = vcmask 1042434   ;;  %v12831_v52 = vsel %vm12785_vm9, 1, %v13949_v9  ;;  %vm14930_vm8 = vcmp.lt.s32.totalorder %v9292_v7, %v14929_v44  ;;  %v7306_v51 = vsel %vm7242_vm13, %v12588_v11, -1e+30  ;;  %7180 = vperm.xlu1 %9098, %v12648_v58   ;;  %v7055_v58 = vpop.permute.xlu1 %7054 }
 0x1f2   : > { %vm12841_vm7 = vmand %vm14930_vm8, %vm6066_vm12  ;;  %v6554_v60 = vrot.slane %v6553_v20, 1  ;;  %v6547_v21 = vmax.f32 %v6545_v30, %v6546_v56  ;;  %vm7889_vm3 = vcmask 1043459   ;;  %v12849_v15 = vsel %vm12801_vm2, 1, %v13949_v9 }
 0x1f3   : > { %v6923_v31 = vadd.f32 %v12808_v42, %v6543_v33  ;;  %v6922_v18 = vadd.f32 %v12808_v42, %v6537_v62  ;;  %v7370_v50 = vrot.slane %v7306_v51, 4  ;;  %vm14934_vm12 = vcmp.lt.s32.totalorder %v9292_v7, %v14933_v54  ;;  %v14935_v33 = vld [vmem:[#allocation118_spill] sm:$0xff] }
 0x1f4   : > { %vm6138_vm4 = vmand %vm14934_vm12, %vm6074_vm10  ;;  %v6555_v11 = vmax.f32 %v6553_v20, %v6554_v60  ;;  %v6548_v30 = vrot.slane %v6547_v21, 1  ;;  %v6564_v56 = vrot.slane %v6563_v6, 2  ;;  %v6472_v28 = vsel %vm6408_vm1, %v12810_v5, -1e+30  ;;  %7195 = vperm.xlu0 %9097, %v12670_v3   ;;  %v3003_v3 = vpop.f32.mrf.mxu1 }
 0x1f5   : > { %vm6411_vm9 = vcmp.eq.s32.totalorder %v14935_v33, 1  ;;  %v12868_v40 = vsel %vm12824_vm0, 1, %v13949_v9  ;;  %v7882_v62 = vrot.slane %v6923_v31, 7  ;;  %v7371_v44 = vmax.f32 %v7306_v51, %v7370_v50  ;;  %7204 = vperm.xlu1 %9098, %v12684_v26  }
 0x1f6   : > { %v6556_v61 = vrot.slane %v6472_v28, 4  ;;  %v12873_v20 = vsel %vm12841_vm7, 1, %v13949_v9  ;;  %v12876_v46 = vsel %vm6138_vm4, 1, %v13949_v9  ;;  %v6549_v60 = vmax.f32 %v6547_v21, %v6548_v30 }
 0x1f7   : > { %v6565_v54 = vmax.f32 %v6563_v6, %v6564_v56  ;;  %v7372_v43 = vrot.slane %v7371_v44, 2  ;;  %v6925_v14 = vadd.f32 %v12808_v42, %v6555_v11  ;;  %v3009_v31 = vadd.f32 %v8857_v17, %v14936_v23  ;;  %v8961_v17 = vpop.f32.mrf.mxu0 }
 0x1f8   : > { %v6557_v35 = vmax.f32 %v6472_v28, %v6556_v61  ;;  %v7884_v51 = vsel %vm7883_vm15, %v7882_v62, %v6922_v18  ;;  %vm7243_vm10 = vcmp.eq.s32.totalorder %v7055_v58, 1  ;;  %vm7244_vm1 = vcmp.eq.s32.totalorder %v7058_v2, 1  ;;  %7219 = vperm.xlu0 %9097, %v12706_v47   ;;  %v7061_v2 = vpop.permute.xlu1 %7060  ;;  %v14938_v47 = vld [vmem:[#allocation10_spill] sm:$0xff] }
 0x1f9   : > { %v6924_v63 = vadd.f32 %v12808_v42, %v6549_v60  ;;  %v7373_v21 = vmax.f32 %v7371_v44, %v7372_v43  ;;  %v7307_v6 = vsel %vm7243_vm10, %v12586_v25, -1e+30  ;;  %v7308_v50 = vsel %vm7244_vm1, %v12665_v49, -1e+30  ;;  %v14937_v43 = vld [vmem:[#allocation147_spill] sm:$0xff]  ;;  %7228 = vperm.xlu1 %9098, %v12723_v39  }
 0x1fa   : > { %v6566_v11 = vrot.slane %v6565_v54, 1  ;;  %v7376_v30 = vrot.slane %v7307_v6, 4  ;;  %v7382_v56 = vrot.slane %v7308_v50, 4  ;;  %v6558_v23 = vrot.slane %v6557_v35, 2 }
 0x1fb   : > { %v7885_v28 = vrot.slane %v6924_v63, 6  ;;  %v7374_v61 = vrot.slane %v7373_v21, 1  ;;  %v7888_v18 = vrot.slane %v6925_v14, 5  ;;  %v12886_v58 = vadd.f32 %v8961_v17, %v3009_v31 }
 0x1fc   : > { %v6567_v62 = vmax.f32 %v6565_v54, %v6566_v11  ;;  %v7377_v26 = vmax.f32 %v7307_v6, %v7376_v30  ;;  %vm6082_vm6 = vcmp.gt.s32.totalorder %v9292_v7, %v14937_v43  ;;  %v7383_v25 = vmax.f32 %v7308_v50, %v7382_v56  ;;  %v7064_v54 = vpop.permute.xlu0 %7063  ;;  %7183 = vperm.xlu0 %9097, %v12728_v57  }
 0x1fd   : > { %v7887_v49 = vsel %vm7886_vm14, %v7885_v28, %v7884_v51  ;;  %v6559_v44 = vmax.f32 %v6557_v35, %v6558_v23  ;;  %vm7892_vm2 = vcmask 1044484   ;;  %v7375_v60 = vmax.f32 %v7373_v21, %v7374_v61  ;;  %v14939_v51 = vld [vmem:[#allocation115_spill] sm:$0xff]  ;;  %7207 = vperm.xlu1 %9098, %v12748_v29  }
 0x1fe   : > { %v12894_v14 = vadd.f32 %v12808_v42, %v6567_v62  ;;  %v7890_v31 = vsel %vm7889_vm3, %v7888_v18, %v7887_v49  ;;  %v3004_v63 = vadd.f32 %v3003_v3, %v14938_v47  ;;  %v7378_v6 = vrot.slane %v7377_v26, 2  ;;  %v4162_v18 = vpop.f32.mrf.mxu0 }
 0x1ff   : > { %v7384_v11 = vrot.slane %v7383_v25, 2  ;;  %vm7245_vm5 = vcmp.eq.s32.totalorder %v7061_v2, 1  ;;  %v6475_v35 = vsel %vm6411_vm9, %v12886_v58, -1e+30  ;;  %vm6410_vm11 = vcmp.eq.s32.totalorder %v14939_v51, 1 }
 0x200   : > { %v7754_v39 = vadd.f32 %v12808_v42, %v7375_v60  ;;  %v7309_v21 = vsel %vm7245_vm5, %v12606_v13, -1e+30  ;;  %vm7246_vm0 = vcmp.eq.s32.totalorder %v7064_v54, 1  ;;  %v6560_v50 = vrot.slane %v6559_v44, 1  ;;  %v7067_v60 = vpop.permute.xlu1 %7066  ;;  %7231 = vperm.xlu0 %9097, %v12762_v37   ;;  %v14940_v37 = vld [vmem:[#allocation149_spill] sm:$0xff] }
 0x201   : > { %v7379_v30 = vmax.f32 %v7377_v26, %v7378_v6  ;;  %v7385_v56 = vmax.f32 %v7383_v25, %v7384_v11  ;;  %v7388_v28 = vrot.slane %v7309_v21, 4  ;;  %v7310_v23 = vsel %vm7246_vm0, %v12810_v5, -1e+30  ;;  %v7070_v5 = vpop.permute.xlu0 %7069  ;;  %7186 = vperm.xlu1 %9098, %v12777_v0  }
 0x202   : > { %vm7895_vm13 = vcmask 1045509   ;;  %v7894_v33 = vrot.slane %v12894_v14, 3  ;;  %v6561_v17 = vmax.f32 %v6559_v44, %v6560_v50  ;;  %v7394_v3 = vrot.slane %v7310_v23, 4 }
 0x203   : > { %v6574_v61 = vrot.slane %v6475_v35, 4  ;;  %v7380_v62 = vrot.slane %v7379_v30, 1  ;;  %v7386_v13 = vrot.slane %v7385_v56, 1  ;;  %v7389_v49 = vmax.f32 %v7309_v21, %v7388_v28 }
 0x204   : > { %v4457_v2 = vadd.f32 %v4162_v18, %v3004_v63  ;;  %v6926_v57 = vadd.f32 %v12808_v42, %v6561_v17  ;;  %v7395_v26 = vmax.f32 %v7310_v23, %v7394_v3  ;;  %vm7247_vm8 = vcmp.eq.s32.totalorder %v7067_v60, 1  ;;  %7210 = vperm.xlu0 %9097, %v12793_v24  }
 0x205   : > { %v6575_v25 = vmax.f32 %v6475_v35, %v6574_v61  ;;  %v7381_v29 = vmax.f32 %v7379_v30, %v7380_v62  ;;  %v7387_v54 = vmax.f32 %v7385_v56, %v7386_v13  ;;  %v7390_v14 = vrot.slane %v7389_v49, 2  ;;  %v8860_v61 = vpop.f32.mrf.mxu1  ;;  %7234 = vperm.xlu1 %9098, %v12816_v38  }
 0x206   : > { %v7311_v44 = vsel %vm7247_vm8, %v12700_v41, -1e+30  ;;  %v7396_v47 = vrot.slane %v7395_v26, 2  ;;  %v7891_v6 = vrot.slane %v6926_v57, 4  ;;  %vm7248_vm7 = vcmp.eq.s32.totalorder %v7070_v5, 1 }
 0x207   : > { %v7400_v11 = vrot.slane %v7311_v44, 4  ;;  %v6576_v21 = vrot.slane %v6575_v25, 2  ;;  %v7755_v63 = vadd.f32 %v12808_v42, %v7381_v29  ;;  %v7756_v50 = vadd.f32 %v12808_v42, %v7387_v54  ;;  %v7073_v29 = vpop.permute.xlu1 %7072  ;;  %v14945_v54 = vld [vmem:[#allocation100_spill] sm:$0xff] }
 0x208   : > { %v7391_v28 = vmax.f32 %v7389_v49, %v7390_v14  ;;  %vm14941_vm12 = vcmp.lt.s32.totalorder %v9292_v7, %v14940_v37  ;;  %v7397_v0 = vmax.f32 %v7395_v26, %v7396_v47  ;;  %v7893_v35 = vsel %vm7892_vm2, %v7891_v6, %v7890_v31  ;;  %v14944_v49 = vld [vmem:[#allocation102_spill] sm:$0xff]  ;;  %7189 = vperm.xlu0 %9097, %v12831_v52   ;;  %v3013_v47 = vpop.f32.mrf.mxu1 }
 0x209   : > { %vm12920_vm4 = vmand %vm14941_vm12, %vm6082_vm6  ;;  %v7401_v30 = vmax.f32 %v7311_v44, %v7400_v11  ;;  %v6577_v56 = vmax.f32 %v6575_v25, %v6576_v21  ;;  %v8073_v23 = vrot.slane %v7755_v63, 7  ;;  %v8075_v17 = vrot.slane %v7756_v50, 6  ;;  %7213 = vperm.xlu1 %9098, %v12849_v15   ;;  %v14946_v6 = vld [vmem:[#allocation26_spill] sm:$0xff]  ;;  %v8964_v50 = vpop.f32.mrf.mxu0 }
 0x20a   : > { %v7392_v3 = vrot.slane %v7391_v28, 1  ;;  %v6474_v43 = vsel %vm6410_vm11, %v4457_v2, -1e+30  ;;  %v7398_v7 = vrot.slane %v7397_v0, 1  ;;  %vm6413_vm9 = vcmp.eq.s32.totalorder %v14944_v49, 1 }
 0x20b   : > { %v7402_v18 = vrot.slane %v7401_v30, 2  ;;  %v6578_v62 = vrot.slane %v6577_v56, 1  ;;  %v6568_v13 = vrot.slane %v6474_v43, 4  ;;  %v8074_v31 = vsel %vm7883_vm15, %v8073_v23, %v7754_v39 }
 0x20c   : > { %v7049_v24 = vsel %vm12920_vm4, 1, %v13949_v9  ;;  %v7393_v60 = vmax.f32 %v7391_v28, %v7392_v3  ;;  %v7312_v57 = vsel %vm7248_vm7, %v4457_v2, -1e+30  ;;  %v7399_v51 = vmax.f32 %v7397_v0, %v7398_v7  ;;  %v7076_v0 = vpop.permute.xlu0 %7075  ;;  %7237 = vperm.xlu0 %9097, %v12868_v40   ;;  %v8863_v3 = vpop.f32.mrf.mxu1  ;;  %v14948_v7 = vld [vmem:[#allocation16_spill] sm:$0xff] }
 0x20d   : > { %v7403_v26 = vmax.f32 %v7401_v30, %v7402_v18  ;;  %v6579_v25 = vmax.f32 %v6577_v56, %v6578_v62  ;;  %v12936_v38 = vsel %vm7895_vm13, %v7894_v33, %v7893_v35  ;;  %vm6412_vm10 = vcmp.eq.s32.totalorder %v14945_v54, 1  ;;  %v14947_v35 = vld [vmem:[#allocation114_spill] sm:$0xff]  ;;  %7192 = vperm.xlu1 %9098, %v12873_v20  }
 0x20e   : > { %v8076_v39 = vsel %vm7886_vm14, %v8075_v17, %v8074_v31  ;;  %v7757_v14 = vadd.f32 %v12808_v42, %v7393_v60  ;;  %v6569_v44 = vmax.f32 %v6474_v43, %v6568_v13  ;;  %v7406_v9 = vrot.slane %v7312_v57, 4  ;;  %v4172_v31 = vpop.f32.mrf.mxu0  ;;  %v7079_v60 = vpop.permute.xlu1 %7078 }
 0x20f   : > { %v7758_v2 = vadd.f32 %v12808_v42, %v7399_v51  ;;  %v7404_v5 = vrot.slane %v7403_v26, 1  ;;  %v12945_v33 = vadd.f32 %v12808_v42, %v6579_v25  ;;  %v3019_v11 = vadd.f32 %v8860_v61, %v14946_v6 }
 0x210   : > { %v8077_v21 = vrot.slane %v7757_v14, 5  ;;  %v6570_v63 = vrot.slane %v6569_v44, 2  ;;  %v7407_v52 = vmax.f32 %v7312_v57, %v7406_v9  ;;  %vm7249_vm1 = vcmp.eq.s32.totalorder %v7073_v29, 1  ;;  %7216 = vperm.xlu0 %9097, %v12876_v46  }
 0x211   : > { %v8079_v28 = vrot.slane %v7758_v2, 4  ;;  %v7405_v37 = vmax.f32 %v7403_v26, %v7404_v5  ;;  %v7900_v41 = vrot.slane %v12945_v33, 1  ;;  %vm7898_vm6 = vcmask 1046534   ;;  %v14949_v26 = vld [vmem:[#allocation32_spill] sm:$0xff]  ;;  %7240 = vperm.xlu1 %9098, %v7049_v24  }
 0x212   : > { %v7313_v15 = vsel %vm7249_vm1, %v12886_v58, -1e+30  ;;  %vm6415_vm5 = vcmp.eq.s32.totalorder %v14947_v35, 1  ;;  %v8078_v30 = vsel %vm7889_vm3, %v8077_v21, %v8076_v39  ;;  %v6571_v56 = vmax.f32 %v6569_v44, %v6570_v63 }
 0x213   : > { %v7408_v23 = vrot.slane %v7407_v52, 2  ;;  %vm7901_vm11 = vcmask 1047559   ;;  %v7412_v17 = vrot.slane %v7313_v15, 4  ;;  %v8080_v43 = vsel %vm7892_vm2, %v8079_v28, %v8078_v30 }
 0x214   : > { %v7759_v61 = vadd.f32 %v12808_v42, %v7405_v37  ;;  %v4460_v58 = vadd.f32 %v8964_v50, %v3019_v11  ;;  %v3014_v18 = vadd.f32 %v3013_v47, %v14948_v7  ;;  %v6572_v62 = vrot.slane %v6571_v56, 1  ;;  %v8967_v11 = vpop.f32.mrf.mxu0  ;;  %v14950_v50 = vld [vmem:[#allocation111_spill] sm:$0xff] }
 0x215   : > { %v7409_v13 = vmax.f32 %v7407_v52, %v7408_v23  ;;  %v7413_v40 = vmax.f32 %v7313_v15, %v7412_v17  ;;  %vm7250_vm0 = vcmp.eq.s32.totalorder %v7076_v0, 1  ;;  %v3029_v25 = vadd.f32 %v8863_v3, %v14949_v26  ;;  %v3023_v17 = vpop.f32.mrf.mxu1 }
 0x216   : > { %v8081_v57 = vrot.slane %v7759_v61, 3  ;;  %v6477_v51 = vsel %vm6413_vm9, %v4460_v58, -1e+30  ;;  %v4459_v20 = vadd.f32 %v4172_v31, %v3014_v18  ;;  %v6573_v29 = vmax.f32 %v6571_v56, %v6572_v62 }
 0x217   : > { %v7410_v39 = vrot.slane %v7409_v13, 1  ;;  %v7414_v14 = vrot.slane %v7413_v40, 2  ;;  %v6586_v44 = vrot.slane %v6477_v51, 4  ;;  %vm7251_vm8 = vcmp.eq.s32.totalorder %v7079_v60, 1 }
 0x218   : > { %v8082_v9 = vsel %vm7895_vm13, %v8081_v57, %v8080_v43  ;;  %v6476_v47 = vsel %vm6412_vm10, %v4459_v20, -1e+30  ;;  %v7314_v2 = vsel %vm7250_vm0, %v4459_v20, -1e+30  ;;  %v6928_v49 = vadd.f32 %v12808_v42, %v6573_v29  ;;  %v14951_v57 = vld [vmem:[#allocation124_spill] sm:$0xff] }
 0x219   : > { %v7411_v5 = vmax.f32 %v7409_v13, %v7410_v39  ;;  %v7415_v6 = vmax.f32 %v7413_v40, %v7414_v14  ;;  %v6587_v46 = vmax.f32 %v6477_v51, %v6586_v44  ;;  %v6580_v21 = vrot.slane %v6476_v47, 4  ;;  %v7082_v40 = vpop.permute.xlu0 %7081  ;;  %v4182_v44 = vpop.f32.mrf.mxu0 }
 0x21a   : > { %v7418_v63 = vrot.slane %v7314_v2, 4  ;;  %v7315_v52 = vsel %vm7251_vm8, %v4460_v58, -1e+30  ;;  %v12969_v24 = vadd.f32 %v8967_v11, %v3029_v25  ;;  %vm6414_vm7 = vcmp.eq.s32.totalorder %v14950_v50, 1  ;;  %v8866_v25 = vpop.f32.mrf.mxu1  ;;  %v14953_v11 = vld [vmem:[#allocation41_spill] sm:$0xff] }
 0x21b   : > { %v7760_v54 = vadd.f32 %v12808_v42, %v7411_v5  ;;  %v7897_v28 = vrot.slane %v6928_v49, 2  ;;  %v7416_v37 = vrot.slane %v7415_v6, 1  ;;  %v6588_v15 = vrot.slane %v6587_v46, 2 }
 0x21c   : > { %v6581_v0 = vmax.f32 %v6476_v47, %v6580_v21  ;;  %v7419_v30 = vmax.f32 %v7314_v2, %v7418_v63  ;;  %v7424_v56 = vrot.slane %v7315_v52, 4  ;;  %v6479_v23 = vsel %vm6415_vm5, %v12969_v24, -1e+30 }
 0x21d   : > { %v7899_v3 = vsel %vm7898_vm6, %v7897_v28, %v12936_v38  ;;  %v8083_v43 = vrot.slane %v7760_v54, 2  ;;  %v7417_v61 = vmax.f32 %v7415_v6, %v7416_v37  ;;  %v6589_v58 = vmax.f32 %v6587_v46, %v6588_v15  ;;  %v7085_v37 = vpop.permute.xlu1 %7084  ;;  %v14954_v15 = vld [vmem:[#allocation119_spill] sm:$0xff] }
 0x21e   : > { %v7902_v7 = vsel %vm7901_vm11, %v7900_v41, %v7899_v3  ;;  %v6582_v18 = vrot.slane %v6581_v0, 2  ;;  %v7420_v62 = vrot.slane %v7419_v30, 2  ;;  %v7425_v13 = vmax.f32 %v7315_v52, %v7424_v56  ;;  %v14952_v41 = vld [vmem:[#allocation19_spill] sm:$0xff] }
 0x21f   : > { %v8084_v31 = vsel %vm7898_vm6, %v8083_v43, %v8082_v9  ;;  %8193 = vst [vmem:[%s12982_s14] sm:$0xff] %v7902_v7  ;;  %v7761_v35 = vadd.f32 %v12808_v42, %v7417_v61  ;;  %v6590_v38 = vrot.slane %v6589_v58, 1  ;;  %v6598_v60 = vrot.slane %v6479_v23, 4  ;;  %v3033_v7 = vpop.f32.mrf.mxu1 }
 0x220   : > { %vm6417_vm12 = vcmp.eq.s32.totalorder %v14951_v57, 1  ;;  %v6583_v51 = vmax.f32 %v6581_v0, %v6582_v18  ;;  %v7421_v33 = vmax.f32 %v7419_v30, %v7420_v62  ;;  %v7426_v20 = vrot.slane %v7425_v13, 2 }
 0x221   : > { %v3024_v26 = vadd.f32 %v3023_v17, %v14952_v41  ;;  %v8085_v29 = vrot.slane %v7761_v35, 1  ;;  %v6591_v39 = vmax.f32 %v6589_v58, %v6590_v38  ;;  %v6599_v14 = vmax.f32 %v6479_v23, %v6598_v60  ;;  %v8970_v58 = vpop.f32.mrf.mxu0  ;;  %v7088_v38 = vpop.permute.xlu0 %7087  ;;  %v14955_v60 = vld [vmem:[#allocation130_spill] sm:$0xff] }
 0x222   : > { %vm7252_vm4 = vcmp.eq.s32.totalorder %v7082_v40, 1  ;;  %v6584_v9 = vrot.slane %v6583_v51, 1  ;;  %v7422_v47 = vrot.slane %v7421_v33, 1  ;;  %v7427_v2 = vmax.f32 %v7425_v13, %v7426_v20 }
 0x223   : > { %v4461_v49 = vadd.f32 %v4182_v44, %v3024_v26  ;;  %v8086_v5 = vsel %vm7901_vm11, %v8085_v29, %v8084_v31  ;;  %v6931_v6 = vadd.f32 %v12808_v42, %v6591_v39  ;;  %v6600_v46 = vrot.slane %v6599_v14, 2  ;;  %v14956_v39 = vld [vmem:[#allocation42_spill] sm:$0xff]  ;;  %v8869_v44 = vpop.f32.mrf.mxu1 }
 0x224   : > { %v3039_v21 = vadd.f32 %v8866_v25, %v14953_v11  ;;  %8194 = vst [vmem:[%s12982_s14 + $0x8] sm:$0xff] %v8086_v5  ;;  %v6585_v63 = vmax.f32 %v6583_v51, %v6584_v9  ;;  %v7423_v52 = vmax.f32 %v7421_v33, %v7422_v47  ;;  %v7428_v54 = vrot.slane %v7427_v2, 1 }
 0x225   : > { %v6478_v28 = vsel %vm6414_vm7, %v4461_v49, -1e+30  ;;  %vm6416_vm9 = vcmp.eq.s32.totalorder %v14954_v15, 1  ;;  %v7903_v0 = vrot.slane %v6931_v6, 7  ;;  %v6601_v30 = vmax.f32 %v6599_v14, %v6600_v46 }
 0x226   : > { %v6592_v56 = vrot.slane %v6478_v28, 4  ;;  %v7316_v23 = vsel %vm7252_vm4, %v4461_v49, -1e+30  ;;  %v6930_v17 = vadd.f32 %v12808_v42, %v6585_v63  ;;  %v7762_v3 = vadd.f32 %v12808_v42, %v7423_v52  ;;  %v7091_v52 = vpop.permute.xlu1 %7090 }
 0x227   : > { %v7429_v43 = vmax.f32 %v7427_v2, %v7428_v54  ;;  %v7430_v61 = vrot.slane %v7316_v23, 4  ;;  %v6602_v18 = vrot.slane %v6601_v30, 1  ;;  %vm7253_vm10 = vcmp.eq.s32.totalorder %v7085_v37, 1 }
 0x228   : > { %v6593_v62 = vmax.f32 %v6478_v28, %v6592_v56  ;;  %v4464_v50 = vadd.f32 %v8970_v58, %v3039_v21  ;;  %v7904_v13 = vsel %vm7883_vm15, %v7903_v0, %v6930_v17  ;;  %v7317_v40 = vsel %vm7253_vm10, %v12969_v24, -1e+30  ;;  %v4192_v24 = vpop.f32.mrf.mxu0 }
 0x229   : > { %v7763_v31 = vadd.f32 %v12808_v42, %v7429_v43  ;;  %v7431_v35 = vmax.f32 %v7316_v23, %v7430_v61  ;;  %vm6419_vm1 = vcmp.eq.s32.totalorder %v14955_v60, 1  ;;  %v6603_v51 = vmax.f32 %v6601_v30, %v6602_v18 }
 0x22a   : > { %v6594_v33 = vrot.slane %v6593_v62, 2  ;;  %v7436_v20 = vrot.slane %v7317_v40, 4  ;;  %v6481_v41 = vsel %vm6417_vm12, %v4464_v50, -1e+30  ;;  %v3034_v14 = vadd.f32 %v3033_v7, %v14956_v39 }
 0x22b   : > { %v8087_v26 = vrot.slane %v7763_v31, 7  ;;  %v7432_v25 = vrot.slane %v7431_v35, 2  ;;  %v6610_v29 = vrot.slane %v6481_v41, 4  ;;  %v6933_v9 = vadd.f32 %v12808_v42, %v6603_v51 }
 0x22c   : > { %v6595_v47 = vmax.f32 %v6593_v62, %v6594_v33  ;;  %v7437_v2 = vmax.f32 %v7317_v40, %v7436_v20  ;;  %vm7254_vm5 = vcmp.eq.s32.totalorder %v7088_v38, 1  ;;  %v4463_v46 = vadd.f32 %v4192_v24, %v3034_v14  ;;  %v14957_v38 = vld [vmem:[#allocation125_spill] sm:$0xff] }
 0x22d   : > { %v8088_v49 = vsel %vm7883_vm15, %v8087_v26, %v7762_v3  ;;  %v7433_v5 = vmax.f32 %v7431_v35, %v7432_v25  ;;  %v6611_v6 = vmax.f32 %v6481_v41, %v6610_v29  ;;  %v7907_v11 = vrot.slane %v6933_v9, 5  ;;  %v8973_v3 = vpop.f32.mrf.mxu0  ;;  %v3043_v26 = vpop.f32.mrf.mxu1 }
 0x22e   : > { %v6596_v57 = vrot.slane %v6595_v47, 1  ;;  %v7438_v21 = vrot.slane %v7437_v2, 2  ;;  %v3049_v63 = vadd.f32 %v8869_v44, %v11830_v55  ;;  %v6480_v37 = vsel %vm6416_vm9, %v4463_v46, -1e+30 }
 0x22f   : > { %v7434_v54 = vrot.slane %v7433_v5, 1  ;;  %v6612_v28 = vrot.slane %v6611_v6, 2  ;;  %v7318_v0 = vsel %vm7254_vm5, %v4463_v46, -1e+30  ;;  %v6604_v23 = vrot.slane %v6480_v37, 4 }
 0x230   : > { %v6597_v30 = vmax.f32 %v6595_v47, %v6596_v57  ;;  %v7439_v56 = vmax.f32 %v7437_v2, %v7438_v21  ;;  %v7442_v17 = vrot.slane %v7318_v0, 4  ;;  %vm7255_vm0 = vcmp.eq.s32.totalorder %v7091_v52, 1  ;;  %v7094_v2 = vpop.permute.xlu0 %7093  ;;  %v8872_v52 = vpop.f32.mrf.mxu1 }
 0x231   : > { %v7435_v43 = vmax.f32 %v7433_v5, %v7434_v54  ;;  %v6613_v61 = vmax.f32 %v6611_v6, %v6612_v28  ;;  %v4466_v58 = vadd.f32 %v8973_v3, %v3049_v63  ;;  %v6605_v55 = vmax.f32 %v6480_v37, %v6604_v23  ;;  %v7097_v54 = vpop.permute.xlu1 %7096  ;;  %v14958_v28 = vld [vmem:[#allocation138_spill] sm:$0xff] }
 0x232   : > { %v6932_v7 = vadd.f32 %v12808_v42, %v6597_v30  ;;  %v7440_v18 = vrot.slane %v7439_v56, 1  ;;  %v7443_v62 = vmax.f32 %v7318_v0, %v7442_v17  ;;  %v7319_v15 = vsel %vm7255_vm0, %v4464_v50, -1e+30  ;;  %v14959_v0 = vld [vmem:[#allocation20_spill] sm:$0xff] }
 0x233   : > { %v7764_v31 = vadd.f32 %v12808_v42, %v7435_v43  ;;  %v6614_v35 = vrot.slane %v6613_v61, 1  ;;  %v6483_v40 = vsel %vm6419_vm1, %v4466_v58, -1e+30  ;;  %vm6418_vm8 = vcmp.eq.s32.totalorder %v14957_v38, 1 }
 0x234   : > { %v7905_v51 = vrot.slane %v6932_v7, 6  ;;  %v7441_v33 = vmax.f32 %v7439_v56, %v7440_v18  ;;  %v6606_v20 = vrot.slane %v6605_v55, 2  ;;  %v7444_v41 = vrot.slane %v7443_v62, 2 }
 0x235   : > { %v8089_v25 = vrot.slane %v7764_v31, 6  ;;  %v6615_v29 = vmax.f32 %v6613_v61, %v6614_v35  ;;  %v7448_v39 = vrot.slane %v7319_v15, 4  ;;  %v6622_v14 = vrot.slane %v6483_v40, 4  ;;  %v14960_v61 = vld [vmem:[#allocation31_spill] sm:$0xff] }
 0x236   : > { %v7906_v44 = vsel %vm7886_vm14, %v7905_v51, %v7904_v13  ;;  %v7765_v9 = vadd.f32 %v12808_v42, %v7441_v33  ;;  %v6607_v47 = vmax.f32 %v6605_v55, %v6606_v20  ;;  %v7445_v50 = vmax.f32 %v7443_v62, %v7444_v41  ;;  %v14961_v35 = vld [vmem:[#allocation131_spill] sm:$0xff] }
 0x237   : > { %v8090_v60 = vsel %vm7886_vm14, %v8089_v25, %v8088_v49  ;;  %v6935_v24 = vadd.f32 %v12808_v42, %v6615_v29  ;;  %v7908_v5 = vsel %vm7889_vm3, %v7907_v11, %v7906_v44  ;;  %v7449_v6 = vmax.f32 %v7319_v15, %v7448_v39  ;;  %v4202_v11 = vpop.f32.mrf.mxu0 }
 0x238   : > { %v8091_v46 = vrot.slane %v7765_v9, 5  ;;  %v6608_v57 = vrot.slane %v6607_v47, 1  ;;  %v7446_v21 = vrot.slane %v7445_v50, 1  ;;  %v6623_v63 = vmax.f32 %v6483_v40, %v6622_v14 }
 0x239   : > { %vm6421_vm7 = vcmp.eq.s32.totalorder %v14958_v28, 1  ;;  %v7911_v13 = vrot.slane %v6935_v24, 3  ;;  %v7450_v37 = vrot.slane %v7449_v6, 2  ;;  %v3044_v30 = vadd.f32 %v3043_v26, %v14959_v0  ;;  %v8976_v29 = vpop.f32.mrf.mxu0  ;;  %v14962_v24 = vld [vmem:[#allocation7_spill] sm:$0xff]  ;;  %v7103_v28 = vpop.permute.xlu1 %7102 }
 0x23a   : > { %vm7256_vm12 = vcmp.eq.s32.totalorder %v7094_v2, 1  ;;  %v8092_v49 = vsel %vm7889_vm3, %v8091_v46, %v8090_v60  ;;  %v6609_v56 = vmax.f32 %v6607_v47, %v6608_v57  ;;  %v7447_v23 = vmax.f32 %v7445_v50, %v7446_v21  ;;  %v3053_v47 = vpop.f32.mrf.mxu1  ;;  %v7100_v21 = vpop.permute.xlu0 %7099 }
 0x23b   : > { %v6624_v17 = vrot.slane %v6623_v63, 2  ;;  %v7451_v3 = vmax.f32 %v7449_v6, %v7450_v37  ;;  %v4465_v43 = vadd.f32 %v4202_v11, %v3044_v30  ;;  %v3059_v7 = vadd.f32 %v8872_v52, %v14960_v61 }
 0x23c   : > { %vm7257_vm4 = vcmp.eq.s32.totalorder %v7097_v54, 1  ;;  %v6934_v18 = vadd.f32 %v12808_v42, %v6609_v56  ;;  %v7766_v55 = vadd.f32 %v12808_v42, %v7447_v23  ;;  %vm6420_vm9 = vcmp.eq.s32.totalorder %v14961_v35, 1  ;;  %v14963_v54 = vld [vmem:[#allocation39_spill] sm:$0xff]  ;;  %v4212_v23 = vpop.f32.mrf.mxu0 }
 0x23d   : > { %v6625_v62 = vmax.f32 %v6623_v63, %v6624_v17  ;;  %v7321_v31 = vsel %vm7257_vm4, %v4466_v58, -1e+30  ;;  %v7452_v15 = vrot.slane %v7451_v3, 1  ;;  %v6482_v40 = vsel %vm6418_vm8, %v4465_v43, -1e+30  ;;  %v8875_v17 = vpop.f32.mrf.mxu1  ;;  %v14964_v35 = vld [vmem:[#allocation139_spill] sm:$0xff] }
 0x23e   : > { %v7320_v51 = vsel %vm7256_vm12, %v4465_v43, -1e+30  ;;  %v7460_v33 = vrot.slane %v7321_v31, 4  ;;  %v7909_v20 = vrot.slane %v6934_v18, 4  ;;  %v8093_v41 = vrot.slane %v7766_v55, 4 }
 0x23f   : > { %v6626_v26 = vrot.slane %v6625_v62, 1  ;;  %v6616_v25 = vrot.slane %v6482_v40, 4  ;;  %v7453_v39 = vmax.f32 %v7451_v3, %v7452_v15  ;;  %v7454_v14 = vrot.slane %v7320_v51, 4 }
 0x240   : > { %v7461_v44 = vmax.f32 %v7321_v31, %v7460_v33  ;;  %v4468_v9 = vadd.f32 %v8976_v29, %v3059_v7  ;;  %v7910_v58 = vsel %vm7892_vm2, %v7909_v20, %v7908_v5  ;;  %v8094_v50 = vsel %vm7892_vm2, %v8093_v41, %v8092_v49  ;;  %v8979_v41 = vpop.f32.mrf.mxu0 }
 0x241   : > { %v6627_v60 = vmax.f32 %v6625_v62, %v6626_v26  ;;  %v6617_v38 = vmax.f32 %v6482_v40, %v6616_v25  ;;  %vm6423_vm10 = vcmp.eq.s32.totalorder %v14962_v24, 1  ;;  %v7767_v2 = vadd.f32 %v12808_v42, %v7453_v39 }
 0x242   : > { %v7455_v6 = vmax.f32 %v7320_v51, %v7454_v14  ;;  %v7912_v46 = vsel %vm7895_vm13, %v7911_v13, %v7910_v58  ;;  %v7462_v57 = vrot.slane %v7461_v44, 2  ;;  %v6485_v5 = vsel %vm6421_vm7, %v4468_v9, -1e+30 }
 0x243   : > { %v13036_v63 = vadd.f32 %v12808_v42, %v6627_v60  ;;  %v6618_v52 = vrot.slane %v6617_v38, 2  ;;  %v3054_v37 = vadd.f32 %v3053_v47, %v14963_v54  ;;  %v8095_v0 = vrot.slane %v7767_v2, 3 }
 0x244   : > { %v7456_v30 = vrot.slane %v7455_v6, 2  ;;  %v7463_v49 = vmax.f32 %v7461_v44, %v7462_v57  ;;  %v6634_v56 = vrot.slane %v6485_v5, 4  ;;  %vm7258_vm1 = vcmp.eq.s32.totalorder %v7100_v21, 1 }
 0x245   : > { %v7915_v11 = vrot.slane %v13036_v63, 1  ;;  %v6619_v13 = vmax.f32 %v6617_v38, %v6618_v52  ;;  %v4467_v3 = vadd.f32 %v4212_v23, %v3054_v37  ;;  %v8096_v43 = vsel %vm7895_vm13, %v8095_v0, %v8094_v50  ;;  %v3063_v38 = vpop.f32.mrf.mxu1 }
 0x246   : > { %v7457_v61 = vmax.f32 %v7455_v6, %v7456_v30  ;;  %v7464_v7 = vrot.slane %v7463_v49, 1  ;;  %v6635_v18 = vmax.f32 %v6485_v5, %v6634_v56  ;;  %v3069_v15 = vadd.f32 %v8875_v17, %v11983_v12  ;;  %v14966_v56 = vld [vmem:[#allocation12_spill] sm:$0xff] }
 0x247   : > { %v6620_v55 = vrot.slane %v6619_v13, 1  ;;  %v6484_v62 = vsel %vm6420_vm9, %v4467_v3, -1e+30  ;;  %v7322_v31 = vsel %vm7258_vm1, %v4467_v3, -1e+30  ;;  %vm7259_vm5 = vcmp.eq.s32.totalorder %v7103_v28, 1  ;;  %v7106_v3 = vpop.permute.xlu0 %7105 }
 0x248   : > { %v7458_v40 = vrot.slane %v7457_v61, 1  ;;  %v7465_v51 = vmax.f32 %v7463_v49, %v7464_v7  ;;  %v6636_v33 = vrot.slane %v6635_v18, 2  ;;  %v6628_v20 = vrot.slane %v6484_v62, 4  ;;  %v14965_v49 = vld [vmem:[#allocation48_spill] sm:$0xff] }
 0x249   : > { %v6621_v26 = vmax.f32 %v6619_v13, %v6620_v55  ;;  %v7466_v25 = vrot.slane %v7322_v31, 4  ;;  %v13046_v29 = vadd.f32 %v8979_v41, %v3069_v15  ;;  %vm6422_vm0 = vcmp.eq.s32.totalorder %v14964_v35, 1 }
 0x24a   : > { %v7459_v39 = vmax.f32 %v7457_v61, %v7458_v40  ;;  %v7769_v14 = vadd.f32 %v12808_v42, %v7465_v51  ;;  %v6637_v44 = vmax.f32 %v6635_v18, %v6636_v33  ;;  %v6629_v47 = vmax.f32 %v6484_v62, %v6628_v20  ;;  %v8878_v61 = vpop.f32.mrf.mxu1  ;;  %v7109_v51 = vpop.permute.xlu1 %7108 }
 0x24b   : > { %v6936_v58 = vadd.f32 %v12808_v42, %v6621_v26  ;;  %v7467_v12 = vmax.f32 %v7322_v31, %v7466_v25  ;;  %v7323_v50 = vsel %vm7259_vm5, %v4468_v9, -1e+30  ;;  %v6487_v60 = vsel %vm6423_vm10, %v13046_v29, -1e+30  ;;  %v14967_v26 = vld [vmem:[#allocation145_spill] sm:$0xff] }
 0x24c   : > { %v7768_v2 = vadd.f32 %v12808_v42, %v7459_v39  ;;  %v8099_v6 = vrot.slane %v7769_v14, 1  ;;  %v6638_v57 = vrot.slane %v6637_v44, 1  ;;  %v6630_v21 = vrot.slane %v6629_v47, 2  ;;  %v3073_v14 = vpop.f32.mrf.mxu1 }
 0x24d   : > { %v7913_v63 = vrot.slane %v6936_v58, 2  ;;  %v7468_v52 = vrot.slane %v7467_v12, 2  ;;  %v7472_v5 = vrot.slane %v7323_v50, 4  ;;  %v6646_v54 = vrot.slane %v6487_v60, 4 }
 0x24e   : > { %v8097_v37 = vrot.slane %v7768_v2, 2  ;;  %v6639_v0 = vmax.f32 %v6637_v44, %v6638_v57  ;;  %v6631_v30 = vmax.f32 %v6629_v47, %v6630_v21  ;;  %v3064_v9 = vadd.f32 %v3063_v38, %v14965_v49 }
 0x24f   : > { %vm6425_vm8 = vcmp.eq.s32.totalorder %v14966_v56, 1  ;;  %v7914_v24 = vsel %vm7898_vm6, %v7913_v63, %v7912_v46  ;;  %v7469_v23 = vmax.f32 %v7467_v12, %v7468_v52  ;;  %v7473_v17 = vmax.f32 %v7323_v50, %v7472_v5  ;;  %v4222_v46 = vpop.f32.mrf.mxu0 }
 0x250   : > { %v6647_v13 = vmax.f32 %v6487_v60, %v6646_v54  ;;  %v7916_v7 = vsel %vm7901_vm11, %v7915_v11, %v7914_v24  ;;  %v8098_v18 = vsel %vm7898_vm6, %v8097_v37, %v8096_v43  ;;  %v6939_v28 = vadd.f32 %v12808_v42, %v6639_v0  ;;  %v8881_v37 = vpop.f32.mrf.mxu1 }
 0x251   : > { %v6632_v55 = vrot.slane %v6631_v30, 1  ;;  %8195 = vst [vmem:[%s12982_s14 + $0x10] sm:$0xff] %v7916_v7  ;;  %v8100_v62 = vsel %vm7901_vm11, %v8099_v6, %v8098_v18  ;;  %v7470_v31 = vrot.slane %v7469_v23, 1  ;;  %v7474_v15 = vrot.slane %v7473_v17, 2  ;;  %v8982_v2 = vpop.f32.mrf.mxu0  ;;  %v7112_v6 = vpop.permute.xlu0 %7111  ;;  %v14969_v18 = vld [vmem:[#allocation56_spill] sm:$0xff] }
 0x252   : > { %v6648_v40 = vrot.slane %v6647_v13, 2  ;;  %8196 = vst [vmem:[%s12982_s14 + $0x18] sm:$0xff] %v8100_v62  ;;  %v7917_v33 = vrot.slane %v6939_v28, 7  ;;  %vm7260_vm7 = vcmp.eq.s32.totalorder %v7106_v3, 1  ;;  %v4469_v41 = vadd.f32 %v4222_v46, %v3064_v9 }
 0x253   : > { %v6633_v20 = vmax.f32 %v6631_v30, %v6632_v55  ;;  %vm6424_vm12 = vcmp.eq.s32.totalorder %v14967_v26, 1  ;;  %v7471_v11 = vmax.f32 %v7469_v23, %v7470_v31  ;;  %v7475_v43 = vmax.f32 %v7473_v17, %v7474_v15  ;;  %v4232_v17 = vpop.f32.mrf.mxu0  ;;  %v7115_v31 = vpop.permute.xlu1 %7114 }
 0x254   : > { %v6649_v25 = vmax.f32 %v6647_v13, %v6648_v40  ;;  %v3079_v39 = vadd.f32 %v8878_v61, %v12049_v4  ;;  %v6486_v47 = vsel %vm6422_vm0, %v4469_v41, -1e+30  ;;  %v7324_v58 = vsel %vm7260_vm7, %v4469_v41, -1e+30  ;;  %v14968_v13 = vld [vmem:[#allocation11_spill] sm:$0xff] }
 0x255   : > { %v6938_v44 = vadd.f32 %v12808_v42, %v6633_v20  ;;  %vm7261_vm4 = vcmp.eq.s32.totalorder %v7109_v51, 1  ;;  %v7770_v12 = vadd.f32 %v12808_v42, %v7471_v11  ;;  %v7476_v50 = vrot.slane %v7475_v43, 1 }
 0x256   : > { %v6650_v60 = vrot.slane %v6649_v25, 1  ;;  %v6640_v38 = vrot.slane %v6486_v47, 4  ;;  %v7478_v21 = vrot.slane %v7324_v58, 4  ;;  %v7325_v4 = vsel %vm7261_vm4, %v13046_v29, -1e+30 }
 0x257   : > { %v13071_v57 = vsel %vm7883_vm15, %v7917_v33, %v6938_v44  ;;  %v4472_v63 = vadd.f32 %v8982_v2, %v3079_v39  ;;  %v7477_v52 = vmax.f32 %v7475_v43, %v7476_v50  ;;  %v7484_v54 = vrot.slane %v7325_v4, 4  ;;  %v8985_v2 = vpop.f32.mrf.mxu0 }
 0x258   : > { %v6651_v5 = vmax.f32 %v6649_v25, %v6650_v60  ;;  %v6641_v35 = vmax.f32 %v6486_v47, %v6640_v38  ;;  %v7479_v0 = vmax.f32 %v7324_v58, %v7478_v21  ;;  %v3074_v49 = vadd.f32 %v3073_v14, %v12084_v8  ;;  %v3083_v58 = vpop.f32.mrf.mxu1 }
 0x259   : > { %v6489_v30 = vsel %vm6425_vm8, %v4472_v63, -1e+30  ;;  %vm7262_vm9 = vcmp.eq.s32.totalorder %v7112_v6, 1  ;;  %v7771_v9 = vadd.f32 %v12808_v42, %v7477_v52  ;;  %v7485_v29 = vmax.f32 %v7325_v4, %v7484_v54 }
 0x25a   : > { %v13079_v24 = vadd.f32 %v12808_v42, %v6651_v5  ;;  %v6642_v23 = vrot.slane %v6641_v35, 2  ;;  %vm6427_vm10 = vcmp.eq.s32.totalorder %v14968_v13, 1  ;;  %v7480_v3 = vrot.slane %v7479_v0, 2 }
 0x25b   : > { %v6658_v61 = vrot.slane %v6489_v30, 4  ;;  %v4471_v7 = vadd.f32 %v4232_v17, %v3074_v49  ;;  %v3089_v28 = vadd.f32 %v8881_v37, %v14969_v18  ;;  %v8101_v56 = vrot.slane %v7771_v9, 7  ;;  %v14970_v37 = vld [vmem:[#allocation8_spill] sm:$0xff] }
 0x25c   : > { %v7921_v55 = vrot.slane %v13079_v24, 5  ;;  %v6643_v8 = vmax.f32 %v6641_v35, %v6642_v23  ;;  %v7486_v62 = vrot.slane %v7485_v29, 2  ;;  %v7481_v15 = vmax.f32 %v7479_v0, %v7480_v3  ;;  %v8884_v24 = vpop.f32.mrf.mxu1 }
 0x25d   : > { %v6659_v40 = vmax.f32 %v6489_v30, %v6658_v61  ;;  %v6488_v42 = vsel %vm6424_vm12, %v4471_v7, -1e+30  ;;  %v7326_v46 = vsel %vm7262_vm9, %v4471_v7, -1e+30  ;;  %v8102_v51 = vsel %vm7883_vm15, %v8101_v56, %v7770_v12  ;;  %v13091_v12 = vld [vmem:[%s13659_s4] ss:$0 sm:$0xff]  ;;  %v7118_v56 = vpop.permute.xlu0 %7117 }
 0x25e   : > { %v6644_v33 = vrot.slane %v6643_v8, 1  ;;  %v7487_v20 = vmax.f32 %v7485_v29, %v7486_v62  ;;  %v6652_v41 = vrot.slane %v6488_v42, 4  ;;  %v7482_v11 = vrot.slane %v7481_v15, 1 }
 0x25f   : > { %v6660_v43 = vrot.slane %v6659_v40, 2  ;;  %v7490_v25 = vrot.slane %v7326_v46, 4  ;;  %vm7263_vm1 = vcmp.eq.s32.totalorder %v7115_v31, 1  ;;  %v4474_v52 = vadd.f32 %v8985_v2, %v3089_v28 }
 0x260   : > { %v6645_v39 = vmax.f32 %v6643_v8, %v6644_v33  ;;  %v7488_v14 = vrot.slane %v7487_v20, 1  ;;  %v6653_v44 = vmax.f32 %v6488_v42, %v6652_v41  ;;  %v7327_v47 = vsel %vm7263_vm1, %v4472_v63, -1e+30  ;;  %v3093_v41 = vpop.f32.mrf.mxu1 }
 0x261   : > { %v7483_v50 = vmax.f32 %v7481_v15, %v7482_v11  ;;  %v6661_v60 = vmax.f32 %v6659_v40, %v6660_v43  ;;  %v7491_v26 = vmax.f32 %v7326_v46, %v7490_v25  ;;  %v7496_v38 = vrot.slane %v7327_v47, 4  ;;  %v4242_v15 = vpop.f32.mrf.mxu0  ;;  %v14972_v25 = vld [vmem:[#allocation60_spill] sm:$0xff] }
 0x262   : > { %v6940_v6 = vadd.f32 %v13091_v12, %v6645_v39  ;;  %v7489_v21 = vmax.f32 %v7487_v20, %v7488_v14  ;;  %v6654_v4 = vrot.slane %v6653_v44, 2  ;;  %vm6426_vm5 = vcmp.eq.s32.totalorder %v14970_v37, 1  ;;  %v7121_v20 = vpop.permute.xlu1 %7120 }
 0x263   : > { %v7772_v5 = vadd.f32 %v13091_v12, %v7483_v50  ;;  %v6662_v35 = vrot.slane %v6661_v60, 1  ;;  %v7492_v63 = vrot.slane %v7491_v26, 2  ;;  %v7497_v54 = vmax.f32 %v7327_v47, %v7496_v38  ;;  %v14974_v47 = vld [vmem:[#allocation66_spill] sm:$0xff] }
 0x264   : > { %v7919_v0 = vrot.slane %v6940_v6, 6  ;;  %v7773_v30 = vadd.f32 %v13091_v12, %v7489_v21  ;;  %v6655_v49 = vmax.f32 %v6653_v44, %v6654_v4  ;;  %v6491_v9 = vsel %vm6427_vm10, %v4474_v52, -1e+30 }
 0x265   : > { %v8103_v23 = vrot.slane %v7772_v5, 6  ;;  %v6663_v29 = vmax.f32 %v6661_v60, %v6662_v35  ;;  %v7493_v17 = vmax.f32 %v7491_v26, %v7492_v63  ;;  %v7498_v3 = vrot.slane %v7497_v54, 2 }
 0x266   : > { %v7920_v61 = vsel %vm7886_vm14, %v7919_v0, %v13071_v57  ;;  %v8105_v7 = vrot.slane %v7773_v30, 5  ;;  %v6656_v18 = vrot.slane %v6655_v49, 1  ;;  %v6670_v28 = vrot.slane %v6491_v9, 4  ;;  %v14971_v57 = vld [vmem:[#allocation27_spill] sm:$0xff] }
 0x267   : > { %v8104_v8 = vsel %vm7886_vm14, %v8103_v23, %v8102_v51  ;;  %v6943_v62 = vadd.f32 %v13091_v12, %v6663_v29  ;;  %v7494_v31 = vrot.slane %v7493_v17, 1  ;;  %v7922_v13 = vsel %vm7889_vm3, %v7921_v55, %v7920_v61  ;;  %v14973_v51 = vld [vmem:[#allocation13_spill] sm:$0xff] }
 0x268   : > { %v8106_v40 = vsel %vm7889_vm3, %v8105_v7, %v8104_v8  ;;  %v6657_v42 = vmax.f32 %v6655_v49, %v6656_v18  ;;  %v7499_v46 = vmax.f32 %v7497_v54, %v7498_v3  ;;  %v6671_v33 = vmax.f32 %v6491_v9, %v6670_v28  ;;  %v14975_v18 = vld [vmem:[#allocation34_spill] sm:$0xff] }
 0x269   : > { %vm6429_vm0 = vcmp.eq.s32.totalorder %v14971_v57, 1  ;;  %v7925_v11 = vrot.slane %v6943_v62, 3  ;;  %v7495_v43 = vmax.f32 %v7493_v17, %v7494_v31  ;;  %v3084_v39 = vadd.f32 %v3083_v58, %v14972_v25  ;;  %v8988_v58 = vpop.f32.mrf.mxu0 }
 0x26a   : > { %vm7264_vm8 = vcmp.eq.s32.totalorder %v7118_v56, 1  ;;  %vm6428_vm7 = vcmp.eq.s32.totalorder %v14973_v51, 1  ;;  %v6942_v14 = vadd.f32 %v13091_v12, %v6657_v42  ;;  %v7500_v55 = vrot.slane %v7499_v46, 1 }
 0x26b   : > { %v6672_v44 = vrot.slane %v6671_v33, 2  ;;  %v3099_v50 = vadd.f32 %v8884_v24, %v14974_v47  ;;  %v7774_v60 = vadd.f32 %v13091_v12, %v7495_v43  ;;  %v4473_v26 = vadd.f32 %v4242_v15, %v3084_v39  ;;  %v7124_v24 = vpop.permute.xlu0 %7123  ;;  %v4252_v7 = vpop.f32.mrf.mxu0 }
 0x26c   : > { %vm7265_vm12 = vcmp.eq.s32.totalorder %v7121_v20, 1  ;;  %v3094_v38 = vadd.f32 %v3093_v41, %v12226_v27  ;;  %v7923_v2 = vrot.slane %v6942_v14, 4  ;;  %v7501_v6 = vmax.f32 %v7499_v46, %v7500_v55  ;;  %v8887_v20 = vpop.f32.mrf.mxu1  ;;  %v7127_v41 = vpop.permute.xlu1 %7126 }
 0x26d   : > { %v6673_v21 = vmax.f32 %v6671_v33, %v6672_v44  ;;  %v7329_v4 = vsel %vm7265_vm12, %v4474_v52, -1e+30  ;;  %v8107_v5 = vrot.slane %v7774_v60, 4  ;;  %v6490_v35 = vsel %vm6426_vm5, %v4473_v26, -1e+30 }
 0x26e   : > { %v7328_v63 = vsel %vm7264_vm8, %v4473_v26, -1e+30  ;;  %v7508_v54 = vrot.slane %v7329_v4, 4  ;;  %v7924_v0 = vsel %vm7892_vm2, %v7923_v2, %v7922_v13  ;;  %v7775_v30 = vadd.f32 %v13091_v12, %v7501_v6  ;;  %v8991_v6 = vpop.f32.mrf.mxu0 }
 0x26f   : > { %v6674_v49 = vrot.slane %v6673_v21, 1  ;;  %v6664_v9 = vrot.slane %v6490_v35, 4  ;;  %v8108_v27 = vsel %vm7892_vm2, %v8107_v5, %v8106_v40  ;;  %v7502_v23 = vrot.slane %v7328_v63, 4 }
 0x270   : > { %v13119_v52 = vsel %vm7895_vm13, %v7925_v11, %v7924_v0  ;;  %v7509_v29 = vmax.f32 %v7329_v4, %v7508_v54  ;;  %v8109_v17 = vrot.slane %v7775_v30, 3  ;;  %v4476_v61 = vadd.f32 %v8988_v58, %v3099_v50 }
 0x271   : > { %v6675_v37 = vmax.f32 %v6673_v21, %v6674_v49  ;;  %v6665_v3 = vmax.f32 %v6490_v35, %v6664_v9  ;;  %vm6431_vm4 = vcmp.eq.s32.totalorder %v14975_v18, 1  ;;  %v7503_v28 = vmax.f32 %v7328_v63, %v7502_v23  ;;  %v3103_v35 = vpop.f32.mrf.mxu1  ;;  %v14976_v49 = vld [vmem:[#allocation29_spill] sm:$0xff] }
 0x272   : > { %v7510_v56 = vrot.slane %v7509_v29, 2  ;;  %vm7266_vm9 = vcmp.eq.s32.totalorder %v7124_v24, 1  ;;  %v4475_v8 = vadd.f32 %v4252_v7, %v3094_v38  ;;  %v13123_v62 = vsel %vm7895_vm13, %v8109_v17, %v8108_v27 }
 0x273   : > { %v6945_v31 = vadd.f32 %v13091_v12, %v6675_v37  ;;  %v6666_v13 = vrot.slane %v6665_v3, 2  ;;  %v6493_v15 = vsel %vm6429_vm0, %v4476_v61, -1e+30  ;;  %v7504_v40 = vrot.slane %v7503_v28, 2 }
 0x274   : > { %v7511_v42 = vmax.f32 %v7509_v29, %v7510_v56  ;;  %v6682_v46 = vrot.slane %v6493_v15, 4  ;;  %v6492_v33 = vsel %vm6428_vm7, %v4475_v8, -1e+30  ;;  %v7330_v39 = vsel %vm7266_vm9, %v4475_v8, -1e+30  ;;  %v7130_v56 = vpop.permute.xlu0 %7129  ;;  %v8890_v8 = vpop.f32.mrf.mxu1 }
 0x275   : > { %v7929_v11 = vrot.slane %v6945_v31, 1  ;;  %v6667_v43 = vmax.f32 %v6665_v3, %v6666_v13  ;;  %v6676_v25 = vrot.slane %v6492_v33, 4  ;;  %v7505_v14 = vmax.f32 %v7503_v28, %v7504_v40 }
 0x276   : > { %v7512_v55 = vrot.slane %v7511_v42, 1  ;;  %v6683_v44 = vmax.f32 %v6493_v15, %v6682_v46  ;;  %v7514_v47 = vrot.slane %v7330_v39, 4  ;;  %v3109_v57 = vadd.f32 %v8887_v20, %v12246_v48 }
 0x277   : > { %v6668_v50 = vrot.slane %v6667_v43, 1  ;;  %v6677_v60 = vmax.f32 %v6492_v33, %v6676_v25  ;;  %vm7267_vm10 = vcmp.eq.s32.totalorder %v7127_v41, 1  ;;  %v7506_v26 = vrot.slane %v7505_v14, 1  ;;  %v4262_v41 = vpop.f32.mrf.mxu0 }
 0x278   : > { %v7513_v38 = vmax.f32 %v7511_v42, %v7512_v55  ;;  %v6684_v2 = vrot.slane %v6683_v44, 2  ;;  %v7515_v51 = vmax.f32 %v7330_v39, %v7514_v47  ;;  %v7331_v58 = vsel %vm7267_vm10, %v4476_v61, -1e+30  ;;  %v14977_v42 = vld [vmem:[#allocation25_spill] sm:$0xff]  ;;  %v7133_v55 = vpop.permute.xlu1 %7132 }
 0x279   : > { %v6669_v21 = vmax.f32 %v6667_v43, %v6668_v50  ;;  %v6678_v4 = vrot.slane %v6677_v60, 2  ;;  %v4478_v5 = vadd.f32 %v8991_v6, %v3109_v57  ;;  %v7507_v63 = vmax.f32 %v7505_v14, %v7506_v26  ;;  %v7136_v6 = vpop.permute.xlu0 %7135 }
 0x27a   : > { %v7777_v54 = vadd.f32 %v13091_v12, %v7513_v38  ;;  %v6685_v0 = vmax.f32 %v6683_v44, %v6684_v2  ;;  %v7516_v30 = vrot.slane %v7515_v51, 2  ;;  %vm6430_vm1 = vcmp.eq.s32.totalorder %v14976_v49, 1 }
 0x27b   : > { %v6944_v48 = vadd.f32 %v13091_v12, %v6669_v21  ;;  %v6679_v9 = vmax.f32 %v6677_v60, %v6678_v4  ;;  %v7520_v24 = vrot.slane %v7331_v58, 4  ;;  %v6495_v27 = vsel %vm6431_vm4, %v4478_v5, -1e+30  ;;  %v3113_v60 = vpop.f32.mrf.mxu1 }
 0x27c   : > { %v7776_v23 = vadd.f32 %v13091_v12, %v7507_v63  ;;  %v8113_v29 = vrot.slane %v7777_v54, 1  ;;  %v6686_v17 = vrot.slane %v6685_v0, 1  ;;  %v7517_v37 = vmax.f32 %v7515_v51, %v7516_v30  ;;  %v8994_v51 = vpop.f32.mrf.mxu0 }
 0x27d   : > { %v7927_v3 = vrot.slane %v6944_v48, 2  ;;  %v6680_v61 = vrot.slane %v6679_v9, 1  ;;  %v7521_v7 = vmax.f32 %v7331_v58, %v7520_v24  ;;  %v6694_v28 = vrot.slane %v6495_v27, 4  ;;  %v8893_v48 = vpop.f32.mrf.mxu1 }
 0x27e   : > { %v8111_v31 = vrot.slane %v7776_v23, 2  ;;  %v6687_v13 = vmax.f32 %v6685_v0, %v6686_v17  ;;  %v7518_v15 = vrot.slane %v7517_v37, 1  ;;  %v3104_v40 = vadd.f32 %v3103_v35, %v12282_v36  ;;  %v14978_v36 = vld [vmem:[#allocation37_spill] sm:$0xff] }
 0x27f   : > { %vm6433_vm5 = vcmp.eq.s32.totalorder %v14977_v42, 1  ;;  %v7928_v18 = vsel %vm7898_vm6, %v7927_v3, %v13119_v52  ;;  %v6681_v46 = vmax.f32 %v6679_v9, %v6680_v61  ;;  %v7522_v33 = vrot.slane %v7521_v7, 2  ;;  %v14979_v9 = vld [vmem:[#allocation17_spill] sm:$0xff] }
 0x280   : > { %v6695_v20 = vmax.f32 %v6495_v27, %v6694_v28  ;;  %v7930_v43 = vsel %vm7901_vm11, %v7929_v11, %v7928_v18  ;;  %v8112_v25 = vsel %vm7898_vm6, %v8111_v31, %v13123_v62  ;;  %v6947_v39 = vadd.f32 %v13091_v12, %v6687_v13  ;;  %v7139_v18 = vpop.permute.xlu1 %7138 }
 0x281   : > { %v7519_v14 = vmax.f32 %v7517_v37, %v7518_v15  ;;  %vm6432_vm0 = vcmp.eq.s32.totalorder %v14978_v36, 1  ;;  %8197 = vst [vmem:[%s12982_s14 + $0x20] sm:$0xff] %v7930_v43  ;;  %v8114_v44 = vsel %vm7901_vm11, %v8113_v29, %v8112_v25  ;;  %v6946_v52 = vadd.f32 %v13091_v12, %v6681_v46  ;;  %v4272_v37 = vpop.f32.mrf.mxu0 }
 0x282   : > { %v7523_v47 = vmax.f32 %v7521_v7, %v7522_v33  ;;  %v6696_v50 = vrot.slane %v6695_v20, 2  ;;  %8198 = vst [vmem:[%s12982_s14 + $0x28] sm:$0xff] %v8114_v44  ;;  %v7931_v57 = vrot.slane %v6947_v39, 7  ;;  %vm7268_vm8 = vcmp.eq.s32.totalorder %v7130_v56, 1 }
 0x283   : > { %v7778_v11 = vadd.f32 %v13091_v12, %v7519_v14  ;;  %v4477_v62 = vadd.f32 %v4262_v41, %v3104_v40  ;;  %v3119_v2 = vadd.f32 %v8890_v8, %v12313_v59  ;;  %vm7269_vm7 = vcmp.eq.s32.totalorder %v7133_v55, 1  ;;  %v8997_v39 = vpop.f32.mrf.mxu0 }
 0x284   : > { %v7524_v26 = vrot.slane %v7523_v47, 1  ;;  %v6697_v38 = vmax.f32 %v6695_v20, %v6696_v50  ;;  %v13153_v21 = vsel %vm7883_vm15, %v7931_v57, %v6946_v52  ;;  %v7333_v35 = vsel %vm7269_vm7, %v4478_v5, -1e+30 }
 0x285   : > { %v6494_v4 = vsel %vm6430_vm1, %v4477_v62, -1e+30  ;;  %v7332_v58 = vsel %vm7268_vm8, %v4477_v62, -1e+30  ;;  %vm6435_vm12 = vcmp.eq.s32.totalorder %v14979_v9, 1  ;;  %v7532_v24 = vrot.slane %v7333_v35, 4 }
 0x286   : > { %v7525_v63 = vmax.f32 %v7523_v47, %v7524_v26  ;;  %v6698_v54 = vrot.slane %v6697_v38, 1  ;;  %v6688_v0 = vrot.slane %v6494_v4, 4  ;;  %v7526_v30 = vrot.slane %v7332_v58, 4  ;;  %v3123_v26 = vpop.f32.mrf.mxu1 }
 0x287   : > { %v4480_v59 = vadd.f32 %v8994_v51, %v3119_v2  ;;  %v3114_v27 = vadd.f32 %v3113_v60, %v12341_v32  ;;  %vm7270_vm4 = vcmp.eq.s32.totalorder %v7136_v6, 1  ;;  %v7533_v3 = vmax.f32 %v7333_v35, %v7532_v24 }
 0x288   : > { %v7779_v23 = vadd.f32 %v13091_v12, %v7525_v63  ;;  %v6699_v29 = vmax.f32 %v6697_v38, %v6698_v54  ;;  %v6689_v17 = vmax.f32 %v6494_v4, %v6688_v0  ;;  %v7527_v49 = vmax.f32 %v7332_v58, %v7526_v30  ;;  %v14980_v54 = vld [vmem:[#allocation43_spill] sm:$0xff] }
 0x289   : > { %v6497_v5 = vsel %vm6433_vm5, %v4480_v59, -1e+30  ;;  %v4479_v61 = vadd.f32 %v4272_v37, %v3114_v27  ;;  %v3129_v7 = vadd.f32 %v8893_v48, %v12370_v1  ;;  %v7534_v31 = vrot.slane %v7533_v3, 2 }
 0x28a   : > { %v8115_v28 = vrot.slane %v7779_v23, 7  ;;  %v13164_v56 = vadd.f32 %v13091_v12, %v6699_v29  ;;  %v6690_v8 = vrot.slane %v6689_v17, 2  ;;  %v7528_v32 = vrot.slane %v7527_v49, 2  ;;  %v8896_v29 = vpop.f32.mrf.mxu1 }
 0x28b   : > { %v6706_v13 = vrot.slane %v6497_v5, 4  ;;  %v6496_v15 = vsel %vm6432_vm0, %v4479_v61, -1e+30  ;;  %v7334_v40 = vsel %vm7270_vm4, %v4479_v61, -1e+30  ;;  %v7535_v20 = vmax.f32 %v7533_v3, %v7534_v31 }
 0x28c   : > { %v8116_v42 = vsel %vm7883_vm15, %v8115_v28, %v7778_v11  ;;  %v7935_v46 = vrot.slane %v13164_v56, 5  ;;  %v6691_v33 = vmax.f32 %v6689_v17, %v6690_v8  ;;  %v7529_v1 = vmax.f32 %v7527_v49, %v7528_v32  ;;  %v7142_v56 = vpop.permute.xlu0 %7141 }
 0x28d   : > { %v6707_v41 = vmax.f32 %v6497_v5, %v6706_v13  ;;  %v6700_v43 = vrot.slane %v6496_v15, 4  ;;  %v7538_v25 = vrot.slane %v7334_v40, 4  ;;  %vm7271_vm9 = vcmp.eq.s32.totalorder %v7139_v18, 1 }
 0x28e   : > { %v6692_v14 = vrot.slane %v6691_v33, 1  ;;  %v7530_v55 = vrot.slane %v7529_v1, 1  ;;  %v13171_v44 = vadd.f32 %v8997_v39, %v3129_v7  ;;  %v7536_v36 = vrot.slane %v7535_v20, 1 }
 0x28f   : > { %v6708_v52 = vrot.slane %v6707_v41, 2  ;;  %v6701_v47 = vmax.f32 %v6496_v15, %v6700_v43  ;;  %v7539_v50 = vmax.f32 %v7334_v40, %v7538_v25  ;;  %v7335_v11 = vsel %vm7271_vm9, %v4480_v59, -1e+30  ;;  %v4282_v15 = vpop.f32.mrf.mxu0  ;;  %v14981_v40 = vld [vmem:[#allocation33_spill] sm:$0xff] }
 0x290   : > { %v6693_v60 = vmax.f32 %v6691_v33, %v6692_v14  ;;  %v7531_v57 = vmax.f32 %v7529_v1, %v7530_v55  ;;  %v6499_v62 = vsel %vm6435_vm12, %v13171_v44, -1e+30  ;;  %v7537_v38 = vmax.f32 %v7535_v20, %v7536_v36  ;;  %v7145_v20 = vpop.permute.xlu1 %7144 }
 0x291   : > { %v6709_v2 = vmax.f32 %v6707_v41, %v6708_v52  ;;  %v6702_v51 = vrot.slane %v6701_v47, 2  ;;  %v7540_v6 = vrot.slane %v7539_v50, 2  ;;  %v7544_v35 = vrot.slane %v7335_v11, 4  ;;  %v14982_v41 = vld [vmem:[#allocation28_spill] sm:$0xff]  ;;  %v14983_v52 = vld [vmem:[#allocation117_spill] sm:$0xff] }
 0x292   : > { %v6948_v4 = vadd.f32 %v13091_v12, %v6693_v60  ;;  %v7780_v58 = vadd.f32 %v13091_v12, %v7531_v57  ;;  %v6718_v63 = vrot.slane %v6499_v62, 4  ;;  %vm6434_vm10 = vcmp.eq.s32.totalorder %v14980_v54, 1  ;;  %v9000_v60 = vpop.f32.mrf.mxu0  ;;  %v14985_v54 = vld [vmem:[#allocation44_spill] sm:$0xff] }
 0x293   : > { %v7781_v0 = vadd.f32 %v13091_v12, %v7537_v38  ;;  %v6710_v30 = vrot.slane %v6709_v2, 1  ;;  %v6703_v48 = vmax.f32 %v6701_v47, %v6702_v51  ;;  %v7541_v24 = vmax.f32 %v7539_v50, %v7540_v6 }
 0x294   : > { %v7933_v9 = vrot.slane %v6948_v4, 6  ;;  %v8117_v59 = vrot.slane %v7780_v58, 6  ;;  %v7545_v27 = vmax.f32 %v7335_v11, %v7544_v35  ;;  %v6719_v23 = vmax.f32 %v6499_v62, %v6718_v63  ;;  %v7148_v58 = vpop.permute.xlu0 %7147 }
 0x295   : > { %v8119_v17 = vrot.slane %v7781_v0, 5  ;;  %v6711_v49 = vmax.f32 %v6709_v2, %v6710_v30  ;;  %v6704_v37 = vrot.slane %v6703_v48, 1  ;;  %v7542_v3 = vrot.slane %v7541_v24, 1 }
 0x296   : > { %v7934_v5 = vsel %vm7886_vm14, %v7933_v9, %v13153_v21  ;;  %v8118_v61 = vsel %vm7886_vm14, %v8117_v59, %v8116_v42  ;;  %v7546_v7 = vrot.slane %v7545_v27, 2  ;;  %v6720_v28 = vrot.slane %v6719_v23, 2  ;;  %v3133_v42 = vpop.f32.mrf.mxu1 }
 0x297   : > { %v8120_v8 = vsel %vm7889_vm3, %v8119_v17, %v8118_v61  ;;  %v6951_v32 = vadd.f32 %v13091_v12, %v6711_v49  ;;  %v6705_v31 = vmax.f32 %v6703_v48, %v6704_v37  ;;  %v7543_v13 = vmax.f32 %v7541_v24, %v7542_v3 }
 0x298   : > { %vm6437_vm1 = vcmp.eq.s32.totalorder %v14981_v40, 1  ;;  %v7936_v18 = vsel %vm7889_vm3, %v7935_v46, %v7934_v5  ;;  %v7547_v33 = vmax.f32 %v7545_v27, %v7546_v7  ;;  %v6721_v1 = vmax.f32 %v6719_v23, %v6720_v28  ;;  %v4292_v27 = vpop.f32.mrf.mxu0  ;;  %v8899_v61 = vpop.f32.mrf.mxu1 }
 0x299   : > { %v3124_v21 = vadd.f32 %v3123_v26, %v12390_v45  ;;  %vm6436_vm5 = vcmp.eq.s32.totalorder %v14982_v41, 1  ;;  %v7939_v43 = vrot.slane %v6951_v32, 3  ;;  %v6950_v25 = vadd.f32 %v13091_v12, %v6705_v31  ;;  %v14984_v45 = vld [vmem:[#allocation120_spill] sm:$0xff] }
 0x29a   : > { %v7782_v39 = vadd.f32 %v13091_v12, %v7543_v13  ;;  %vm7272_vm0 = vcmp.eq.s32.totalorder %v7142_v56, 1  ;;  %v7548_v14 = vrot.slane %v7547_v33, 1  ;;  %v6722_v55 = vrot.slane %v6721_v1, 1 }
 0x29b   : > { %v4481_v36 = vadd.f32 %v4282_v15, %v3124_v21  ;;  %v3139_v47 = vadd.f32 %v8896_v29, %v14983_v52  ;;  %v7937_v46 = vrot.slane %v6950_v25, 4  ;;  %vm7273_vm8 = vcmp.eq.s32.totalorder %v7145_v20, 1  ;;  %v9003_v25 = vpop.f32.mrf.mxu0 }
 0x29c   : > { %v8121_v50 = vrot.slane %v7782_v39, 4  ;;  %v3134_v57 = vadd.f32 %v3133_v42, %v14984_v45  ;;  %v7549_v11 = vmax.f32 %v7547_v33, %v7548_v14  ;;  %v6723_v62 = vmax.f32 %v6721_v1, %v6722_v55  ;;  %v14986_v1 = vld [vmem:[#allocation123_spill] sm:$0xff] }
 0x29d   : > { %v6498_v26 = vsel %vm6434_vm10, %v4481_v36, -1e+30  ;;  %v7336_v38 = vsel %vm7272_vm0, %v4481_v36, -1e+30  ;;  %v7938_v2 = vsel %vm7892_vm2, %v7937_v46, %v7936_v18  ;;  %v7337_v30 = vsel %vm7273_vm8, %v13171_v44, -1e+30  ;;  %v7151_v44 = vpop.permute.xlu1 %7150 }
 0x29e   : > { %v8122_v51 = vsel %vm7892_vm2, %v8121_v50, %v8120_v8  ;;  %v6712_v6 = vrot.slane %v6498_v26, 4  ;;  %v7550_v4 = vrot.slane %v7336_v38, 4  ;;  %v7783_v35 = vadd.f32 %v13091_v12, %v7549_v11  ;;  %v3143_v50 = vpop.f32.mrf.mxu1 }
 0x29f   : > { %v13199_v63 = vadd.f32 %v13091_v12, %v6723_v62  ;;  %v13202_v0 = vsel %vm7895_vm13, %v7939_v43, %v7938_v2  ;;  %vm6439_vm7 = vcmp.eq.s32.totalorder %v14985_v54, 1  ;;  %v7556_v9 = vrot.slane %v7337_v30, 4 }
 0x2a0   : > { %v6713_v48 = vmax.f32 %v6498_v26, %v6712_v6  ;;  %v7551_v24 = vmax.f32 %v7336_v38, %v7550_v4  ;;  %v4484_v59 = vadd.f32 %v9000_v60, %v3139_v47  ;;  %v8123_v23 = vrot.slane %v7783_v35, 3 }
 0x2a1   : > { %v7943_v29 = vrot.slane %v13199_v63, 1  ;;  %vm7274_vm12 = vcmp.eq.s32.totalorder %v7148_v58, 1  ;;  %v4483_v17 = vadd.f32 %v4292_v27, %v3134_v57  ;;  %v7557_v3 = vmax.f32 %v7337_v30, %v7556_v9 }
 0x2a2   : > { %v6714_v49 = vrot.slane %v6713_v48, 2  ;;  %v7552_v37 = vrot.slane %v7551_v24, 2  ;;  %v6501_v5 = vsel %vm6437_vm1, %v4484_v59, -1e+30  ;;  %v8124_v7 = vsel %vm7895_vm13, %v8123_v23, %v8122_v51  ;;  %v14987_v51 = vld [vmem:[#allocation35_spill] sm:$0xff] }
 0x2a3   : > { %v6730_v28 = vrot.slane %v6501_v5, 4  ;;  %v6500_v56 = vsel %vm6436_vm5, %v4483_v17, -1e+30  ;;  %v7338_v8 = vsel %vm7274_vm12, %v4483_v17, -1e+30  ;;  %v7558_v13 = vrot.slane %v7557_v3, 2 }
 0x2a4   : > { %v6715_v32 = vmax.f32 %v6713_v48, %v6714_v49  ;;  %v7553_v31 = vmax.f32 %v7551_v24, %v7552_v37  ;;  %v6724_v15 = vrot.slane %v6500_v56, 4  ;;  %v7562_v33 = vrot.slane %v7338_v8, 4  ;;  %v7154_v49 = vpop.permute.xlu0 %7153  ;;  %v4302_v37 = vpop.f32.mrf.mxu0 }
 0x2a5   : > { %v6731_v18 = vmax.f32 %v6501_v5, %v6730_v28  ;;  %v3149_v21 = vadd.f32 %v8899_v61, %v14986_v1  ;;  %vm7275_vm4 = vcmp.eq.s32.totalorder %v7151_v44, 1  ;;  %v7559_v42 = vmax.f32 %v7557_v3, %v7558_v13  ;;  %v14988_v3 = vld [vmem:[#allocation49_spill] sm:$0xff] }
 0x2a6   : > { %v6716_v40 = vrot.slane %v6715_v32, 1  ;;  %v7554_v20 = vrot.slane %v7553_v31, 1  ;;  %v6725_v43 = vmax.f32 %v6500_v56, %v6724_v15  ;;  %v7563_v14 = vmax.f32 %v7338_v8, %v7562_v33  ;;  %v14989_v56 = vld [vmem:[#allocation45_spill] sm:$0xff]  ;;  %v7157_v15 = vpop.permute.xlu1 %7156 }
 0x2a7   : > { %v6732_v39 = vrot.slane %v6731_v18, 2  ;;  %v7339_v55 = vsel %vm7275_vm4, %v4484_v59, -1e+30  ;;  %v4486_v41 = vadd.f32 %v9003_v25, %v3149_v21  ;;  %v7560_v47 = vrot.slane %v7559_v42, 1  ;;  %v8902_v59 = vpop.f32.mrf.mxu1  ;;  %v14991_v25 = vld [vmem:[#allocation132_spill] sm:$0xff] }
 0x2a8   : > { %v6717_v36 = vmax.f32 %v6715_v32, %v6716_v40  ;;  %v7555_v52 = vmax.f32 %v7553_v31, %v7554_v20  ;;  %v6726_v46 = vrot.slane %v6725_v43, 2  ;;  %v7564_v45 = vrot.slane %v7563_v14, 2 }
 0x2a9   : > { %v6733_v60 = vmax.f32 %v6731_v18, %v6732_v39  ;;  %v7568_v57 = vrot.slane %v7339_v55, 4  ;;  %v6503_v11 = vsel %vm6439_vm7, %v4486_v41, -1e+30  ;;  %v7561_v38 = vmax.f32 %v7559_v42, %v7560_v47  ;;  %v3153_v21 = vpop.f32.mrf.mxu1 }
 0x2aa   : > { %v6952_v62 = vadd.f32 %v13091_v12, %v6717_v36  ;;  %v7784_v26 = vadd.f32 %v13091_v12, %v7555_v52  ;;  %v6727_v2 = vmax.f32 %v6725_v43, %v6726_v46  ;;  %vm6438_vm9 = vcmp.eq.s32.totalorder %v14987_v51, 1  ;;  %v14992_v52 = vld [vmem:[#allocation135_spill] sm:$0xff]  ;;  %v7160_v46 = vpop.permute.xlu0 %7159 }
 0x2ab   : > { %v6734_v6 = vrot.slane %v6733_v60, 1  ;;  %v7565_v4 = vmax.f32 %v7563_v14, %v7564_v45  ;;  %v7569_v58 = vmax.f32 %v7339_v55, %v7568_v57  ;;  %v6742_v35 = vrot.slane %v6503_v11, 4 }
 0x2ac   : > { %v7941_v30 = vrot.slane %v6952_v62, 2  ;;  %v8125_v48 = vrot.slane %v7784_v26, 2  ;;  %v7785_v24 = vadd.f32 %v13091_v12, %v7561_v38  ;;  %v6728_v9 = vrot.slane %v6727_v2, 1 }
 0x2ad   : > { %v6735_v54 = vmax.f32 %v6733_v60, %v6734_v6  ;;  %v7566_v27 = vrot.slane %v7565_v4, 1  ;;  %v7570_v23 = vrot.slane %v7569_v58, 2  ;;  %v6743_v17 = vmax.f32 %v6503_v11, %v6742_v35 }
 0x2ae   : > { %vm6441_vm10 = vcmp.eq.s32.totalorder %v14988_v3, 1  ;;  %v7942_v5 = vsel %vm7898_vm6, %v7941_v30, %v13202_v0  ;;  %v8126_v61 = vsel %vm7898_vm6, %v8125_v48, %v8124_v7  ;;  %v8127_v44 = vrot.slane %v7785_v24, 1  ;;  %v14990_v7 = vld [vmem:[#allocation128_spill] sm:$0xff] }
 0x2af   : > { %v6729_v28 = vmax.f32 %v6727_v2, %v6728_v9  ;;  %vm6440_vm1 = vcmp.eq.s32.totalorder %v14989_v56, 1  ;;  %v7944_v8 = vsel %vm7901_vm11, %v7943_v29, %v7942_v5  ;;  %v6955_v32 = vadd.f32 %v13091_v12, %v6735_v54  ;;  %v9006_v29 = vpop.f32.mrf.mxu0  ;;  %v7163_v5 = vpop.permute.xlu1 %7162 }
 0x2b0   : > { %v7567_v31 = vmax.f32 %v7565_v4, %v7566_v27  ;;  %v7571_v13 = vmax.f32 %v7569_v58, %v7570_v23  ;;  %8199 = vst [vmem:[%s12982_s14 + $0x30] sm:$0xff] %v7944_v8  ;;  %v8128_v18 = vsel %vm7901_vm11, %v8127_v44, %v8126_v61  ;;  %v6744_v33 = vrot.slane %v6743_v17, 2 }
 0x2b1   : > { %v6954_v0 = vadd.f32 %v13091_v12, %v6729_v28  ;;  %v3144_v1 = vadd.f32 %v3143_v50, %v14990_v7  ;;  %8200 = vst [vmem:[%s12982_s14 + $0x38] sm:$0xff] %v8128_v18  ;;  %v7945_v40 = vrot.slane %v6955_v32, 7  ;;  %vm7276_vm5 = vcmp.eq.s32.totalorder %v7154_v49, 1  ;;  %v4312_v2 = vpop.f32.mrf.mxu0  ;;  %v14994_v18 = vld [vmem:[#allocation6_spill] sm:$0xff] }
 0x2b2   : > { %v7786_v63 = vadd.f32 %v13091_v12, %v7567_v31  ;;  %v7572_v20 = vrot.slane %v7571_v13, 1  ;;  %v6745_v42 = vmax.f32 %v6743_v17, %v6744_v33  ;;  %v3159_v39 = vadd.f32 %v8902_v59, %v14991_v25 }
 0x2b3   : > { %v4485_v43 = vadd.f32 %v4302_v37, %v3144_v1  ;;  %vm7277_vm0 = vcmp.eq.s32.totalorder %v7157_v15, 1  ;;  %v13236_v14 = vsel %vm7883_vm15, %v7945_v40, %v6954_v0  ;;  %v3154_v47 = vadd.f32 %v3153_v21, %v14992_v52  ;;  %v8905_v37 = vpop.f32.mrf.mxu1  ;;  %v9009_v40 = vpop.f32.mrf.mxu0 }
 0x2b4   : > { %v7573_v55 = vmax.f32 %v7571_v13, %v7572_v20  ;;  %v7341_v36 = vsel %vm7277_vm0, %v4486_v41, -1e+30  ;;  %v6746_v50 = vrot.slane %v6745_v42, 1  ;;  %v4488_v38 = vadd.f32 %v9006_v29, %v3159_v39  ;;  %v14993_v41 = vld [vmem:[#allocation51_spill] sm:$0xff] }
 0x2b5   : > { %v6502_v60 = vsel %vm6438_vm9, %v4485_v43, -1e+30  ;;  %v7340_v45 = vsel %vm7276_vm5, %v4485_v43, -1e+30  ;;  %v7580_v57 = vrot.slane %v7341_v36, 4  ;;  %vm7278_vm8 = vcmp.eq.s32.totalorder %v7160_v46, 1 }
 0x2b6   : > { %v7787_v11 = vadd.f32 %v13091_v12, %v7573_v55  ;;  %v6736_v62 = vrot.slane %v6502_v60, 4  ;;  %v7574_v26 = vrot.slane %v7340_v45, 4  ;;  %v6747_v6 = vmax.f32 %v6745_v42, %v6746_v50  ;;  %v14995_v50 = vld [vmem:[#allocation47_spill] sm:$0xff] }
 0x2b7   : > { %v7581_v4 = vmax.f32 %v7341_v36, %v7580_v57  ;;  %v4487_v58 = vadd.f32 %v4312_v2, %v3154_v47  ;;  %vm6443_vm7 = vcmp.eq.s32.totalorder %v14993_v41, 1  ;;  %v6505_v51 = vsel %vm6441_vm10, %v4488_v38, -1e+30 }
 0x2b8   : > { %v8129_v35 = vrot.slane %v7787_v11, 7  ;;  %v6737_v30 = vmax.f32 %v6502_v60, %v6736_v62  ;;  %v7575_v48 = vmax.f32 %v7340_v45, %v7574_v26  ;;  %v13246_v24 = vadd.f32 %v13091_v12, %v6747_v6  ;;  %v3163_v62 = vpop.f32.mrf.mxu1 }
 0x2b9   : > { %v7582_v9 = vrot.slane %v7581_v4, 2  ;;  %v6754_v59 = vrot.slane %v6505_v51, 4  ;;  %v6504_v54 = vsel %vm6440_vm1, %v4487_v58, -1e+30  ;;  %v7342_v28 = vsel %vm7278_vm8, %v4487_v58, -1e+30 }
 0x2ba   : > { %v8130_v27 = vsel %vm7883_vm15, %v8129_v35, %v7786_v63  ;;  %v6738_v23 = vrot.slane %v6737_v30, 2  ;;  %v7576_v17 = vrot.slane %v7575_v48, 2  ;;  %v6748_v49 = vrot.slane %v6504_v54, 4 }
 0x2bb   : > { %v7949_v61 = vrot.slane %v13246_v24, 5  ;;  %v7583_v44 = vmax.f32 %v7581_v4, %v7582_v9  ;;  %v6755_v3 = vmax.f32 %v6505_v51, %v6754_v59  ;;  %v7586_v13 = vrot.slane %v7342_v28, 4  ;;  %v14996_v24 = vld [vmem:[#allocation146_spill] sm:$0xff]  ;;  %v7166_v59 = vpop.permute.xlu0 %7165 }
 0x2bc   : > { %v6739_v8 = vmax.f32 %v6737_v30, %v6738_v23  ;;  %v7577_v32 = vmax.f32 %v7575_v48, %v7576_v17  ;;  %v6749_v31 = vmax.f32 %v6504_v54, %v6748_v49  ;;  %v3169_v0 = vadd.f32 %v8905_v37, %v14994_v18  ;;  %v4322_v54 = vpop.f32.mrf.mxu0  ;;  %v14997_v23 = vld [vmem:[#allocation58_spill] sm:$0xff] }
 0x2bd   : > { %v7584_v15 = vrot.slane %v7583_v44, 1  ;;  %v6756_v56 = vrot.slane %v6755_v3, 2  ;;  %vm7279_vm12 = vcmp.eq.s32.totalorder %v7163_v5, 1  ;;  %v7587_v21 = vmax.f32 %v7342_v28, %v7586_v13  ;;  %v14998_v13 = vld [vmem:[#allocation52_spill] sm:$0xff] }
 0x2be   : > { %v6740_v33 = vrot.slane %v6739_v8, 1  ;;  %v7578_v7 = vrot.slane %v7577_v32, 1  ;;  %v6750_v1 = vrot.slane %v6749_v31, 2  ;;  %v7343_v29 = vsel %vm7279_vm12, %v4488_v38, -1e+30 }
 0x2bf   : > { %v7585_v63 = vmax.f32 %v7583_v44, %v7584_v15  ;;  %v6757_v20 = vmax.f32 %v6755_v3, %v6756_v56  ;;  %v4490_v42 = vadd.f32 %v9009_v40, %v3169_v0  ;;  %v7588_v55 = vrot.slane %v7587_v21, 2  ;;  %v8908_v44 = vpop.f32.mrf.mxu1  ;;  %v7169_v3 = vpop.permute.xlu1 %7168  ;;  %v14999_v0 = vld [vmem:[#allocation9_spill] sm:$0xff] }
 0x2c0   : > { %v6741_v43 = vmax.f32 %v6739_v8, %v6740_v33  ;;  %v7579_v25 = vmax.f32 %v7577_v32, %v7578_v7  ;;  %v6751_v39 = vmax.f32 %v6749_v31, %v6750_v1  ;;  %v7592_v47 = vrot.slane %v7343_v29, 4 }
 0x2c1   : > { %v7789_v36 = vadd.f32 %v13091_v12, %v7585_v63  ;;  %v6758_v52 = vrot.slane %v6757_v20, 1  ;;  %v6507_v46 = vsel %vm6443_vm7, %v4490_v42, -1e+30  ;;  %vm6442_vm4 = vcmp.eq.s32.totalorder %v14995_v50, 1  ;;  %v9012_v63 = vpop.f32.mrf.mxu0 }
 0x2c2   : > { %v6956_v60 = vadd.f32 %v13091_v12, %v6741_v43  ;;  %v7788_v45 = vadd.f32 %v13091_v12, %v7579_v25  ;;  %v6752_v57 = vrot.slane %v6751_v39, 1  ;;  %v7589_v11 = vmax.f32 %v7587_v21, %v7588_v55 }
 0x2c3   : > { %v8133_v26 = vrot.slane %v7789_v36, 5  ;;  %v6759_v38 = vmax.f32 %v6757_v20, %v6758_v52  ;;  %v7593_v2 = vmax.f32 %v7343_v29, %v7592_v47  ;;  %v6766_v6 = vrot.slane %v6507_v46, 4 }
 0x2c4   : > { %v7947_v4 = vrot.slane %v6956_v60, 6  ;;  %v8131_v58 = vrot.slane %v7788_v45, 6  ;;  %v6753_v35 = vmax.f32 %v6751_v39, %v6752_v57  ;;  %v7590_v30 = vrot.slane %v7589_v11, 1  ;;  %v7172_v39 = vpop.permute.xlu0 %7171  ;;  %v15000_v45 = vld [vmem:[#allocation21_spill] sm:$0xff] }
 0x2c5   : > { %v6959_v41 = vadd.f32 %v13091_v12, %v6759_v38  ;;  %v7594_v48 = vrot.slane %v7593_v2, 2  ;;  %v6767_v51 = vmax.f32 %v6507_v46, %v6766_v6  ;;  %v3164_v9 = vadd.f32 %v3163_v62, %v14996_v24 }
 0x2c6   : > { %vm6445_vm9 = vcmp.eq.s32.totalorder %v14997_v23, 1  ;;  %v7948_v17 = vsel %vm7886_vm14, %v7947_v4, %v13236_v14  ;;  %v8132_v49 = vsel %vm7886_vm14, %v8131_v58, %v8130_v27  ;;  %v6958_v37 = vadd.f32 %v13091_v12, %v6753_v35  ;;  %v15001_v58 = vld [vmem:[#allocation61_spill] sm:$0xff] }
 0x2c7   : > { %v7591_v5 = vmax.f32 %v7589_v11, %v7590_v30  ;;  %v8134_v28 = vsel %vm7889_vm3, %v8133_v26, %v8132_v49  ;;  %v7953_v8 = vrot.slane %v6959_v41, 3  ;;  %v7950_v32 = vsel %vm7889_vm3, %v7949_v61, %v7948_v17  ;;  %v3173_v61 = vpop.f32.mrf.mxu1  ;;  %v4332_v26 = vpop.f32.mrf.mxu0 }
 0x2c8   : > { %v7595_v31 = vmax.f32 %v7593_v2, %v7594_v48  ;;  %vm6444_vm10 = vcmp.eq.s32.totalorder %v14998_v13, 1  ;;  %v7951_v56 = vrot.slane %v6958_v37, 4  ;;  %v6768_v18 = vrot.slane %v6767_v51, 2  ;;  %v7175_v17 = vpop.permute.xlu1 %7174 }
 0x2c9   : > { %v7790_v15 = vadd.f32 %v13091_v12, %v7591_v5  ;;  %vm7280_vm1 = vcmp.eq.s32.totalorder %v7166_v59, 1  ;;  %v4489_v27 = vadd.f32 %v4322_v54, %v3164_v9  ;;  %v3179_v33 = vadd.f32 %v8908_v44, %v14999_v0 }
 0x2ca   : > { %v7596_v14 = vrot.slane %v7595_v31, 1  ;;  %vm7281_vm5 = vcmp.eq.s32.totalorder %v7169_v3, 1  ;;  %v7952_v7 = vsel %vm7892_vm2, %v7951_v56, %v7950_v32  ;;  %v6769_v21 = vmax.f32 %v6767_v51, %v6768_v18  ;;  %v8911_v51 = vpop.f32.mrf.mxu1  ;;  %v9015_v32 = vpop.f32.mrf.mxu0 }
 0x2cb   : > { %v8135_v1 = vrot.slane %v7790_v15, 4  ;;  %v7345_v40 = vsel %vm7281_vm5, %v4490_v42, -1e+30  ;;  %v6506_v29 = vsel %vm6442_vm4, %v4489_v27, -1e+30  ;;  %v13276_v25 = vsel %vm7895_vm13, %v7953_v8, %v7952_v7 }
 0x2cc   : > { %v7597_v20 = vmax.f32 %v7595_v31, %v7596_v14  ;;  %v7344_v43 = vsel %vm7280_vm1, %v4489_v27, -1e+30  ;;  %v6770_v36 = vrot.slane %v6769_v21, 1  ;;  %v6760_v52 = vrot.slane %v6506_v29, 4  ;;  %v3183_v18 = vpop.f32.mrf.mxu1 }
 0x2cd   : > { %v8136_v55 = vsel %vm7892_vm2, %v8135_v1, %v8134_v28  ;;  %v7598_v47 = vrot.slane %v7344_v43, 4  ;;  %v7604_v60 = vrot.slane %v7345_v40, 4  ;;  %v4492_v42 = vadd.f32 %v9012_v63, %v3179_v33  ;;  %v15002_v28 = vld [vmem:[#allocation14_spill] sm:$0xff] }
 0x2ce   : > { %v7791_v46 = vadd.f32 %v13091_v12, %v7597_v20  ;;  %v3174_v57 = vadd.f32 %v3173_v61, %v15000_v45  ;;  %v6771_v11 = vmax.f32 %v6769_v21, %v6770_v36  ;;  %v6761_v62 = vmax.f32 %v6506_v29, %v6760_v52  ;;  %v4342_v29 = vpop.f32.mrf.mxu0 }
 0x2cf   : > { %v7599_v50 = vmax.f32 %v7344_v43, %v7598_v47  ;;  %vm7282_vm0 = vcmp.eq.s32.totalorder %v7172_v39, 1  ;;  %v7605_v2 = vmax.f32 %v7345_v40, %v7604_v60  ;;  %v6509_v6 = vsel %vm6445_vm9, %v4492_v42, -1e+30  ;;  %v13297_v43 = vld [vmem:[%s13659_s4] ss:$0 sm:$0xff]  ;;  %v13301_v47 = vpop.permute.xlu0 %7198 }
 0x2d0   : > { %v8137_v38 = vrot.slane %v7791_v46, 3  ;;  %v4491_v4 = vadd.f32 %v4332_v26, %v3174_v57  ;;  %vm6447_vm8 = vcmp.eq.s32.totalorder %v15001_v58, 1  ;;  %v13285_v35 = vadd.f32 %v13091_v12, %v6771_v11  ;;  %v8914_v46 = vpop.f32.mrf.mxu1 }
 0x2d1   : > { %v6762_v30 = vrot.slane %v6761_v62, 2  ;;  %v7600_v41 = vrot.slane %v7599_v50, 2  ;;  %v6778_v48 = vrot.slane %v6509_v6, 4  ;;  %v7606_v9 = vrot.slane %v7605_v2, 2 }
 0x2d2   : > { %v8138_v24 = vsel %vm7895_vm13, %v8137_v38, %v8136_v55  ;;  %v6508_v59 = vsel %vm6444_vm10, %v4491_v4, -1e+30  ;;  %v7346_v54 = vsel %vm7282_vm0, %v4491_v4, -1e+30  ;;  %v7957_v23 = vrot.slane %v13285_v35, 1  ;;  %v9018_v35 = vpop.f32.mrf.mxu0 }
 0x2d3   : > { %v6763_v49 = vmax.f32 %v6761_v62, %v6762_v30  ;;  %v7601_v37 = vmax.f32 %v7599_v50, %v7600_v41  ;;  %v6779_v5 = vmax.f32 %v6509_v6, %v6778_v48  ;;  %v7607_v44 = vmax.f32 %v7605_v2, %v7606_v9 }
 0x2d4   : > { %v6772_v12 = vrot.slane %v6508_v59, 4  ;;  %v7610_v3 = vrot.slane %v7346_v54, 4  ;;  %v3189_v8 = vadd.f32 %v8911_v51, %v15002_v28  ;;  %vm7283_vm7 = vcmp.eq.s32.totalorder %v7175_v17, 1  ;;  %v3193_v51 = vpop.f32.mrf.mxu1  ;;  %v15006_v28 = vld [vmem:[#allocation18_spill] sm:$0xff] }
 0x2d5   : > { %v6764_v31 = vrot.slane %v6763_v49, 1  ;;  %v7602_v15 = vrot.slane %v7601_v37, 1  ;;  %v6780_v56 = vrot.slane %v6779_v5, 2  ;;  %v7608_v13 = vrot.slane %v7607_v44, 1 }
 0x2d6   : > { %v6773_v14 = vmax.f32 %v6508_v59, %v6772_v12  ;;  %v7611_v27 = vmax.f32 %v7346_v54, %v7610_v3  ;;  %v7347_v0 = vsel %vm7283_vm7, %v4492_v42, -1e+30  ;;  %v13292_v20 = vadd.f32 %v9015_v32, %v3189_v8  ;;  %v13317_v12 = vpop.permute.xlu1 %7222  ;;  %v15005_v3 = vld [vmem:[#allocation63_spill] sm:$0xff]  ;;  %v4352_v32 = vpop.f32.mrf.mxu0 }
 0x2d7   : > { %v6765_v33 = vmax.f32 %v6763_v49, %v6764_v31  ;;  %v7603_v7 = vmax.f32 %v7601_v37, %v7602_v15  ;;  %v6781_v1 = vmax.f32 %v6779_v5, %v6780_v56  ;;  %v7616_v21 = vrot.slane %v7347_v0, 4  ;;  %v15003_v49 = vld [vmem:[#allocation54_spill] sm:$0xff] }
 0x2d8   : > { %v7609_v40 = vmax.f32 %v7607_v44, %v7608_v13  ;;  %v6774_v63 = vrot.slane %v6773_v14, 2  ;;  %v7612_v61 = vrot.slane %v7611_v27, 2  ;;  %v6511_v57 = vsel %vm6447_vm8, %v13292_v20, -1e+30  ;;  %v15004_v44 = vld [vmem:[#allocation24_spill] sm:$0xff] }
 0x2d9   : > { %v6960_v39 = vadd.f32 %v13297_v43, %v6765_v33  ;;  %v7792_v55 = vadd.f32 %v13297_v43, %v7603_v7  ;;  %v6782_v36 = vrot.slane %v6781_v1, 1  ;;  %v7617_v52 = vmax.f32 %v7347_v0, %v7616_v21  ;;  %v15007_v0 = vld [vmem:[#allocation40_spill] sm:$0xff] }
 0x2da   : > { %v7793_v60 = vadd.f32 %v13297_v43, %v7609_v40  ;;  %v6775_v42 = vmax.f32 %v6773_v14, %v6774_v63  ;;  %v7613_v45 = vmax.f32 %v7611_v27, %v7612_v61  ;;  %v6790_v4 = vrot.slane %v6511_v57, 4  ;;  %v8917_v14 = vpop.f32.mrf.mxu1 }
 0x2db   : > { %v7955_v11 = vrot.slane %v6960_v39, 2  ;;  %v8139_v62 = vrot.slane %v7792_v55, 2  ;;  %v6783_v50 = vmax.f32 %v6781_v1, %v6782_v36  ;;  %v7618_v26 = vrot.slane %v7617_v52, 2  ;;  %v9021_v55 = vpop.f32.mrf.mxu0 }
 0x2dc   : > { %v8141_v38 = vrot.slane %v7793_v60, 1  ;;  %v6776_v2 = vrot.slane %v6775_v42, 1  ;;  %v7614_v6 = vrot.slane %v7613_v45, 1  ;;  %vm6446_vm12 = vcmp.eq.s32.totalorder %v15003_v49, 1  ;;  %v15008_v60 = vld [vmem:[#allocation22_spill] sm:$0xff] }
 0x2dd   : > { %v7956_v30 = vsel %vm7898_vm6, %v7955_v11, %v13276_v25  ;;  %v8140_v41 = vsel %vm7898_vm6, %v8139_v62, %v8138_v24  ;;  %v6963_v48 = vadd.f32 %v13297_v43, %v6783_v50  ;;  %v7619_v58 = vmax.f32 %v7617_v52, %v7618_v26  ;;  %v7178_v24 = vpop.permute.xlu0 %7177 }
 0x2de   : > { %v7958_v9 = vsel %vm7901_vm11, %v7957_v23, %v7956_v30  ;;  %v8142_v59 = vsel %vm7901_vm11, %v8141_v38, %v8140_v41  ;;  %v6777_v54 = vmax.f32 %v6775_v42, %v6776_v2  ;;  %v7615_v17 = vmax.f32 %v7613_v45, %v7614_v6  ;;  %v13337_v45 = vpop.permute.xlu1 %7201  ;;  %v15009_v30 = vld [vmem:[#allocation15_spill] sm:$0xff] }
 0x2df   : > { %8201 = vst [vmem:[%s12982_s14 + $0x40] sm:$0xff] %v7958_v9  ;;  %8202 = vst [vmem:[%s12982_s14 + $0x48] sm:$0xff] %v8142_v59  ;;  %v7620_v37 = vrot.slane %v7619_v58, 1  ;;  %v6791_v5 = vmax.f32 %v6511_v57, %v6790_v4  ;;  %v3184_v25 = vadd.f32 %v3183_v18, %v15004_v44  ;;  %vm6448_vm4 = vcmp.eq.s32.totalorder %v15005_v3, 1  ;;  %v3203_v57 = vpop.f32.mrf.mxu1  ;;  %v4362_v59 = vpop.f32.mrf.mxu0 }
 0x2e0   : > { %vm6449_vm9 = vcmp.eq.s32.totalorder %v12211_v16, 1  ;;  %v7959_v23 = vrot.slane %v6963_v48, 7  ;;  %v3199_v8 = vadd.f32 %v8914_v46, %v15006_v28  ;;  %v6962_v31 = vadd.f32 %v13297_v43, %v6777_v54 }
 0x2e1   : > { %v7621_v15 = vmax.f32 %v7619_v58, %v7620_v37  ;;  %v6792_v56 = vrot.slane %v6791_v5, 2  ;;  %v4493_v13 = vadd.f32 %v4342_v29, %v3184_v25  ;;  %v7794_v27 = vadd.f32 %v13297_v43, %v7615_v17  ;;  %v8920_v54 = vpop.f32.mrf.mxu1 }
 0x2e2   : > { %v13324_v18 = vadd.f32 %v9018_v35, %v3199_v8  ;;  %v3194_v33 = vadd.f32 %v3193_v51, %v15007_v0  ;;  %vm7284_vm10 = vcmp.eq.s32.totalorder %v7178_v24, 1  ;;  %vm6450_vm1 = vcmp.eq.s32.totalorder %v12213_v10, 1  ;;  %v7181_v28 = vpop.permute.xlu1 %7180 }
 0x2e3   : > { %v7795_v7 = vadd.f32 %v13297_v43, %v7621_v15  ;;  %v6793_v1 = vmax.f32 %v6791_v5, %v6792_v56  ;;  %v6510_v21 = vsel %vm6446_vm12, %v4493_v13, -1e+30  ;;  %v7348_v40 = vsel %vm7284_vm10, %v4493_v13, -1e+30 }
 0x2e4   : > { %v6784_v63 = vrot.slane %v6510_v21, 4  ;;  %v6513_v61 = vsel %vm6449_vm9, %v13324_v18, -1e+30  ;;  %v7622_v29 = vrot.slane %v7348_v40, 4  ;;  %v13334_v39 = vadd.f32 %v4352_v32, %v3194_v33 }
 0x2e5   : > { %v8143_v36 = vrot.slane %v7795_v7, 7  ;;  %v6794_v52 = vrot.slane %v6793_v1, 1  ;;  %v6802_v46 = vrot.slane %v6513_v61, 4  ;;  %v3209_v42 = vadd.f32 %v8917_v14, %v15008_v60  ;;  %v13366_v60 = vpop.permute.xlu0 %7225 }
 0x2e6   : > { %vm6451_vm5 = vcmp.eq.s32.totalorder %v12264_v34, 1  ;;  %v6785_v11 = vmax.f32 %v6510_v21, %v6784_v63  ;;  %v7623_v62 = vmax.f32 %v7348_v40, %v7622_v29  ;;  %v6512_v16 = vsel %vm6448_vm4, %v13334_v39, -1e+30 }
 0x2e7   : > { %vm6453_vm0 = vcmp.eq.s32.totalorder %v12303_v53, 1  ;;  %v8144_v50 = vsel %vm7883_vm15, %v8143_v36, %v7794_v27  ;;  %v6795_v26 = vmax.f32 %v6793_v1, %v6794_v52  ;;  %v6803_v38 = vmax.f32 %v6513_v61, %v6802_v46  ;;  %v9024_v27 = vpop.f32.mrf.mxu0 }
 0x2e8   : > { %v6796_v2 = vrot.slane %v6512_v16, 4  ;;  %v6786_v6 = vrot.slane %v6785_v11, 2  ;;  %v7624_v4 = vrot.slane %v7623_v62, 2  ;;  %v13345_v35 = vadd.f32 %v9021_v55, %v3209_v42 }
 0x2e9   : > { %v3204_v41 = vadd.f32 %v3203_v57, %v15009_v30  ;;  %v7960_v48 = vsel %vm7883_vm15, %v7959_v23, %v6962_v31  ;;  %v6965_v58 = vadd.f32 %v13297_v43, %v6795_v26  ;;  %v6804_v51 = vrot.slane %v6803_v38, 2  ;;  %v15010_v31 = vld [vmem:[#allocation30_spill] sm:$0xff] }
 0x2ea   : > { %v6797_v9 = vmax.f32 %v6512_v16, %v6796_v2  ;;  %v6787_v17 = vmax.f32 %v6785_v11, %v6786_v6  ;;  %v7625_v49 = vmax.f32 %v7623_v62, %v7624_v4  ;;  %v6515_v37 = vsel %vm6451_vm5, %v13345_v35, -1e+30 }
 0x2eb   : > { %v13353_v5 = vadd.f32 %v4362_v59, %v3204_v41  ;;  %v7963_v44 = vrot.slane %v6965_v58, 5  ;;  %v6805_v25 = vmax.f32 %v6803_v38, %v6804_v51  ;;  %v6814_v3 = vrot.slane %v6515_v37, 4 }
 0x2ec   : > { %v6798_v24 = vrot.slane %v6797_v9, 2  ;;  %v6788_v23 = vrot.slane %v6787_v17, 1  ;;  %v7626_v8 = vrot.slane %v7625_v49, 1  ;;  %v3219_v15 = vadd.f32 %v8920_v54, %v15010_v31  ;;  %v4372_v31 = vpop.f32.mrf.mxu0 }
 0x2ed   : > { %v6514_v32 = vsel %vm6450_vm1, %v13353_v5, -1e+30  ;;  %vm7291_vm8 = vcmp.eq.s32.totalorder %v13301_v47, 1  ;;  %v6806_v56 = vrot.slane %v6805_v25, 1  ;;  %v6815_v13 = vmax.f32 %v6515_v37, %v6814_v3  ;;  %v15011_v37 = vld [vmem:[#allocation23_spill] sm:$0xff] }
 0x2ee   : > { %v6799_v34 = vmax.f32 %v6797_v9, %v6798_v24  ;;  %v6808_v14 = vrot.slane %v6514_v32, 4  ;;  %v6789_v0 = vmax.f32 %v6787_v17, %v6788_v23  ;;  %v7627_v33 = vmax.f32 %v7625_v49, %v7626_v8 }
 0x2ef   : > { %vm7285_vm7 = vcmp.eq.s32.totalorder %v7181_v28, 1  ;;  %v4500_v7 = vadd.f32 %v9024_v27, %v3219_v15  ;;  %v6807_v1 = vmax.f32 %v6805_v25, %v6806_v56  ;;  %v6816_v40 = vrot.slane %v6815_v13, 2  ;;  %v15012_v15 = vld [vmem:[#allocation68_spill] sm:$0xff] }
 0x2f0   : > { %v6800_v21 = vrot.slane %v6799_v34, 1  ;;  %v6809_v63 = vmax.f32 %v6514_v32, %v6808_v14  ;;  %v6964_v10 = vadd.f32 %v13297_v43, %v6789_v0  ;;  %v7796_v61 = vadd.f32 %v13297_v43, %v7627_v33  ;;  %v15013_v14 = vld [vmem:[#allocation38_spill] sm:$0xff] }
 0x2f1   : > { %v7349_v29 = vsel %vm7285_vm7, %v13292_v20, -1e+30  ;;  %v6517_v55 = vsel %vm6453_vm0, %v4500_v7, -1e+30  ;;  %v6967_v36 = vadd.f32 %v13297_v43, %v6807_v1  ;;  %v6817_v46 = vmax.f32 %v6815_v13, %v6816_v40  ;;  %v3213_v20 = vpop.f32.mrf.mxu1 }
 0x2f2   : > { %v6801_v52 = vmax.f32 %v6799_v34, %v6800_v21  ;;  %v6810_v42 = vrot.slane %v6809_v63, 2  ;;  %v7961_v57 = vrot.slane %v6964_v10, 6  ;;  %v8145_v11 = vrot.slane %v7796_v61, 6  ;;  %v9027_v61 = vpop.f32.mrf.mxu0 }
 0x2f3   : > { %v7628_v62 = vrot.slane %v7349_v29, 4  ;;  %v6826_v16 = vrot.slane %v6517_v55, 4  ;;  %v7967_v26 = vrot.slane %v6967_v36, 3  ;;  %v6818_v2 = vrot.slane %v6817_v46, 1  ;;  %v8923_v28 = vpop.f32.mrf.mxu1 }
 0x2f4   : > { %v6966_v38 = vadd.f32 %v13297_v43, %v6801_v52  ;;  %v6811_v6 = vmax.f32 %v6809_v63, %v6810_v42  ;;  %v7962_v53 = vsel %vm7886_vm14, %v7961_v57, %v7960_v48  ;;  %v8146_v4 = vsel %vm7886_vm14, %v8145_v11, %v8144_v50  ;;  %v7196_v50 = vpop.permute.xlu0 %7195  ;;  %v15014_v11 = vld [vmem:[#allocation36_spill] sm:$0xff] }
 0x2f5   : > { %v7629_v30 = vmax.f32 %v7349_v29, %v7628_v62  ;;  %v6827_v41 = vmax.f32 %v6517_v55, %v6826_v16  ;;  %v7964_v58 = vsel %vm7889_vm3, %v7963_v44, %v7962_v53  ;;  %v6819_v9 = vmax.f32 %v6817_v46, %v6818_v2  ;;  %v3223_v1 = vpop.f32.mrf.mxu1 }
 0x2f6   : > { %v7965_v51 = vrot.slane %v6966_v38, 4  ;;  %v6812_v59 = vrot.slane %v6811_v6, 1  ;;  %v7355_v49 = vsel %vm7291_vm8, %v4500_v7, -1e+30  ;;  %v3214_v25 = vadd.f32 %v3213_v20, %v15011_v37 }
 0x2f7   : > { %v7630_v54 = vrot.slane %v7629_v30, 2  ;;  %v6828_v17 = vrot.slane %v6827_v41, 2  ;;  %v6969_v48 = vadd.f32 %v13297_v43, %v6819_v9  ;;  %v7664_v32 = vrot.slane %v7355_v49, 4 }
 0x2f8   : > { %v7966_v24 = vsel %vm7892_vm2, %v7965_v51, %v7964_v58  ;;  %v6813_v3 = vmax.f32 %v6811_v6, %v6812_v59  ;;  %vm6452_vm12 = vcmp.eq.s32.totalorder %v15012_v15, 1  ;;  %v4499_v56 = vadd.f32 %v4372_v31, %v3214_v25  ;;  %v8926_v6 = vpop.f32.mrf.mxu1  ;;  %v4382_v58 = vpop.f32.mrf.mxu0 }
 0x2f9   : > { %v7968_v23 = vsel %vm7895_vm13, %v7967_v26, %v7966_v24  ;;  %v7631_v44 = vmax.f32 %v7629_v30, %v7630_v54  ;;  %v6829_v8 = vmax.f32 %v6827_v41, %v6828_v17  ;;  %vm7290_vm4 = vcmp.eq.s32.totalorder %v7196_v50, 1  ;;  %v7205_v41 = vpop.permute.xlu1 %7204  ;;  %v13393_v54 = vpop.permute.xlu0 %7219 }
 0x2fa   : > { %v6968_v47 = vadd.f32 %v13297_v43, %v6813_v3  ;;  %v3229_v27 = vadd.f32 %v8923_v28, %v15013_v14  ;;  %vm6455_vm9 = vcmp.eq.s32.totalorder %v12347_v19, 1  ;;  %v6516_v33 = vsel %vm6452_vm12, %v4499_v56, -1e+30  ;;  %v15015_v19 = vld [vmem:[#allocation72_spill] sm:$0xff]  ;;  %v3233_v31 = vpop.f32.mrf.mxu1 }
 0x2fb   : > { %v7632_v34 = vrot.slane %v7631_v44, 1  ;;  %v6830_v13 = vrot.slane %v6829_v8, 1  ;;  %v7354_v7 = vsel %vm7290_vm4, %v4499_v56, -1e+30  ;;  %v7971_v21 = vrot.slane %v6969_v48, 1 }
 0x2fc   : > { %v7969_v0 = vrot.slane %v6968_v47, 2  ;;  %v7665_v63 = vmax.f32 %v7355_v49, %v7664_v32  ;;  %v6820_v10 = vrot.slane %v6516_v33, 4  ;;  %v7658_v36 = vrot.slane %v7354_v7, 4  ;;  %v15016_v49 = vld [vmem:[#allocation46_spill] sm:$0xff]  ;;  %v9030_v32 = vpop.f32.mrf.mxu0 }
 0x2fd   : > { %v7633_v40 = vmax.f32 %v7631_v44, %v7632_v34  ;;  %v6831_v55 = vmax.f32 %v6829_v8, %v6830_v13  ;;  %v4502_v52 = vadd.f32 %v9027_v61, %v3229_v27  ;;  %v3224_v62 = vadd.f32 %v3223_v1, %v15014_v11  ;;  %v13398_v34 = vpop.permute.xlu1 %7228  ;;  %v7184_v27 = vpop.permute.xlu0 %7183  ;;  %v15017_v1 = vld [vmem:[#allocation50_spill] sm:$0xff] }
 0x2fe   : > { %v7970_v29 = vsel %vm7898_vm6, %v7969_v0, %v7968_v23  ;;  %v6821_v57 = vmax.f32 %v6516_v33, %v6820_v10  ;;  %v7666_v53 = vrot.slane %v7665_v63, 2  ;;  %v7659_v30 = vmax.f32 %v7354_v7, %v7658_v36  ;;  %v4392_v11 = vpop.f32.mrf.mxu0 }
 0x2ff   : > { %v7972_v46 = vsel %vm7901_vm11, %v7971_v21, %v7970_v29  ;;  %v7797_v42 = vadd.f32 %v13297_v43, %v7633_v40  ;;  %v6519_v16 = vsel %vm6455_vm9, %v4502_v52, -1e+30  ;;  %v6971_v20 = vadd.f32 %v13297_v43, %v6831_v55  ;;  %v15018_v29 = vld [vmem:[#allocation71_spill] sm:$0xff] }
 0x300   : > { %8203 = vst [vmem:[%s12982_s14 + $0x50] sm:$0xff] %v7972_v46  ;;  %v6822_v38 = vrot.slane %v6821_v57, 2  ;;  %v6838_v2 = vrot.slane %v6519_v16, 4  ;;  %v4501_v17 = vadd.f32 %v4382_v58, %v3224_v62  ;;  %vm6454_vm10 = vcmp.eq.s32.totalorder %v15015_v19, 1 }
 0x301   : > { %v8147_v26 = vrot.slane %v7797_v42, 5  ;;  %vm7292_vm1 = vcmp.eq.s32.totalorder %v13337_v45, 1  ;;  %v3239_v37 = vadd.f32 %v8926_v6, %v15016_v49  ;;  %v7667_v50 = vmax.f32 %v7665_v63, %v7666_v53 }
 0x302   : > { %v6823_v9 = vmax.f32 %v6821_v57, %v6822_v38  ;;  %v6839_v59 = vmax.f32 %v6519_v16, %v6838_v2  ;;  %v6518_v48 = vsel %vm6454_vm10, %v4501_v17, -1e+30  ;;  %v7356_v3 = vsel %vm7292_vm1, %v4501_v17, -1e+30  ;;  %v7208_v2 = vpop.permute.xlu1 %7207 }
 0x303   : > { %v13391_v51 = vsel %vm7889_vm3, %v8147_v26, %v8146_v4  ;;  %vm7293_vm5 = vcmp.eq.s32.totalorder %v7205_v41, 1  ;;  %v6832_v28 = vrot.slane %v6518_v48, 4  ;;  %v7973_v4 = vrot.slane %v6971_v20, 7 }
 0x304   : > { %v6824_v25 = vrot.slane %v6823_v9, 1  ;;  %v6840_v24 = vrot.slane %v6839_v59, 2  ;;  %v7660_v44 = vrot.slane %v7659_v30, 2  ;;  %v7357_v15 = vsel %vm7293_vm5, %v4502_v52, -1e+30  ;;  %v15019_v52 = vld [vmem:[#allocation5_spill] sm:$0xff] }
 0x305   : > { %v6833_v47 = vmax.f32 %v6518_v48, %v6832_v28  ;;  %v7670_v56 = vrot.slane %v7356_v3, 4  ;;  %v13400_v45 = vadd.f32 %v9030_v32, %v3239_v37  ;;  %vm6457_vm0 = vcmp.eq.s32.totalorder %v12383_v22, 1  ;;  %v8929_v22 = vpop.f32.mrf.mxu1  ;;  %v9033_v37 = vpop.f32.mrf.mxu0  ;;  %v15022_v32 = vld [vmem:[#allocation76_spill] sm:$0xff] }
 0x306   : > { %v6825_v23 = vmax.f32 %v6823_v9, %v6824_v25  ;;  %v6841_v8 = vmax.f32 %v6839_v59, %v6840_v24  ;;  %v7668_v0 = vrot.slane %v7667_v50, 1  ;;  %v3234_v21 = vadd.f32 %v3233_v31, %v15017_v1  ;;  %v15021_v25 = vld [vmem:[#allocation73_spill] sm:$0xff] }
 0x307   : > { %v6834_v33 = vrot.slane %v6833_v47, 2  ;;  %v6521_v7 = vsel %vm6457_vm0, %v13400_v45, -1e+30  ;;  %v7661_v40 = vmax.f32 %v7659_v30, %v7660_v44  ;;  %v7676_v10 = vrot.slane %v7357_v15, 4  ;;  %v15020_v30 = vld [vmem:[#allocation53_spill] sm:$0xff]  ;;  %v3243_v28 = vpop.f32.mrf.mxu1 }
 0x308   : > { %v6970_v13 = vadd.f32 %v13297_v43, %v6825_v23  ;;  %v6842_v14 = vrot.slane %v6841_v8, 1  ;;  %v6850_v61 = vrot.slane %v6521_v7, 4  ;;  %vm6456_vm8 = vcmp.eq.s32.totalorder %v15018_v29, 1 }
 0x309   : > { %v6835_v55 = vmax.f32 %v6833_v47, %v6834_v33  ;;  %v7671_v36 = vmax.f32 %v7356_v3, %v7670_v56  ;;  %vm7286_vm7 = vcmp.eq.s32.totalorder %v7184_v27, 1  ;;  %vm6459_vm12 = vcmp.eq.s32.totalorder %v15019_v52, 1  ;;  %v7187_v52 = vpop.permute.xlu1 %7186 }
 0x30a   : > { %v7974_v63 = vsel %vm7883_vm15, %v7973_v4, %v6970_v13  ;;  %v6843_v46 = vmax.f32 %v6841_v8, %v6842_v14  ;;  %v6851_v42 = vmax.f32 %v6521_v7, %v6850_v61  ;;  %v7350_v57 = vsel %vm7286_vm7, %v13334_v39, -1e+30  ;;  %v8932_v61 = vpop.f32.mrf.mxu1 }
 0x30b   : > { %v7669_v62 = vmax.f32 %v7667_v50, %v7668_v0  ;;  %v6836_v16 = vrot.slane %v6835_v55, 1  ;;  %v7634_v26 = vrot.slane %v7350_v57, 4  ;;  %v4503_v38 = vadd.f32 %v4392_v11, %v3234_v21  ;;  %v15023_v0 = vld [vmem:[#allocation55_spill] sm:$0xff] }
 0x30c   : > { %v7662_v6 = vrot.slane %v7661_v40, 1  ;;  %v7677_v20 = vmax.f32 %v7357_v15, %v7676_v10  ;;  %v6852_v53 = vrot.slane %v6851_v42, 2  ;;  %v3249_v41 = vadd.f32 %v8929_v22, %v15020_v30  ;;  %v4402_v10 = vpop.f32.mrf.mxu0 }
 0x30d   : > { %v6837_v58 = vmax.f32 %v6835_v55, %v6836_v16  ;;  %v7672_v9 = vrot.slane %v7671_v36, 2  ;;  %v7635_v59 = vmax.f32 %v7350_v57, %v7634_v26  ;;  %v6520_v17 = vsel %vm6456_vm8, %v4503_v38, -1e+30  ;;  %v15024_v26 = vld [vmem:[#allocation59_spill] sm:$0xff] }
 0x30e   : > { %v6973_v19 = vadd.f32 %v13297_v43, %v6843_v46  ;;  %v6853_v39 = vmax.f32 %v6851_v42, %v6852_v53  ;;  %v6844_v49 = vrot.slane %v6520_v17, 4  ;;  %vm7294_vm4 = vcmp.eq.s32.totalorder %v7208_v2, 1  ;;  %v13437_v53 = vpop.permute.xlu0 %7231  ;;  %v9036_v30 = vpop.f32.mrf.mxu0 }
 0x30f   : > { %vm6458_vm9 = vcmp.eq.s32.totalorder %v15021_v25, 1  ;;  %v13416_v24 = vadd.f32 %v13297_v43, %v7669_v62  ;;  %v6972_v48 = vadd.f32 %v13297_v43, %v6837_v58  ;;  %v7636_v3 = vrot.slane %v7635_v59, 2 }
 0x310   : > { %v13419_v50 = vadd.f32 %v9033_v37, %v3249_v41  ;;  %v7663_v4 = vmax.f32 %v7661_v40, %v7662_v6  ;;  %v7678_v23 = vrot.slane %v7677_v20, 2  ;;  %v6845_v44 = vmax.f32 %v6520_v17, %v6844_v49 }
 0x311   : > { %v7358_v8 = vsel %vm7294_vm4, %v4503_v38, -1e+30  ;;  %vm6461_vm10 = vcmp.eq.s32.totalorder %v15022_v32, 1  ;;  %vm7299_vm1 = vcmp.eq.s32.totalorder %v13317_v12, 1  ;;  %v7975_v31 = vrot.slane %v6972_v48, 6  ;;  %v3253_v32 = vpop.f32.mrf.mxu1 }
 0x312   : > { %v6854_v15 = vrot.slane %v6853_v39, 1  ;;  %v7637_v47 = vmax.f32 %v7635_v59, %v7636_v3  ;;  %v6523_v56 = vsel %vm6459_vm12, %v13419_v50, -1e+30  ;;  %v7977_v13 = vrot.slane %v6973_v19, 5 }
 0x313   : > { %v7673_v14 = vmax.f32 %v7671_v36, %v7672_v9  ;;  %v6846_v27 = vrot.slane %v6845_v44, 2  ;;  %v3244_v33 = vadd.f32 %v3243_v28, %v15023_v0  ;;  %v7976_v7 = vsel %vm7886_vm14, %v7975_v31, %v7974_v63  ;;  %v7211_v0 = vpop.permute.xlu0 %7210 }
 0x314   : > { %v7638_v1 = vrot.slane %v7637_v47, 1  ;;  %v7682_v21 = vrot.slane %v7358_v8, 4  ;;  %v6862_v40 = vrot.slane %v6523_v56, 4  ;;  %v8157_v29 = vrot.slane %v13416_v24, 7  ;;  %v15030_v24 = vld [vmem:[#allocation65_spill] sm:$0xff] }
 0x315   : > { %v7679_v55 = vmax.f32 %v7677_v20, %v7678_v23  ;;  %v6847_v22 = vmax.f32 %v6845_v44, %v6846_v27  ;;  %v7978_v46 = vsel %vm7889_vm3, %v7977_v13, %v7976_v7  ;;  %v13431_v42 = vadd.f32 %v13297_v43, %v7663_v4  ;;  %v15025_v44 = vld [vmem:[#allocation74_spill] sm:$0xff] }
 0x316   : > { %v6855_v36 = vmax.f32 %v6853_v39, %v6854_v15  ;;  %v7639_v57 = vmax.f32 %v7637_v47, %v7638_v1  ;;  %v6863_v11 = vmax.f32 %v6523_v56, %v6862_v40  ;;  %v7674_v62 = vrot.slane %v7673_v14, 1 }
 0x317   : > { %v6848_v63 = vrot.slane %v6847_v22, 1  ;;  %v13433_v16 = vadd.f32 %v4402_v10, %v3244_v33  ;;  %v3259_v38 = vadd.f32 %v8932_v61, %v15024_v26  ;;  %v7683_v6 = vmax.f32 %v7358_v8, %v7682_v21  ;;  %v15026_v33 = vld [vmem:[#allocation75_spill] sm:$0xff] }
 0x318   : > { %v7798_v2 = vadd.f32 %v13297_v43, %v7639_v57  ;;  %v6864_v20 = vrot.slane %v6863_v11, 2  ;;  %vm7287_vm5 = vcmp.eq.s32.totalorder %v7187_v52, 1  ;;  %v6975_v17 = vadd.f32 %v13297_v43, %v6855_v36 }
 0x319   : > { %v6849_v41 = vmax.f32 %v6847_v22, %v6848_v63  ;;  %v6522_v58 = vsel %vm6458_vm9, %v13433_v16, -1e+30  ;;  %v7351_v9 = vsel %vm7287_vm5, %v13324_v18, -1e+30  ;;  %v4508_v59 = vadd.f32 %v9036_v30, %v3259_v38  ;;  %v15027_v22 = vld [vmem:[#allocation64_spill] sm:$0xff] }
 0x31a   : > { %v8149_v19 = vrot.slane %v7798_v2, 4  ;;  %v6865_v39 = vmax.f32 %v6863_v11, %v6864_v20  ;;  %v6856_v49 = vrot.slane %v6522_v58, 4  ;;  %v7640_v48 = vrot.slane %v7351_v9, 4  ;;  %v4412_v11 = vpop.f32.mrf.mxu0 }
 0x31b   : > { %v6974_v37 = vadd.f32 %v13297_v43, %v6849_v41  ;;  %v6525_v3 = vsel %vm6461_vm10, %v4508_v59, -1e+30  ;;  %v7363_v28 = vsel %vm7299_vm1, %v4508_v59, -1e+30  ;;  %v7680_v4 = vrot.slane %v7679_v55, 1  ;;  %v15028_v59 = vld [vmem:[#allocation62_spill] sm:$0xff] }
 0x31c   : > { %v13451_v25 = vsel %vm7892_vm2, %v8149_v19, %v13391_v51  ;;  %v6866_v18 = vrot.slane %v6865_v39, 1  ;;  %v6857_v23 = vmax.f32 %v6522_v58, %v6856_v49  ;;  %vm6460_vm0 = vcmp.eq.s32.totalorder %v15025_v44, 1 }
 0x31d   : > { %vm7298_vm8 = vcmp.eq.s32.totalorder %v13393_v54, 1  ;;  %v7979_v8 = vrot.slane %v6974_v37, 4  ;;  %v7641_v31 = vmax.f32 %v7351_v9, %v7640_v48  ;;  %v6874_v15 = vrot.slane %v6525_v3, 4  ;;  %v9039_v37 = vpop.f32.mrf.mxu0 }
 0x31e   : > { %v7712_v47 = vrot.slane %v7363_v28, 4  ;;  %v7675_v56 = vmax.f32 %v7673_v14, %v7674_v62  ;;  %v7981_v13 = vrot.slane %v6975_v17, 3  ;;  %v7684_v12 = vrot.slane %v7683_v6, 2  ;;  %v8935_v62 = vpop.f32.mrf.mxu1 }
 0x31f   : > { %v6858_v27 = vrot.slane %v6857_v23, 2  ;;  %vm6463_vm7 = vcmp.eq.s32.totalorder %v15026_v33, 1  ;;  %v7980_v51 = vsel %vm7892_vm2, %v7979_v8, %v7978_v46  ;;  %v7642_v7 = vrot.slane %v7641_v31, 2 }
 0x320   : > { %v6875_v1 = vmax.f32 %v6525_v3, %v6874_v15  ;;  %v7713_v21 = vmax.f32 %v7363_v28, %v7712_v47  ;;  %v7681_v40 = vmax.f32 %v7679_v55, %v7680_v4  ;;  %v7982_v61 = vsel %vm7895_vm13, %v7981_v13, %v7980_v51 }
 0x321   : > { %v6859_v10 = vmax.f32 %v6857_v23, %v6858_v27  ;;  %v3254_v52 = vadd.f32 %v3253_v32, %v15027_v22  ;;  %v6867_v36 = vmax.f32 %v6865_v39, %v6866_v18  ;;  %v7643_v57 = vmax.f32 %v7641_v31, %v7642_v7  ;;  %v15029_v31 = vld [vmem:[#allocation77_spill] sm:$0xff]  ;;  %v13477_v27 = vpop.permute.xlu1 %7234 }
 0x322   : > { %v6876_v14 = vrot.slane %v6875_v1, 2  ;;  %vm7295_vm12 = vcmp.eq.s32.totalorder %v7211_v0, 1  ;;  %v7804_v63 = vadd.f32 %v13297_v43, %v7675_v56  ;;  %v7685_v26 = vmax.f32 %v7683_v6, %v7684_v12 }
 0x323   : > { %v6860_v38 = vrot.slane %v6859_v10, 1  ;;  %v7359_v46 = vsel %vm7295_vm12, %v13400_v45, -1e+30  ;;  %v7644_v2 = vrot.slane %v7643_v57, 1  ;;  %v7714_v55 = vrot.slane %v7713_v21, 2 }
 0x324   : > { %v6877_v20 = vmax.f32 %v6875_v1, %v6876_v14  ;;  %v7688_v30 = vrot.slane %v7359_v46, 4  ;;  %v13462_v41 = vadd.f32 %v13297_v43, %v7681_v40  ;;  %vm7301_vm4 = vcmp.eq.s32.totalorder %v13398_v34, 1  ;;  %v7190_v40 = vpop.permute.xlu0 %7189 }
 0x325   : > { %v6861_v58 = vmax.f32 %v6859_v10, %v6860_v38  ;;  %v4507_v9 = vadd.f32 %v4412_v11, %v3254_v52  ;;  %v3269_v17 = vadd.f32 %v8935_v62, %v15028_v59  ;;  %v6977_v19 = vadd.f32 %v13297_v43, %v6867_v36  ;;  %v4422_v38 = vpop.f32.mrf.mxu0  ;;  %v15031_v59 = vld [vmem:[#allocation82_spill] sm:$0xff] }
 0x326   : > { %v7645_v39 = vmax.f32 %v7643_v57, %v7644_v2  ;;  %v6878_v6 = vrot.slane %v6877_v20, 1  ;;  %v7689_v49 = vmax.f32 %v7359_v46, %v7688_v30  ;;  %v8159_v4 = vrot.slane %v7804_v63, 6  ;;  %v7214_v30 = vpop.permute.xlu1 %7213 }
 0x327   : > { %v6976_v45 = vadd.f32 %v13297_v43, %v6861_v58  ;;  %v6524_v48 = vsel %vm6460_vm0, %v4507_v9, -1e+30  ;;  %v7362_v3 = vsel %vm7298_vm8, %v4507_v9, -1e+30  ;;  %v4510_v28 = vadd.f32 %v9039_v37, %v3269_v17 }
 0x328   : > { %v7686_v18 = vrot.slane %v7685_v26, 1  ;;  %v7799_v23 = vadd.f32 %v13297_v43, %v7645_v39  ;;  %v7715_v8 = vmax.f32 %v7713_v21, %v7714_v55  ;;  %vm6462_vm9 = vcmp.eq.s32.totalorder %v15029_v31, 1  ;;  %v3263_v21 = vpop.f32.mrf.mxu1 }
 0x329   : > { %vm7300_vm10 = vcmp.eq.s32.totalorder %v13366_v60, 1  ;;  %v7983_v15 = vrot.slane %v6976_v45, 2  ;;  %v6868_v47 = vrot.slane %v6524_v48, 4  ;;  %v7706_v32 = vrot.slane %v7362_v3, 4 }
 0x32a   : > { %v6527_v44 = vsel %vm6463_vm7, %v4510_v28, -1e+30  ;;  %v7985_v56 = vrot.slane %v6977_v19, 1  ;;  %v8151_v54 = vrot.slane %v7799_v23, 3  ;;  %v6879_v13 = vmax.f32 %v6877_v20, %v6878_v6 }
 0x32b   : > { %v7690_v12 = vrot.slane %v7689_v49, 2  ;;  %v7984_v0 = vsel %vm7898_vm6, %v7983_v15, %v7982_v61  ;;  %v6869_v51 = vmax.f32 %v6524_v48, %v6868_v47  ;;  %v7707_v7 = vmax.f32 %v7362_v3, %v7706_v32  ;;  %v15032_v15 = vld [vmem:[#allocation67_spill] sm:$0xff] }
 0x32c   : > { %v6886_v1 = vrot.slane %v6527_v44, 4  ;;  %v8158_v33 = vsel %vm7883_vm15, %v8157_v29, %v13431_v42  ;;  %v7687_v10 = vmax.f32 %v7685_v26, %v7686_v18  ;;  %v7986_v22 = vsel %vm7901_vm11, %v7985_v56, %v7984_v0  ;;  %v15033_v47 = vld [vmem:[#allocation79_spill] sm:$0xff] }
 0x32d   : > { %v13487_v52 = vsel %vm7895_vm13, %v8151_v54, %v13451_v25  ;;  %8205 = vst [vmem:[%s12982_s14 + $0x60] sm:$0xff] %v7986_v22  ;;  %v7716_v36 = vrot.slane %v7715_v8, 1  ;;  %v6870_v61 = vrot.slane %v6869_v51, 2  ;;  %v7708_v57 = vrot.slane %v7707_v7, 2 }
 0x32e   : > { %v6887_v14 = vmax.f32 %v6527_v44, %v6886_v1  ;;  %v8161_v11 = vrot.slane %v13462_v41, 5  ;;  %v7365_v62 = vsel %vm7301_vm4, %v4510_v28, -1e+30  ;;  %v3264_v63 = vadd.f32 %v3263_v21, %v15030_v24 }
 0x32f   : > { %vm7288_vm1 = vcmp.eq.s32.totalorder %v7190_v40, 1  ;;  %v8160_v29 = vsel %vm7886_vm14, %v8159_v4, %v8158_v33  ;;  %v6979_v42 = vadd.f32 %v13297_v43, %v6879_v13  ;;  %v7691_v26 = vmax.f32 %v7689_v49, %v7690_v12  ;;  %v8938_v49 = vpop.f32.mrf.mxu1  ;;  %v9042_v33 = vpop.f32.mrf.mxu0 }
 0x330   : > { %v6871_v25 = vmax.f32 %v6869_v51, %v6870_v61  ;;  %v6888_v46 = vrot.slane %v6887_v14, 2  ;;  %v7724_v2 = vrot.slane %v7365_v62, 4  ;;  %v7352_v20 = vsel %vm7288_vm1, %v13353_v5, -1e+30  ;;  %v15034_v61 = vld [vmem:[#allocation69_spill] sm:$0xff] }
 0x331   : > { %v4509_v55 = vadd.f32 %v4422_v38, %v3264_v63  ;;  %v7806_v41 = vadd.f32 %v13297_v43, %v7687_v10  ;;  %v7717_v34 = vmax.f32 %v7715_v8, %v7716_v36  ;;  %v7709_v9 = vmax.f32 %v7707_v7, %v7708_v57  ;;  %v3273_v54 = vpop.f32.mrf.mxu1 }
 0x332   : > { %v6872_v58 = vrot.slane %v6871_v25, 1  ;;  %vm6465_vm5 = vcmp.eq.s32.totalorder %v15031_v59, 1  ;;  %v7725_v17 = vmax.f32 %v7365_v62, %v7724_v2  ;;  %v7646_v19 = vrot.slane %v7352_v20, 4 }
 0x333   : > { %v6526_v39 = vsel %vm6462_vm9, %v4509_v55, -1e+30  ;;  %v7364_v6 = vsel %vm7300_vm10, %v4509_v55, -1e+30  ;;  %v7987_v37 = vrot.slane %v6979_v42, 7  ;;  %v7692_v5 = vrot.slane %v7691_v26, 1 }
 0x334   : > { %v6873_v45 = vmax.f32 %v6871_v25, %v6872_v58  ;;  %vm7296_vm0 = vcmp.eq.s32.totalorder %v7214_v30, 1  ;;  %v6889_v48 = vmax.f32 %v6887_v14, %v6888_v46  ;;  %v7726_v3 = vrot.slane %v7725_v17, 2  ;;  %v4432_v46 = vpop.f32.mrf.mxu0 }
 0x335   : > { %v6880_v28 = vrot.slane %v6526_v39, 4  ;;  %v7718_v4 = vrot.slane %v7364_v6, 4  ;;  %v8162_v18 = vsel %vm7889_vm3, %v8161_v11, %v8160_v29  ;;  %v7647_v8 = vmax.f32 %v7352_v20, %v7646_v19 }
 0x336   : > { %v6978_v23 = vadd.f32 %v13297_v43, %v6873_v45  ;;  %v3279_v31 = vadd.f32 %v8938_v49, %v15032_v15  ;;  %vm6464_vm8 = vcmp.eq.s32.totalorder %v15033_v47, 1  ;;  %v7710_v60 = vrot.slane %v7709_v9, 1 }
 0x337   : > { %v7727_v32 = vmax.f32 %v7725_v17, %v7726_v3  ;;  %v6881_v44 = vmax.f32 %v6526_v39, %v6880_v28  ;;  %v7719_v56 = vmax.f32 %v7364_v6, %v7718_v4  ;;  %v8163_v13 = vrot.slane %v7806_v41, 4  ;;  %v13529_v28 = vpop.permute.xlu0 %7237 }
 0x338   : > { %v7811_v12 = vadd.f32 %v13297_v43, %v7717_v34  ;;  %v7988_v0 = vsel %vm7883_vm15, %v7987_v37, %v6978_v23  ;;  %v7360_v51 = vsel %vm7296_vm0, %v13433_v16, -1e+30  ;;  %vm7302_vm7 = vcmp.eq.s32.totalorder %v13437_v53, 1  ;;  %v15036_v53 = vld [vmem:[#allocation70_spill] sm:$0xff] }
 0x339   : > { %v7693_v7 = vmax.f32 %v7691_v26, %v7692_v5  ;;  %v6890_v1 = vrot.slane %v6889_v48, 1  ;;  %v6882_v21 = vrot.slane %v6881_v44, 2  ;;  %v7720_v40 = vrot.slane %v7719_v56, 2  ;;  %v15035_v5 = vld [vmem:[#allocation80_spill] sm:$0xff] }
 0x33a   : > { %v7648_v10 = vrot.slane %v7647_v8, 2  ;;  %v7694_v22 = vrot.slane %v7360_v51, 4  ;;  %v4512_v36 = vadd.f32 %v9042_v33, %v3279_v31  ;;  %v3274_v57 = vadd.f32 %v3273_v54, %v15034_v61 }
 0x33b   : > { %v7711_v14 = vmax.f32 %v7709_v9, %v7710_v60  ;;  %v7728_v11 = vrot.slane %v7727_v32, 1  ;;  %v6883_v62 = vmax.f32 %v6881_v44, %v6882_v21  ;;  %v7721_v24 = vmax.f32 %v7719_v56, %v7720_v40  ;;  %v7193_v56 = vpop.permute.xlu1 %7192 }
 0x33c   : > { %v13514_v63 = vsel %vm7892_vm2, %v8163_v13, %v8162_v18  ;;  %vm7303_vm12 = vcmp.eq.s32.totalorder %v13477_v27, 1  ;;  %v7695_v16 = vmax.f32 %v7360_v51, %v7694_v22  ;;  %v6529_v29 = vsel %vm6465_vm5, %v4512_v36, -1e+30  ;;  %v8941_v18 = vpop.f32.mrf.mxu1 }
 0x33d   : > { %v13520_v42 = vadd.f32 %v13297_v43, %v7693_v7  ;;  %v6891_v26 = vmax.f32 %v6889_v48, %v6890_v1  ;;  %v6884_v25 = vrot.slane %v6883_v62, 1  ;;  %v7367_v38 = vsel %vm7303_vm12, %v4512_v36, -1e+30  ;;  %v15037_v7 = vld [vmem:[#allocation78_spill] sm:$0xff] }
 0x33e   : > { %v7649_v2 = vmax.f32 %v7647_v8, %v7648_v10  ;;  %v7722_v20 = vrot.slane %v7721_v24, 1  ;;  %v6898_v55 = vrot.slane %v6529_v29, 4  ;;  %v4511_v30 = vadd.f32 %v4432_v46, %v3274_v57  ;;  %v3283_v10 = vpop.f32.mrf.mxu1 }
 0x33f   : > { %v8171_v41 = vrot.slane %v7811_v12, 7  ;;  %v7810_v34 = vadd.f32 %v13297_v43, %v7711_v14  ;;  %v7729_v58 = vmax.f32 %v7727_v32, %v7728_v11  ;;  %v6885_v27 = vmax.f32 %v6883_v62, %v6884_v25  ;;  %v9045_v62 = vpop.f32.mrf.mxu0 }
 0x340   : > { %v7696_v9 = vrot.slane %v7695_v16, 2  ;;  %v6899_v17 = vmax.f32 %v6529_v29, %v6898_v55  ;;  %v7736_v59 = vrot.slane %v7367_v38, 4  ;;  %v6528_v19 = vsel %vm6464_vm8, %v4511_v30, -1e+30 }
 0x341   : > { %v8165_v39 = vrot.slane %v13520_v42, 3  ;;  %v6981_v6 = vadd.f32 %v13297_v43, %v6891_v26  ;;  %v6980_v49 = vadd.f32 %v13297_v43, %v6885_v27  ;;  %v6892_v37 = vrot.slane %v6528_v19, 4  ;;  %v15038_v26 = vld [vmem:[#allocation57_spill] sm:$0xff] }
 0x342   : > { %vm6467_vm4 = vcmp.eq.s32.totalorder %v15035_v5, 1  ;;  %v7650_v45 = vrot.slane %v7649_v2, 1  ;;  %v7723_v48 = vmax.f32 %v7721_v24, %v7722_v20  ;;  %v6900_v3 = vrot.slane %v6899_v17, 2  ;;  %v7217_v24 = vpop.permute.xlu0 %7216 }
 0x343   : > { %v7366_v4 = vsel %vm7302_vm7, %v4511_v30, -1e+30  ;;  %v13534_v23 = vsel %vm7883_vm15, %v8171_v41, %v7810_v34  ;;  %v13537_v8 = vadd.f32 %v13297_v43, %v7729_v58  ;;  %v7989_v15 = vrot.slane %v6980_v49, 6  ;;  %v7241_v34 = vpop.permute.xlu1 %7240 }
 0x344   : > { %v6893_v31 = vmax.f32 %v6528_v19, %v6892_v37  ;;  %v7697_v47 = vmax.f32 %v7695_v16, %v7696_v9  ;;  %v6901_v60 = vmax.f32 %v6899_v17, %v6900_v3  ;;  %v7737_v32 = vmax.f32 %v7367_v38, %v7736_v59  ;;  %v13553_v38 = vld [vmem:[%s13659_s4] ss:$0 sm:$0xff]  ;;  %v4442_v59 = vpop.f32.mrf.mxu0 }
 0x345   : > { %v7730_v44 = vrot.slane %v7366_v4, 4  ;;  %v7991_v54 = vrot.slane %v6981_v6, 5  ;;  %v7990_v13 = vsel %vm7886_vm14, %v7989_v15, %v7988_v0  ;;  %v3289_v51 = vadd.f32 %v8941_v18, %v15036_v53 }
 0x346   : > { %v6894_v12 = vrot.slane %v6893_v31, 2  ;;  %vm6466_vm9 = vcmp.eq.s32.totalorder %v15037_v7, 1  ;;  %v7651_v1 = vmax.f32 %v7649_v2, %v7650_v45  ;;  %v13543_v21 = vadd.f32 %v13297_v43, %v7723_v48 }
 0x347   : > { %v6902_v40 = vrot.slane %v6901_v60, 1  ;;  %vm7304_vm15 = vcmp.eq.s32.totalorder %v13529_v28, 1  ;;  %v7731_v33 = vmax.f32 %v7366_v4, %v7730_v44  ;;  %v8175_v22 = vrot.slane %v13537_v8, 5 }
 0x348   : > { %v6895_v36 = vmax.f32 %v6893_v31, %v6894_v12  ;;  %v7992_v61 = vsel %vm7889_vm3, %v7991_v54, %v7990_v13  ;;  %vm7289_vm10 = vcmp.eq.s32.totalorder %v7193_v56, 1  ;;  %v7698_v0 = vrot.slane %v7697_v47, 1 }
 0x349   : > { %v6903_v57 = vmax.f32 %v6901_v60, %v6902_v40  ;;  %v7738_v14 = vrot.slane %v7737_v32, 2  ;;  %v7732_v11 = vrot.slane %v7731_v33, 2  ;;  %v7353_v43 = vsel %vm7289_vm10, %v13345_v35, -1e+30 }
 0x34a   : > { %v6896_v16 = vrot.slane %v6895_v36, 1  ;;  %v4514_v29 = vadd.f32 %v9045_v62, %v3289_v51  ;;  %v3284_v25 = vadd.f32 %v3283_v10, %v15038_v26  ;;  %v13556_v46 = vadd.f32 %v13553_v38, %v7651_v1 }
 0x34b   : > { %v8173_v2 = vrot.slane %v13543_v21, 6  ;;  %v6983_v20 = vadd.f32 %v13553_v38, %v6903_v57  ;;  %v7733_v55 = vmax.f32 %v7731_v33, %v7732_v11  ;;  %v7652_v41 = vrot.slane %v7353_v43, 4 }
 0x34c   : > { %v6897_v30 = vmax.f32 %v6895_v36, %v6896_v16  ;;  %v6531_v35 = vsel %vm6467_vm4, %v4514_v29, -1e+30  ;;  %vm7297_vm1 = vcmp.eq.s32.totalorder %v7217_v24, 1  ;;  %v7699_v58 = vmax.f32 %v7697_v47, %v7698_v0 }
 0x34d   : > { %v7739_v27 = vmax.f32 %v7737_v32, %v7738_v14  ;;  %v7734_v9 = vrot.slane %v7733_v55, 1  ;;  %v6910_v17 = vrot.slane %v6531_v35, 4  ;;  %v7653_v6 = vmax.f32 %v7353_v43, %v7652_v41 }
 0x34e   : > { %v6982_v19 = vadd.f32 %v13553_v38, %v6897_v30  ;;  %v7361_v49 = vsel %vm7297_vm1, %v13419_v50, -1e+30  ;;  %v4513_v37 = vadd.f32 %v4442_v59, %v3284_v25  ;;  %v7995_v45 = vrot.slane %v6983_v20, 3 }
 0x34f   : > { %v6911_v48 = vmax.f32 %v6531_v35, %v6910_v17  ;;  %v7700_v3 = vrot.slane %v7361_v49, 4  ;;  %vm7305_vm5 = vcmp.eq.s32.totalorder %v7241_v34, 1  ;;  %v7654_v5 = vrot.slane %v7653_v6, 2 }
 0x350   : > { %v7993_v4 = vrot.slane %v6982_v19, 4  ;;  %v6530_v18 = vsel %vm6466_vm9, %v4513_v37, -1e+30  ;;  %v7368_v15 = vsel %vm7304_vm15, %v4513_v37, -1e+30  ;;  %v7735_v31 = vmax.f32 %v7733_v55, %v7734_v9 }
 0x351   : > { %v6912_v47 = vrot.slane %v6911_v48, 2  ;;  %v7701_v60 = vmax.f32 %v7361_v49, %v7700_v3  ;;  %v6904_v32 = vrot.slane %v6530_v18, 4  ;;  %v7655_v50 = vmax.f32 %v7653_v6, %v7654_v5 }
 0x352   : > { %v7994_v44 = vsel %vm7892_vm2, %v7993_v4, %v7992_v61  ;;  %v7742_v56 = vrot.slane %v7368_v15, 4  ;;  %v7369_v54 = vsel %vm7305_vm5, %v4514_v29, -1e+30  ;;  %v7740_v13 = vrot.slane %v7739_v27, 1 }
 0x353   : > { %v6913_v12 = vmax.f32 %v6911_v48, %v6912_v47  ;;  %v7702_v53 = vrot.slane %v7701_v60, 2  ;;  %v6905_v51 = vmax.f32 %v6530_v18, %v6904_v32  ;;  %v7656_v1 = vrot.slane %v7655_v50, 1 }
 0x354   : > { %v7743_v21 = vmax.f32 %v7368_v15, %v7742_v56  ;;  %v7996_v7 = vsel %vm7895_vm13, %v7995_v45, %v7994_v44  ;;  %v7748_v40 = vrot.slane %v7369_v54, 4  ;;  %v7808_v28 = vadd.f32 %v13553_v38, %v7699_v58 }
 0x355   : > { %v6914_v33 = vrot.slane %v6913_v12, 1  ;;  %v7703_v10 = vmax.f32 %v7701_v60, %v7702_v53  ;;  %v6906_v36 = vrot.slane %v6905_v51, 2  ;;  %v7814_v0 = vadd.f32 %v13553_v38, %v7735_v31 }
 0x356   : > { %v7657_v61 = vmax.f32 %v7655_v50, %v7656_v1  ;;  %v7744_v57 = vrot.slane %v7743_v21, 2  ;;  %v7749_v14 = vmax.f32 %v7369_v54, %v7748_v40  ;;  %v8153_v11 = vrot.slane %v13556_v46, 2 }
 0x357   : > { %v7741_v62 = vmax.f32 %v7739_v27, %v7740_v13  ;;  %v7704_v24 = vrot.slane %v7703_v10, 1  ;;  %v6907_v16 = vmax.f32 %v6905_v51, %v6906_v36  ;;  %v6915_v29 = vmax.f32 %v6913_v12, %v6914_v33 }
 0x358   : > { %v7801_v43 = vadd.f32 %v13553_v38, %v7657_v61  ;;  %v7745_v26 = vmax.f32 %v7743_v21, %v7744_v57  ;;  %v7750_v25 = vrot.slane %v7749_v14, 2  ;;  %v8174_v20 = vsel %vm7886_vm14, %v8173_v2, %v13534_v23 }
 0x359   : > { %v8167_v55 = vrot.slane %v7808_v28, 2  ;;  %v7705_v30 = vmax.f32 %v7703_v10, %v7704_v24  ;;  %v6908_v41 = vrot.slane %v6907_v16, 1  ;;  %v8177_v35 = vrot.slane %v7814_v0, 4 }
 0x35a   : > { %v8155_v34 = vrot.slane %v7801_v43, 1  ;;  %v7746_v58 = vrot.slane %v7745_v26, 1  ;;  %v7751_v9 = vmax.f32 %v7749_v14, %v7750_v25  ;;  %v8154_v46 = vsel %vm7898_vm6, %v8153_v11, %v13487_v52 }
 0x35b   : > { %v7815_v27 = vadd.f32 %v13553_v38, %v7741_v62  ;;  %v7809_v17 = vadd.f32 %v13553_v38, %v7705_v30  ;;  %v6909_v59 = vmax.f32 %v6907_v16, %v6908_v41  ;;  %v6985_v23 = vadd.f32 %v13553_v38, %v6915_v29 }
 0x35c   : > { %v8156_v19 = vsel %vm7901_vm11, %v8155_v34, %v8154_v46  ;;  %v7747_v2 = vmax.f32 %v7745_v26, %v7746_v58  ;;  %v7752_v6 = vrot.slane %v7751_v9, 1  ;;  %v8166_v49 = vsel %vm7895_vm13, %v8165_v39, %v13514_v63 }
 0x35d   : > { %v8176_v52 = vsel %vm7889_vm3, %v8175_v22, %v8174_v20  ;;  %8204 = vst [vmem:[%s12982_s14 + $0x58] sm:$0xff] %v8156_v19  ;;  %v8169_v37 = vrot.slane %v7809_v17, 1  ;;  %v6984_v45 = vadd.f32 %v13553_v38, %v6909_v59  ;;  %v8168_v48 = vsel %vm7898_vm6, %v8167_v55, %v8166_v49 }
 0x35e   : > { %v8178_v3 = vsel %vm7892_vm2, %v8177_v35, %v8176_v52  ;;  %v7816_v4 = vadd.f32 %v13553_v38, %v7747_v2  ;;  %v7753_v5 = vmax.f32 %v7751_v9, %v7752_v6  ;;  %v8179_v18 = vrot.slane %v7815_v27, 3 }
 0x35f   : > { %v8170_v42 = vsel %vm7901_vm11, %v8169_v37, %v8168_v48  ;;  %v7997_v63 = vrot.slane %v6984_v45, 2  ;;  %v7999_v39 = vrot.slane %v6985_v23, 1 }
 0x360   : > { %8206 = vst [vmem:[%s12982_s14 + $0x68] sm:$0xff] %v8170_v42  ;;  %v8181_v8 = vrot.slane %v7816_v4, 2  ;;  %v7817_v22 = vadd.f32 %v13553_v38, %v7753_v5  ;;  %v8180_v31 = vsel %vm7895_vm13, %v8179_v18, %v8178_v3 }
 0x361   : > { %v7998_v15 = vsel %vm7898_vm6, %v7997_v63, %v7996_v7 }
 0x362   : > { %v8000_v47 = vsel %vm7901_vm11, %v7999_v39, %v7998_v15  ;;  %v8182_v60 = vsel %vm7898_vm6, %v8181_v8, %v8180_v31  ;;  %v8183_v32 = vrot.slane %v7817_v22, 1 }
 0x363   : > { %8207 = vst [vmem:[%s12982_s14 + $0x70] sm:$0xff] %v8000_v47 }
 0x364   : > { %v8184_v38 = vsel %vm7901_vm11, %v8183_v32, %v8182_v60 }
 0x365   : > { %8208 = vst [vmem:[%s12982_s14 + $0x78] sm:$0xff] %v8184_v38 }
 0x366   : > { %9146 = shalt.err (!%p9143_p4)
}
 0x367   : > { %s9147_s11 = scalar_lea.hbm %s13606_s22, 2048  ;;  %s9151_s17 = scalar_lea.hbm %s13660_s5, 8192 }
 0x368   : > { %p9148_p7 = scmp.ne.s32.totalorder %s13606_s22, %s9147_s11  ;;  %p9152_p10 = scmp.lt.s32.totalorder %s13606_s22, %s13660_s5 }
 0x369   : > { %p9153_p11 = scmp.lt.s32.totalorder %s9151_s17, %s9147_s11 }
 0x36a   : > { %p9149_p8 = pnand %p9148_p7, %p9268_p5 }
 0x36b   : > { %p9154_p12 = por %p9153_p11, %p9152_p10 }
 0x36c   : > { %p9150_p9 = pneg %p9149_p8 }
 0x36e   : > { %p9155_p13 = pnand %p9154_p12, %p9150_p9 }
 0x370   : > { %9158 = shalt.err (!%p9155_p13)
}
 0x371   : > { %s9198_s30 = smov 256   ;;  %s9199_s6 = smov 16  }
 0x372   : > { %9054 = dma.vmem_to_hbm [thread:$0]  (%p9268_p5), %s13608_s7, 2048, %s13606_s22, %s13615_s12, %s9198_s30, %s9198_s30, %s9199_s6  }
 0x373 PF: > { %p9060_p0 = scmp.ge.s32.totalorder %s9193_s21, 2  ;;  %s8239_s9 = sand.u32 1, %s9181_s18  }
 0x374   : > { %s8240_s10 = scalar_lea.sflag [#allocation3], %s8239_s9 }
 0x375   : > { %p9057_p1 = pnand %p9060_p0, %p9272_p6 }
 0x377   : > { %p9058_p2 = pneg %p9057_p1 }
 0x379   : > { %9176 = dma.done.wait (%p9058_p2), %s8240_s10, 2048  }
 0x37a   : > { %9178 = vsyncadd (%p9058_p2), %s8240_s10, 4294965248  ;;  %p15_p3 = scmp.ge.s32.totalorder %s9255_s24, 6   ;;  %s15039_s18 = smov %s9185_s19 }
 0x37b   : > { %s15040_s19 = smov %s9189_s20  ;;  %s15041_s20 = smov %s9266_s27 }
 0x37c   : > { %s15042_s21 = smov %s9255_s24  ;;  %17 = sbr.rel (!%p15_p3) target bundleno = 3 (0x3), region = 83 }
 0x381   :  { %8245 = vsyncpa [#allocation3], 1 }
 0x382   :  { %8247 = vsyncpa [#allocation3 + $0x1], 1 }

</bundles_post_ra>
